<compile_context>
chip_gen: v7x
topology: tpu7x:2x2x1
jax: 0.10.0
libtpu: 0.0.40
codegen_flags: <defaults>
</compile_context>

<pallas_src>
import functools
from types import SimpleNamespace

import jax
import jax.numpy as jnp
from jax import lax
from jax.experimental import pallas as pl
from jax.experimental.pallas import tpu as pltpu

CP = 128          # lane width of every slab (lane-dense stores, no masked vst)
TAPC = 16         # packed channels per conv tap (all true widths are <= 16)
KP = 2 * CP       # packed im2col K: taps 0-7 in group 0, tap 8 in group 1
HIDDEN = 16       # hidden width of the stand-in conv stacks
VMEM_LIMIT = 32 * 1024 * 1024   # safe on v5e/v6e (128 MiB) and v7x (64 MiB)


def _round8(x):
    return ((x + 7) // 8) * 8


# ----------------------------------------------------------------------------
# In-kernel fused 3x3 conv layer: halo'd-scratch taps + K-packed single matmul
# ----------------------------------------------------------------------------

def _conv3x3_packed(xpad_ref, x, w_ref, b_ref, *, mask_l, mask_r, H, W, pad,
                    act):
    """One 3x3 'same' conv.

    x:        (H*W, CP) f32, true channels in lanes [0, TAPC), lanes >= TAPC
              are exactly zero (required for the roll-based tap packing).
    xpad_ref: (H*W + 2*pad, CP) f32 VMEM scratch; rows [0,pad) and
              [pad+HW, ...) are zero (written once per grid step).
    w_ref:    (2*CP, CP) bf16 K-packed weights (row TAPC*t + c <-> tap t<8,
              channel c; rows CP+c <-> tap 8, channel c).
    b_ref:    (1, CP) f32 bias (zero in padded output lanes).
    """
    HW = H * W
    xpad_ref[pl.ds(pad, HW), :] = x            # one store; taps are views below
    g0 = None
    g1 = None
    for t in range(9):
        dy, dx = divmod(t, 3)
        shift = (dy - 1) * W + (dx - 1)
        sh = xpad_ref[pl.ds(pad + shift, HW), :]        # row-shifted tap view
        # column-validity masks for the horizontal taps (f32 selects; v5e-safe)
        if dx == 0:
            sh = jnp.where(mask_l, sh, 0.0)
        elif dx == 2:
            sh = jnp.where(mask_r, sh, 0.0)
        if t == 0:
            g0 = sh
        elif t < 8:
            # lanes >= TAPC of sh are zero, so the rotate wrap adds only zeros:
            # channel c of tap t lands exactly at lane TAPC*t + c.
            g0 = g0 + pltpu.roll(sh, TAPC * t, axis=1)
        else:
            g1 = sh
    patch = jnp.concatenate([g0, g1], axis=-1).astype(jnp.bfloat16)  # (HW, 256)
    y = jnp.dot(patch, w_ref[...], preferred_element_type=jnp.float32)
    y = y + b_ref[...]
    if act == "lrelu":
        y = jnp.where(y >= 0.0, y, 0.2 * y)
    elif act == "tanh":
        y = jnp.tanh(y)
    return y


def _col_masks(H, W):
    HW = H * W
    w_idx = lax.broadcasted_iota(jnp.int32, (H, W, CP), 1).reshape(HW, CP)
    return w_idx >= 1, w_idx <= W - 2


# ----------------------------------------------------------------------------
# Fused generator kernel: 3 convs + blend epilogue + packed bf16 output slab
#   gin lanes : [img_masked(3) | label(L) | mask(1) | orig(3) | 0...]
#   out lanes : [gen(3) | blend(3) | label(L) | orig(3) | 0...]
# ----------------------------------------------------------------------------

def _gen_stack_kernel(gin_ref, w1, b1, w2, b2, w3, b3, out_ref, xpad_ref,
                      *, H, W, pad, lnc):
    HW = H * W
    x = gin_ref[...].reshape(HW, CP).astype(jnp.float32)
    # zero the halo rows once per grid step (they are never overwritten)
    xpad_ref[pl.ds(0, pad), :] = jnp.zeros((pad, CP), jnp.float32)
    xpad_ref[pl.ds(pad + HW, pad), :] = jnp.zeros((pad, CP), jnp.float32)

    mask_l, mask_r = _col_masks(H, W)
    conv = functools.partial(_conv3x3_packed, xpad_ref, mask_l=mask_l,
                             mask_r=mask_r, H=H, W=W, pad=pad)
    h = conv(x, w1, b1, act="lrelu")
    h = conv(h, w2, b2, act="lrelu")
    g = conv(h, w3, b3, act="tanh")            # gen in lanes 0-2, rest zero

    lane = lax.broadcasted_iota(jnp.int32, (HW, CP), 1)
    m = x[:, 3 + lnc:4 + lnc]                               # (HW,1) mask
    o3 = jnp.where(lane < 3, pltpu.roll(x, CP - (4 + lnc), axis=1), 0.0)
    blend = g * m + o3 * (1.0 - m)                          # lanes 0-2
    out = (g
           + pltpu.roll(blend, 3, axis=1)                   # blend -> lanes 3-5
           + jnp.where((lane >= 6) & (lane < 6 + lnc),
                       pltpu.roll(x, 3, axis=1), 0.0)       # label -> 6..5+L
           + jnp.where((lane >= 6 + lnc) & (lane < 9 + lnc),
                       pltpu.roll(x, 2, axis=1), 0.0))      # orig  -> 6+L..8+L
    out_ref[...] = out.astype(jnp.bfloat16).reshape(1, HW, CP)


# ----------------------------------------------------------------------------
# Fused per-scale discriminator kernel: fake + real stacks, in-kernel loss sums
#   sums lanes: [sum(o_fake), sum(hinge_fake), sum(hinge_real),
#                sum|f1_f - f1_r|, sum|f2_f - f2_r|, 0...]
# ----------------------------------------------------------------------------

def _disc_stack_kernel(din_ref, w1, b1, w2, b2, w3, b3, sums_ref, xpad_ref,
                       *, H, W, pad, lnc):
    HW = H * W
    s = din_ref[...].reshape(HW, CP).astype(jnp.float32)
    xpad_ref[pl.ds(0, pad), :] = jnp.zeros((pad, CP), jnp.float32)
    xpad_ref[pl.ds(pad + HW, pad), :] = jnp.zeros((pad, CP), jnp.float32)

    lane = lax.broadcasted_iota(jnp.int32, (HW, CP), 1)
    # real input = [label(L), orig(3)], fake input = [label(L), blend(3)]
    r6 = pltpu.roll(s, CP - 6, axis=1)                      # label/orig to lane 0
    real_x = jnp.where(lane < lnc + 3, r6, 0.0)
    fake_x = (jnp.where(lane < lnc, r6, 0.0)
              + jnp.where((lane >= lnc) & (lane < lnc + 3),
                          pltpu.roll(s, lnc - 3, axis=1), 0.0))

    mask_l, mask_r = _col_masks(H, W)
    conv = functools.partial(_conv3x3_packed, xpad_ref, mask_l=mask_l,
                             mask_r=mask_r, H=H, W=W, pad=pad)

    def stack(x0):
        f1 = conv(x0, w1, b1, act="lrelu")
        f2 = conv(f1, w2, b2, act="lrelu")
        o = conv(f2, w3, b3, act="none")
        return f1, f2, o

    f1f, f2f, o_f = stack(fake_x)
    f1r, f2r, o_r = stack(real_x)

    lane0 = lane == 0                                       # true output channel
    s_of = jnp.sum(jnp.where(lane0, o_f, 0.0))
    s_hf = jnp.sum(jnp.where(lane0, jnp.maximum(1.0 + o_f, 0.0), 0.0))
    s_hr = jnp.sum(jnp.where(lane0, jnp.maximum(1.0 - o_r, 0.0), 0.0))
    s_f1 = jnp.sum(jnp.abs(f1f - f1r))      # lanes >= HIDDEN are zero for both
    s_f2 = jnp.sum(jnp.abs(f2f - f2r))

    lr = lax.broadcasted_iota(jnp.int32, (1, CP), 1)
    row = (jnp.where(lr == 0, s_of, 0.0) + jnp.where(lr == 1, s_hf, 0.0)
           + jnp.where(lr == 2, s_hr, 0.0) + jnp.where(lr == 3, s_f1, 0.0)
           + jnp.where(lr == 4, s_f2, 0.0))
    sums_ref[...] = row.reshape(1, 1, CP)


# ----------------------------------------------------------------------------
# Pallas wrappers
# ----------------------------------------------------------------------------

def _slab_spec(HW):
    return pl.BlockSpec((1, HW, CP), lambda n: (n, 0, 0))


def _w_spec():
    # constant index map -> block stays resident across the grid.
    # (pipeline_mode=pl.Buffered(1) would save the second weight buffer; the
    #  weights are only 64 KiB bf16 each after K-packing, so it is left off.)
    return pl.BlockSpec((KP, CP), lambda n: (0, 0))


def _b_spec():
    return pl.BlockSpec((1, CP), lambda n: (0, 0))


def generator_forward(gin, params, H, W, lnc):
    """Fused 3-conv generator + blend; one packed bf16 output slab."""
    N, HW, _ = gin.shape
    assert HW == H * W and HW % 8 == 0
    pad = _round8(W + 1)
    kern = functools.partial(_gen_stack_kernel, H=H, W=W, pad=pad, lnc=lnc)
    return pl.pallas_call(
        kern,
        out_shape=jax.ShapeDtypeStruct((N, HW, CP), jnp.bfloat16),
        grid=(N,),
        in_specs=[_slab_spec(HW),
                  _w_spec(), _b_spec(), _w_spec(), _b_spec(),
                  _w_spec(), _b_spec()],
        out_specs=_slab_spec(HW),
        scratch_shapes=[pltpu.VMEM((HW + 2 * pad, CP), jnp.float32)],
        compiler_params=pltpu.CompilerParams(
            dimension_semantics=("parallel",),
            vmem_limit_bytes=VMEM_LIMIT),
    )(gin, *params)


def discriminator_scale_forward(din, params, H, W, lnc):
    """Fused per-scale D (fake+real) with in-kernel partial loss sums."""
    N, HW, _ = din.shape
    assert HW == H * W and HW % 8 == 0
    pad = _round8(W + 1)
    kern = functools.partial(_disc_stack_kernel, H=H, W=W, pad=pad, lnc=lnc)
    return pl.pallas_call(
        kern,
        out_shape=jax.ShapeDtypeStruct((N, 1, CP), jnp.float32),
        grid=(N,),
        in_specs=[_slab_spec(HW),
                  _w_spec(), _b_spec(), _w_spec(), _b_spec(),
                  _w_spec(), _b_spec()],
        out_specs=pl.BlockSpec((1, 1, CP), lambda n: (n, 0, 0)),
        scratch_shapes=[pltpu.VMEM((HW + 2 * pad, CP), jnp.float32)],
        compiler_params=pltpu.CompilerParams(
            dimension_semantics=("parallel",),
            vmem_limit_bytes=VMEM_LIMIT),
    )(din, *params)


# ----------------------------------------------------------------------------
# XLA glue: layout helpers, pooling, parameter packing
# ----------------------------------------------------------------------------

def _nchw_to_nhwc(t):
    return jnp.transpose(t, (0, 2, 3, 1)).astype(jnp.float32)


def _to_slab(parts, dtype=jnp.bfloat16):
    """Concat NHWC parts on channels, zero-pad to CP, flatten to (N, H*W, CP)."""
    x = jnp.concatenate(parts, axis=-1)
    N, H, W, C = x.shape
    assert C <= CP
    if C < CP:
        x = jnp.pad(x, ((0, 0), (0, 0), (0, 0), (0, CP - C)))
    return x.reshape(N, H * W, CP).astype(dtype)


def _gen_lanes(slab, H, W, lo, hi):
    N = slab.shape[0]
    return slab.reshape(N, H, W, CP)[..., lo:hi].astype(jnp.float32)


def _avg_pool2_slab(slab, H, W):
    # TODO(synk): fuse into the scale-2 discriminator kernel prologue.
    N = slab.shape[0]
    x = slab.astype(jnp.float32).reshape(N, H // 2, 2, W // 2, 2, CP)
    x = x.mean(axis=(2, 4))
    return x.reshape(N, (H // 2) * (W // 2), CP).astype(slab.dtype)


def _init_packed_conv(key, cin, cout, std=0.02):
    """3x3 conv weights K-packed to (2*CP, CP) bf16 + (1, CP) f32 bias."""
    assert cin <= TAPC and cout <= CP
    w = std * jax.random.normal(key, (3, 3, cin, cout), jnp.float32)
    w9 = jnp.zeros((9, TAPC, CP), jnp.float32)
    w9 = w9.at[:, :cin, :cout].set(w.reshape(9, cin, cout))
    g0 = w9[:8].reshape(8 * TAPC, CP)                       # = (CP, CP)
    g1 = jnp.zeros((CP, CP), jnp.float32).at[:TAPC].set(w9[8])
    wp = jnp.concatenate([g0, g1], axis=0).astype(jnp.bfloat16)  # (2*CP, CP)
    bp = jnp.zeros((1, CP), jnp.float32)
    return wp, bp


# ----------------------------------------------------------------------------
# Model
# ----------------------------------------------------------------------------

class Pix2PixModelPallas:
    """JAX/Pallas re-implementation of Pix2PixModel.forward (outpainting)."""

    def __init__(self, opt):
        self.opt = opt
        if not hasattr(self.opt, "segmentation"):
            self.opt.segmentation = False
        if not hasattr(self.opt, "ce_loss"):
            self.opt.ce_loss = False

        L = opt.label_nc
        # packed-slab lane budgets (true channels must fit inside one tap group)
        assert 9 + L <= TAPC, "label_nc too large for the packed slab layout"
        g_in = 3 + L + 1                      # img_masked ++ one-hot ++ mask
        d_in = L + 3                          # one-hot ++ image
        assert g_in <= TAPC and d_in <= TAPC

        pkey = jax.random.PRNGKey(42)
        ks = jax.random.split(pkey, 16)
        # generator stand-in (SPADEOutpaintingGenerator replacement)
        self.g_params = (
            *_init_packed_conv(ks[0], g_in, HIDDEN),
            *_init_packed_conv(ks[1], HIDDEN, HIDDEN),
            *_init_packed_conv(ks[2], HIDDEN, 3),
        )
        # 2-scale multiscale discriminator stand-in
        self.d_params = []
        if opt.isTrain:
            for s in range(2):
                base = 3 + 3 * s
                self.d_params.append((
                    *_init_packed_conv(ks[base], d_in, HIDDEN),
                    *_init_packed_conv(ks[base + 1], HIDDEN, HIDDEN),
                    *_init_packed_conv(ks[base + 2], HIDDEN, 1),
                ))

    # ---- networks -----------------------------------------------------------

    def _netG(self, img_masked, label_one_hot, img_orig, mask):
        """Returns the packed bf16 slab [gen | blend | label | orig]."""
        gin = _to_slab([img_masked, label_one_hot, mask, img_orig])
        N, H, W, _ = img_masked.shape
        return generator_forward(gin, self.g_params, H, W, self.opt.label_nc)

    def _disc_sums(self, packed, H, W):
        """Per-scale in-kernel partial loss sums; returns [(sums, HW_s), ...]."""
        out = []
        cur, Hs, Ws = packed, H, W
        for s, params in enumerate(self.d_params):
            if s > 0:
                cur = _avg_pool2_slab(cur, Hs, Ws)
                Hs, Ws = Hs // 2, Ws // 2
            sums = discriminator_scale_forward(cur, params, Hs, Ws,
                                               self.opt.label_nc)
            out.append((sums, Hs * Ws))
        return out

    # ---- loss assembly from in-kernel partial sums --------------------------

    def _combine_sums(self, scale_sums, N):
        num_D = len(scale_sums)
        g_gan = jnp.float32(0.0)
        d_fake = jnp.float32(0.0)
        d_real = jnp.float32(0.0)
        feat = jnp.float32(0.0)
        for sums, HWs in scale_sums:
            tot = jnp.sum(sums[:, 0, :], axis=0)            # (CP,)
            n_o = jnp.float32(N * HWs)                      # numel of D output
            n_f = jnp.float32(N * HWs * HIDDEN)             # numel of features
            g_gan = g_gan + (-tot[0] / n_o)                 # hinge G: -mean(o_f)
            d_fake = d_fake + tot[1] / n_o                  # mean max(1+o_f,0)
            d_real = d_real + tot[2] / n_o                  # mean max(1-o_r,0)
            feat = feat + (tot[3] + tot[4]) / n_f * self.opt.lambda_feat
        return (g_gan / num_D, d_fake / num_D, d_real / num_D, feat / num_D)

    # ---- pix2pix logic ------------------------------------------------------

    def _compute_generator_loss(self, img_orig, img_masked, label_one_hot,
                                label_one_hot_masked, mask, label=None):
        G_losses = {}
        lab = label_one_hot_masked if self.opt.segmentation else label_one_hot
        packed = self._netG(img_masked, lab, img_orig, mask)
        N, H, W, _ = img_orig.shape
        img_gen = _gen_lanes(packed, H, W, 0, 3)            # (N, H, W, 3) f32

        scale_sums = self._disc_sums(packed, H, W)
        g_gan, _, _, feat = self._combine_sums(scale_sums, N)
        G_losses["GAN"] = g_gan
        if self.opt.l1_loss:
            G_losses["L1Loss"] = self.opt.lambda_l1 * jnp.mean(
                jnp.abs(img_gen - img_orig))
        # opt.ce_loss is False -> skipped, matching the reference config.
        if not self.opt.no_ganFeat_loss:
            G_losses["GAN_Feat"] = feat
        # opt.no_vgg_loss is True -> VGG loss skipped.
        return G_losses, img_gen

    def _compute_discriminator_loss(self, img_orig, img_masked, label_one_hot,
                                    label_one_hot_masked, mask):
        D_losses = {}
        lab = label_one_hot_masked if self.opt.segmentation else label_one_hot
        packed = self._netG(img_masked, lab, img_orig, mask)
        packed = lax.stop_gradient(packed)                  # fake_image.detach()
        N, H, W, _ = img_orig.shape
        scale_sums = self._disc_sums(packed, H, W)
        _, d_fake, d_real, _ = self._combine_sums(scale_sums, N)
        D_losses["D_Fake"] = d_fake
        D_losses["D_real"] = d_real
        return D_losses

    # ---- public forward (mirrors Pix2PixModel.forward) ----------------------

    def forward(self, data, mode):
        if len(data) == 7:
            (img_orig, img_masked, label, label_masked, label_one_hot,
             label_one_hot_masked, mask) = data
            img_orig = _nchw_to_nhwc(img_orig)
            img_masked = _nchw_to_nhwc(img_masked)
            label_one_hot = _nchw_to_nhwc(label_one_hot)
            label_one_hot_masked = _nchw_to_nhwc(label_one_hot_masked)
            mask = _nchw_to_nhwc(mask)
        else:
            img_orig, img_masked, mask = data
            img_orig = _nchw_to_nhwc(img_orig)
            img_masked = _nchw_to_nhwc(img_masked)
            mask = _nchw_to_nhwc(mask)
            N, H, W, _ = img_orig.shape
            # stand-in generator needs label channels; substitute zeros.
            label_one_hot = jnp.zeros((N, H, W, self.opt.label_nc), jnp.float32)
            label_one_hot_masked = jnp.zeros_like(label_one_hot)
            label = None

        if mode == "generator":
            g_loss, generated = self._compute_generator_loss(
                img_orig, img_masked, label_one_hot, label_one_hot_masked,
                mask, label)
            return g_loss, jnp.transpose(generated, (0, 3, 1, 2))
        elif mode == "discriminator":
            return self._compute_discriminator_loss(
                img_orig, img_masked, label_one_hot, label_one_hot_masked,
                mask)
        elif mode == "inference":
            N, H, W, _ = img_orig.shape
            if self.opt.outpainting:
                packed = self._netG(img_masked, label_one_hot, img_orig, mask)
                fake_image = _gen_lanes(packed, H, W, 0, 3)
            elif self.opt.segmentation:
                packed = self._netG(img_masked, label_one_hot_masked, img_orig,
                                    mask)
                fake_image = _gen_lanes(packed, H, W, 0, 3)
                return jnp.argmax(fake_image, axis=-1)
            else:
                raise NotImplementedError
            return jnp.transpose(fake_image, (0, 3, 1, 2))
        else:
            raise ValueError("|mode| is invalid")


# ----------------------------------------------------------------------------
# main
# ----------------------------------------------------------------------------

if __name__ == "__main__":
    opt = SimpleNamespace(
        outpainting=True, segmentation=False, isTrain=True, contextD=False,
        l1_loss=True, ce_loss=False, no_ganFeat_loss=False, no_vgg_loss=True,
        gan_mode="hinge", lambda_l1=10.0, lambda_feat=10.0, lambda_vgg=10.0,
        use_gpu=False, label_nc=4,
    )

    N, L, H, W = 2, opt.label_nc, 16, 16
    key = jax.random.PRNGKey(0)
    k0, k1, k2 = jax.random.split(key, 3)

    img_orig = jax.random.normal(k0, (N, 3, H, W), jnp.float32)
    mask = (jax.random.uniform(k1, (N, 1, H, W)) > 0.5).astype(jnp.float32)
    img_masked = img_orig * (1.0 - mask)
    label = jax.random.randint(k2, (N, H, W), 0, L)
    label_one_hot = jax.nn.one_hot(label, L, axis=1, dtype=jnp.float32)
    label_masked = (label.astype(jnp.float32) * (1.0 - mask[:, 0])).astype(jnp.int32)
    label_one_hot_masked = label_one_hot * (1.0 - mask)

    data = (img_orig, img_masked, label, label_masked, label_one_hot,
            label_one_hot_masked, mask)

    model = Pix2PixModelPallas(opt)

    g_losses, generated = model.forward(data, "generator")
    d_losses = model.forward(data, "discriminator")
    fake = model.forward(data, "inference")

    jax.block_until_ready((g_losses, generated, d_losses, fake))
    assert generated.shape == (N, 3, H, W)
    assert fake.shape == (N, 3, H, W)
    assert set(g_losses.keys()) == {"GAN", "L1Loss", "GAN_Feat"}
    assert set(d_losses.keys()) == {"D_Fake", "D_real"}
    print("KERNEL_OK")
</pallas_src>

<mosaic_0001>
module attributes {stable_mosaic.version = 11 : i64} {
  func.func @_gen_stack_kernel(%arg0: i32, %arg1: memref<1x256x128xbf16, #tpu.memory_space<vmem>>, %arg2: memref<256x128xbf16, #tpu.memory_space<vmem>>, %arg3: memref<1x128xf32, #tpu.memory_space<vmem>>, %arg4: memref<256x128xbf16, #tpu.memory_space<vmem>>, %arg5: memref<1x128xf32, #tpu.memory_space<vmem>>, %arg6: memref<256x128xbf16, #tpu.memory_space<vmem>>, %arg7: memref<1x128xf32, #tpu.memory_space<vmem>>, %arg8: memref<1x256x128xbf16, #tpu.memory_space<vmem>>, %arg9: memref<304x128xf32, #tpu.memory_space<vmem>>) attributes {dimension_semantics = [#tpu.dimension_semantics<parallel>], iteration_bounds = array<i64: 2>, scalar_prefetch = 0 : i64, scratch_operands = 1 : i64, tpu.core_type = #tpu.core_type<tc>, window_params = [{transform_indices = @transform_0, window_bounds = array<i64: 1, 256, 128>}, {pipeline_mode = #tpu.pipeline_mode<synchronous>, transform_indices = @transform_1, window_bounds = array<i64: 256, 128>}, {pipeline_mode = #tpu.pipeline_mode<synchronous>, transform_indices = @transform_2, window_bounds = array<i64: 1, 128>}, {pipeline_mode = #tpu.pipeline_mode<synchronous>, transform_indices = @transform_3, window_bounds = array<i64: 256, 128>}, {pipeline_mode = #tpu.pipeline_mode<synchronous>, transform_indices = @transform_4, window_bounds = array<i64: 1, 128>}, {pipeline_mode = #tpu.pipeline_mode<synchronous>, transform_indices = @transform_5, window_bounds = array<i64: 256, 128>}, {pipeline_mode = #tpu.pipeline_mode<synchronous>, transform_indices = @transform_6, window_bounds = array<i64: 1, 128>}, {transform_indices = @transform_7, window_bounds = array<i64: 1, 256, 128>}]} {
    %c0 = arith.constant 0 : index
    %c0_0 = arith.constant 0 : index
    %c0_1 = arith.constant 0 : index
    %0 = vector.load %arg1[%c0, %c0_0, %c0_1] : memref<1x256x128xbf16, #tpu.memory_space<vmem>>, vector<1x256x128xbf16>
    %1 = vector.shape_cast %0 : vector<1x256x128xbf16> to vector<256x128xbf16>
    %2 = arith.extf %1 : vector<256x128xbf16> to vector<256x128xf32>
    %cst = arith.constant 0.000000e+00 : f32
    %3 = vector.broadcast %cst : f32 to vector<24x128xf32>
    %c0_2 = arith.constant 0 : index
    %c0_3 = arith.constant 0 : index
    %4 = vector.load %arg9[%c0_2, %c0_3] : memref<304x128xf32, #tpu.memory_space<vmem>>, vector<24x128xf32>
    tpu.vector_store %arg9[%c0_2, %c0_3], %3 {strides = array<i32>} : memref<304x128xf32, #tpu.memory_space<vmem>>, vector<24x128xf32>,
    %cst_4 = arith.constant 0.000000e+00 : f32
    %5 = vector.broadcast %cst_4 : f32 to vector<24x128xf32>
    %c280 = arith.constant 280 : index
    %c0_5 = arith.constant 0 : index
    %6 = vector.load %arg9[%c280, %c0_5] : memref<304x128xf32, #tpu.memory_space<vmem>>, vector<24x128xf32>
    tpu.vector_store %arg9[%c280, %c0_5], %5 {strides = array<i32>} : memref<304x128xf32, #tpu.memory_space<vmem>>, vector<24x128xf32>,
    %7 = tpu.iota {dimensions = array<i32: 1>} : vector<16x16x128xi32>
    %8 = vector.shape_cast %7 : vector<16x16x128xi32> to vector<256x128xi32>
    %c1_i32 = arith.constant 1 : i32
    %9 = vector.broadcast %c1_i32 : i32 to vector<256x128xi32>
    %10 = arith.cmpi sge, %8, %9 : vector<256x128xi32>
    %c14_i32 = arith.constant 14 : i32
    %11 = vector.broadcast %c14_i32 : i32 to vector<256x128xi32>
    %12 = arith.cmpi sle, %8, %11 : vector<256x128xi32>
    %c24 = arith.constant 24 : index
    %c0_6 = arith.constant 0 : index
    %13 = vector.load %arg9[%c24, %c0_6] : memref<304x128xf32, #tpu.memory_space<vmem>>, vector<256x128xf32>
    tpu.vector_store %arg9[%c24, %c0_6], %2 {strides = array<i32>} : memref<304x128xf32, #tpu.memory_space<vmem>>, vector<256x128xf32>,
    %c7 = arith.constant 7 : index
    %c0_7 = arith.constant 0 : index
    %14 = vector.load %arg9[%c7, %c0_7] : memref<304x128xf32, #tpu.memory_space<vmem>>, vector<256x128xf32>
    %cst_8 = arith.constant 0.000000e+00 : f32
    %15 = vector.broadcast %cst_8 : f32 to vector<256x128xf32>
    %16 = arith.select %10, %14, %15 : vector<256x128xi1>, vector<256x128xf32>
    %c8 = arith.constant 8 : index
    %c0_9 = arith.constant 0 : index
    %17 = vector.load %arg9[%c8, %c0_9] : memref<304x128xf32, #tpu.memory_space<vmem>>, vector<256x128xf32>
    %c16_i32 = arith.constant 16 : i32
    %18 = tpu.dynamic_rotate %17 by %c16_i32 dim 1 : vector<256x128xf32>, i32 -> vector<256x128xf32>
    %19 = arith.addf %16, %18 : vector<256x128xf32>
    %c9 = arith.constant 9 : index
    %c0_10 = arith.constant 0 : index
    %20 = vector.load %arg9[%c9, %c0_10] : memref<304x128xf32, #tpu.memory_space<vmem>>, vector<256x128xf32>
    %cst_11 = arith.constant 0.000000e+00 : f32
    %21 = vector.broadcast %cst_11 : f32 to vector<256x128xf32>
    %22 = arith.select %12, %20, %21 : vector<256x128xi1>, vector<256x128xf32>
    %c32_i32 = arith.constant 32 : i32
    %23 = tpu.dynamic_rotate %22 by %c32_i32 dim 1 : vector<256x128xf32>, i32 -> vector<256x128xf32>
    %24 = arith.addf %19, %23 : vector<256x128xf32>
    %c23 = arith.constant 23 : index
    %c0_12 = arith.constant 0 : index
    %25 = vector.load %arg9[%c23, %c0_12] : memref<304x128xf32, #tpu.memory_space<vmem>>, vector<256x128xf32>
    %cst_13 = arith.constant 0.000000e+00 : f32
    %26 = vector.broadcast %cst_13 : f32 to vector<256x128xf32>
    %27 = arith.select %10, %25, %26 : vector<256x128xi1>, vector<256x128xf32>
    %c48_i32 = arith.constant 48 : i32
    %28 = tpu.dynamic_rotate %27 by %c48_i32 dim 1 : vector<256x128xf32>, i32 -> vector<256x128xf32>
    %29 = arith.addf %24, %28 : vector<256x128xf32>
    %c24_14 = arith.constant 24 : index
    %c0_15 = arith.constant 0 : index
    %30 = vector.load %arg9[%c24_14, %c0_15] : memref<304x128xf32, #tpu.memory_space<vmem>>, vector<256x128xf32>
    %c64_i32 = arith.constant 64 : i32
    %31 = tpu.dynamic_rotate %30 by %c64_i32 dim 1 : vector<256x128xf32>, i32 -> vector<256x128xf32>
    %32 = arith.addf %29, %31 : vector<256x128xf32>
    %c25 = arith.constant 25 : index
    %c0_16 = arith.constant 0 : index
    %33 = vector.load %arg9[%c25, %c0_16] : memref<304x128xf32, #tpu.memory_space<vmem>>, vector<256x128xf32>
    %cst_17 = arith.constant 0.000000e+00 : f32
    %34 = vector.broadcast %cst_17 : f32 to vector<256x128xf32>
    %35 = arith.select %12, %33, %34 : vector<256x128xi1>, vector<256x128xf32>
    %c80_i32 = arith.constant 80 : i32
    %36 = tpu.dynamic_rotate %35 by %c80_i32 dim 1 : vector<256x128xf32>, i32 -> vector<256x128xf32>
    %37 = arith.addf %32, %36 : vector<256x128xf32>
    %c39 = arith.constant 39 : index
    %c0_18 = arith.constant 0 : index
    %38 = vector.load %arg9[%c39, %c0_18] : memref<304x128xf32, #tpu.memory_space<vmem>>, vector<256x128xf32>
    %cst_19 = arith.constant 0.000000e+00 : f32
    %39 = vector.broadcast %cst_19 : f32 to vector<256x128xf32>
    %40 = arith.select %10, %38, %39 : vector<256x128xi1>, vector<256x128xf32>
    %c96_i32 = arith.constant 96 : i32
    %41 = tpu.dynamic_rotate %40 by %c96_i32 dim 1 : vector<256x128xf32>, i32 -> vector<256x128xf32>
    %42 = arith.addf %37, %41 : vector<256x128xf32>
    %c40 = arith.constant 40 : index
    %c0_20 = arith.constant 0 : index
    %43 = vector.load %arg9[%c40, %c0_20] : memref<304x128xf32, #tpu.memory_space<vmem>>, vector<256x128xf32>
    %c112_i32 = arith.constant 112 : i32
    %44 = tpu.dynamic_rotate %43 by %c112_i32 dim 1 : vector<256x128xf32>, i32 -> vector<256x128xf32>
    %45 = arith.addf %42, %44 : vector<256x128xf32>
    %c41 = arith.constant 41 : index
    %c0_21 = arith.constant 0 : index
    %46 = vector.load %arg9[%c41, %c0_21] : memref<304x128xf32, #tpu.memory_space<vmem>>, vector<256x128xf32>
    %cst_22 = arith.constant 0.000000e+00 : f32
    %47 = vector.broadcast %cst_22 : f32 to vector<256x128xf32>
    %48 = arith.select %12, %46, %47 : vector<256x128xi1>, vector<256x128xf32>
    %49 = tpu.concatenate %45, %48 in 1 : vector<256x128xf32>, vector<256x128xf32> -> vector<256x256xf32>
    %50 = arith.truncf %49 : vector<256x256xf32> to vector<256x256xbf16>
    %c0_23 = arith.constant 0 : index
    %c0_24 = arith.constant 0 : index
    %51 = vector.load %arg2[%c0_23, %c0_24] : memref<256x128xbf16, #tpu.memory_space<vmem>>, vector<256x128xbf16>
    %cst_25 = arith.constant dense<0.000000e+00> : vector<256x128xf32>
    %52 = tpu.matmul %50, %51, %cst_25 {dimension_numbers = #tpu.dot_dimension_numbers<[1], [0], [0], [1], [0, 0, 1, 1], [], []>} : vector<256x256xbf16>, vector<256x128xbf16>, vector<256x128xf32> -> vector<256x128xf32>
    %c0_26 = arith.constant 0 : index
    %c0_27 = arith.constant 0 : index
    %53 = vector.load %arg3[%c0_26, %c0_27] : memref<1x128xf32, #tpu.memory_space<vmem>>, vector<1x128xf32>
    %54 = vector.broadcast %53 : vector<1x128xf32> to vector<256x128xf32>
    %55 = arith.addf %52, %54 : vector<256x128xf32>
    %cst_28 = arith.constant 0.000000e+00 : f32
    %56 = vector.broadcast %cst_28 : f32 to vector<256x128xf32>
    %57 = arith.cmpf oge, %55, %56 : vector<256x128xf32>
    %cst_29 = arith.constant 2.000000e-01 : f32
    %58 = vector.broadcast %cst_29 : f32 to vector<256x128xf32>
    %59 = arith.mulf %58, %55 : vector<256x128xf32>
    %60 = arith.select %57, %55, %59 : vector<256x128xi1>, vector<256x128xf32>
    %c24_30 = arith.constant 24 : index
    %c0_31 = arith.constant 0 : index
    %61 = vector.load %arg9[%c24_30, %c0_31] : memref<304x128xf32, #tpu.memory_space<vmem>>, vector<256x128xf32>
    tpu.vector_store %arg9[%c24_30, %c0_31], %60 {strides = array<i32>} : memref<304x128xf32, #tpu.memory_space<vmem>>, vector<256x128xf32>,
    %c7_32 = arith.constant 7 : index
    %c0_33 = arith.constant 0 : index
    %62 = vector.load %arg9[%c7_32, %c0_33] : memref<304x128xf32, #tpu.memory_space<vmem>>, vector<256x128xf32>
    %cst_34 = arith.constant 0.000000e+00 : f32
    %63 = vector.broadcast %cst_34 : f32 to vector<256x128xf32>
    %64 = arith.select %10, %62, %63 : vector<256x128xi1>, vector<256x128xf32>
    %c8_35 = arith.constant 8 : index
    %c0_36 = arith.constant 0 : index
    %65 = vector.load %arg9[%c8_35, %c0_36] : memref<304x128xf32, #tpu.memory_space<vmem>>, vector<256x128xf32>
    %c16_i32_37 = arith.constant 16 : i32
    %66 = tpu.dynamic_rotate %65 by %c16_i32_37 dim 1 : vector<256x128xf32>, i32 -> vector<256x128xf32>
    %67 = arith.addf %64, %66 : vector<256x128xf32>
    %c9_38 = arith.constant 9 : index
    %c0_39 = arith.constant 0 : index
    %68 = vector.load %arg9[%c9_38, %c0_39] : memref<304x128xf32, #tpu.memory_space<vmem>>, vector<256x128xf32>
    %cst_40 = arith.constant 0.000000e+00 : f32
    %69 = vector.broadcast %cst_40 : f32 to vector<256x128xf32>
    %70 = arith.select %12, %68, %69 : vector<256x128xi1>, vector<256x128xf32>
    %c32_i32_41 = arith.constant 32 : i32
    %71 = tpu.dynamic_rotate %70 by %c32_i32_41 dim 1 : vector<256x128xf32>, i32 -> vector<256x128xf32>
    %72 = arith.addf %67, %71 : vector<256x128xf32>
    %c23_42 = arith.constant 23 : index
    %c0_43 = arith.constant 0 : index
    %73 = vector.load %arg9[%c23_42, %c0_43] : memref<304x128xf32, #tpu.memory_space<vmem>>, vector<256x128xf32>
    %cst_44 = arith.constant 0.000000e+00 : f32
    %74 = vector.broadcast %cst_44 : f32 to vector<256x128xf32>
    %75 = arith.select %10, %73, %74 : vector<256x128xi1>, vector<256x128xf32>
    %c48_i32_45 = arith.constant 48 : i32
    %76 = tpu.dynamic_rotate %75 by %c48_i32_45 dim 1 : vector<256x128xf32>, i32 -> vector<256x128xf32>
    %77 = arith.addf %72, %76 : vector<256x128xf32>
    %c24_46 = arith.constant 24 : index
    %c0_47 = arith.constant 0 : index
    %78 = vector.load %arg9[%c24_46, %c0_47] : memref<304x128xf32, #tpu.memory_space<vmem>>, vector<256x128xf32>
    %c64_i32_48 = arith.constant 64 : i32
    %79 = tpu.dynamic_rotate %78 by %c64_i32_48 dim 1 : vector<256x128xf32>, i32 -> vector<256x128xf32>
    %80 = arith.addf %77, %79 : vector<256x128xf32>
    %c25_49 = arith.constant 25 : index
    %c0_50 = arith.constant 0 : index
    %81 = vector.load %arg9[%c25_49, %c0_50] : memref<304x128xf32, #tpu.memory_space<vmem>>, vector<256x128xf32>
    %cst_51 = arith.constant 0.000000e+00 : f32
    %82 = vector.broadcast %cst_51 : f32 to vector<256x128xf32>
    %83 = arith.select %12, %81, %82 : vector<256x128xi1>, vector<256x128xf32>
    %c80_i32_52 = arith.constant 80 : i32
    %84 = tpu.dynamic_rotate %83 by %c80_i32_52 dim 1 : vector<256x128xf32>, i32 -> vector<256x128xf32>
    %85 = arith.addf %80, %84 : vector<256x128xf32>
    %c39_53 = arith.constant 39 : index
    %c0_54 = arith.constant 0 : index
    %86 = vector.load %arg9[%c39_53, %c0_54] : memref<304x128xf32, #tpu.memory_space<vmem>>, vector<256x128xf32>
    %cst_55 = arith.constant 0.000000e+00 : f32
    %87 = vector.broadcast %cst_55 : f32 to vector<256x128xf32>
    %88 = arith.select %10, %86, %87 : vector<256x128xi1>, vector<256x128xf32>
    %c96_i32_56 = arith.constant 96 : i32
    %89 = tpu.dynamic_rotate %88 by %c96_i32_56 dim 1 : vector<256x128xf32>, i32 -> vector<256x128xf32>
    %90 = arith.addf %85, %89 : vector<256x128xf32>
    %c40_57 = arith.constant 40 : index
    %c0_58 = arith.constant 0 : index
    %91 = vector.load %arg9[%c40_57, %c0_58] : memref<304x128xf32, #tpu.memory_space<vmem>>, vector<256x128xf32>
    %c112_i32_59 = arith.constant 112 : i32
    %92 = tpu.dynamic_rotate %91 by %c112_i32_59 dim 1 : vector<256x128xf32>, i32 -> vector<256x128xf32>
    %93 = arith.addf %90, %92 : vector<256x128xf32>
    %c41_60 = arith.constant 41 : index
    %c0_61 = arith.constant 0 : index
    %94 = vector.load %arg9[%c41_60, %c0_61] : memref<304x128xf32, #tpu.memory_space<vmem>>, vector<256x128xf32>
    %cst_62 = arith.constant 0.000000e+00 : f32
    %95 = vector.broadcast %cst_62 : f32 to vector<256x128xf32>
    %96 = arith.select %12, %94, %95 : vector<256x128xi1>, vector<256x128xf32>
    %97 = tpu.concatenate %93, %96 in 1 : vector<256x128xf32>, vector<256x128xf32> -> vector<256x256xf32>
    %98 = arith.truncf %97 : vector<256x256xf32> to vector<256x256xbf16>
    %c0_63 = arith.constant 0 : index
    %c0_64 = arith.constant 0 : index
    %99 = vector.load %arg4[%c0_63, %c0_64] : memref<256x128xbf16, #tpu.memory_space<vmem>>, vector<256x128xbf16>
    %cst_65 = arith.constant dense<0.000000e+00> : vector<256x128xf32>
    %100 = tpu.matmul %98, %99, %cst_65 {dimension_numbers = #tpu.dot_dimension_numbers<[1], [0], [0], [1], [0, 0, 1, 1], [], []>} : vector<256x256xbf16>, vector<256x128xbf16>, vector<256x128xf32> -> vector<256x128xf32>
    %c0_66 = arith.constant 0 : index
    %c0_67 = arith.constant 0 : index
    %101 = vector.load %arg5[%c0_66, %c0_67] : memref<1x128xf32, #tpu.memory_space<vmem>>, vector<1x128xf32>
    %102 = vector.broadcast %101 : vector<1x128xf32> to vector<256x128xf32>
    %103 = arith.addf %100, %102 : vector<256x128xf32>
    %cst_68 = arith.constant 0.000000e+00 : f32
    %104 = vector.broadcast %cst_68 : f32 to vector<256x128xf32>
    %105 = arith.cmpf oge, %103, %104 : vector<256x128xf32>
    %cst_69 = arith.constant 2.000000e-01 : f32
    %106 = vector.broadcast %cst_69 : f32 to vector<256x128xf32>
    %107 = arith.mulf %106, %103 : vector<256x128xf32>
    %108 = arith.select %105, %103, %107 : vector<256x128xi1>, vector<256x128xf32>
    %c24_70 = arith.constant 24 : index
    %c0_71 = arith.constant 0 : index
    %109 = vector.load %arg9[%c24_70, %c0_71] : memref<304x128xf32, #tpu.memory_space<vmem>>, vector<256x128xf32>
    tpu.vector_store %arg9[%c24_70, %c0_71], %108 {strides = array<i32>} : memref<304x128xf32, #tpu.memory_space<vmem>>, vector<256x128xf32>,
    %c7_72 = arith.constant 7 : index
    %c0_73 = arith.constant 0 : index
    %110 = vector.load %arg9[%c7_72, %c0_73] : memref<304x128xf32, #tpu.memory_space<vmem>>, vector<256x128xf32>
    %cst_74 = arith.constant 0.000000e+00 : f32
    %111 = vector.broadcast %cst_74 : f32 to vector<256x128xf32>
    %112 = arith.select %10, %110, %111 : vector<256x128xi1>, vector<256x128xf32>
    %c8_75 = arith.constant 8 : index
    %c0_76 = arith.constant 0 : index
    %113 = vector.load %arg9[%c8_75, %c0_76] : memref<304x128xf32, #tpu.memory_space<vmem>>, vector<256x128xf32>
    %c16_i32_77 = arith.constant 16 : i32
    %114 = tpu.dynamic_rotate %113 by %c16_i32_77 dim 1 : vector<256x128xf32>, i32 -> vector<256x128xf32>
    %115 = arith.addf %112, %114 : vector<256x128xf32>
    %c9_78 = arith.constant 9 : index
    %c0_79 = arith.constant 0 : index
    %116 = vector.load %arg9[%c9_78, %c0_79] : memref<304x128xf32, #tpu.memory_space<vmem>>, vector<256x128xf32>
    %cst_80 = arith.constant 0.000000e+00 : f32
    %117 = vector.broadcast %cst_80 : f32 to vector<256x128xf32>
    %118 = arith.select %12, %116, %117 : vector<256x128xi1>, vector<256x128xf32>
    %c32_i32_81 = arith.constant 32 : i32
    %119 = tpu.dynamic_rotate %118 by %c32_i32_81 dim 1 : vector<256x128xf32>, i32 -> vector<256x128xf32>
    %120 = arith.addf %115, %119 : vector<256x128xf32>
    %c23_82 = arith.constant 23 : index
    %c0_83 = arith.constant 0 : index
    %121 = vector.load %arg9[%c23_82, %c0_83] : memref<304x128xf32, #tpu.memory_space<vmem>>, vector<256x128xf32>
    %cst_84 = arith.constant 0.000000e+00 : f32
    %122 = vector.broadcast %cst_84 : f32 to vector<256x128xf32>
    %123 = arith.select %10, %121, %122 : vector<256x128xi1>, vector<256x128xf32>
    %c48_i32_85 = arith.constant 48 : i32
    %124 = tpu.dynamic_rotate %123 by %c48_i32_85 dim 1 : vector<256x128xf32>, i32 -> vector<256x128xf32>
    %125 = arith.addf %120, %124 : vector<256x128xf32>
    %c24_86 = arith.constant 24 : index
    %c0_87 = arith.constant 0 : index
    %126 = vector.load %arg9[%c24_86, %c0_87] : memref<304x128xf32, #tpu.memory_space<vmem>>, vector<256x128xf32>
    %c64_i32_88 = arith.constant 64 : i32
    %127 = tpu.dynamic_rotate %126 by %c64_i32_88 dim 1 : vector<256x128xf32>, i32 -> vector<256x128xf32>
    %128 = arith.addf %125, %127 : vector<256x128xf32>
    %c25_89 = arith.constant 25 : index
    %c0_90 = arith.constant 0 : index
    %129 = vector.load %arg9[%c25_89, %c0_90] : memref<304x128xf32, #tpu.memory_space<vmem>>, vector<256x128xf32>
    %cst_91 = arith.constant 0.000000e+00 : f32
    %130 = vector.broadcast %cst_91 : f32 to vector<256x128xf32>
    %131 = arith.select %12, %129, %130 : vector<256x128xi1>, vector<256x128xf32>
    %c80_i32_92 = arith.constant 80 : i32
    %132 = tpu.dynamic_rotate %131 by %c80_i32_92 dim 1 : vector<256x128xf32>, i32 -> vector<256x128xf32>
    %133 = arith.addf %128, %132 : vector<256x128xf32>
    %c39_93 = arith.constant 39 : index
    %c0_94 = arith.constant 0 : index
    %134 = vector.load %arg9[%c39_93, %c0_94] : memref<304x128xf32, #tpu.memory_space<vmem>>, vector<256x128xf32>
    %cst_95 = arith.constant 0.000000e+00 : f32
    %135 = vector.broadcast %cst_95 : f32 to vector<256x128xf32>
    %136 = arith.select %10, %134, %135 : vector<256x128xi1>, vector<256x128xf32>
    %c96_i32_96 = arith.constant 96 : i32
    %137 = tpu.dynamic_rotate %136 by %c96_i32_96 dim 1 : vector<256x128xf32>, i32 -> vector<256x128xf32>
    %138 = arith.addf %133, %137 : vector<256x128xf32>
    %c40_97 = arith.constant 40 : index
    %c0_98 = arith.constant 0 : index
    %139 = vector.load %arg9[%c40_97, %c0_98] : memref<304x128xf32, #tpu.memory_space<vmem>>, vector<256x128xf32>
    %c112_i32_99 = arith.constant 112 : i32
    %140 = tpu.dynamic_rotate %139 by %c112_i32_99 dim 1 : vector<256x128xf32>, i32 -> vector<256x128xf32>
    %141 = arith.addf %138, %140 : vector<256x128xf32>
    %c41_100 = arith.constant 41 : index
    %c0_101 = arith.constant 0 : index
    %142 = vector.load %arg9[%c41_100, %c0_101] : memref<304x128xf32, #tpu.memory_space<vmem>>, vector<256x128xf32>
    %cst_102 = arith.constant 0.000000e+00 : f32
    %143 = vector.broadcast %cst_102 : f32 to vector<256x128xf32>
    %144 = arith.select %12, %142, %143 : vector<256x128xi1>, vector<256x128xf32>
    %145 = tpu.concatenate %141, %144 in 1 : vector<256x128xf32>, vector<256x128xf32> -> vector<256x256xf32>
    %146 = arith.truncf %145 : vector<256x256xf32> to vector<256x256xbf16>
    %c0_103 = arith.constant 0 : index
    %c0_104 = arith.constant 0 : index
    %147 = vector.load %arg6[%c0_103, %c0_104] : memref<256x128xbf16, #tpu.memory_space<vmem>>, vector<256x128xbf16>
    %cst_105 = arith.constant dense<0.000000e+00> : vector<256x128xf32>
    %148 = tpu.matmul %146, %147, %cst_105 {dimension_numbers = #tpu.dot_dimension_numbers<[1], [0], [0], [1], [0, 0, 1, 1], [], []>} : vector<256x256xbf16>, vector<256x128xbf16>, vector<256x128xf32> -> vector<256x128xf32>
    %c0_106 = arith.constant 0 : index
    %c0_107 = arith.constant 0 : index
    %149 = vector.load %arg7[%c0_106, %c0_107] : memref<1x128xf32, #tpu.memory_space<vmem>>, vector<1x128xf32>
    %150 = vector.broadcast %149 : vector<1x128xf32> to vector<256x128xf32>
    %151 = arith.addf %148, %150 : vector<256x128xf32>
    %152 = math.tanh %151 : vector<256x128xf32>
    %153 = tpu.iota {dimensions = array<i32: 1>} : vector<256x128xi32>
    %154 = vector.extract_strided_slice %2 {offsets = [0, 7], sizes = [256, 1], strides = [1, 1]} : vector<256x128xf32> to vector<256x1xf32>
    %c3_i32 = arith.constant 3 : i32
    %155 = vector.broadcast %c3_i32 : i32 to vector<256x128xi32>
    %156 = arith.cmpi slt, %153, %155 : vector<256x128xi32>
    %c120_i32 = arith.constant 120 : i32
    %157 = tpu.dynamic_rotate %2 by %c120_i32 dim 1 : vector<256x128xf32>, i32 -> vector<256x128xf32>
    %cst_108 = arith.constant 0.000000e+00 : f32
    %158 = vector.broadcast %cst_108 : f32 to vector<256x128xf32>
    %159 = arith.select %156, %157, %158 : vector<256x128xi1>, vector<256x128xf32>
    %160 = vector.broadcast %154 : vector<256x1xf32> to vector<256x128xf32>
    %161 = arith.mulf %152, %160 : vector<256x128xf32>
    %cst_109 = arith.constant 1.000000e+00 : f32
    %162 = vector.broadcast %cst_109 : f32 to vector<256x1xf32>
    %163 = arith.subf %162, %154 : vector<256x1xf32>
    %164 = vector.broadcast %163 : vector<256x1xf32> to vector<256x128xf32>
    %165 = arith.mulf %159, %164 : vector<256x128xf32>
    %166 = arith.addf %161, %165 : vector<256x128xf32>
    %c3_i32_110 = arith.constant 3 : i32
    %167 = tpu.dynamic_rotate %166 by %c3_i32_110 dim 1 : vector<256x128xf32>, i32 -> vector<256x128xf32>
    %168 = arith.addf %152, %167 : vector<256x128xf32>
    %c6_i32 = arith.constant 6 : i32
    %169 = vector.broadcast %c6_i32 : i32 to vector<256x128xi32>
    %170 = arith.cmpi sge, %153, %169 : vector<256x128xi32>
    %c10_i32 = arith.constant 10 : i32
    %171 = vector.broadcast %c10_i32 : i32 to vector<256x128xi32>
    %172 = arith.cmpi slt, %153, %171 : vector<256x128xi32>
    %173 = arith.andi %170, %172 : vector<256x128xi1>
    %c3_i32_111 = arith.constant 3 : i32
    %174 = tpu.dynamic_rotate %2 by %c3_i32_111 dim 1 : vector<256x128xf32>, i32 -> vector<256x128xf32>
    %cst_112 = arith.constant 0.000000e+00 : f32
    %175 = vector.broadcast %cst_112 : f32 to vector<256x128xf32>
    %176 = arith.select %173, %174, %175 : vector<256x128xi1>, vector<256x128xf32>
    %177 = arith.addf %168, %176 : vector<256x128xf32>
    %c10_i32_113 = arith.constant 10 : i32
    %178 = vector.broadcast %c10_i32_113 : i32 to vector<256x128xi32>
    %179 = arith.cmpi sge, %153, %178 : vector<256x128xi32>
    %c13_i32 = arith.constant 13 : i32
    %180 = vector.broadcast %c13_i32 : i32 to vector<256x128xi32>
    %181 = arith.cmpi slt, %153, %180 : vector<256x128xi32>
    %182 = arith.andi %179, %181 : vector<256x128xi1>
    %c2_i32 = arith.constant 2 : i32
    %183 = tpu.dynamic_rotate %2 by %c2_i32 dim 1 : vector<256x128xf32>, i32 -> vector<256x128xf32>
    %cst_114 = arith.constant 0.000000e+00 : f32
    %184 = vector.broadcast %cst_114 : f32 to vector<256x128xf32>
    %185 = arith.select %182, %183, %184 : vector<256x128xi1>, vector<256x128xf32>
    %186 = arith.addf %177, %185 : vector<256x128xf32>
    %187 = arith.truncf %186 : vector<256x128xf32> to vector<256x128xbf16>
    %188 = vector.shape_cast %187 : vector<256x128xbf16> to vector<1x256x128xbf16>
    %c0_115 = arith.constant 0 : index
    %c0_116 = arith.constant 0 : index
    %c0_117 = arith.constant 0 : index
    %189 = vector.load %arg8[%c0_115, %c0_116, %c0_117] : memref<1x256x128xbf16, #tpu.memory_space<vmem>>, vector<1x256x128xbf16>
    tpu.vector_store %arg8[%c0_115, %c0_116, %c0_117], %188 {strides = array<i32>} : memref<1x256x128xbf16, #tpu.memory_space<vmem>>, vector<1x256x128xbf16>,
    return
  }
  func.func @transform_0(%arg0: i32) -> (i32, i32, i32) {
    %c0_i32 = arith.constant 0 : i32
    %c0_i32_0 = arith.constant 0 : i32
    %c0_i32_1 = arith.constant 0 : i32
    return %arg0, %c0_i32, %c0_i32_0 : i32, i32, i32
  }
  func.func @transform_1(%arg0: i32) -> (i32, i32) {
    %c0_i32 = arith.constant 0 : i32
    %c0_i32_0 = arith.constant 0 : i32
    %c0_i32_1 = arith.constant 0 : i32
    return %c0_i32, %c0_i32_0 : i32, i32
  }
  func.func @transform_2(%arg0: i32) -> (i32, i32) {
    %c0_i32 = arith.constant 0 : i32
    %c0_i32_0 = arith.constant 0 : i32
    %c0_i32_1 = arith.constant 0 : i32
    return %c0_i32, %c0_i32_0 : i32, i32
  }
  func.func @transform_3(%arg0: i32) -> (i32, i32) {
    %c0_i32 = arith.constant 0 : i32
    %c0_i32_0 = arith.constant 0 : i32
    %c0_i32_1 = arith.constant 0 : i32
    return %c0_i32, %c0_i32_0 : i32, i32
  }
  func.func @transform_4(%arg0: i32) -> (i32, i32) {
    %c0_i32 = arith.constant 0 : i32
    %c0_i32_0 = arith.constant 0 : i32
    %c0_i32_1 = arith.constant 0 : i32
    return %c0_i32, %c0_i32_0 : i32, i32
  }
  func.func @transform_5(%arg0: i32) -> (i32, i32) {
    %c0_i32 = arith.constant 0 : i32
    %c0_i32_0 = arith.constant 0 : i32
    %c0_i32_1 = arith.constant 0 : i32
    return %c0_i32, %c0_i32_0 : i32, i32
  }
  func.func @transform_6(%arg0: i32) -> (i32, i32) {
    %c0_i32 = arith.constant 0 : i32
    %c0_i32_0 = arith.constant 0 : i32
    %c0_i32_1 = arith.constant 0 : i32
    return %c0_i32, %c0_i32_0 : i32, i32
  }
  func.func @transform_7(%arg0: i32) -> (i32, i32, i32) {
    %c0_i32 = arith.constant 0 : i32
    %c0_i32_0 = arith.constant 0 : i32
    %c0_i32_1 = arith.constant 0 : i32
    return %arg0, %c0_i32, %c0_i32_0 : i32, i32, i32
  }
}

</mosaic_0001>

<bundles_post_ra>
// kernel: tpu_custom_call.1
= control target key start
LH: loop header
LB: loop body
LE: loop exit
PB: predicated region body
PF: predicated region fallthrough
CT: control target
= control target key end

     0   :  { %12 = vsyncpa [#allocation4], 0  ;;  %s12694_s0 = inlined_call_operand.hbm [shape: bf16[2,256,128], index: 0, kind: input, shape index: {}]   ;;  %s12695_s1 = inlined_call_operand.hbm [shape: bf16[256,128], index: 1, kind: input, shape index: {}]   ;;  %s12696_s2 = inlined_call_operand.vmem [shape: f32[1,128], index: 2, kind: input, shape index: {}]   ;;  %s12697_s3 = inlined_call_operand.hbm [shape: bf16[256,128], index: 3, kind: input, shape index: {}]   ;;  %s12698_s4 = inlined_call_operand.vmem [shape: f32[1,128], index: 4, kind: input, shape index: {}]   ;;  %s12699_s5 = inlined_call_operand.hbm [shape: bf16[256,128], index: 5, kind: input, shape index: {}]   ;;  %s12700_s6 = inlined_call_operand.vmem [shape: f32[1,128], index: 6, kind: input, shape index: {}]   ;;  %s12701_s7 = inlined_call_operand.hbm [shape: bf16[2,256,128], index: 7, kind: output, shape index: {}]  }
   0x1   :  { %14 = vsyncpa [#allocation4 + $0x1], 0 }
   0x2   :  { %15 = vsyncpa [#allocation7], 0 }
   0x3   :  { %16 = vsyncpa [#allocation10], 0 }
   0x4   :  { %17 = vsyncpa [#allocation5], 0 }
   0x5   :  { %19 = vsyncpa [#allocation5 + $0x1], 0  ;;  %s7238_s24 = smov 0   ;;  %s7240_s25 = smov 0  }
   0x6   :  { %s7242_s26 = smov 0   ;;  %s7244_s27 = smov 0  }
   0x7 LB: > { %s7259_s28 = sadd.s32 4294967295, %s7175_s27   ;;  %s5460_s29 = sadd.s32 4294967294, %s7175_s27   ;;  %s7175_s27 = sphi %s7244_s27, %s14336_s27   ;;  %s7171_s26 = sphi %s7242_s26, %s14335_s26   ;;  %s7167_s25 = sphi %s7240_s25, %s14334_s25   ;;  %s7163_s24 = sphi %s7238_s24, %s14333_s24  }
   0x8   : > { %p45_p0 = scmp.ne.s32.totalorder %s7167_s25, %s7163_s24  ;;  %p12702_p1 = scmp.eq.s32.totalorder %s7259_s28, 0 }
   0x9   : > { %p201_p3 = scmp.eq.s32.totalorder %s5460_s29, 1  ;;  %p5461_p5 = scmp.ge.s32.totalorder %s7175_s27, 1 }
   0xa   : > { %p7268_p4 = por %p12702_p1, %p45_p0  ;;  %p208_p7 = scmp.lt.s32.totalorder %s7175_s27, 3 }
   0xb   : > { %p7273_p6 = por %p201_p3, %p45_p0  ;;  %s7177_s10 = smov [#allocation6]  }
   0xc   : > { %s12976_s30 = scalar_select %p7268_p4, 1, 0 }
   0xd   : > { %s12977_s8 = scalar_select %p7273_p6, 1, 0 }
   0xe   : > { %p7278_p8 = pnand %p5461_p5, %p208_p7  ;;  %s220_s11 = sshll.u32 %s7177_s10, 4  ;;  %s7282_s11 = int_to_ptr.vmem [resolvable:$true] %s220_s11 }
   0xf   : > { %12978 = sst [smem:[#allocation16_spill]] %s12977_s8  ;;  %s7178_s13 = smov [#allocation8]  }
  0x10   : > { %s12979_s9 = scalar_select %p7278_p8, 1, 0 }
  0x11   : > { %p6283_p9 = pneg %p7278_p8  ;;  %s236_s14 = sshll.u32 %s7178_s13, 4  ;;  %s7293_s14 = int_to_ptr.vmem [resolvable:$true] %s236_s14 }
  0x12   : > { %s7179_s15 = smov [#allocation9]   ;;  %s6987_s19 = scalar_lea.hbm %s12695_s1, 2048 }
  0x13   : > { %p7289_p11 = pnand %p6283_p9, %p12702_p1  ;;  %s7295_s16 = sshll.u32 %s7179_s15, 4  ;;  %s253_s16 = int_to_ptr.vmem [resolvable:$true] %s7295_s16 }
  0x14   : > { %p6988_p12 = scmp.ne.s32.totalorder %s12695_s1, %s6987_s19  ;;  %p6994_p5 = scmp.lt.u32.totalorder %s6987_s19, %s12695_s1 }
  0x15   : > { %p7305_p13 = pneg %p7289_p11 }
  0x17   : > { %p6990_p0 = pnand %p7305_p13, %p6988_p12 }
  0x19   : > { %p6991_p3 = pneg %p6990_p0 }
  0x1b   : > { %p6996_p7 = pnand %p6994_p5, %p6991_p3 }
  0x1d   : > { %6999 = shalt.err (!%p6996_p7)
}
  0x1e   : > { %s7000_s10 = scalar_lea.vmem %s7282_s11, 2048  ;;  %p7008_p2 = scmp.lt.s32.totalorder %s7282_s11, %s7282_s11 }
  0x1f   : > { %p7001_p9 = scmp.ne.s32.totalorder %s7282_s11, %s7000_s10  ;;  %p7009_p6 = scmp.lt.s32.totalorder %s7000_s10, %s7000_s10 }
  0x21   : > { %p7003_p10 = pnand %p7001_p9, %p7305_p13  ;;  %p7010_p12 = por %p7009_p6, %p7008_p2 }
  0x23   : > { %p7004_p1 = pneg %p7003_p10 }
  0x25   : > { %p7011_p0 = pnand %p7010_p12, %p7004_p1 }
  0x27   : > { %7014 = shalt.err (!%p7011_p0)
}
  0x28   : > { %s7180_s13 = smov 64   ;;  %s7181_s15 = smov 4  }
  0x29   : > { %6286 = dma.hbm_to_vmem [thread:$0]  (!%p7289_p11), %s12695_s1, 2048, %s7282_s11, [#allocation7], %s7180_s13, %s7180_s13, %s7181_s15  }
  0x2a   : > { %s7015_s21 = scalar_lea.hbm %s12697_s3, 2048 }
  0x2b   : > { %p7016_p1 = scmp.ne.s32.totalorder %s12697_s3, %s7015_s21  ;;  %p7022_p10 = scmp.lt.u32.totalorder %s7015_s21, %s12697_s3 }
  0x2d   : > { %p7018_p2 = pnand %p7016_p1, %p7305_p13 }
  0x2f   : > { %p7019_p6 = pneg %p7018_p2 }
  0x31   : > { %p7024_p3 = pnand %p7022_p10, %p7019_p6 }
  0x33   : > { %7027 = shalt.err (!%p7024_p3)
}
  0x34   : > { %s7028_s11 = scalar_lea.vmem %s7293_s14, 2048  ;;  %p7036_p12 = scmp.lt.s32.totalorder %s7293_s14, %s7293_s14 }
  0x35   : > { %p7029_p5 = scmp.ne.s32.totalorder %s7293_s14, %s7028_s11  ;;  %p7037_p0 = scmp.lt.s32.totalorder %s7028_s11, %s7028_s11 }
  0x37   : > { %p7031_p7 = pnand %p7029_p5, %p7305_p13  ;;  %p7038_p1 = por %p7037_p0, %p7036_p12 }
  0x39   : > { %p7032_p9 = pneg %p7031_p7 }
  0x3b   : > { %p7039_p2 = pnand %p7038_p1, %p7032_p9 }
  0x3d   : > { %7042 = shalt.err (!%p7039_p2)
}
  0x3e   : > { %6289 = dma.hbm_to_vmem [thread:$0]  (!%p7289_p11), %s12697_s3, 2048, %s7293_s14, [#allocation7], %s7180_s13, %s7180_s13, %s7181_s15  }
  0x3f   : > { %s7043_s20 = scalar_lea.hbm %s12699_s5, 2048 }
  0x40   : > { %p7044_p6 = scmp.ne.s32.totalorder %s12699_s5, %s7043_s20  ;;  %p7050_p5 = scmp.lt.u32.totalorder %s7043_s20, %s12699_s5 }
  0x42   : > { %p7046_p10 = pnand %p7044_p6, %p7305_p13 }
  0x44   : > { %p7047_p3 = pneg %p7046_p10 }
  0x46   : > { %p7052_p7 = pnand %p7050_p5, %p7047_p3 }
  0x48   : > { %7055 = shalt.err (!%p7052_p7)
}
  0x49   : > { %s7056_s11 = scalar_lea.vmem %s253_s16, 2048  ;;  %p7064_p1 = scmp.lt.s32.totalorder %s253_s16, %s253_s16 }
  0x4a   : > { %p7057_p9 = scmp.ne.s32.totalorder %s253_s16, %s7056_s11  ;;  %p7065_p2 = scmp.lt.s32.totalorder %s7056_s11, %s7056_s11 }
  0x4c   : > { %p7059_p12 = pnand %p7057_p9, %p7305_p13  ;;  %p7066_p4 = por %p7065_p2, %p7064_p1 }
  0x4e   : > { %p7060_p0 = pneg %p7059_p12 }
  0x50   : > { %p7067_p8 = pnand %p7066_p4, %p7060_p0 }
  0x52   : > { %7070 = shalt.err (!%p7067_p8)
}
  0x53   : > { %6292 = dma.hbm_to_vmem [thread:$0]  (!%p7289_p11), %s12699_s5, 2048, %s253_s16, [#allocation10], %s7180_s13, %s7180_s13, %s7181_s15  }
  0x54   : > { %s7378_s22 = sadd.s32 1, %s7175_s27   ;;  %s32_s17 = sadd.s32 1, %s7171_s26 }
  0x55   : > { %s29_s12 = ssub.s32 %s7175_s27, %s7378_s22  ;;  %p39_p8 = scmp.ne.s32.totalorder %s7171_s26, %s7167_s25 }
  0x56   : > { %p30_p4 = scmp.eq.s32.totalorder %s29_s12, 0  ;;  %p40_p13 = scmp.eq.s32.totalorder %s7175_s27, 0 }
  0x57   : > { %p6304_p6 = scmp.lt.s32.totalorder %s7175_s27, 2  ;;  %p12982_p3 = scmp.eq.s32.totalorder %s7259_s28, 1 }
  0x58   : > { %s7388_s18 = scalar_select %p30_p4, %s7171_s26, %s32_s17  }
  0x59   : > { %p41_p10 = por %p40_p13, %p39_p8  ;;  %p7392_p5 = por %p12982_p3, %p39_p8 }
  0x5a   : > { %s269_s20 = sand.u32 1, %s7171_s26   ;;  %s5707_s21 = sshll.u32 %s7175_s27, 11 }
  0x5b   : > { %s5466_s16 = sshll.u32 %s269_s20, 7  ;;  %s7401_s10 = scalar_lea.hbm %s12694_s0, %s5707_s21 }
  0x5c   : > { %s273_s11 = scalar_lea.vmem [#allocation3], %s5466_s16  ;;  %p7403_p11 = pnand %p6304_p6, %p41_p10 }
  0x5d   : > { %s280_s14 = sshll.u32 %s273_s11, 4  ;;  %s7409_s12 = scalar_lea.sflag [#allocation4], %s269_s20  ;;  %s7407_s14 = int_to_ptr.vmem [resolvable:$true] %s280_s14 }
  0x5e   : > { %s7071_s17 = scalar_lea.hbm %s7401_s10, 2048  ;;  %p7073_p9 = pneg %p7403_p11 }
  0x5f   : > { %p7072_p7 = scmp.ne.s32.totalorder %s7401_s10, %s7071_s17  ;;  %s7076_s23 = scalar_lea.hbm %s12694_s0, 4096 }
  0x60   : > { %p7077_p1 = scmp.lt.u32.totalorder %s7401_s10, %s12694_s0  ;;  %p7078_p2 = scmp.lt.u32.totalorder %s7076_s23, %s7071_s17 }
  0x61   : > { %p7074_p12 = pnand %p7073_p9, %p7072_p7  ;;  %p7080_p8 = scmp.lt.u32.totalorder %s7071_s17, %s7401_s10 }
  0x62   : > { %p7079_p4 = por %p7078_p2, %p7077_p1 }
  0x63   : > { %p7075_p0 = pneg %p7074_p12 }
  0x64   : > { %p7081_p13 = por %p7080_p8, %p7079_p4 }
  0x66   : > { %p7082_p6 = pnand %p7081_p13, %p7075_p0 }
  0x68   : > { %7085 = shalt.err (!%p7082_p6)
}
  0x69   : > { %s7086_s20 = scalar_lea.vmem %s7407_s14, 2048  ;;  %s7182_s21 = smov [#allocation3]  }
  0x6a   : > { %p7087_p10 = scmp.ne.s32.totalorder %s7407_s14, %s7086_s20  ;;  %s7091_s16 = sshll.u32 %s7182_s21, 4  ;;  %s7092_s16 = int_to_ptr.vmem [resolvable:$false] %s7091_s16 }
  0x6b   : > { %s7093_s29 = scalar_lea.vmem %s7092_s16, 4096  ;;  %p7094_p12 = scmp.lt.s32.totalorder %s7407_s14, %s7092_s16 }
  0x6c   : > { %p7089_p3 = pnand %p7087_p10, %p7073_p9  ;;  %p7095_p1 = scmp.lt.s32.totalorder %s7093_s29, %s7086_s20 }
  0x6e   : > { %p7090_p7 = pneg %p7089_p3  ;;  %p7096_p2 = por %p7095_p1, %p7094_p12 }
  0x70   : > { %p7097_p4 = pnand %p7096_p2, %p7090_p7 }
  0x72   : > { %7100 = shalt.err (!%p7097_p4)
}
  0x73   : > { %6296 = dma.hbm_to_vmem [thread:$0]  (!%p7403_p11), %s7401_s10, 2048, %s7407_s14, %s7409_s12, %s7180_s13, %s7180_s13, %s7181_s15  }
  0x74   : > { %p12985_p9 = scmp.ne.s32.totalorder %s12979_s9, 0 }
  0x76   : > { %292 = sbr.rel (%p12985_p9) target bundleno = 2727 (0xaa7), region = 48 }
  0x7d   : > { %s7443_s17 = sand.u32 1, %s7167_s25   ;;  %p12986_p0 = scmp.ne.s32.totalorder %s12976_s30, 0 }
  0x7e   : > { %s5470_s23 = sshll.u32 %s7443_s17, 7  ;;  %s295_s11 = scalar_lea.sflag [#allocation4], %s7443_s17 }
  0x7f   : > { %s7449_s8 = scalar_lea.vmem [#allocation3], %s5470_s23 }
  0x80   : > { %7146 = dma.done.wait (%p12986_p0), %s295_s11, 2048  }
  0x81   : > { %7148 = vsyncadd (%p12986_p0), %s295_s11, 4294965248  ;;  %p12987_p11 = scmp.eq.s32.totalorder %s7259_s28, 0 }
  0x83   : > { %7150 = dma.done.wait (%p12987_p11), [#allocation7], 4096   ;;  %p12988_p8 = pmov %p12987_p11 }
  0x85   : > { %7152 = vsyncadd (%p12988_p8), [#allocation7], 4294963200  ;;  %p12989_p13 = pmov %p12988_p8 }
  0x86   : > { %p12990_p6 = pmov %p12988_p8 }
  0x87   : > { %7154 = dma.done.wait (%p12989_p13), [#allocation10], 2048  }
  0x88   : > { %7156 = vsyncadd (%p12990_p6), [#allocation10], 4294965248  ;;  %v7183_v0 = vmov 0.0   ;;  %s7184_s30 = smov 16   ;;  %v5885_v1 = vld [vmem:[%s7449_s8 + $0x8] sm:$0xff]   ;;  %v5742_v2 = vld [vmem:[%s7449_s8] sm:$0xff]   ;;  %v12706_v48 = vlaneseq }
  0x89   : > { %407 = vst [vmem:[#allocation2 + $0x8] sm:$0xff] %v7183_v0  ;;  %547 = vrot.lane.b32.xlu0 %v7183_v0, %s7184_s30  ;;  %406 = vst [vmem:[#allocation2] sm:$0xff] %v7183_v0  ;;  %v5886_v3 = vld [vmem:[%s7449_s8 + $0x10] sm:$0xff]   ;;  %v7468_v4 = vunpack.c.l.bf16 %v5885_v1  ;;  %v7470_v5 = vunpack.c.l.bf16 %v5742_v2  ;;  %v7474_v7 = vunpack.c.h.bf16 %v5742_v2  ;;  %v5887_v8 = vld [vmem:[%s7449_s8 + $0x18] sm:$0xff]   ;;  %v7481_v12 = vunpack.c.h.bf16 %v5885_v1  ;;  %s7185_s9 = smov 32   ;;  %s7186_s13 = smov 48  }
  0x8a   : > { %408 = vst [vmem:[#allocation2 + $0x10] sm:$0xff] %v7183_v0  ;;  %409 = vst [vmem:[#allocation2 + $0x118] sm:$0xff] %v7183_v0  ;;  %v7472_v6 = vunpack.c.l.bf16 %v5886_v3  ;;  %v5888_v9 = vld [vmem:[%s7449_s8 + $0x20] sm:$0xff]   ;;  %v5889_v10 = vld [vmem:[%s7449_s8 + $0x28] sm:$0xff]   ;;  %v7479_v11 = vunpack.c.l.bf16 %v5887_v8  ;;  %v7485_v14 = vunpack.c.h.bf16 %v5886_v3  ;;  %v7500_v19 = vunpack.c.h.bf16 %v5887_v8  ;;  %s7187_s15 = smov 64   ;;  %s7188_s10 = smov 80  }
  0x8b   : > { %410 = vst [vmem:[#allocation2 + $0x120] sm:$0xff] %v7183_v0  ;;  %411 = vst [vmem:[#allocation2 + $0x128] sm:$0xff] %v7183_v0  ;;  %v7483_v13 = vunpack.c.l.bf16 %v5888_v9  ;;  %v5890_v15 = vld [vmem:[%s7449_s8 + $0x30] sm:$0xff]   ;;  %v5891_v16 = vld [vmem:[%s7449_s8 + $0x38] sm:$0xff]   ;;  %551 = vrot.lane.b32.xlu1 %v7470_v5, %s7184_s30  ;;  %v7498_v18 = vunpack.c.l.bf16 %v5889_v10  ;;  %v7504_v21 = vunpack.c.h.bf16 %v5888_v9  ;;  %v7514_v25 = vunpack.c.h.bf16 %v5889_v10  ;;  %s7189_s14 = smov 96   ;;  %s7191_s12 = smov 112  }
  0x8c   : > { %12991 = vst [vmem:[#allocation17_spill] sm:$0xff] %v7470_v5  ;;  %12992 = vst [vmem:[#allocation18_spill] sm:$0xff] %v7474_v7  ;;  %v5892_v17 = vld [vmem:[%s7449_s8 + $0x40] sm:$0xff]   ;;  %v7502_v20 = vunpack.c.l.bf16 %v5890_v15  ;;  %v5893_v22 = vld [vmem:[%s7449_s8 + $0x48] sm:$0xff]   ;;  %v7512_v24 = vunpack.c.l.bf16 %v5891_v16  ;;  %v7518_v27 = vunpack.c.h.bf16 %v5890_v15  ;;  %v7529_v32 = vunpack.c.h.bf16 %v5891_v16  ;;  %s7193_s11 = smov 120   ;;  %s7196_s29 = smov [#allocation11]  }
  0x8d   : > { %549 = vrot.lane.b32.xlu0 %v7183_v0, %s7184_s30  ;;  %421 = vst [vmem:[#allocation2 + $0x28] sm:$0xff] %v7468_v4  ;;  %419 = vst [vmem:[#allocation2 + $0x18] sm:$0xff] %v7470_v5  ;;  %v5894_v23 = vld [vmem:[%s7449_s8 + $0x50] sm:$0xff]   ;;  %v7516_v26 = vunpack.c.l.bf16 %v5892_v17  ;;  %v5895_v28 = vld [vmem:[%s7449_s8 + $0x58] sm:$0xff]   ;;  %v7527_v31 = vunpack.c.l.bf16 %v5893_v22  ;;  %v7533_v34 = vunpack.c.h.bf16 %v5892_v17  ;;  %v7542_v37 = vunpack.c.h.bf16 %v5893_v22 }
  0x8e   : > { %423 = vst [vmem:[#allocation2 + $0x38] sm:$0xff] %v7472_v6  ;;  %420 = vst [vmem:[#allocation2 + $0x20] sm:$0xff] %v7474_v7  ;;  %v5896_v29 = vld [vmem:[%s7449_s8 + $0x60] sm:$0xff]   ;;  %v5897_v30 = vld [vmem:[%s7449_s8 + $0x68] sm:$0xff]   ;;  %v7531_v33 = vunpack.c.l.bf16 %v5894_v23  ;;  %v7540_v36 = vunpack.c.l.bf16 %v5895_v28  ;;  %v7546_v39 = vunpack.c.h.bf16 %v5894_v23  ;;  %v7561_v42 = vunpack.c.h.bf16 %v5895_v28 }
  0x8f   : > { %425 = vst [vmem:[#allocation2 + $0x48] sm:$0xff] %v7479_v11  ;;  %422 = vst [vmem:[#allocation2 + $0x30] sm:$0xff] %v7481_v12  ;;  %v5898_v35 = vld [vmem:[%s7449_s8 + $0x70] sm:$0xff]   ;;  %v7544_v38 = vunpack.c.l.bf16 %v5896_v29  ;;  %v7549_v40 = vld [vmem:[%s7449_s8 + $0x78] sm:$0xff]   ;;  %553 = vrot.lane.b32.xlu1 %v7474_v7, %s7184_s30  ;;  %v7559_v41 = vunpack.c.l.bf16 %v5897_v30  ;;  %v7565_v44 = vunpack.c.h.bf16 %v5896_v29  ;;  %v7571_v45 = vunpack.c.h.bf16 %v5897_v30 }
  0x90   : > { %427 = vst [vmem:[#allocation2 + $0x58] sm:$0xff] %v7483_v13  ;;  %424 = vst [vmem:[#allocation2 + $0x40] sm:$0xff] %v7485_v14  ;;  %v7563_v43 = vunpack.c.l.bf16 %v5898_v35  ;;  %v7573_v46 = vunpack.c.h.bf16 %v5898_v35  ;;  %v12708_v47 = vunpack.c.l.bf16 %v7549_v40  ;;  %v7625_v49 = vshrl.u32 %v12706_v48, 7 }
  0x91   : > { %555 = vrot.lane.b32.xlu0 %v7468_v4, %s7184_s30  ;;  %429 = vst [vmem:[#allocation2 + $0x68] sm:$0xff] %v7498_v18  ;;  %426 = vst [vmem:[#allocation2 + $0x50] sm:$0xff] %v7500_v19  ;;  %v12707_v50 = vunpack.c.h.bf16 %v7549_v40  ;;  %v643_v51 = vld [vmem:[#allocation2 + $0x9] sm:$0xff]  ;;  %vm7190_vm2 = vmmov 1  }
  0x92   : > { %431 = vst [vmem:[#allocation2 + $0x78] sm:$0xff] %v7502_v20  ;;  %428 = vst [vmem:[#allocation2 + $0x60] sm:$0xff] %v7504_v21  ;;  %v7633_v52 = vadd.s32 8, %v7625_v49  ;;  %vm415_vm1 = vcmp.ge.s32.totalorder %v7625_v49, 1 }
  0x93   : > { %433 = vst [vmem:[#allocation2 + $0x88] sm:$0xff] %v7512_v24  ;;  %430 = vst [vmem:[#allocation2 + $0x70] sm:$0xff] %v7514_v25  ;;  %557 = vrot.lane.b32.xlu1 %v7481_v12, %s7184_s30 }
  0x94   : > { %435 = vst [vmem:[#allocation2 + $0x98] sm:$0xff] %v7516_v26  ;;  %432 = vst [vmem:[#allocation2 + $0x80] sm:$0xff] %v7518_v27  ;;  %vm418_vm0 = vcmp.le.s32.totalorder %v7633_v52, 14  ;;  %v644_v54 = vld [vmem:[#allocation2 + $0x11] sm:$0xff] }
  0x95   : > { %559 = vrot.lane.b32.xlu0 %v7472_v6, %s7184_s30  ;;  %437 = vst [vmem:[#allocation2 + $0xa8] sm:$0xff] %v7527_v31  ;;  %434 = vst [vmem:[#allocation2 + $0x90] sm:$0xff] %v7529_v32  ;;  %v7641_v53 = vld [vmem:[#allocation2 + $0x19] sm:$0xff]  ;;  %v676_v56 = vsel %vm418_vm0, %v644_v54, 0.0  ;;  %v646_v57 = vld [vmem:[#allocation2 + $0x21] sm:$0xff] }
  0x96   : > { %439 = vst [vmem:[#allocation2 + $0xb8] sm:$0xff] %v7531_v33  ;;  %436 = vst [vmem:[#allocation2 + $0xa0] sm:$0xff] %v7533_v34  ;;  %v7651_v55 = vld [vmem:[#allocation2 + $0x29] sm:$0xff]  ;;  %v7662_v59 = vsel %vm418_vm0, %v646_v57, 0.0  ;;  %v7664_v60 = vld [vmem:[#allocation2 + $0x31] sm:$0xff] }
  0x97   : > { %441 = vst [vmem:[#allocation2 + $0xc8] sm:$0xff] %v7540_v36  ;;  %438 = vst [vmem:[#allocation2 + $0xb0] sm:$0xff] %v7542_v37  ;;  %561 = vrot.lane.b32.xlu1 %v7485_v14, %s7184_s30  ;;  %v7658_v58 = vld [vmem:[#allocation2 + $0x39] sm:$0xff]  ;;  %v7675_v62 = vsel %vm418_vm0, %v7664_v60, 0.0  ;;  %v650_v63 = vld [vmem:[#allocation2 + $0x41] sm:$0xff] }
  0x98   : > { %443 = vst [vmem:[#allocation2 + $0xd8] sm:$0xff] %v7544_v38  ;;  %440 = vst [vmem:[#allocation2 + $0xc0] sm:$0xff] %v7546_v39  ;;  %v7670_v61 = vld [vmem:[#allocation2 + $0x49] sm:$0xff]  ;;  %v7685_v1 = vsel %vm418_vm0, %v650_v63, 0.0  ;;  %v652_v2 = vld [vmem:[#allocation2 + $0x51] sm:$0xff] }
  0x99   : > { %445 = vst [vmem:[#allocation2 + $0xe8] sm:$0xff] %v7559_v41  ;;  %442 = vst [vmem:[#allocation2 + $0xd0] sm:$0xff] %v7561_v42  ;;  %563 = vrot.lane.b32.xlu0 %v7479_v11, %s7184_s30  ;;  %v7681_v0 = vld [vmem:[#allocation2 + $0x59] sm:$0xff]  ;;  %v7695_v8 = vsel %vm418_vm0, %v652_v2, 0.0  ;;  %v654_v9 = vld [vmem:[#allocation2 + $0x61] sm:$0xff] }
  0x9a   : > { %447 = vst [vmem:[#allocation2 + $0xf8] sm:$0xff] %v7563_v43  ;;  %444 = vst [vmem:[#allocation2 + $0xe0] sm:$0xff] %v7565_v44  ;;  %v7691_v3 = vld [vmem:[#allocation2 + $0x69] sm:$0xff]  ;;  %v7705_v15 = vsel %vm418_vm0, %v654_v9, 0.0  ;;  %v656_v16 = vld [vmem:[#allocation2 + $0x71] sm:$0xff] }
  0x9b   : > { %446 = vst [vmem:[#allocation2 + $0xf0] sm:$0xff] %v7571_v45  ;;  %448 = vst [vmem:[#allocation2 + $0x100] sm:$0xff] %v7573_v46  ;;  %565 = vrot.lane.b32.xlu1 %v7500_v19, %s7184_s30  ;;  %v7701_v10 = vld [vmem:[#allocation2 + $0x79] sm:$0xff]  ;;  %v7715_v22 = vsel %vm418_vm0, %v656_v16, 0.0  ;;  %v658_v23 = vld [vmem:[#allocation2 + $0x81] sm:$0xff] }
  0x9c   : > { %449 = vst [vmem:[#allocation2 + $0x108] sm:$0xff] %v12708_v47  ;;  %12993 = vst [vmem:[#allocation19_spill] sm:$0xff] %v7625_v49  ;;  %v7711_v17 = vld [vmem:[#allocation2 + $0x89] sm:$0xff]  ;;  %v7725_v29 = vsel %vm418_vm0, %v658_v23, 0.0  ;;  %v660_v30 = vld [vmem:[#allocation2 + $0x91] sm:$0xff] }
  0x9d   : > { %567 = vrot.lane.b32.xlu0 %v7483_v13, %s7184_s30  ;;  %12994 = vst [vmem:[#allocation20_spill] sm:$0xff] %v7633_v52  ;;  %450 = vst [vmem:[#allocation2 + $0x110] sm:$0xff] %v12707_v50  ;;  %v7721_v28 = vld [vmem:[#allocation2 + $0x99] sm:$0xff]  ;;  %v662_v54 = vld [vmem:[#allocation2 + $0xa1] sm:$0xff] }
  0x9e   : > { %12995 = vst [vmem:[#allocation21_spill] sm:$0xff] %v7664_v60  ;;  %v7731_v35 = vld [vmem:[#allocation2 + $0xa9] sm:$0xff]  ;;  %v7745_v57 = vsel %vm418_vm0, %v662_v54, 0.0  ;;  %v7747_v63 = vld [vmem:[#allocation2 + $0xb1] sm:$0xff]  ;;  %v7843_v52 = vld [vmem:[#allocation2 + $0x1f] sm:$0xff] }
  0x9f   : > { %569 = vrot.lane.b32.xlu1 %v7504_v21, %s7184_s30  ;;  %12996 = vst [vmem:[#allocation22_spill] sm:$0xff] %v7747_v63  ;;  %v7758_v9 = vsel %vm418_vm0, %v7747_v63, 0.0  ;;  %v666_v16 = vld [vmem:[#allocation2 + $0xc1] sm:$0xff]  ;;  %13017 = vst [vmem:[#allocation43_spill] sm:$0xff] %v7843_v52 }
  0xa0   : > { %v7753_v2 = vld [vmem:[#allocation2 + $0xc9] sm:$0xff]  ;;  %v7770_v54 = vsel %vm418_vm0, %v666_v16, 0.0  ;;  %v668_v48 = vld [vmem:[#allocation2 + $0xd1] sm:$0xff]  ;;  %vm8432_vm3 = vmpackc.low %vm418_vm0, %vm7190_vm2 }
  0xa1   : > { %571 = vrot.lane.b32.xlu0 %v7498_v18, %s7184_s30  ;;  %12997 = vst [vmem:[#allocation23_spill] sm:$0xff] %v7753_v2  ;;  %13000 = vst [vmem:[#allocation26_spill] sm:$0xff] %v7770_v54  ;;  %v670_v63 = vld [vmem:[#allocation2 + $0xe1] sm:$0xff] }
  0xa2   : > { %v7778_v47 = vld [vmem:[#allocation2 + $0xe9] sm:$0xff]  ;;  %v7788_v16 = vld [vmem:[#allocation2 + $0xf9] sm:$0xff]  ;;  %v7792_v60 = vsel %vm418_vm0, %v670_v63, 0.0 }
  0xa3   : > { %573 = vrot.lane.b32.xlu1 %v7514_v25, %s7184_s30  ;;  %13002 = vst [vmem:[#allocation28_spill] sm:$0xff] %v7778_v47  ;;  %13004 = vst [vmem:[#allocation30_spill] sm:$0xff] %v7788_v16  ;;  %v455_v63 = vld [vmem:[#allocation2 + $0x27] sm:$0xff] }
  0xa5   : > { %575 = vrot.lane.b32.xlu0 %v7502_v20, %s7184_s30 }
  0xa6   : > { %v13263_v49 = vld [vmem:[#allocation43_spill] sm:$0xff] }
  0xa7   : > { %577 = vrot.lane.b32.xlu1 %v7518_v27, %s7184_s30 }
  0xa9   : > { %579 = vrot.lane.b32.xlu0 %v7512_v24, %s7184_s30 }
  0xab   : > { %581 = vrot.lane.b32.xlu1 %v7529_v32, %s7184_s30 }
  0xad   : > { %583 = vrot.lane.b32.xlu0 %v7516_v26, %s7184_s30 }
  0xaf   : > { %585 = vrot.lane.b32.xlu1 %v7533_v34, %s7184_s30 }
  0xb1   : > { %587 = vrot.lane.b32.xlu0 %v7527_v31, %s7184_s30 }
  0xb3   : > { %589 = vrot.lane.b32.xlu1 %v7542_v37, %s7184_s30 }
  0xb5   : > { %591 = vrot.lane.b32.xlu0 %v7531_v33, %s7184_s30 }
  0xb7   : > { %593 = vrot.lane.b32.xlu1 %v7546_v39, %s7184_s30 }
  0xb9   : > { %595 = vrot.lane.b32.xlu0 %v7540_v36, %s7184_s30 }
  0xbb   : > { %597 = vrot.lane.b32.xlu1 %v7561_v42, %s7184_s30 }
  0xbd   : > { %599 = vrot.lane.b32.xlu0 %v7544_v38, %s7184_s30 }
  0xbf   : > { %601 = vrot.lane.b32.xlu1 %v7565_v44, %s7184_s30 }
  0xc1   : > { %603 = vrot.lane.b32.xlu0 %v7559_v41, %s7184_s30 }
  0xc3   : > { %605 = vrot.lane.b32.xlu1 %v7571_v45, %s7184_s30 }
  0xc5   : > { %607 = vrot.lane.b32.xlu0 %v7563_v43, %s7184_s30 }
  0xc7   : > { %609 = vrot.lane.b32.xlu1 %v7573_v46, %s7184_s30 }
  0xc9   : > { %707 = vrot.lane.b32.xlu0 %v643_v51, %s7185_s9  ;;  %v7735_v51 = vsel %vm418_vm0, %v660_v30, 0.0  ;;  %v7766_v30 = vld [vmem:[#allocation2 + $0xd9] sm:$0xff] }
  0xca   : > { %12999 = vst [vmem:[#allocation25_spill] sm:$0xff] %v7766_v30 }
  0xcb   : > { %709 = vrot.lane.b32.xlu1 %v676_v56, %s7185_s9  ;;  %v7741_v56 = vld [vmem:[#allocation2 + $0xb9] sm:$0xff] }
  0xcd   : > { %711 = vrot.lane.b32.xlu0 %v7641_v53, %s7185_s9 }
  0xcf   : > { %713 = vrot.lane.b32.xlu1 %v7662_v59, %s7185_s9 }
  0xd1   : > { %715 = vrot.lane.b32.xlu0 %v7651_v55, %s7185_s9 }
  0xd3   : > { %717 = vrot.lane.b32.xlu1 %v7675_v62, %s7185_s9 }
  0xd5   : > { %719 = vrot.lane.b32.xlu0 %v7658_v58, %s7185_s9 }
  0xd7   : > { %721 = vrot.lane.b32.xlu1 %v7685_v1, %s7185_s9 }
  0xd9   : > { %723 = vrot.lane.b32.xlu0 %v7670_v61, %s7185_s9 }
  0xdb   : > { %725 = vrot.lane.b32.xlu1 %v7695_v8, %s7185_s9 }
  0xdd   : > { %727 = vrot.lane.b32.xlu0 %v7681_v0, %s7185_s9 }
  0xdf   : > { %729 = vrot.lane.b32.xlu1 %v7705_v15, %s7185_s9 }
  0xe1   : > { %731 = vrot.lane.b32.xlu0 %v7691_v3, %s7185_s9 }
  0xe3   : > { %733 = vrot.lane.b32.xlu1 %v7715_v22, %s7185_s9 }
  0xe5   : > { %735 = vrot.lane.b32.xlu0 %v7701_v10, %s7185_s9 }
  0xe7   : > { %737 = vrot.lane.b32.xlu1 %v7725_v29, %s7185_s9 }
  0xe9   : > { %739 = vrot.lane.b32.xlu0 %v7711_v17, %s7185_s9 }
  0xeb   : > { %741 = vrot.lane.b32.xlu1 %v7735_v51, %s7185_s9 }
  0xed   : > { %743 = vrot.lane.b32.xlu0 %v7721_v28, %s7185_s9 }
  0xef   : > { %745 = vrot.lane.b32.xlu1 %v7745_v57, %s7185_s9 }
  0xf1   : > { %747 = vrot.lane.b32.xlu0 %v7731_v35, %s7185_s9 }
  0xf3   : > { %749 = vrot.lane.b32.xlu1 %v7758_v9, %s7185_s9 }
  0xf5   : > { %751 = vrot.lane.b32.xlu0 %v7741_v56, %s7185_s9 }
  0xf7   : > { %753 = vrot.lane.b32.xlu1 %v7770_v54, %s7185_s9  ;;  %v672_v54 = vld [vmem:[#allocation2 + $0xf1] sm:$0xff] }
  0xf9   : > { %755 = vrot.lane.b32.xlu0 %v7753_v2, %s7185_s9 }
  0xfb   : > { %v7764_v23 = vpop.permute.xlu0 %547 }
  0xfc   : > { %12998 = vst [vmem:[#allocation24_spill] sm:$0xff] %v7764_v23  ;;  %v7782_v23 = vsel %vm418_vm0, %v668_v48, 0.0  ;;  %v453_v48 = vld [vmem:[#allocation2 + $0x17] sm:$0xff] }
  0xfd   : > { %759 = vrot.lane.b32.xlu0 %v7766_v30, %s7185_s9  ;;  %13003 = vst [vmem:[#allocation29_spill] sm:$0xff] %v7782_v23  ;;  %757 = vrot.lane.b32.xlu1 %v7782_v23, %s7185_s9  ;;  %v7796_v30 = vpop.permute.xlu1 %551  ;;  %v7813_v2 = vsel %vm415_vm1, %v453_v48, 0.0 }
  0xfe   : > { %13006 = vst [vmem:[#allocation32_spill] sm:$0xff] %v7796_v30  ;;  %v674_v30 = vld [vmem:[#allocation2 + $0x101] sm:$0xff]  ;;  %13010 = vst [vmem:[#allocation36_spill] sm:$0xff] %v7813_v2 }
  0xff   : > { %v7776_v50 = vpop.permute.xlu0 %549 }
 0x100   : > { %13001 = vst [vmem:[#allocation27_spill] sm:$0xff] %v7776_v50 }
 0x101   : > { %763 = vrot.lane.b32.xlu0 %v7778_v47, %s7185_s9  ;;  %761 = vrot.lane.b32.xlu1 %v7792_v60, %s7185_s9  ;;  %v7805_v47 = vsel %vm418_vm0, %v672_v54, 0.0  ;;  %v7821_v54 = vsel %vm415_vm1, %v455_v63, 0.0  ;;  %v459_v63 = vld [vmem:[#allocation2 + $0x47] sm:$0xff] }
 0x102   : > { %13007 = vst [vmem:[#allocation33_spill] sm:$0xff] %v7805_v47  ;;  %13011 = vst [vmem:[#allocation37_spill] sm:$0xff] %v7821_v54 }
 0x103   : > { %v7794_v50 = vpop.permute.xlu0 %555 }
 0x104   : > { %13005 = vst [vmem:[#allocation31_spill] sm:$0xff] %v7794_v50  ;;  %v7809_v50 = vpop.permute.xlu1 %553 }
 0x105   : > { %767 = vrot.lane.b32.xlu0 %v7788_v16, %s7185_s9  ;;  %13009 = vst [vmem:[#allocation35_spill] sm:$0xff] %v7809_v50  ;;  %765 = vrot.lane.b32.xlu1 %v7805_v47, %s7185_s9  ;;  %v457_v50 = vld [vmem:[#allocation2 + $0x37] sm:$0xff] }
 0x107   : > { %v7807_v23 = vpop.permute.xlu0 %559 }
 0x108   : > { %13008 = vst [vmem:[#allocation34_spill] sm:$0xff] %v7807_v23  ;;  %v7825_v23 = vsel %vm418_vm0, %v674_v30, 0.0  ;;  %v7829_v48 = vpop.permute.xlu1 %557 }
 0x109   : > { %807 = vrot.lane.b32.xlu0 %v7813_v2, %s7186_s13  ;;  %13013 = vst [vmem:[#allocation39_spill] sm:$0xff] %v7829_v48  ;;  %769 = vrot.lane.b32.xlu1 %v7825_v23, %s7185_s9  ;;  %v7837_v2 = vsel %vm415_vm1, %v457_v50, 0.0  ;;  %v461_v48 = vld [vmem:[#allocation2 + $0x57] sm:$0xff] }
 0x10a   : > { %13014 = vst [vmem:[#allocation40_spill] sm:$0xff] %v7837_v2 }
 0x10b   : > { %v7827_v16 = vpop.permute.xlu0 %563 }
 0x10c   : > { %13012 = vst [vmem:[#allocation38_spill] sm:$0xff] %v7827_v16  ;;  %v7841_v30 = vpop.permute.xlu1 %561  ;;  %v7851_v16 = vsel %vm415_vm1, %v459_v63, 0.0 }
 0x10d   : > { %811 = vrot.lane.b32.xlu0 %v7821_v54, %s7186_s13  ;;  %13016 = vst [vmem:[#allocation42_spill] sm:$0xff] %v7841_v30  ;;  %809 = vrot.lane.b32.xlu1 %v7843_v52, %s7186_s13  ;;  %13018 = vst [vmem:[#allocation44_spill] sm:$0xff] %v7851_v16  ;;  %v7865_v30 = vsel %vm415_vm1, %v461_v48, 0.0  ;;  %v463_v52 = vld [vmem:[#allocation2 + $0x67] sm:$0xff] }
 0x10e   : > { %13022 = vst [vmem:[#allocation48_spill] sm:$0xff] %v7865_v30 }
 0x10f   : > { %v7839_v47 = vpop.permute.xlu0 %567 }
 0x110   : > { %13015 = vst [vmem:[#allocation41_spill] sm:$0xff] %v7839_v47  ;;  %v7855_v54 = vpop.permute.xlu1 %565  ;;  %v7857_v47 = vld [vmem:[#allocation2 + $0x2f] sm:$0xff] }
 0x111   : > { %815 = vrot.lane.b32.xlu0 %v7837_v2, %s7186_s13  ;;  %13020 = vst [vmem:[#allocation46_spill] sm:$0xff] %v7855_v54  ;;  %13021 = vst [vmem:[#allocation47_spill] sm:$0xff] %v7857_v47  ;;  %813 = vrot.lane.b32.xlu1 %v7857_v47, %s7186_s13  ;;  %v7879_v54 = vsel %vm415_vm1, %v463_v52, 0.0 }
 0x112   : > { %13026 = vst [vmem:[#allocation52_spill] sm:$0xff] %v7879_v54 }
 0x113   : > { %v7853_v50 = vpop.permute.xlu0 %571 }
 0x114   : > { %13019 = vst [vmem:[#allocation45_spill] sm:$0xff] %v7853_v50  ;;  %v7869_v2 = vpop.permute.xlu1 %569  ;;  %v7871_v50 = vld [vmem:[#allocation2 + $0x3f] sm:$0xff] }
 0x115   : > { %819 = vrot.lane.b32.xlu0 %v7851_v16, %s7186_s13  ;;  %13024 = vst [vmem:[#allocation50_spill] sm:$0xff] %v7869_v2  ;;  %13025 = vst [vmem:[#allocation51_spill] sm:$0xff] %v7871_v50  ;;  %817 = vrot.lane.b32.xlu1 %v7871_v50, %s7186_s13  ;;  %v465_v16 = vld [vmem:[#allocation2 + $0x77] sm:$0xff] }
 0x116   : > { %v7893_v2 = vsel %vm415_vm1, %v465_v16, 0.0 }
 0x117   : > { %v7867_v63 = vpop.permute.xlu0 %575  ;;  %13030 = vst [vmem:[#allocation56_spill] sm:$0xff] %v7893_v2 }
 0x118   : > { %13023 = vst [vmem:[#allocation49_spill] sm:$0xff] %v7867_v63  ;;  %v7883_v47 = vpop.permute.xlu1 %573  ;;  %v7885_v63 = vld [vmem:[#allocation2 + $0x4f] sm:$0xff] }
 0x119   : > { %823 = vrot.lane.b32.xlu0 %v7865_v30, %s7186_s13  ;;  %13028 = vst [vmem:[#allocation54_spill] sm:$0xff] %v7883_v47  ;;  %13029 = vst [vmem:[#allocation55_spill] sm:$0xff] %v7885_v63  ;;  %821 = vrot.lane.b32.xlu1 %v7885_v63, %s7186_s13  ;;  %v467_v30 = vld [vmem:[#allocation2 + $0x87] sm:$0xff] }
 0x11a   : > { %v7907_v47 = vsel %vm415_vm1, %v467_v30, 0.0 }
 0x11b   : > { %v7881_v48 = vpop.permute.xlu0 %579  ;;  %13034 = vst [vmem:[#allocation60_spill] sm:$0xff] %v7907_v47 }
 0x11c   : > { %13027 = vst [vmem:[#allocation53_spill] sm:$0xff] %v7881_v48  ;;  %v7897_v50 = vpop.permute.xlu1 %577  ;;  %v7899_v48 = vld [vmem:[#allocation2 + $0x5f] sm:$0xff] }
 0x11d   : > { %827 = vrot.lane.b32.xlu0 %v7879_v54, %s7186_s13  ;;  %13032 = vst [vmem:[#allocation58_spill] sm:$0xff] %v7897_v50  ;;  %13033 = vst [vmem:[#allocation59_spill] sm:$0xff] %v7899_v48  ;;  %825 = vrot.lane.b32.xlu1 %v7899_v48, %s7186_s13  ;;  %v469_v54 = vld [vmem:[#allocation2 + $0x97] sm:$0xff] }
 0x11e   : > { %v7921_v50 = vsel %vm415_vm1, %v469_v54, 0.0 }
 0x11f   : > { %v7895_v52 = vpop.permute.xlu0 %583  ;;  %13038 = vst [vmem:[#allocation64_spill] sm:$0xff] %v7921_v50 }
 0x120   : > { %13031 = vst [vmem:[#allocation57_spill] sm:$0xff] %v7895_v52  ;;  %v7911_v63 = vpop.permute.xlu1 %581  ;;  %v7913_v52 = vld [vmem:[#allocation2 + $0x6f] sm:$0xff] }
 0x121   : > { %831 = vrot.lane.b32.xlu0 %v7893_v2, %s7186_s13  ;;  %13036 = vst [vmem:[#allocation62_spill] sm:$0xff] %v7911_v63  ;;  %13037 = vst [vmem:[#allocation63_spill] sm:$0xff] %v7913_v52  ;;  %829 = vrot.lane.b32.xlu1 %v7913_v52, %s7186_s13  ;;  %v471_v2 = vld [vmem:[#allocation2 + $0xa7] sm:$0xff] }
 0x122   : > { %v7935_v63 = vsel %vm415_vm1, %v471_v2, 0.0 }
 0x123   : > { %v7909_v16 = vpop.permute.xlu0 %587  ;;  %13042 = vst [vmem:[#allocation68_spill] sm:$0xff] %v7935_v63 }
 0x124   : > { %13035 = vst [vmem:[#allocation61_spill] sm:$0xff] %v7909_v16  ;;  %v7925_v48 = vpop.permute.xlu1 %585  ;;  %v7927_v16 = vld [vmem:[#allocation2 + $0x7f] sm:$0xff] }
 0x125   : > { %835 = vrot.lane.b32.xlu0 %v7907_v47, %s7186_s13  ;;  %13040 = vst [vmem:[#allocation66_spill] sm:$0xff] %v7925_v48  ;;  %13041 = vst [vmem:[#allocation67_spill] sm:$0xff] %v7927_v16  ;;  %833 = vrot.lane.b32.xlu1 %v7927_v16, %s7186_s13  ;;  %v473_v47 = vld [vmem:[#allocation2 + $0xb7] sm:$0xff] }
 0x126   : > { %v7949_v48 = vsel %vm415_vm1, %v473_v47, 0.0 }
 0x127   : > { %v7923_v30 = vpop.permute.xlu0 %591  ;;  %13046 = vst [vmem:[#allocation72_spill] sm:$0xff] %v7949_v48 }
 0x128   : > { %13039 = vst [vmem:[#allocation65_spill] sm:$0xff] %v7923_v30  ;;  %v7939_v52 = vpop.permute.xlu1 %589  ;;  %v7941_v30 = vld [vmem:[#allocation2 + $0x8f] sm:$0xff] }
 0x129   : > { %839 = vrot.lane.b32.xlu0 %v7921_v50, %s7186_s13  ;;  %13044 = vst [vmem:[#allocation70_spill] sm:$0xff] %v7939_v52  ;;  %13045 = vst [vmem:[#allocation71_spill] sm:$0xff] %v7941_v30  ;;  %837 = vrot.lane.b32.xlu1 %v7941_v30, %s7186_s13  ;;  %v475_v50 = vld [vmem:[#allocation2 + $0xc7] sm:$0xff] }
 0x12a   : > { %v7963_v52 = vsel %vm415_vm1, %v475_v50, 0.0 }
 0x12b   : > { %v7937_v54 = vpop.permute.xlu0 %595  ;;  %13050 = vst [vmem:[#allocation76_spill] sm:$0xff] %v7963_v52 }
 0x12c   : > { %13043 = vst [vmem:[#allocation69_spill] sm:$0xff] %v7937_v54  ;;  %v7953_v16 = vpop.permute.xlu1 %593  ;;  %v7955_v54 = vld [vmem:[#allocation2 + $0x9f] sm:$0xff] }
 0x12d   : > { %843 = vrot.lane.b32.xlu0 %v7935_v63, %s7186_s13  ;;  %13048 = vst [vmem:[#allocation74_spill] sm:$0xff] %v7953_v16  ;;  %13049 = vst [vmem:[#allocation75_spill] sm:$0xff] %v7955_v54  ;;  %841 = vrot.lane.b32.xlu1 %v7955_v54, %s7186_s13  ;;  %v477_v63 = vld [vmem:[#allocation2 + $0xd7] sm:$0xff] }
 0x12e   : > { %v7977_v16 = vsel %vm415_vm1, %v477_v63, 0.0 }
 0x12f   : > { %v7951_v2 = vpop.permute.xlu0 %599  ;;  %13054 = vst [vmem:[#allocation80_spill] sm:$0xff] %v7977_v16 }
 0x130   : > { %13047 = vst [vmem:[#allocation73_spill] sm:$0xff] %v7951_v2  ;;  %v7967_v30 = vpop.permute.xlu1 %597  ;;  %v7969_v2 = vld [vmem:[#allocation2 + $0xaf] sm:$0xff] }
 0x131   : > { %847 = vrot.lane.b32.xlu0 %v7949_v48, %s7186_s13  ;;  %13052 = vst [vmem:[#allocation78_spill] sm:$0xff] %v7967_v30  ;;  %13053 = vst [vmem:[#allocation79_spill] sm:$0xff] %v7969_v2  ;;  %845 = vrot.lane.b32.xlu1 %v7969_v2, %s7186_s13  ;;  %v479_v48 = vld [vmem:[#allocation2 + $0xe7] sm:$0xff] }
 0x132   : > { %v7991_v30 = vsel %vm415_vm1, %v479_v48, 0.0 }
 0x133   : > { %v7965_v47 = vpop.permute.xlu0 %603  ;;  %13058 = vst [vmem:[#allocation84_spill] sm:$0xff] %v7991_v30 }
 0x134   : > { %13051 = vst [vmem:[#allocation77_spill] sm:$0xff] %v7965_v47  ;;  %v7981_v54 = vpop.permute.xlu1 %601  ;;  %v7983_v47 = vld [vmem:[#allocation2 + $0xbf] sm:$0xff] }
 0x135   : > { %851 = vrot.lane.b32.xlu0 %v7963_v52, %s7186_s13  ;;  %13056 = vst [vmem:[#allocation82_spill] sm:$0xff] %v7981_v54  ;;  %13057 = vst [vmem:[#allocation83_spill] sm:$0xff] %v7983_v47  ;;  %849 = vrot.lane.b32.xlu1 %v7983_v47, %s7186_s13  ;;  %v481_v52 = vld [vmem:[#allocation2 + $0xf7] sm:$0xff]  ;;  %v803_v47 = vld [vmem:[#allocation2 + $0x107] sm:$0xff] }
 0x136   : > { %v8005_v54 = vsel %vm415_vm1, %v481_v52, 0.0 }
 0x137   : > { %v7979_v50 = vpop.permute.xlu0 %607  ;;  %13061 = vst [vmem:[#allocation87_spill] sm:$0xff] %v8005_v54 }
 0x138   : > { %13055 = vst [vmem:[#allocation81_spill] sm:$0xff] %v7979_v50  ;;  %v7995_v2 = vpop.permute.xlu1 %605  ;;  %v7997_v50 = vld [vmem:[#allocation2 + $0xcf] sm:$0xff] }
 0x139   : > { %855 = vrot.lane.b32.xlu0 %v7977_v16, %s7186_s13  ;;  %13060 = vst [vmem:[#allocation86_spill] sm:$0xff] %v7995_v2  ;;  %853 = vrot.lane.b32.xlu1 %v7997_v50, %s7186_s13  ;;  %v8019_v2 = vsel %vm415_vm1, %v803_v47, 0.0  ;;  %v8041_v47 = vld [vmem:[#allocation2 + $0x10f] sm:$0xff] }
 0x13b   : > { %v7993_v63 = vpop.permute.xlu0 %707 }
 0x13c   : > { %13059 = vst [vmem:[#allocation85_spill] sm:$0xff] %v7993_v63  ;;  %v8009_v48 = vpop.permute.xlu1 %609  ;;  %v8011_v63 = vld [vmem:[#allocation2 + $0xdf] sm:$0xff] }
 0x13d   : > { %859 = vrot.lane.b32.xlu0 %v7991_v30, %s7186_s13  ;;  %13063 = vst [vmem:[#allocation89_spill] sm:$0xff] %v8009_v48  ;;  %13064 = vst [vmem:[#allocation90_spill] sm:$0xff] %v8011_v63  ;;  %857 = vrot.lane.b32.xlu1 %v8011_v63, %s7186_s13 }
 0x13f   : > { %v8007_v16 = vpop.permute.xlu0 %711 }
 0x140   : > { %13062 = vst [vmem:[#allocation88_spill] sm:$0xff] %v8007_v16  ;;  %v8023_v52 = vpop.permute.xlu1 %709  ;;  %v8025_v16 = vld [vmem:[#allocation2 + $0xef] sm:$0xff] }
 0x141   : > { %863 = vrot.lane.b32.xlu0 %v8005_v54, %s7186_s13  ;;  %13066 = vst [vmem:[#allocation92_spill] sm:$0xff] %v8023_v52  ;;  %861 = vrot.lane.b32.xlu1 %v8025_v16, %s7186_s13  ;;  %v8035_v54 = vld [vmem:[#allocation2 + $0xff] sm:$0xff] }
 0x143   : > { %v8021_v30 = vpop.permute.xlu0 %715 }
 0x144   : > { %13065 = vst [vmem:[#allocation91_spill] sm:$0xff] %v8021_v30  ;;  %v8033_v63 = vpop.permute.xlu1 %713 }
 0x145   : > { %867 = vrot.lane.b32.xlu0 %v8019_v2, %s7186_s13  ;;  %13068 = vst [vmem:[#allocation94_spill] sm:$0xff] %v8033_v63  ;;  %865 = vrot.lane.b32.xlu1 %v8035_v54, %s7186_s13 }
 0x147   : > { %v8031_v48 = vpop.permute.xlu0 %719 }
 0x148   : > { %13067 = vst [vmem:[#allocation93_spill] sm:$0xff] %v8031_v48  ;;  %v8045_v52 = vpop.permute.xlu1 %717 }
 0x149   : > { %905 = vrot.lane.b32.xlu0 %v7470_v5, %s7187_s15  ;;  %869 = vrot.lane.b32.xlu1 %v8041_v47, %s7186_s13 }
 0x14b   : > { %v8043_v30 = vpop.permute.xlu0 %723 }
 0x14c   : > { %13069 = vst [vmem:[#allocation95_spill] sm:$0xff] %v8043_v30  ;;  %v8053_v63 = vpop.permute.xlu1 %721 }
 0x14d   : > { %909 = vrot.lane.b32.xlu0 %v7468_v4, %s7187_s15  ;;  %907 = vrot.lane.b32.xlu1 %v7474_v7, %s7187_s15 }
 0x14f   : > { %v8051_v48 = vpop.permute.xlu0 %727 }
 0x150   : > { %13070 = vst [vmem:[#allocation96_spill] sm:$0xff] %v8051_v48  ;;  %v8061_v30 = vpop.permute.xlu1 %725 }
 0x151   : > { %913 = vrot.lane.b32.xlu0 %v7472_v6, %s7187_s15  ;;  %911 = vrot.lane.b32.xlu1 %v7481_v12, %s7187_s15 }
 0x153   : > { %v8059_v5 = vpop.permute.xlu0 %731 }
 0x154   : > { %13071 = vst [vmem:[#allocation97_spill] sm:$0xff] %v8059_v5  ;;  %v8069_v48 = vpop.permute.xlu1 %729  ;;  %v6682_v5 = vld [vmem:[#allocation6 + $0x40] sm:$0xff]  }
 0x155   : > { %917 = vrot.lane.b32.xlu0 %v7479_v11, %s7187_s15  ;;  %13073 = vst [vmem:[#allocation99_spill] sm:$0xff] %v8069_v48  ;;  %915 = vrot.lane.b32.xlu1 %v7485_v14, %s7187_s15  ;;  %v8497_v48 = vld [vmem:[#allocation2 + $0x60] sm:$0xff] }
 0x156   : > { %5915 = vmatprep.subr.bf16.mxu0 %v6682_v5  ;;  %6251 = vmatprep.subr.bf16.mxu1 %v6682_v5  ;;  %v13160_v5 = vld [vmem:[#allocation72_spill] sm:$0xff]  ;;  %13196 = vst [vmem:[#allocation161_spill] sm:$0xff] %v8497_v48 }
 0x157   : > { %v8067_v4 = vpop.permute.xlu0 %735 }
 0x158   : > { %13072 = vst [vmem:[#allocation98_spill] sm:$0xff] %v8067_v4  ;;  %v8077_v7 = vpop.permute.xlu1 %733 }
 0x159   : > { %921 = vrot.lane.b32.xlu0 %v7483_v13, %s7187_s15  ;;  %13074 = vst [vmem:[#allocation100_spill] sm:$0xff] %v8077_v7  ;;  %919 = vrot.lane.b32.xlu1 %v7500_v19, %s7187_s15  ;;  %v13151_v7 = vld [vmem:[#allocation67_spill] sm:$0xff] }
 0x15b   : > { %v8075_v6 = vpop.permute.xlu0 %739 }
 0x15c   : > { %v8085_v12 = vpop.permute.xlu1 %737 }
 0x15d   : > { %925 = vrot.lane.b32.xlu0 %v7498_v18, %s7187_s15  ;;  %13076 = vst [vmem:[#allocation102_spill] sm:$0xff] %v8085_v12  ;;  %923 = vrot.lane.b32.xlu1 %v7504_v21, %s7187_s15  ;;  %v13140_v12 = vld [vmem:[#allocation52_spill] sm:$0xff] }
 0x15f   : > { %v8083_v11 = vpop.permute.xlu0 %743 }
 0x160   : > { %13075 = vst [vmem:[#allocation101_spill] sm:$0xff] %v8083_v11  ;;  %v8093_v14 = vpop.permute.xlu1 %741 }
 0x161   : > { %929 = vrot.lane.b32.xlu0 %v7502_v20, %s7187_s15  ;;  %13078 = vst [vmem:[#allocation104_spill] sm:$0xff] %v8093_v14  ;;  %927 = vrot.lane.b32.xlu1 %v7514_v25, %s7187_s15  ;;  %v13264_v14 = vld [vmem:[#allocation35_spill] sm:$0xff] }
 0x163   : > { %v8091_v13 = vpop.permute.xlu0 %747 }
 0x164   : > { %13077 = vst [vmem:[#allocation103_spill] sm:$0xff] %v8091_v13  ;;  %v8101_v19 = vpop.permute.xlu1 %745  ;;  %v13148_v13 = vld [vmem:[#allocation60_spill] sm:$0xff] }
 0x165   : > { %933 = vrot.lane.b32.xlu0 %v7512_v24, %s7187_s15  ;;  %13080 = vst [vmem:[#allocation106_spill] sm:$0xff] %v8101_v19  ;;  %931 = vrot.lane.b32.xlu1 %v7518_v27, %s7187_s15 }
 0x167   : > { %v8099_v18 = vpop.permute.xlu0 %751 }
 0x168   : > { %13079 = vst [vmem:[#allocation105_spill] sm:$0xff] %v8099_v18  ;;  %v8109_v21 = vpop.permute.xlu1 %749 }
 0x169   : > { %937 = vrot.lane.b32.xlu0 %v7516_v26, %s7187_s15  ;;  %13082 = vst [vmem:[#allocation108_spill] sm:$0xff] %v8109_v21  ;;  %935 = vrot.lane.b32.xlu1 %v7529_v32, %s7187_s15 }
 0x16b   : > { %v8107_v20 = vpop.permute.xlu0 %755 }
 0x16c   : > { %13081 = vst [vmem:[#allocation107_spill] sm:$0xff] %v8107_v20  ;;  %v8117_v25 = vpop.permute.xlu1 %753 }
 0x16d   : > { %941 = vrot.lane.b32.xlu0 %v7527_v31, %s7187_s15  ;;  %13084 = vst [vmem:[#allocation110_spill] sm:$0xff] %v8117_v25  ;;  %939 = vrot.lane.b32.xlu1 %v7533_v34, %s7187_s15  ;;  %v13139_v25 = vld [vmem:[#allocation55_spill] sm:$0xff] }
 0x16f   : > { %v8115_v24 = vpop.permute.xlu0 %759 }
 0x170   : > { %13083 = vst [vmem:[#allocation109_spill] sm:$0xff] %v8115_v24  ;;  %v8125_v27 = vpop.permute.xlu1 %757 }
 0x171   : > { %945 = vrot.lane.b32.xlu0 %v7531_v33, %s7187_s15  ;;  %13086 = vst [vmem:[#allocation112_spill] sm:$0xff] %v8125_v27  ;;  %943 = vrot.lane.b32.xlu1 %v7542_v37, %s7187_s15  ;;  %v13131_v27 = vld [vmem:[#allocation47_spill] sm:$0xff] }
 0x173   : > { %v8123_v26 = vpop.permute.xlu0 %763 }
 0x174   : > { %13085 = vst [vmem:[#allocation111_spill] sm:$0xff] %v8123_v26  ;;  %v8133_v32 = vpop.permute.xlu1 %761 }
 0x175   : > { %949 = vrot.lane.b32.xlu0 %v7540_v36, %s7187_s15  ;;  %13088 = vst [vmem:[#allocation114_spill] sm:$0xff] %v8133_v32  ;;  %947 = vrot.lane.b32.xlu1 %v7546_v39, %s7187_s15 }
 0x177   : > { %v8131_v31 = vpop.permute.xlu0 %767 }
 0x178   : > { %13087 = vst [vmem:[#allocation113_spill] sm:$0xff] %v8131_v31  ;;  %v8139_v33 = vpop.permute.xlu1 %765 }
 0x179   : > { %953 = vrot.lane.b32.xlu0 %v7544_v38, %s7187_s15  ;;  %13089 = vst [vmem:[#allocation115_spill] sm:$0xff] %v8139_v33  ;;  %951 = vrot.lane.b32.xlu1 %v7561_v42, %s7187_s15 }
 0x17b   : > { %v8141_v34 = vpop.permute.xlu0 %807 }
 0x17c   : > { %v8147_v36 = vpop.permute.xlu1 %769 }
 0x17d   : > { %957 = vrot.lane.b32.xlu0 %v7559_v41, %s7187_s15  ;;  %13090 = vst [vmem:[#allocation116_spill] sm:$0xff] %v8147_v36  ;;  %955 = vrot.lane.b32.xlu1 %v7565_v44, %s7187_s15  ;;  %v13091_v41 = vunpack.c.l.bf16 %v7549_v40 }
 0x17f   : > { %v8149_v37 = vpop.permute.xlu0 %811 }
 0x180   : > { %v8155_v38 = vpop.permute.xlu1 %809 }
 0x181   : > { %961 = vrot.lane.b32.xlu0 %v7563_v43, %s7187_s15  ;;  %959 = vrot.lane.b32.xlu1 %v7571_v45, %s7187_s15  ;;  %v13093_v45 = vunpack.c.h.bf16 %v7549_v40 }
 0x183   : > { %v8157_v39 = vpop.permute.xlu0 %815 }
 0x184   : > { %v8164_v42 = vpop.permute.xlu1 %813 }
 0x185   : > { %965 = vrot.lane.b32.xlu0 %v13091_v41, %s7187_s15  ;;  %963 = vrot.lane.b32.xlu1 %v7573_v46, %s7187_s15 }
 0x187   : > { %v8166_v31 = vpop.permute.xlu0 %819 }
 0x188   : > { %v8172_v43 = vpop.permute.xlu1 %817 }
 0x189   : > { %1005 = vrot.lane.b32.xlu0 %v7641_v53, %s7188_s10  ;;  %967 = vrot.lane.b32.xlu1 %v13093_v45, %s7187_s15 }
 0x18b   : > { %v8174_v44 = vpop.permute.xlu0 %823 }
 0x18c   : > { %13092 = vst [vmem:[#allocation117_spill] sm:$0xff] %v8174_v44  ;;  %v8181_v41 = vpop.permute.xlu1 %821 }
 0x18d   : > { %1009 = vrot.lane.b32.xlu0 %v7651_v55, %s7188_s10  ;;  %1007 = vrot.lane.b32.xlu1 %v7662_v59, %s7188_s10 }
 0x18f   : > { %v8183_v36 = vpop.permute.xlu0 %827 }
 0x190   : > { %13094 = vst [vmem:[#allocation118_spill] sm:$0xff] %v8183_v36  ;;  %v8189_v46 = vpop.permute.xlu1 %825 }
 0x191   : > { %1013 = vrot.lane.b32.xlu0 %v7658_v58, %s7188_s10  ;;  %13095 = vst [vmem:[#allocation119_spill] sm:$0xff] %v8189_v46  ;;  %1011 = vrot.lane.b32.xlu1 %v7675_v62, %s7188_s10 }
 0x193   : > { %v8191_v53 = vpop.permute.xlu0 %831 }
 0x194   : > { %13096 = vst [vmem:[#allocation120_spill] sm:$0xff] %v8191_v53  ;;  %v8197_v40 = vpop.permute.xlu1 %829  ;;  %v13144_v53 = vld [vmem:[#allocation56_spill] sm:$0xff] }
 0x195   : > { %1017 = vrot.lane.b32.xlu0 %v7670_v61, %s7188_s10  ;;  %13097 = vst [vmem:[#allocation121_spill] sm:$0xff] %v8197_v40  ;;  %1015 = vrot.lane.b32.xlu1 %v7685_v1, %s7188_s10 }
 0x197   : > { %v8199_v45 = vpop.permute.xlu0 %835 }
 0x198   : > { %13098 = vst [vmem:[#allocation122_spill] sm:$0xff] %v8199_v45  ;;  %v8205_v58 = vpop.permute.xlu1 %833 }
 0x199   : > { %1021 = vrot.lane.b32.xlu0 %v7681_v0, %s7188_s10  ;;  %13099 = vst [vmem:[#allocation123_spill] sm:$0xff] %v8205_v58  ;;  %1019 = vrot.lane.b32.xlu1 %v7695_v8, %s7188_s10 }
 0x19b   : > { %v8207_v59 = vpop.permute.xlu0 %839 }
 0x19c   : > { %13100 = vst [vmem:[#allocation124_spill] sm:$0xff] %v8207_v59  ;;  %v8213_v61 = vpop.permute.xlu1 %837 }
 0x19d   : > { %1025 = vrot.lane.b32.xlu0 %v7691_v3, %s7188_s10  ;;  %13101 = vst [vmem:[#allocation125_spill] sm:$0xff] %v8213_v61  ;;  %1023 = vrot.lane.b32.xlu1 %v7705_v15, %s7188_s10 }
 0x19f   : > { %v8215_v62 = vpop.permute.xlu0 %843 }
 0x1a0   : > { %13102 = vst [vmem:[#allocation126_spill] sm:$0xff] %v8215_v62  ;;  %v8221_v0 = vpop.permute.xlu1 %841  ;;  %v13156_v62 = vld [vmem:[#allocation68_spill] sm:$0xff] }
 0x1a1   : > { %1029 = vrot.lane.b32.xlu0 %v7701_v10, %s7188_s10  ;;  %13103 = vst [vmem:[#allocation127_spill] sm:$0xff] %v8221_v0  ;;  %1027 = vrot.lane.b32.xlu1 %v7715_v22, %s7188_s10 }
 0x1a3   : > { %v8223_v1 = vpop.permute.xlu0 %847 }
 0x1a4   : > { %13104 = vst [vmem:[#allocation128_spill] sm:$0xff] %v8223_v1  ;;  %v8229_v3 = vpop.permute.xlu1 %845 }
 0x1a5   : > { %1033 = vrot.lane.b32.xlu0 %v7711_v17, %s7188_s10  ;;  %13105 = vst [vmem:[#allocation129_spill] sm:$0xff] %v8229_v3  ;;  %1031 = vrot.lane.b32.xlu1 %v7725_v29, %s7188_s10  ;;  %v6685_v3 = vld [vmem:[#allocation6 + $0x8] sm:$0xff]  }
 0x1a7   : > { %v8231_v8 = vpop.permute.xlu0 %851 }
 0x1a8   : > { %13106 = vst [vmem:[#allocation130_spill] sm:$0xff] %v8231_v8  ;;  %v8237_v10 = vpop.permute.xlu1 %849  ;;  %v13132_v8 = vld [vmem:[#allocation44_spill] sm:$0xff] }
 0x1a9   : > { %1037 = vrot.lane.b32.xlu0 %v7721_v28, %s7188_s10  ;;  %13107 = vst [vmem:[#allocation131_spill] sm:$0xff] %v8237_v10  ;;  %1035 = vrot.lane.b32.xlu1 %v7735_v51, %s7188_s10  ;;  %v13113_v51 = vld [vmem:[#allocation23_spill] sm:$0xff] }
 0x1ab   : > { %v8239_v15 = vpop.permute.xlu0 %855 }
 0x1ac   : > { %13108 = vst [vmem:[#allocation132_spill] sm:$0xff] %v8239_v15  ;;  %v8245_v17 = vpop.permute.xlu1 %853 }
 0x1ad   : > { %1041 = vrot.lane.b32.xlu0 %v7731_v35, %s7188_s10  ;;  %13109 = vst [vmem:[#allocation133_spill] sm:$0xff] %v8245_v17  ;;  %1039 = vrot.lane.b32.xlu1 %v7745_v57, %s7188_s10  ;;  %v13117_v57 = vld [vmem:[#allocation25_spill] sm:$0xff]  ;;  %v13135_v17 = vld [vmem:[#allocation51_spill] sm:$0xff] }
 0x1af   : > { %v8247_v22 = vpop.permute.xlu0 %859 }
 0x1b0   : > { %13110 = vst [vmem:[#allocation134_spill] sm:$0xff] %v8247_v22  ;;  %v8253_v28 = vpop.permute.xlu1 %857  ;;  %v13116_v22 = vld [vmem:[#allocation26_spill] sm:$0xff] }
 0x1b1   : > { %1045 = vrot.lane.b32.xlu0 %v7741_v56, %s7188_s10  ;;  %13111 = vst [vmem:[#allocation135_spill] sm:$0xff] %v8253_v28  ;;  %1043 = vrot.lane.b32.xlu1 %v7758_v9, %s7188_s10  ;;  %v13120_v9 = vld [vmem:[#allocation28_spill] sm:$0xff] }
 0x1b2   : > { %v13129_v28 = vld [vmem:[#allocation40_spill] sm:$0xff] }
 0x1b3   : > { %v8255_v29 = vpop.permute.xlu0 %863 }
 0x1b4   : > { %13112 = vst [vmem:[#allocation136_spill] sm:$0xff] %v8255_v29  ;;  %v8261_v26 = vpop.permute.xlu1 %861  ;;  %v13119_v29 = vld [vmem:[#allocation29_spill] sm:$0xff] }
 0x1b5   : > { %1049 = vrot.lane.b32.xlu0 %v13113_v51, %s7188_s10  ;;  %13114 = vst [vmem:[#allocation23_spill] sm:$0xff] %v8261_v26  ;;  %1047 = vrot.lane.b32.xlu1 %v13116_v22, %s7188_s10  ;;  %v13122_v22 = vld [vmem:[#allocation30_spill] sm:$0xff] }
 0x1b7   : > { %v8263_v33 = vpop.permute.xlu0 %867 }
 0x1b8   : > { %13115 = vst [vmem:[#allocation137_spill] sm:$0xff] %v8263_v33  ;;  %v8269_v56 = vpop.permute.xlu1 %865 }
 0x1b9   : > { %1053 = vrot.lane.b32.xlu0 %v13117_v57, %s7188_s10  ;;  %13118 = vst [vmem:[#allocation26_spill] sm:$0xff] %v8269_v56  ;;  %1051 = vrot.lane.b32.xlu1 %v13119_v29, %s7188_s10  ;;  %v8285_v57 = vld [vmem:[#allocation2 + $0x109] sm:$0xff] }
 0x1ba   : > { %13123 = vst [vmem:[#allocation29_spill] sm:$0xff] %v8285_v57  ;;  %v13124_v29 = vld [vmem:[#allocation33_spill] sm:$0xff] }
 0x1bb   : > { %v8271_v24 = vpop.permute.xlu0 %905 }
 0x1bc   : > { %v8277_v51 = vpop.permute.xlu1 %869 }
 0x1bd   : > { %1057 = vrot.lane.b32.xlu0 %v13120_v9, %s7188_s10  ;;  %13121 = vst [vmem:[#allocation25_spill] sm:$0xff] %v8277_v51  ;;  %1055 = vrot.lane.b32.xlu1 %v7792_v60, %s7188_s10  ;;  %v8299_v60 = vld [vmem:[#allocation2 + $0x111] sm:$0xff] }
 0x1be   : > { %13125 = vst [vmem:[#allocation28_spill] sm:$0xff] %v8299_v60 }
 0x1bf   : > { %v8279_v26 = vpop.permute.xlu0 %909 }
 0x1c0   : > { %v8287_v33 = vpop.permute.xlu1 %907 }
 0x1c1   : > { %1061 = vrot.lane.b32.xlu0 %v13122_v22, %s7188_s10  ;;  %1059 = vrot.lane.b32.xlu1 %v13124_v29, %s7188_s10  ;;  %v13126_v22 = vld [vmem:[#allocation37_spill] sm:$0xff]  ;;  %v1004_v29 = vsel %vm418_vm0, %v8299_v60, 0.0 }
 0x1c3   : > { %v8289_v56 = vpop.permute.xlu0 %913 }
 0x1c4   : > { %v8295_v9 = vpop.permute.xlu1 %911 }
 0x1c5   : > { %1065 = vrot.lane.b32.xlu0 %v8285_v57, %s7188_s10  ;;  %1063 = vrot.lane.b32.xlu1 %v7825_v23, %s7188_s10 }
 0x1c7   : > { %v8297_v51 = vpop.permute.xlu0 %917 }
 0x1c8   : > { %v8308_v15 = vpop.permute.xlu1 %915 }
 0x1c9   : > { %1105 = vrot.lane.b32.xlu0 %v13126_v22, %s7189_s14  ;;  %1067 = vrot.lane.b32.xlu1 %v1004_v29, %s7188_s10  ;;  %v13136_v29 = vld [vmem:[#allocation48_spill] sm:$0xff] }
 0x1cb   : > { %v8310_v57 = vpop.permute.xlu0 %921 }
 0x1cc   : > { %13128 = vst [vmem:[#allocation30_spill] sm:$0xff] %v8310_v57  ;;  %v8315_v20 = vpop.permute.xlu1 %919 }
 0x1cd   : > { %1109 = vrot.lane.b32.xlu0 %v13129_v28, %s7189_s14  ;;  %1107 = vrot.lane.b32.xlu1 %v13131_v27, %s7189_s14 }
 0x1cf   : > { %v8317_v23 = vpop.permute.xlu0 %925 }
 0x1d0   : > { %13130 = vst [vmem:[#allocation33_spill] sm:$0xff] %v8317_v23  ;;  %v8323_v60 = vpop.permute.xlu1 %923  ;;  %v6683_v23 = vld [vmem:[#allocation6] sm:$0xff]  }
 0x1d1   : > { %1113 = vrot.lane.b32.xlu0 %v13132_v8, %s7189_s14  ;;  %13133 = vst [vmem:[#allocation37_spill] sm:$0xff] %v8323_v60  ;;  %1111 = vrot.lane.b32.xlu1 %v13135_v17, %s7189_s14 }
 0x1d2   : > { %5916 = vmatpush3.bf16.msra.mxu0 %v6683_v23  ;;  %6259 = vmatpush3.bf16.msra.mxu1 %v6683_v23  ;;  %v6687_v23 = vld [vmem:[#allocation6 + $0x10] sm:$0xff]  }
 0x1d3   : > { %v8325_v45 = vpop.permute.xlu0 %929 }
 0x1d4   : > { %13134 = vst [vmem:[#allocation40_spill] sm:$0xff] %v8325_v45  ;;  %v8331_v61 = vpop.permute.xlu1 %927  ;;  %v13143_v45 = vld [vmem:[#allocation59_spill] sm:$0xff] }
 0x1d5   : > { %1117 = vrot.lane.b32.xlu0 %v13136_v29, %s7189_s14  ;;  %13137 = vst [vmem:[#allocation47_spill] sm:$0xff] %v8331_v61  ;;  %1115 = vrot.lane.b32.xlu1 %v13139_v25, %s7189_s14  ;;  %v13155_v61 = vld [vmem:[#allocation71_spill] sm:$0xff] }
 0x1d7   : > { %v8333_v18 = vpop.permute.xlu0 %933 }
 0x1d8   : > { %13138 = vst [vmem:[#allocation44_spill] sm:$0xff] %v8333_v18  ;;  %v8339_v4 = vpop.permute.xlu1 %931  ;;  %v13147_v18 = vld [vmem:[#allocation63_spill] sm:$0xff] }
 0x1d9   : > { %1121 = vrot.lane.b32.xlu0 %v13140_v12, %s7189_s14  ;;  %13141 = vst [vmem:[#allocation51_spill] sm:$0xff] %v8339_v4  ;;  %1119 = vrot.lane.b32.xlu1 %v13143_v45, %s7189_s14  ;;  %v13152_v45 = vld [vmem:[#allocation64_spill] sm:$0xff] }
 0x1db   : > { %v8341_v1 = vpop.permute.xlu0 %937 }
 0x1dc   : > { %13142 = vst [vmem:[#allocation48_spill] sm:$0xff] %v8341_v1  ;;  %v8347_v10 = vpop.permute.xlu1 %935 }
 0x1dd   : > { %1125 = vrot.lane.b32.xlu0 %v13144_v53, %s7189_s14  ;;  %13145 = vst [vmem:[#allocation55_spill] sm:$0xff] %v8347_v10  ;;  %1123 = vrot.lane.b32.xlu1 %v13147_v18, %s7189_s14 }
 0x1df   : > { %v8349_v58 = vpop.permute.xlu0 %941 }
 0x1e0   : > { %13146 = vst [vmem:[#allocation52_spill] sm:$0xff] %v8349_v58  ;;  %v8355_v21 = vpop.permute.xlu1 %939 }
 0x1e1   : > { %1129 = vrot.lane.b32.xlu0 %v13148_v13, %s7189_s14  ;;  %13149 = vst [vmem:[#allocation59_spill] sm:$0xff] %v8355_v21  ;;  %1127 = vrot.lane.b32.xlu1 %v13151_v7, %s7189_s14 }
 0x1e3   : > { %v8357_v4 = vpop.permute.xlu0 %945 }
 0x1e4   : > { %13150 = vst [vmem:[#allocation60_spill] sm:$0xff] %v8357_v4  ;;  %v8363_v10 = vpop.permute.xlu1 %943  ;;  %v6684_v4 = vld [vmem:[#allocation6 + $0x48] sm:$0xff]  }
 0x1e5   : > { %1133 = vrot.lane.b32.xlu0 %v13152_v45, %s7189_s14  ;;  %13153 = vst [vmem:[#allocation67_spill] sm:$0xff] %v8363_v10  ;;  %1131 = vrot.lane.b32.xlu1 %v13155_v61, %s7189_s14  ;;  %v6686_v10 = vld [vmem:[#allocation6 + $0x50] sm:$0xff]  }
 0x1e6   : > { %5917 = vmatprep.subr.bf16.mxu0 %v6684_v4  ;;  %6252 = vmatprep.subr.bf16.mxu1 %v6684_v4  ;;  %v13164_v4 = vld [vmem:[#allocation76_spill] sm:$0xff] }
 0x1e7   : > { %v8365_v58 = vpop.permute.xlu0 %949  ;;  %5918 = vmatpush3.bf16.msra.mxu0 %v6685_v3  ;;  %6260 = vmatpush3.bf16.msra.mxu1 %v6685_v3  ;;  %v6689_v3 = vld [vmem:[#allocation6 + $0x18] sm:$0xff]  }
 0x1e8   : > { %13154 = vst [vmem:[#allocation138_spill] sm:$0xff] %v8365_v58  ;;  %v8371_v7 = vpop.permute.xlu1 %947  ;;  %v13159_v58 = vld [vmem:[#allocation75_spill] sm:$0xff]  ;;  %5919 = vmatprep.subr.bf16.mxu0 %v6686_v10  ;;  %6253 = vmatprep.subr.bf16.mxu1 %v6686_v10  ;;  %v13168_v10 = vld [vmem:[#allocation80_spill] sm:$0xff] }
 0x1e9   : > { %1137 = vrot.lane.b32.xlu0 %v13156_v62, %s7189_s14  ;;  %13157 = vst [vmem:[#allocation71_spill] sm:$0xff] %v8371_v7  ;;  %1135 = vrot.lane.b32.xlu1 %v13159_v58, %s7189_s14  ;;  %v6688_v7 = vld [vmem:[#allocation6 + $0x58] sm:$0xff]  }
 0x1eb   : > { %v8373_v36 = vpop.permute.xlu0 %953  ;;  %5920 = vmatpush3.bf16.msra.mxu0 %v6687_v23  ;;  %6261 = vmatpush3.bf16.msra.mxu1 %v6687_v23  ;;  %v6691_v23 = vld [vmem:[#allocation6 + $0x20] sm:$0xff]  }
 0x1ec   : > { %13158 = vst [vmem:[#allocation139_spill] sm:$0xff] %v8373_v36  ;;  %v8379_v40 = vpop.permute.xlu1 %951  ;;  %v13163_v36 = vld [vmem:[#allocation79_spill] sm:$0xff]  ;;  %5921 = vmatprep.subr.bf16.mxu0 %v6688_v7  ;;  %6254 = vmatprep.subr.bf16.mxu1 %v6688_v7  ;;  %v13171_v7 = vld [vmem:[#allocation84_spill] sm:$0xff] }
 0x1ed   : > { %1141 = vrot.lane.b32.xlu0 %v13160_v5, %s7189_s14  ;;  %13161 = vst [vmem:[#allocation140_spill] sm:$0xff] %v8379_v40  ;;  %1139 = vrot.lane.b32.xlu1 %v13163_v36, %s7189_s14  ;;  %v6690_v36 = vld [vmem:[#allocation6 + $0x60] sm:$0xff]  }
 0x1ef   : > { %v8381_v11 = vpop.permute.xlu0 %957  ;;  %5922 = vmatpush3.bf16.msra.mxu0 %v6689_v3  ;;  %6262 = vmatpush3.bf16.msra.mxu1 %v6689_v3  ;;  %v6693_v3 = vld [vmem:[#allocation6 + $0x28] sm:$0xff]  }
 0x1f0   : > { %13162 = vst [vmem:[#allocation141_spill] sm:$0xff] %v8381_v11  ;;  %v8387_v5 = vpop.permute.xlu1 %955  ;;  %v13167_v11 = vld [vmem:[#allocation83_spill] sm:$0xff]  ;;  %5923 = vmatprep.subr.bf16.mxu0 %v6690_v36  ;;  %6255 = vmatprep.subr.bf16.mxu1 %v6690_v36 }
 0x1f1   : > { %1145 = vrot.lane.b32.xlu0 %v13164_v4, %s7189_s14  ;;  %13165 = vst [vmem:[#allocation79_spill] sm:$0xff] %v8387_v5  ;;  %1143 = vrot.lane.b32.xlu1 %v13167_v11, %s7189_s14  ;;  %v6692_v11 = vld [vmem:[#allocation6 + $0x68] sm:$0xff]   ;;  %v13174_v36 = vld [vmem:[#allocation87_spill] sm:$0xff] }
 0x1f2   : > { %v8473_v5 = vld [vmem:[#allocation2 + $0x40] sm:$0xff] }
 0x1f3   : > { %v8389_v19 = vpop.permute.xlu0 %961  ;;  %5924 = vmatpush3.bf16.msra.mxu0 %v6691_v23  ;;  %6263 = vmatpush3.bf16.msra.mxu1 %v6691_v23  ;;  %v1101_v23 = vld [vmem:[#allocation2 + $0x117] sm:$0xff]  ;;  %13188 = vst [vmem:[#allocation153_spill] sm:$0xff] %v8473_v5 }
 0x1f4   : > { %13166 = vst [vmem:[#allocation142_spill] sm:$0xff] %v8389_v19  ;;  %v8395_v4 = vpop.permute.xlu1 %959  ;;  %5925 = vmatprep.subr.bf16.mxu0 %v6692_v11  ;;  %6256 = vmatprep.subr.bf16.mxu1 %v6692_v11  ;;  %v6696_v11 = vld [vmem:[#allocation6 + $0x78] sm:$0xff]  }
 0x1f5   : > { %1149 = vrot.lane.b32.xlu0 %v13168_v10, %s7189_s14  ;;  %13169 = vst [vmem:[#allocation83_spill] sm:$0xff] %v8395_v4  ;;  %1147 = vrot.lane.b32.xlu1 %v7997_v50, %s7189_s14  ;;  %v6694_v50 = vld [vmem:[#allocation6 + $0x70] sm:$0xff]  }
 0x1f7   : > { %v8397_v40 = vpop.permute.xlu0 %965  ;;  %5926 = vmatpush3.bf16.msra.mxu0 %v6693_v3  ;;  %6264 = vmatpush3.bf16.msra.mxu1 %v6693_v3 }
 0x1f8   : > { %13170 = vst [vmem:[#allocation143_spill] sm:$0xff] %v8397_v40  ;;  %v8403_v19 = vpop.permute.xlu1 %963  ;;  %v13173_v40 = vld [vmem:[#allocation90_spill] sm:$0xff]  ;;  %5927 = vmatprep.subr.bf16.mxu0 %v6694_v50  ;;  %6257 = vmatprep.subr.bf16.mxu1 %v6694_v50 }
 0x1f9   : > { %1153 = vrot.lane.b32.xlu0 %v13171_v7, %s7189_s14  ;;  %13172 = vst [vmem:[#allocation144_spill] sm:$0xff] %v8403_v19  ;;  %1151 = vrot.lane.b32.xlu1 %v13173_v40, %s7189_s14  ;;  %v6695_v19 = vld [vmem:[#allocation6 + $0x30] sm:$0xff]   ;;  %v1103_v40 = vsel %vm415_vm1, %v1101_v23, 0.0 }
 0x1fb   : > { %v8405_v10 = vpop.permute.xlu0 %1005  ;;  %5928 = vmatpush3.bf16.msra.mxu0 %v6695_v19  ;;  %6265 = vmatpush3.bf16.msra.mxu1 %v6695_v19  ;;  %v13177_v19 = vmov 0 }
 0x1fc   : > { %v8411_v7 = vpop.permute.xlu1 %967  ;;  %5929 = vmatprep.subr.bf16.mxu0 %v6696_v11  ;;  %6258 = vmatprep.subr.bf16.mxu1 %v6696_v11  ;;  %v13178_v19 = vsel %vm8432_vm3, 4294967295, %v13177_v19  ;;  %v8453_v11 = vld [vmem:[#allocation2 + $0x38] sm:$0xff] }
 0x1fd   : > { %1157 = vrot.lane.b32.xlu0 %v13174_v36, %s7189_s14  ;;  %13175 = vst [vmem:[#allocation90_spill] sm:$0xff] %v8411_v7  ;;  %1155 = vrot.lane.b32.xlu1 %v8025_v16, %s7189_s14  ;;  %v6697_v36 = vld [vmem:[#allocation6 + $0x38] sm:$0xff]   ;;  %v13176_v16 = vld [vmem:[#allocation21_spill] sm:$0xff]  ;;  %13182 = vst [vmem:[#allocation147_spill] sm:$0xff] %v8453_v11 }
 0x1fe   : > { %13179 = vst [vmem:[#allocation21_spill] sm:$0xff] %v13178_v19 }
 0x1ff   : > { %v8413_v4 = vpop.permute.xlu0 %1009  ;;  %5930 = vmatpush3.bf16.msra.mxu0 %v6697_v36  ;;  %6266 = vmatpush3.bf16.msra.mxu1 %v6697_v36 }
 0x200   : > { %v8421_v3 = vpop.permute.xlu1 %1007 }
 0x201   : > { %1161 = vrot.lane.b32.xlu0 %v8019_v2, %s7189_s14  ;;  %1159 = vrot.lane.b32.xlu1 %v8035_v54, %s7189_s14  ;;  %v5493_v2 = vpack.c.bf16 %v13176_v16, %v7651_v55  ;;  %v8444_v55 = vld [vmem:[#allocation2 + $0x28] sm:$0xff]  ;;  %v1102_v54 = vld [vmem:[#allocation2 + $0x11f] sm:$0xff] }
 0x202   : > { %13180 = vst [vmem:[#allocation145_spill] sm:$0xff] %v8444_v55 }
 0x203   : > { %v8423_v7 = vpop.permute.xlu0 %1013  ;;  %5494 = vmatprep.mubr.msk.bf16.mxu0 %vm8432_vm3, %v5493_v2  ;;  %v8461_v2 = vld [vmem:[#allocation2 + $0x30] sm:$0xff] }
 0x204   : > { %v8436_v50 = vpop.permute.xlu1 %1011  ;;  %13184 = vst [vmem:[#allocation149_spill] sm:$0xff] %v8461_v2 }
 0x205   : > { %1165 = vrot.lane.b32.xlu0 %v1103_v40, %s7189_s14  ;;  %1163 = vrot.lane.b32.xlu1 %v8041_v47, %s7189_s14 }
 0x207   : > { %v8438_v23 = vpop.permute.xlu0 %1017 }
 0x208   : > { %v8448_v40 = vpop.permute.xlu1 %1015 }
 0x209   : > { %1203 = vrot.lane.b32.xlu0 %v8444_v55, %s7191_s12  ;;  %1167 = vrot.lane.b32.xlu1 %v1102_v54, %s7189_s14  ;;  %v8465_v55 = vld [vmem:[#allocation2 + $0x48] sm:$0xff] }
 0x20a   : > { %13185 = vst [vmem:[#allocation150_spill] sm:$0xff] %v8465_v55 }
 0x20b   : > { %v8450_v36 = vpop.permute.xlu0 %1021 }
 0x20c   : > { %13181 = vst [vmem:[#allocation146_spill] sm:$0xff] %v8450_v36  ;;  %v8457_v16 = vpop.permute.xlu1 %1019  ;;  %v8485_v36 = vld [vmem:[#allocation2 + $0x50] sm:$0xff] }
 0x20d   : > { %1207 = vrot.lane.b32.xlu0 %v8453_v11, %s7191_s12  ;;  %1205 = vrot.lane.b32.xlu1 %v8461_v2, %s7191_s12  ;;  %v8477_v11 = vld [vmem:[#allocation2 + $0x58] sm:$0xff]  ;;  %13192 = vst [vmem:[#allocation157_spill] sm:$0xff] %v8485_v36 }
 0x20e   : > { %13189 = vst [vmem:[#allocation154_spill] sm:$0xff] %v8477_v11 }
 0x20f   : > { %v8459_v47 = vpop.permute.xlu0 %1025 }
 0x210   : > { %13183 = vst [vmem:[#allocation148_spill] sm:$0xff] %v8459_v47  ;;  %v8469_v54 = vpop.permute.xlu1 %1023 }
 0x211   : > { %1211 = vrot.lane.b32.xlu0 %v8465_v55, %s7191_s12  ;;  %13186 = vst [vmem:[#allocation151_spill] sm:$0xff] %v8469_v54  ;;  %1209 = vrot.lane.b32.xlu1 %v8473_v5, %s7191_s12  ;;  %v8489_v55 = vld [vmem:[#allocation2 + $0x68] sm:$0xff] }
 0x212   : > { %13193 = vst [vmem:[#allocation158_spill] sm:$0xff] %v8489_v55 }
 0x213   : > { %v8471_v32 = vpop.permute.xlu0 %1029 }
 0x214   : > { %13187 = vst [vmem:[#allocation152_spill] sm:$0xff] %v8471_v32  ;;  %v8481_v2 = vpop.permute.xlu1 %1027 }
 0x215   : > { %1215 = vrot.lane.b32.xlu0 %v8477_v11, %s7191_s12  ;;  %13190 = vst [vmem:[#allocation155_spill] sm:$0xff] %v8481_v2  ;;  %1213 = vrot.lane.b32.xlu1 %v8485_v36, %s7191_s12  ;;  %v8501_v11 = vld [vmem:[#allocation2 + $0x78] sm:$0xff]  ;;  %v8509_v2 = vld [vmem:[#allocation2 + $0x70] sm:$0xff] }
 0x216   : > { %13197 = vst [vmem:[#allocation162_spill] sm:$0xff] %v8501_v11  ;;  %13200 = vst [vmem:[#allocation165_spill] sm:$0xff] %v8509_v2 }
 0x217   : > { %v8483_v47 = vpop.permute.xlu0 %1033 }
 0x218   : > { %13191 = vst [vmem:[#allocation156_spill] sm:$0xff] %v8483_v47  ;;  %v8493_v5 = vpop.permute.xlu1 %1031 }
 0x219   : > { %1219 = vrot.lane.b32.xlu0 %v8489_v55, %s7191_s12  ;;  %13194 = vst [vmem:[#allocation159_spill] sm:$0xff] %v8493_v5  ;;  %1217 = vrot.lane.b32.xlu1 %v8497_v48, %s7191_s12  ;;  %v8513_v55 = vld [vmem:[#allocation2 + $0x88] sm:$0xff] }
 0x21a   : > { %13201 = vst [vmem:[#allocation166_spill] sm:$0xff] %v8513_v55 }
 0x21b   : > { %v8495_v32 = vpop.permute.xlu0 %1037 }
 0x21c   : > { %13195 = vst [vmem:[#allocation160_spill] sm:$0xff] %v8495_v32  ;;  %v8505_v36 = vpop.permute.xlu1 %1035  ;;  %v8521_v32 = vld [vmem:[#allocation2 + $0x80] sm:$0xff] }
 0x21d   : > { %1223 = vrot.lane.b32.xlu0 %v8501_v11, %s7191_s12  ;;  %13198 = vst [vmem:[#allocation163_spill] sm:$0xff] %v8505_v36  ;;  %1221 = vrot.lane.b32.xlu1 %v8509_v2, %s7191_s12  ;;  %13204 = vst [vmem:[#allocation169_spill] sm:$0xff] %v8521_v32  ;;  %v8525_v11 = vld [vmem:[#allocation2 + $0x98] sm:$0xff] }
 0x21e   : > { %13205 = vst [vmem:[#allocation170_spill] sm:$0xff] %v8525_v11  ;;  %v13206_v2 = vld [vmem:[#allocation22_spill] sm:$0xff] }
 0x21f   : > { %v8507_v47 = vpop.permute.xlu0 %1041  ;;  %v5517_v36 = vpack.c.bf16 %v13206_v2, %v7731_v35  ;;  %v8549_v2 = vld [vmem:[#allocation2 + $0xa0] sm:$0xff] }
 0x220   : > { %13199 = vst [vmem:[#allocation164_spill] sm:$0xff] %v8507_v47  ;;  %v8517_v48 = vpop.permute.xlu1 %1039  ;;  %13213 = vst [vmem:[#allocation176_spill] sm:$0xff] %v8549_v2 }
 0x221   : > { %1227 = vrot.lane.b32.xlu0 %v8513_v55, %s7191_s12  ;;  %13202 = vst [vmem:[#allocation167_spill] sm:$0xff] %v8517_v48  ;;  %1225 = vrot.lane.b32.xlu1 %v8521_v32, %s7191_s12  ;;  %v8541_v32 = vld [vmem:[#allocation2 + $0xa8] sm:$0xff]  ;;  %v8619_v48 = vld [vmem:[#allocation2 + $0x100] sm:$0xff] }
 0x222   : > { %5518 = vmatprep.mubr.msk.bf16.mxu1 %vm8432_vm3, %v5517_v36  ;;  %13210 = vst [vmem:[#allocation173_spill] sm:$0xff] %v8541_v32  ;;  %v8553_v36 = vld [vmem:[#allocation2 + $0xb8] sm:$0xff]  ;;  %13233 = vst [vmem:[#allocation196_spill] sm:$0xff] %v8619_v48 }
 0x223   : > { %v8519_v5 = vpop.permute.xlu0 %1045  ;;  %13214 = vst [vmem:[#allocation177_spill] sm:$0xff] %v8553_v36 }
 0x224   : > { %13203 = vst [vmem:[#allocation168_spill] sm:$0xff] %v8519_v5  ;;  %v8531_v47 = vpop.permute.xlu1 %1043  ;;  %v8537_v5 = vld [vmem:[#allocation2 + $0x90] sm:$0xff] }
 0x225   : > { %1231 = vrot.lane.b32.xlu0 %v8525_v11, %s7191_s12  ;;  %13207 = vst [vmem:[#allocation22_spill] sm:$0xff] %v8531_v47  ;;  %13209 = vst [vmem:[#allocation172_spill] sm:$0xff] %v8537_v5  ;;  %1229 = vrot.lane.b32.xlu1 %v8537_v5, %s7191_s12  ;;  %v8561_v47 = vld [vmem:[#allocation2 + $0xb0] sm:$0xff] }
 0x226   : > { %13217 = vst [vmem:[#allocation180_spill] sm:$0xff] %v8561_v47 }
 0x227   : > { %v8533_v55 = vpop.permute.xlu0 %1049 }
 0x228   : > { %13208 = vst [vmem:[#allocation171_spill] sm:$0xff] %v8533_v55  ;;  %v8545_v11 = vpop.permute.xlu1 %1047 }
 0x229   : > { %1235 = vrot.lane.b32.xlu0 %v8541_v32, %s7191_s12  ;;  %13211 = vst [vmem:[#allocation174_spill] sm:$0xff] %v8545_v11  ;;  %1233 = vrot.lane.b32.xlu1 %v8549_v2, %s7191_s12  ;;  %v8565_v32 = vld [vmem:[#allocation2 + $0xc8] sm:$0xff]  ;;  %v8573_v11 = vld [vmem:[#allocation2 + $0xc0] sm:$0xff] }
 0x22a   : > { %13218 = vst [vmem:[#allocation181_spill] sm:$0xff] %v8565_v32  ;;  %13221 = vst [vmem:[#allocation184_spill] sm:$0xff] %v8573_v11 }
 0x22b   : > { %v8547_v35 = vpop.permute.xlu0 %1053 }
 0x22c   : > { %13212 = vst [vmem:[#allocation175_spill] sm:$0xff] %v8547_v35  ;;  %v8557_v5 = vpop.permute.xlu1 %1051 }
 0x22d   : > { %1239 = vrot.lane.b32.xlu0 %v8553_v36, %s7191_s12  ;;  %13215 = vst [vmem:[#allocation178_spill] sm:$0xff] %v8557_v5  ;;  %1237 = vrot.lane.b32.xlu1 %v8561_v47, %s7191_s12  ;;  %v8577_v36 = vld [vmem:[#allocation2 + $0xd8] sm:$0xff]  ;;  %v8585_v5 = vld [vmem:[#allocation2 + $0xd0] sm:$0xff] }
 0x22e   : > { %13222 = vst [vmem:[#allocation185_spill] sm:$0xff] %v8577_v36  ;;  %13225 = vst [vmem:[#allocation188_spill] sm:$0xff] %v8585_v5 }
 0x22f   : > { %v8559_v55 = vpop.permute.xlu0 %1057 }
 0x230   : > { %13216 = vst [vmem:[#allocation179_spill] sm:$0xff] %v8559_v55  ;;  %v8569_v2 = vpop.permute.xlu1 %1055 }
 0x231   : > { %1243 = vrot.lane.b32.xlu0 %v8565_v32, %s7191_s12  ;;  %13219 = vst [vmem:[#allocation182_spill] sm:$0xff] %v8569_v2  ;;  %1241 = vrot.lane.b32.xlu1 %v8573_v11, %s7191_s12  ;;  %v8589_v32 = vld [vmem:[#allocation2 + $0xe8] sm:$0xff]  ;;  %v8597_v2 = vld [vmem:[#allocation2 + $0xe0] sm:$0xff] }
 0x232   : > { %13226 = vst [vmem:[#allocation189_spill] sm:$0xff] %v8589_v32  ;;  %13228 = vst [vmem:[#allocation191_spill] sm:$0xff] %v8597_v2 }
 0x233   : > { %v8571_v35 = vpop.permute.xlu0 %1061 }
 0x234   : > { %13220 = vst [vmem:[#allocation183_spill] sm:$0xff] %v8571_v35  ;;  %v8581_v47 = vpop.permute.xlu1 %1059 }
 0x235   : > { %1247 = vrot.lane.b32.xlu0 %v8577_v36, %s7191_s12  ;;  %13223 = vst [vmem:[#allocation186_spill] sm:$0xff] %v8581_v47  ;;  %1245 = vrot.lane.b32.xlu1 %v8585_v5, %s7191_s12  ;;  %v8601_v36 = vld [vmem:[#allocation2 + $0xf8] sm:$0xff]  ;;  %v8609_v47 = vld [vmem:[#allocation2 + $0xf0] sm:$0xff] }
 0x236   : > { %13229 = vst [vmem:[#allocation192_spill] sm:$0xff] %v8601_v36  ;;  %13231 = vst [vmem:[#allocation194_spill] sm:$0xff] %v8609_v47 }
 0x237   : > { %v8583_v55 = vpop.permute.xlu0 %1065 }
 0x238   : > { %13224 = vst [vmem:[#allocation187_spill] sm:$0xff] %v8583_v55  ;;  %v8593_v11 = vpop.permute.xlu1 %1063 }
 0x239   : > { %1251 = vrot.lane.b32.xlu0 %v8589_v32, %s7191_s12  ;;  %13227 = vst [vmem:[#allocation190_spill] sm:$0xff] %v8593_v11  ;;  %1249 = vrot.lane.b32.xlu1 %v8597_v2, %s7191_s12  ;;  %v8613_v32 = vld [vmem:[#allocation2 + $0x108] sm:$0xff] }
 0x23a   : > { %13232 = vst [vmem:[#allocation195_spill] sm:$0xff] %v8613_v32 }
 0x23b   : > { %v8595_v35 = vpop.permute.xlu0 %1105 }
 0x23c   : > { %v8605_v5 = vpop.permute.xlu1 %1067 }
 0x23d   : > { %1255 = vrot.lane.b32.xlu0 %v8601_v36, %s7191_s12  ;;  %13230 = vst [vmem:[#allocation193_spill] sm:$0xff] %v8605_v5  ;;  %1253 = vrot.lane.b32.xlu1 %v8609_v47, %s7191_s12  ;;  %v6823_v36 = vld [vmem:[#allocation2 + $0x8] sm:$0xff]  ;;  %v8628_v47 = vld [vmem:[#allocation2 + $0x110] sm:$0xff] }
 0x23e   : > { %13235 = vst [vmem:[#allocation198_spill] sm:$0xff] %v8628_v47 }
 0x23f   : > { %v8607_v55 = vpop.permute.xlu0 %1109 }
 0x240   : > { %v1108_v2 = vpop.permute.xlu1 %1107 }
 0x241   : > { %1259 = vrot.lane.b32.xlu0 %v8613_v32, %s7191_s12  ;;  %1257 = vrot.lane.b32.xlu1 %v8619_v48, %s7191_s12 }
 0x243   : > { %v8617_v11 = vpop.permute.xlu0 %1113 }
 0x244   : > { %v8624_v5 = vpop.permute.xlu1 %1111 }
 0x245   : > { %1263 = vrot.lane.b32.xlu0 %v6823_v36, %s7191_s12  ;;  %1261 = vrot.lane.b32.xlu1 %v8628_v47, %s7191_s12 }
 0x247   : > { %v8626_v62 = vpop.permute.xlu0 %1117 }
 0x248   : > { %13234 = vst [vmem:[#allocation197_spill] sm:$0xff] %v8626_v62  ;;  %v8633_v32 = vpop.permute.xlu1 %1115 }
 0x249   : > { %1855 = vrot.lane.b32.xlu0 %v6823_v36, %s7184_s30  ;;  %1265 = vrot.lane.b32.xlu1 %v6823_v36, %s7191_s12 }
 0x24b   : > { %v8635_v54 = vpop.permute.xlu0 %1121 }
 0x24c   : > { %13236 = vst [vmem:[#allocation199_spill] sm:$0xff] %v8635_v54  ;;  %v8638_v48 = vpop.permute.xlu1 %1119 }
 0x24d   : > { %1857 = vrot.lane.b32.xlu1 %v6823_v36, %s7184_s30 }
 0x24f   : > { %v8640_v21 = vpop.permute.xlu0 %1125 }
 0x250   : > { %13237 = vst [vmem:[#allocation200_spill] sm:$0xff] %v8640_v21  ;;  %v8643_v1 = vpop.permute.xlu1 %1123 }
 0x251   : > { %13238 = vst [vmem:[#allocation201_spill] sm:$0xff] %v8643_v1 }
 0x253   : > { %v8645_v57 = vpop.permute.xlu0 %1129 }
 0x254   : > { %13239 = vst [vmem:[#allocation202_spill] sm:$0xff] %v8645_v57  ;;  %v8647_v58 = vpop.permute.xlu1 %1127 }
 0x255   : > { %13240 = vst [vmem:[#allocation203_spill] sm:$0xff] %v8647_v58 }
 0x257   : > { %v8649_v47 = vpop.permute.xlu0 %1133 }
 0x258   : > { %13241 = vst [vmem:[#allocation204_spill] sm:$0xff] %v8649_v47  ;;  %v8651_v45 = vpop.permute.xlu1 %1131 }
 0x259   : > { %13242 = vst [vmem:[#allocation205_spill] sm:$0xff] %v8651_v45 }
 0x25b   : > { %v8653_v60 = vpop.permute.xlu0 %1137 }
 0x25c   : > { %13243 = vst [vmem:[#allocation206_spill] sm:$0xff] %v8653_v60  ;;  %v8655_v54 = vpop.permute.xlu1 %1135  ;;  %v451_v60 = vld [vmem:[#allocation2 + $0x7] sm:$0xff] }
 0x25d   : > { %13244 = vst [vmem:[#allocation207_spill] sm:$0xff] %v8655_v54 }
 0x25f   : > { %v8657_v0 = vpop.permute.xlu0 %1141 }
 0x260   : > { %13245 = vst [vmem:[#allocation208_spill] sm:$0xff] %v8657_v0  ;;  %v8659_v59 = vpop.permute.xlu1 %1139 }
 0x261   : > { %13246 = vst [vmem:[#allocation209_spill] sm:$0xff] %v8659_v59  ;;  %v452_v59 = vld [vmem:[#allocation2 + $0xf] sm:$0xff] }
 0x263   : > { %v8661_v21 = vpop.permute.xlu0 %1145 }
 0x264   : > { %13247 = vst [vmem:[#allocation210_spill] sm:$0xff] %v8661_v21  ;;  %v8663_v36 = vpop.permute.xlu1 %1143  ;;  %v483_v21 = vsel %vm415_vm1, %v451_v60, 0.0 }
 0x265   : > { %13248 = vst [vmem:[#allocation211_spill] sm:$0xff] %v8663_v36 }
 0x267   : > { %v8665_v1 = vpop.permute.xlu0 %1149 }
 0x268   : > { %13249 = vst [vmem:[#allocation212_spill] sm:$0xff] %v8665_v1  ;;  %v8667_v57 = vpop.permute.xlu1 %1147 }
 0x269   : > { %13250 = vst [vmem:[#allocation213_spill] sm:$0xff] %v8667_v57  ;;  %v13258_v57 = vld [vmem:[#allocation24_spill] sm:$0xff] }
 0x26a   : > { %v611_v44 = vadd.f32 %v13258_v57, %v483_v21 }
 0x26b   : > { %v8669_v58 = vpop.permute.xlu0 %1153 }
 0x26c   : > { %13251 = vst [vmem:[#allocation214_spill] sm:$0xff] %v8669_v58  ;;  %v8671_v47 = vpop.permute.xlu1 %1151  ;;  %v13259_v58 = vld [vmem:[#allocation27_spill] sm:$0xff] }
 0x26d   : > { %13252 = vst [vmem:[#allocation215_spill] sm:$0xff] %v8671_v47  ;;  %v612_v18 = vadd.f32 %v13259_v58, %v452_v59  ;;  %v13260_v47 = vld [vmem:[#allocation85_spill] sm:$0xff]  ;;  %v13266_v59 = vld [vmem:[#allocation32_spill] sm:$0xff] }
 0x26e   : > { %v771_v53 = vadd.f32 %v13260_v47, %v611_v44  ;;  %v13265_v44 = vld [vmem:[#allocation36_spill] sm:$0xff] }
 0x26f   : > { %v8673_v45 = vpop.permute.xlu0 %1157 }
 0x270   : > { %13253 = vst [vmem:[#allocation216_spill] sm:$0xff] %v8673_v45  ;;  %v8675_v54 = vpop.permute.xlu1 %1155  ;;  %v13261_v45 = vld [vmem:[#allocation92_spill] sm:$0xff] }
 0x271   : > { %13254 = vst [vmem:[#allocation217_spill] sm:$0xff] %v8675_v54  ;;  %v772_v62 = vadd.f32 %v13261_v45, %v612_v18  ;;  %v613_v18 = vadd.f32 %v13266_v59, %v13265_v44  ;;  %v13267_v45 = vld [vmem:[#allocation94_spill] sm:$0xff] }
 0x273   : > { %v8677_v0 = vpop.permute.xlu0 %1161  ;;  %v872_v60 = vadd.f32 %v8155_v38, %v772_v62  ;;  %v13268_v38 = vld [vmem:[#allocation88_spill] sm:$0xff] }
 0x274   : > { %13255 = vst [vmem:[#allocation218_spill] sm:$0xff] %v8677_v0  ;;  %v8681_v36 = vpop.permute.xlu1 %1159  ;;  %v871_v0 = vadd.f32 %v8141_v34, %v771_v53  ;;  %v773_v53 = vadd.f32 %v13268_v38, %v613_v18 }
 0x275   : > { %13256 = vst [vmem:[#allocation219_spill] sm:$0xff] %v8681_v36  ;;  %v614_v36 = vadd.f32 %v13264_v14, %v13263_v49  ;;  %v970_v21 = vadd.f32 %v8287_v33, %v872_v60 }
 0x277   : > { %v8683_v1 = vpop.permute.xlu0 %1165  ;;  %v774_v47 = vadd.f32 %v13267_v45, %v614_v36  ;;  %v1070_v34 = vadd.f32 %v8421_v3, %v970_v21  ;;  %v6825_v36 = vld [vmem:[#allocation2 + $0x39] sm:$0xff]  ;;  %v6826_v45 = vld [vmem:[#allocation2 + $0x41] sm:$0xff] }
 0x278   : > { %13257 = vst [vmem:[#allocation220_spill] sm:$0xff] %v8683_v1  ;;  %v8689_v46 = vpop.permute.xlu1 %1163  ;;  %v969_v1 = vadd.f32 %v8271_v24, %v871_v0  ;;  %v873_v0 = vadd.f32 %v8149_v37, %v773_v53  ;;  %v13270_v37 = vld [vmem:[#allocation31_spill] sm:$0xff] }
 0x279   : > { %13262 = vst [vmem:[#allocation24_spill] sm:$0xff] %v8689_v46  ;;  %v874_v49 = vadd.f32 %v8164_v42, %v774_v47  ;;  %v1170_v24 = vadd.f32 %v1108_v2, %v1070_v34  ;;  %v615_v18 = vadd.f32 %v13270_v37, %v13126_v22 }
 0x27a   : > { %v1069_v46 = vadd.f32 %v8405_v10, %v969_v1  ;;  %v5496_v1 = vpack.c.bf16 %v6826_v45, %v6825_v36  ;;  %v13269_v10 = vld [vmem:[#allocation39_spill] sm:$0xff]  ;;  %v971_v21 = vadd.f32 %v8279_v26, %v873_v0  ;;  %v13273_v36 = vld [vmem:[#allocation34_spill] sm:$0xff] }
 0x27b   : > { %v1204_v54 = vpop.permute.xlu0 %1203  ;;  %v972_v60 = vadd.f32 %v8295_v9, %v874_v49  ;;  %v616_v3 = vadd.f32 %v13269_v10, %v13131_v27  ;;  %v13271_v26 = vld [vmem:[#allocation91_spill] sm:$0xff] }
 0x27c   : > { %v8697_v57 = vpop.permute.xlu1 %1167  ;;  %v1169_v14 = vadd.f32 %v8595_v35, %v1069_v46  ;;  %v775_v27 = vadd.f32 %v13271_v26, %v615_v18 }
 0x27d   : > { %v1072_v42 = vadd.f32 %v8436_v50, %v972_v60  ;;  %v776_v9 = vadd.f32 %v8045_v52, %v616_v3 }
 0x27e   : > { %v1267_v44 = vadd.f32 %v1204_v54, %v1169_v14  ;;  %v1071_v54 = vadd.f32 %v8413_v4, %v971_v21  ;;  %v875_v52 = vadd.f32 %v8157_v39, %v775_v27  ;;  %v6828_v14 = vld [vmem:[#allocation2 + $0x51] sm:$0xff]  ;;  %v617_v39 = vadd.f32 %v13273_v36, %v13129_v28 }
 0x27f   : > { %v1208_v58 = vpop.permute.xlu0 %1207  ;;  %v1172_v47 = vadd.f32 %v8624_v5, %v1072_v42  ;;  %v876_v50 = vadd.f32 %v8172_v43, %v776_v9  ;;  %v6827_v5 = vld [vmem:[#allocation2 + $0x49] sm:$0xff]  ;;  %v6830_v42 = vld [vmem:[#allocation2 + $0x61] sm:$0xff]  ;;  %v13276_v9 = vld [vmem:[#allocation38_spill] sm:$0xff] }
 0x280   : > { %v1206_v33 = vpop.permute.xlu1 %1205  ;;  %v1171_v34 = vadd.f32 %v8607_v55, %v1071_v54  ;;  %v973_v60 = vadd.f32 %v8289_v56, %v875_v52  ;;  %v619_v54 = vadd.f32 %v13276_v9, %v13132_v8  ;;  %v13280_v8 = vld [vmem:[#allocation45_spill] sm:$0xff]  ;;  %v13300_v9 = vld [vmem:[#allocation59_spill] sm:$0xff] }
 0x281   : > { %v1268_v59 = vadd.f32 %v1206_v33, %v1170_v24  ;;  %v974_v22 = vadd.f32 %v8308_v15, %v876_v50  ;;  %v5499_v24 = vpack.c.bf16 %v6828_v14, %v6827_v5  ;;  %v13272_v33 = vld [vmem:[#allocation42_spill] sm:$0xff]  ;;  %v13285_v5 = vld [vmem:[#allocation56_spill] sm:$0xff] }
 0x282   : > { %v1269_v4 = vadd.f32 %v1208_v58, %v1171_v34  ;;  %v618_v0 = vadd.f32 %v13272_v33, %v13135_v17  ;;  %v1073_v58 = vadd.f32 %v8423_v7, %v973_v60  ;;  %v13274_v17 = vld [vmem:[#allocation93_spill] sm:$0xff]  ;;  %v8770_v34 = vadd.f32 %v13280_v8, %v13140_v12  ;;  %v6831_v12 = vld [vmem:[#allocation2 + $0x5f] sm:$0xff] }
 0x283   : > { %v1212_v62 = vpop.permute.xlu0 %1211  ;;  %v1303_v46 = vpack.c.bf16 %v1268_v59, %v1267_v44  ;;  %v1074_v43 = vadd.f32 %v8448_v40, %v974_v22  ;;  %v777_v56 = vadd.f32 %v13274_v17, %v617_v39  ;;  %v13289_v60 = vld [vmem:[#allocation54_spill] sm:$0xff]  ;;  %v13293_v17 = vld [vmem:[#allocation37_spill] sm:$0xff]  ;;  %v13305_v8 = vld [vmem:[#allocation99_spill] sm:$0xff] }
 0x284   : > { %v1210_v35 = vpop.permute.xlu1 %1209  ;;  %v778_v15 = vadd.f32 %v8053_v63, %v618_v0  ;;  %v13288_v0 = vld [vmem:[#allocation63_spill] sm:$0xff] }
 0x285   : > { %1503 = vmatmul.mubr.bf16.vlgmr.msra.gmra.mrb[0].mxu0 %v1303_v46  ;;  %v1270_v38 = vadd.f32 %v1210_v35, %v1172_v47  ;;  %v1174_v45 = vadd.f32 %v8633_v32, %v1074_v43  ;;  %v877_v28 = vadd.f32 %v8166_v31, %v777_v56  ;;  %v6829_v32 = vld [vmem:[#allocation2 + $0x59] sm:$0xff]  ;;  %v13277_v31 = vld [vmem:[#allocation53_spill] sm:$0xff] }
 0x286   : > { %5497 = vmatprep.mubr.msk.bf16.mxu0 %vm8432_vm3, %v5496_v1  ;;  %v878_v40 = vadd.f32 %v8181_v41, %v778_v15  ;;  %v1173_v1 = vadd.f32 %v8617_v11, %v1073_v58  ;;  %v5502_v46 = vpack.c.bf16 %v6830_v42, %v6829_v32  ;;  %v13275_v35 = vld [vmem:[#allocation46_spill] sm:$0xff]  ;;  %v13290_v43 = vld [vmem:[#allocation117_spill] sm:$0xff]  ;;  %v13291_v15 = vld [vmem:[#allocation124_spill] sm:$0xff] }
 0x287   : > { %v8713_v2 = vpop.permute.xlu0 %1215  ;;  %v1305_v55 = vpack.c.bf16 %v1270_v38, %v1269_v4  ;;  %v620_v37 = vadd.f32 %v13275_v35, %v13139_v25  ;;  %v975_v41 = vadd.f32 %v8297_v51, %v877_v28  ;;  %v13278_v47 = vld [vmem:[#allocation62_spill] sm:$0xff]  ;;  %v6832_v35 = vld [vmem:[#allocation2 + $0x69] sm:$0xff] }
 0x288   : > { %v1214_v53 = vpop.permute.xlu1 %1213  ;;  %v976_v63 = vadd.f32 %v8315_v20, %v878_v40  ;;  %v1271_v7 = vadd.f32 %v1212_v62, %v1173_v1  ;;  %v627_v20 = vadd.f32 %v13277_v31, %v13148_v13  ;;  %v628_v26 = vadd.f32 %v13278_v47, %v13155_v61  ;;  %v13281_v13 = vld [vmem:[#allocation95_spill] sm:$0xff]  ;;  %v13294_v1 = vld [vmem:[#allocation64_spill] sm:$0xff]  ;;  %v13298_v42 = vld [vmem:[#allocation30_spill] sm:$0xff] }
 0x289   : > { %v1272_v10 = vadd.f32 %v1214_v53, %v1174_v45  ;;  %v780_v27 = vadd.f32 %v8061_v30, %v620_v37  ;;  %v1075_v25 = vadd.f32 %v8438_v23, %v975_v41  ;;  %v779_v38 = vadd.f32 %v13281_v13, %v619_v54  ;;  %v13282_v30 = vld [vmem:[#allocation104_spill] sm:$0xff]  ;;  %v13283_v23 = vld [vmem:[#allocation119_spill] sm:$0xff]  ;;  %v6833_v37 = vld [vmem:[#allocation2 + $0x71] sm:$0xff] }
 0x28a   : > { %v1076_v11 = vadd.f32 %v8457_v16, %v976_v63  ;;  %v13279_v16 = vld [vmem:[#allocation41_spill] sm:$0xff]  ;;  %v787_v53 = vadd.f32 %v8075_v6, %v627_v20  ;;  %v788_v61 = vadd.f32 %v13282_v30, %v628_v26  ;;  %v624_v6 = vadd.f32 %v13289_v60, %v13288_v0  ;;  %v13292_v45 = vld [vmem:[#allocation127_spill] sm:$0xff] }
 0x28b   : > { %v8725_v49 = vpop.permute.xlu0 %1219  ;;  %v1307_v18 = vpack.c.bf16 %v1272_v10, %v1271_v7  ;;  %v621_v50 = vadd.f32 %v13279_v16, %v13136_v29  ;;  %v880_v52 = vadd.f32 %v13283_v23, %v780_v27  ;;  %v13286_v29 = vld [vmem:[#allocation49_spill] sm:$0xff]  ;;  %v13296_v63 = vld [vmem:[#allocation75_spill] sm:$0xff]  ;;  %v13297_v7 = vld [vmem:[#allocation66_spill] sm:$0xff]  ;;  %v5505_v41 = vpack.c.bf16 %v6833_v37, %v6832_v35 }
 0x28c   : > { %v1218_v44 = vpop.permute.xlu1 %1217  ;;  %v1176_v51 = vadd.f32 %v8638_v48, %v1076_v11  ;;  %v13284_v48 = vld [vmem:[#allocation197_spill] sm:$0xff]  ;;  %v8781_v14 = vadd.f32 %v13286_v29, %v13285_v5  ;;  %v887_v58 = vadd.f32 %v13291_v15, %v787_v53  ;;  %v630_v32 = vadd.f32 %v13297_v7, %v13296_v63  ;;  %v13299_v11 = vld [vmem:[#allocation48_spill] sm:$0xff]  ;;  %v13301_v31 = vld [vmem:[#allocation151_spill] sm:$0xff] }
 0x28d   : > { %1511 = vmatmul.mubr.bf16.gmra.mrb[4].mxu0 %v1305_v55  ;;  %v1175_v22 = vadd.f32 %v13284_v48, %v1075_v25  ;;  %v879_v55 = vadd.f32 %v13290_v43, %v779_v38  ;;  %v978_v56 = vadd.f32 %v13293_v17, %v880_v52  ;;  %v13295_v10 = vld [vmem:[#allocation57_spill] sm:$0xff]  ;;  %v6834_v26 = vld [vmem:[#allocation2 + $0x7f] sm:$0xff]  ;;  %v13303_v25 = vld [vmem:[#allocation68_spill] sm:$0xff] }
 0x28e   : > { %5500 = vmatprep.mubr.msk.bf16.mxu0 %vm8432_vm3, %v5499_v24  ;;  %v1274_v4 = vadd.f32 %v1218_v44, %v1176_v51  ;;  %v13287_v24 = vld [vmem:[#allocation50_spill] sm:$0xff]  ;;  %v888_v44 = vadd.f32 %v13292_v45, %v788_v61  ;;  %v629_v28 = vadd.f32 %v13295_v10, %v13294_v1  ;;  %v13304_v51 = vld [vmem:[#allocation61_spill] sm:$0xff]  ;;  %v13308_v52 = vld [vmem:[#allocation160_spill] sm:$0xff] }
 0x28f   : > { %v8733_v59 = vpop.permute.xlu0 %1223  ;;  %v622_v33 = vadd.f32 %v6831_v12, %v13287_v24  ;;  %v1273_v40 = vadd.f32 %v8713_v2, %v1175_v22  ;;  %v1078_v20 = vadd.f32 %v13301_v31, %v978_v56  ;;  %v13302_v2 = vld [vmem:[#allocation58_spill] sm:$0xff]  ;;  %v631_v16 = vadd.f32 %v13304_v51, %v13303_v25  ;;  %v13309_v22 = vld [vmem:[#allocation167_spill] sm:$0xff]  ;;  %v13311_v12 = vld [vmem:[#allocation96_spill] sm:$0xff] }
 0x290   : > { %v8745_v3 = vpop.permute.xlu1 %1221  ;;  %v986_v54 = vadd.f32 %v13300_v9, %v888_v44  ;;  %v8804_v27 = vadd.f32 %v6834_v26, %v13302_v2  ;;  %v13306_v38 = vld [vmem:[#allocation106_spill] sm:$0xff]  ;;  %v781_v24 = vadd.f32 %v13311_v12, %v621_v50  ;;  %v13312_v0 = vld [vmem:[#allocation101_spill] sm:$0xff]  ;;  %v13315_v45 = vld [vmem:[#allocation199_spill] sm:$0xff] }
 0x291   : > { %v1309_v47 = vpack.c.bf16 %v1274_v4, %v1273_v40  ;;  %v782_v13 = vadd.f32 %v13305_v8, %v622_v33  ;;  %v790_v53 = vadd.f32 %v13306_v38, %v630_v32  ;;  %v13307_v61 = vld [vmem:[#allocation146_spill] sm:$0xff]  ;;  %v13310_v4 = vld [vmem:[#allocation201_spill] sm:$0xff]  ;;  %v789_v60 = vadd.f32 %v13312_v0, %v629_v28  ;;  %v13321_v35 = vld [vmem:[#allocation47_spill] sm:$0xff] }
 0x292   : > { %v1086_v5 = vadd.f32 %v13309_v22, %v986_v54  ;;  %v1178_v29 = vadd.f32 %v13310_v4, %v1078_v20  ;;  %v13313_v43 = vld [vmem:[#allocation121_spill] sm:$0xff]  ;;  %v13316_v17 = vld [vmem:[#allocation206_spill] sm:$0xff]  ;;  %v13324_v26 = vld [vmem:[#allocation52_spill] sm:$0xff] }
 0x293   : > { %v8749_v21 = vpop.permute.xlu0 %1227  ;;  %v13314_v33 = vld [vmem:[#allocation129_spill] sm:$0xff]  ;;  %v13318_v50 = vld [vmem:[#allocation70_spill] sm:$0xff]  ;;  %v6837_v25 = vld [vmem:[#allocation2 + $0xc1] sm:$0xff] }
 0x294   : > { %v8759_v62 = vpop.permute.xlu1 %1225  ;;  %v890_v15 = vadd.f32 %v13314_v33, %v790_v53  ;;  %v13317_v40 = vld [vmem:[#allocation209_spill] sm:$0xff]  ;;  %v1276_v10 = vadd.f32 %v8745_v3, %v1178_v29  ;;  %v13319_v28 = vld [vmem:[#allocation118_spill] sm:$0xff]  ;;  %v13325_v53 = vld [vmem:[#allocation155_spill] sm:$0xff] }
 0x295   : > { %1519 = vmatmul.mubr.bf16.gmra.mrb[8].mxu0 %v1307_v18  ;;  %v985_v18 = vadd.f32 %v13299_v11, %v887_v58  ;;  %v1186_v1 = vadd.f32 %v13317_v40, %v1086_v5  ;;  %v6835_v63 = vld [vmem:[#allocation2 + $0xaf] sm:$0xff]  ;;  %v881_v32 = vadd.f32 %v13319_v28, %v781_v24  ;;  %v6836_v2 = vld [vmem:[#allocation2 + $0xb9] sm:$0xff] }
 0x296   : > { %5503 = vmatprep.mubr.msk.bf16.mxu0 %vm8432_vm3, %v5502_v46  ;;  %v977_v46 = vadd.f32 %v13298_v42, %v879_v55  ;;  %v882_v55 = vadd.f32 %v13313_v43, %v782_v13  ;;  %v632_v7 = vadd.f32 %v6835_v63, %v13318_v50  ;;  %v13320_v42 = vld [vmem:[#allocation126_spill] sm:$0xff]  ;;  %v13323_v20 = vld [vmem:[#allocation33_spill] sm:$0xff]  ;;  %v5520_v51 = vpack.c.bf16 %v6837_v25, %v6836_v2  ;;  %v6839_v13 = vld [vmem:[#allocation2 + $0x81] sm:$0xff] }
 0x297   : > { %v8787_v36 = vpop.permute.xlu0 %1231  ;;  %v1085_v48 = vadd.f32 %v13308_v52, %v985_v18  ;;  %v13322_v18 = vld [vmem:[#allocation67_spill] sm:$0xff]  ;;  %v13328_v4 = vld [vmem:[#allocation100_spill] sm:$0xff] }
 0x298   : > { %v8789_v39 = vpop.permute.xlu1 %1229  ;;  %v1077_v23 = vadd.f32 %v13307_v61, %v977_v46  ;;  %v889_v46 = vadd.f32 %v13320_v42, %v789_v60  ;;  %v980_v37 = vadd.f32 %v13321_v35, %v882_v55  ;;  %v6838_v8 = vld [vmem:[#allocation2 + $0x79] sm:$0xff]  ;;  %v784_v29 = vadd.f32 %v13328_v4, %v624_v6  ;;  %v13329_v12 = vld [vmem:[#allocation108_spill] sm:$0xff] }
 0x299   : > { %v1185_v56 = vadd.f32 %v13316_v17, %v1085_v48  ;;  %v5508_v38 = vpack.c.bf16 %v6839_v13, %v6838_v8  ;;  %v792_v24 = vadd.f32 %v13329_v12, %v632_v7  ;;  %v13330_v0 = vld [vmem:[#allocation148_spill] sm:$0xff]  ;;  %v13334_v17 = vld [vmem:[#allocation103_spill] sm:$0xff] }
 0x29a   : > { %v1177_v44 = vadd.f32 %v13315_v45, %v1077_v23  ;;  %v987_v3 = vadd.f32 %v13324_v26, %v889_v46  ;;  %v1080_v61 = vadd.f32 %v13325_v53, %v980_v37  ;;  %v13326_v23 = vld [vmem:[#allocation22_spill] sm:$0xff]  ;;  %v13331_v55 = vld [vmem:[#allocation164_spill] sm:$0xff]  ;;  %v13333_v45 = vld [vmem:[#allocation211_spill] sm:$0xff] }
 0x29b   : > { %v1236_v58 = vpop.permute.xlu0 %1235  ;;  %v13335_v40 = vld [vmem:[#allocation123_spill] sm:$0xff]  ;;  %v13337_v63 = vld [vmem:[#allocation200_spill] sm:$0xff]  ;;  %v6842_v53 = vld [vmem:[#allocation2 + $0xd1] sm:$0xff] }
 0x29c   : > { %v8810_v30 = vpop.permute.xlu1 %1233  ;;  %v1275_v9 = vadd.f32 %v8725_v49, %v1177_v44  ;;  %v1283_v54 = vadd.f32 %v1236_v58, %v1185_v56  ;;  %v13327_v49 = vld [vmem:[#allocation97_spill] sm:$0xff]  ;;  %v1087_v33 = vadd.f32 %v13331_v55, %v987_v3  ;;  %v791_v56 = vadd.f32 %v13334_v17, %v631_v16  ;;  %v13338_v7 = vld [vmem:[#allocation208_spill] sm:$0xff]  ;;  %v6840_v37 = vld [vmem:[#allocation2 + $0xbf] sm:$0xff] }
 0x29d   : > { %1527 = vmatmul.mubr.bf16.gmra.mrb[12].mxu0 %v1309_v47  ;;  %v979_v47 = vadd.f32 %v13323_v20, %v881_v32  ;;  %v783_v5 = vadd.f32 %v13327_v49, %v8770_v34  ;;  %v13336_v34 = vld [vmem:[#allocation131_spill] sm:$0xff]  ;;  %v13339_v46 = vld [vmem:[#allocation72_spill] sm:$0xff]  ;;  %v13340_v16 = vld [vmem:[#allocation65_spill] sm:$0xff] }
 0x29e   : > { %5506 = vmatprep.mubr.msk.bf16.mxu0 %vm8432_vm3, %v5505_v41  ;;  %v988_v41 = vadd.f32 %v13322_v18, %v890_v15  ;;  %v1311_v48 = vpack.c.bf16 %v1276_v10, %v1275_v9  ;;  %v13332_v15 = vld [vmem:[#allocation203_spill] sm:$0xff]  ;;  %v892_v10 = vadd.f32 %v13336_v34, %v792_v24  ;;  %v1187_v28 = vadd.f32 %v13338_v7, %v1087_v33  ;;  %v13347_v8 = vld [vmem:[#allocation60_spill] sm:$0xff]  ;;  %v13350_v24 = vld [vmem:[#allocation98_spill] sm:$0xff] }
 0x29f   : > { %v1079_v60 = vadd.f32 %v13330_v0, %v979_v47  ;;  %v1180_v58 = vadd.f32 %v13332_v15, %v1080_v61  ;;  %v1240_v6 = vpop.permute.xlu0 %1239  ;;  %v633_v35 = vadd.f32 %v13340_v16, %v13339_v46  ;;  %v13344_v20 = vld [vmem:[#allocation51_spill] sm:$0xff]  ;;  %v13351_v0 = vld [vmem:[#allocation102_spill] sm:$0xff]  ;;  %v13353_v33 = vld [vmem:[#allocation152_spill] sm:$0xff] }
 0x2a0   : > { %v1238_v11 = vpop.permute.xlu1 %1237  ;;  %v1088_v52 = vadd.f32 %v13326_v23, %v988_v41  ;;  %v13342_v41 = vld [vmem:[#allocation120_spill] sm:$0xff]  ;;  %v13345_v26 = vld [vmem:[#allocation71_spill] sm:$0xff]  ;;  %v1285_v25 = vadd.f32 %v1240_v6, %v1187_v28  ;;  %v13355_v17 = vld [vmem:[#allocation205_spill] sm:$0xff] }
 0x2a1   : > { %v1284_v31 = vadd.f32 %v1238_v11, %v1186_v1  ;;  %v884_v1 = vadd.f32 %v13335_v40, %v784_v29  ;;  %v1179_v50 = vadd.f32 %v13337_v63, %v1079_v60  ;;  %v1278_v32 = vadd.f32 %v8759_v62, %v1180_v58  ;;  %v13341_v11 = vld [vmem:[#allocation74_spill] sm:$0xff]  ;;  %v6843_v23 = vld [vmem:[#allocation2 + $0x89] sm:$0xff] }
 0x2a2   : > { %v1188_v44 = vadd.f32 %v13333_v45, %v1088_v52  ;;  %v634_v18 = vadd.f32 %v6840_v37, %v13341_v11  ;;  %v883_v9 = vadd.f32 %v13342_v41, %v783_v5  ;;  %v990_v3 = vadd.f32 %v13345_v26, %v892_v10  ;;  %v6844_v52 = vld [vmem:[#allocation2 + $0x91] sm:$0xff]  ;;  %v13354_v45 = vld [vmem:[#allocation168_spill] sm:$0xff] }
 0x2a3   : > { %v1319_v22 = vpack.c.bf16 %v1284_v31, %v1283_v54  ;;  %v13343_v54 = vld [vmem:[#allocation128_spill] sm:$0xff]  ;;  %v982_v47 = vadd.f32 %v13344_v20, %v884_v1  ;;  %v1277_v2 = vadd.f32 %v8733_v59, %v1179_v50  ;;  %v13349_v5 = vld [vmem:[#allocation174_spill] sm:$0xff]  ;;  %v785_v59 = vadd.f32 %v13350_v24, %v8781_v14  ;;  %v13356_v40 = vld [vmem:[#allocation213_spill] sm:$0xff] }
 0x2a4   : > { %v1242_v43 = vpop.permute.xlu1 %1241  ;;  %v891_v31 = vadd.f32 %v13343_v54, %v791_v56  ;;  %v1090_v4 = vadd.f32 %v13349_v5, %v990_v3  ;;  %v786_v60 = vadd.f32 %v13351_v0, %v8804_v27  ;;  %v13357_v34 = vld [vmem:[#allocation105_spill] sm:$0xff]  ;;  %v1244_v27 = vpop.permute.xlu0 %1243  ;;  %v13360_v7 = vld [vmem:[#allocation202_spill] sm:$0xff]  ;;  %v13373_v24 = vld [vmem:[#allocation112_spill] sm:$0xff] }
 0x2a5   : > { %1535 = vmatmul.mubr.bf16.gmra.mrb[16].mxu0 %v1311_v48  ;;  %1567 = vmatmul.mubr.bf16.vlgmr.msra.gmra.mrb[0].mxu1 %v1319_v22  ;;  %v1286_v42 = vadd.f32 %v1242_v43, %v1188_v44  ;;  %v5511_v48 = vpack.c.bf16 %v6844_v52, %v6843_v23  ;;  %v13348_v22 = vld [vmem:[#allocation159_spill] sm:$0xff]  ;;  %v1313_v29 = vpack.c.bf16 %v1278_v32, %v1277_v2  ;;  %v13352_v43 = vld [vmem:[#allocation110_spill] sm:$0xff]  ;;  %v13358_v6 = vld [vmem:[#allocation125_spill] sm:$0xff] }
 0x2a6   : > { %5521 = vmatprep.mubr.msk.bf16.mxu1 %vm8432_vm3, %v5520_v51  ;;  %5509 = vmatprep.mubr.msk.bf16.mxu0 %vm8432_vm3, %v5508_v38  ;;  %v13346_v51 = vld [vmem:[#allocation40_spill] sm:$0xff]  ;;  %v989_v13 = vadd.f32 %v13347_v8, %v891_v31  ;;  %v1082_v49 = vadd.f32 %v13348_v22, %v982_v47  ;;  %v794_v55 = vadd.f32 %v13352_v43, %v634_v18  ;;  %v13359_v63 = vld [vmem:[#allocation133_spill] sm:$0xff]  ;;  %v13361_v32 = vld [vmem:[#allocation210_spill] sm:$0xff] }
 0x2a7   : > { %v981_v62 = vadd.f32 %v13346_v51, %v883_v9  ;;  %v6841_v38 = vld [vmem:[#allocation2 + $0xc9] sm:$0xff]  ;;  %v1321_v12 = vpack.c.bf16 %v1286_v42, %v1285_v25  ;;  %v1190_v1 = vadd.f32 %v13356_v40, %v1090_v4  ;;  %v793_v10 = vadd.f32 %v13357_v34, %v633_v35  ;;  %v13362_v35 = vld [vmem:[#allocation78_spill] sm:$0xff]  ;;  %v13365_v31 = vld [vmem:[#allocation55_spill] sm:$0xff] }
 0x2a8   : > { %v5523_v61 = vpack.c.bf16 %v6842_v53, %v6841_v38  ;;  %v1246_v58 = vpop.permute.xlu1 %1245  ;;  %v1089_v44 = vadd.f32 %v13354_v45, %v989_v13  ;;  %v1182_v56 = vadd.f32 %v13355_v17, %v1082_v49  ;;  %v886_v14 = vadd.f32 %v13358_v6, %v786_v60  ;;  %v6845_v37 = vld [vmem:[#allocation2 + $0xcf] sm:$0xff]  ;;  %v13363_v18 = vld [vmem:[#allocation122_spill] sm:$0xff]  ;;  %v6847_v13 = vld [vmem:[#allocation2 + $0xa1] sm:$0xff]  ;;  %v1248_v34 = vpop.permute.xlu0 %1247 }
 0x2a9   : > { %v1081_v15 = vadd.f32 %v13353_v33, %v981_v62  ;;  %v894_v50 = vadd.f32 %v13359_v63, %v794_v55  ;;  %v1288_v16 = vadd.f32 %v1246_v58, %v1190_v1  ;;  %v636_v11 = vadd.f32 %v6845_v37, %v13362_v35  ;;  %v13364_v9 = vld [vmem:[#allocation130_spill] sm:$0xff]  ;;  %v13366_v47 = vld [vmem:[#allocation140_spill] sm:$0xff]  ;;  %v13369_v52 = vld [vmem:[#allocation163_spill] sm:$0xff] }
 0x2aa   : > { %v1189_v42 = vadd.f32 %v13361_v32, %v1089_v44  ;;  %v1280_v46 = vadd.f32 %v8789_v39, %v1182_v56  ;;  %v885_v41 = vadd.f32 %v13363_v18, %v785_v59  ;;  %v893_v54 = vadd.f32 %v13364_v9, %v793_v10  ;;  %v13367_v25 = vld [vmem:[#allocation44_spill] sm:$0xff]  ;;  %v13368_v62 = vld [vmem:[#allocation138_spill] sm:$0xff]  ;;  %v13375_v55 = vld [vmem:[#allocation171_spill] sm:$0xff] }
 0x2ab   : > { %v1181_v28 = vadd.f32 %v13360_v7, %v1081_v15  ;;  %v984_v20 = vadd.f32 %v13365_v31, %v886_v14  ;;  %v992_v26 = vadd.f32 %v13366_v47, %v894_v50  ;;  %v6846_v39 = vld [vmem:[#allocation2 + $0x99] sm:$0xff]  ;;  %v796_v59 = vadd.f32 %v13373_v24, %v636_v11  ;;  %v13374_v0 = vld [vmem:[#allocation156_spill] sm:$0xff] }
 0x2ac   : > { %v1287_v2 = vadd.f32 %v1244_v27, %v1189_v42  ;;  %v983_v51 = vadd.f32 %v13367_v25, %v885_v41  ;;  %v991_v8 = vadd.f32 %v13368_v62, %v893_v54  ;;  %v5514_v38 = vpack.c.bf16 %v6847_v13, %v6846_v39  ;;  %v6848_v53 = vld [vmem:[#allocation2 + $0xd9] sm:$0xff]  ;;  %v1250_v43 = vpop.permute.xlu1 %1249  ;;  %v13380_v10 = vld [vmem:[#allocation204_spill] sm:$0xff]  ;;  %v6852_v41 = vld [vmem:[#allocation2 + $0xf1] sm:$0xff] }
 0x2ad   : > { %1543 = vmatmul.mubr.bf16.gmra.mrb[20].mxu0 %v1313_v29  ;;  %1575 = vmatmul.mubr.bf16.gmra.mrb[4].mxu1 %v1321_v12  ;;  %v1279_v3 = vadd.f32 %v8749_v21, %v1181_v28  ;;  %v13370_v22 = vld [vmem:[#allocation178_spill] sm:$0xff]  ;;  %v13371_v29 = vld [vmem:[#allocation76_spill] sm:$0xff]  ;;  %v13372_v12 = vld [vmem:[#allocation69_spill] sm:$0xff] }
 0x2ae   : > { %5524 = vmatprep.mubr.msk.bf16.mxu1 %vm8432_vm3, %v5523_v61  ;;  %5512 = vmatprep.mubr.msk.bf16.mxu0 %vm8432_vm3, %v5511_v48  ;;  %v6849_v61 = vld [vmem:[#allocation2 + $0xe1] sm:$0xff]  ;;  %v1084_v48 = vadd.f32 %v13369_v52, %v984_v20  ;;  %v1092_v49 = vadd.f32 %v13370_v22, %v992_v26  ;;  %v1323_v4 = vpack.c.bf16 %v1288_v16, %v1287_v2  ;;  %v13384_v35 = vld [vmem:[#allocation82_spill] sm:$0xff]  ;;  %v6851_v18 = vld [vmem:[#allocation2 + $0xe9] sm:$0xff] }
 0x2af   : > { %v5526_v23 = vpack.c.bf16 %v6849_v61, %v6848_v53  ;;  %v1315_v5 = vpack.c.bf16 %v1280_v46, %v1279_v3  ;;  %v635_v21 = vadd.f32 %v13372_v12, %v13371_v29  ;;  %v1083_v60 = vadd.f32 %v13374_v0, %v983_v51  ;;  %v13376_v15 = vld [vmem:[#allocation207_spill] sm:$0xff]  ;;  %v13381_v14 = vld [vmem:[#allocation212_spill] sm:$0xff]  ;;  %v13386_v20 = vld [vmem:[#allocation182_spill] sm:$0xff]  ;;  %v1252_v53 = vpop.permute.xlu0 %1251 }
 0x2b0   : > { %v1091_v33 = vadd.f32 %v13375_v55, %v991_v8  ;;  %v1184_v58 = vadd.f32 %v13376_v15, %v1084_v48  ;;  %v13377_v45 = vld [vmem:[#allocation215_spill] sm:$0xff]  ;;  %v13382_v7 = vld [vmem:[#allocation132_spill] sm:$0xff]  ;;  %v5529_v9 = vpack.c.bf16 %v6852_v41, %v6851_v18  ;;  %v13388_v2 = vld [vmem:[#allocation73_spill] sm:$0xff]  ;;  %v1254_v51 = vpop.permute.xlu1 %1253 }
 0x2b1   : > { %v1192_v44 = vadd.f32 %v13377_v45, %v1092_v49  ;;  %v13378_v17 = vld [vmem:[#allocation107_spill] sm:$0xff]  ;;  %v1183_v6 = vadd.f32 %v13380_v10, %v1083_v60  ;;  %v13387_v3 = vld [vmem:[#allocation80_spill] sm:$0xff]  ;;  %v13389_v62 = vld [vmem:[#allocation114_spill] sm:$0xff] }
 0x2b2   : > { %v795_v56 = vadd.f32 %v13378_v17, %v635_v21  ;;  %v13379_v40 = vld [vmem:[#allocation135_spill] sm:$0xff]  ;;  %v1191_v63 = vadd.f32 %v13381_v14, %v1091_v33  ;;  %v1282_v50 = vadd.f32 %v8810_v30, %v1184_v58  ;;  %v637_v25 = vadd.f32 %v13388_v2, %v13387_v3  ;;  %v13391_v13 = vld [vmem:[#allocation217_spill] sm:$0xff]  ;;  %v13394_v22 = vld [vmem:[#allocation214_spill] sm:$0xff] }
 0x2b3   : > { %v896_v1 = vadd.f32 %v13379_v40, %v796_v59  ;;  %v1290_v27 = vadd.f32 %v1250_v43, %v1192_v44  ;;  %v13383_v32 = vld [vmem:[#allocation79_spill] sm:$0xff]  ;;  %v1281_v46 = vadd.f32 %v8787_v36, %v1183_v6  ;;  %v13392_v61 = vld [vmem:[#allocation109_spill] sm:$0xff]  ;;  %v13397_v55 = vld [vmem:[#allocation86_spill] sm:$0xff] }
 0x2b4   : > { %v895_v28 = vadd.f32 %v13382_v7, %v795_v56  ;;  %v1289_v16 = vadd.f32 %v1248_v34, %v1191_v63  ;;  %v6850_v37 = vld [vmem:[#allocation2 + $0xdf] sm:$0xff]  ;;  %v6855_v43 = vld [vmem:[#allocation2 + $0xef] sm:$0xff]  ;;  %v1258_v56 = vpop.permute.xlu1 %1257  ;;  %v1256_v7 = vpop.permute.xlu0 %1255 }
 0x2b5   : > { %1551 = vmatmul.mubr.bf16.gmra.mrb[24].mxu0 %v1315_v5  ;;  %1583 = vmatmul.mubr.bf16.gmra.mrb[8].mxu1 %v1323_v4  ;;  %v994_v42 = vadd.f32 %v13383_v32, %v896_v1  ;;  %v638_v11 = vadd.f32 %v6850_v37, %v13384_v35  ;;  %v13385_v54 = vld [vmem:[#allocation139_spill] sm:$0xff]  ;;  %v1317_v26 = vpack.c.bf16 %v1282_v50, %v1281_v46  ;;  %v13395_v4 = vld [vmem:[#allocation134_spill] sm:$0xff]  ;;  %v13398_v15 = vld [vmem:[#allocation141_spill] sm:$0xff] }
 0x2b6   : > { %5515 = vmatprep.mubr.msk.bf16.mxu0 %vm8432_vm3, %v5514_v38  ;;  %5527 = vmatprep.mubr.msk.bf16.mxu1 %vm8432_vm3, %v5526_v23  ;;  %v993_v31 = vadd.f32 %v13385_v54, %v895_v28  ;;  %v1325_v30 = vpack.c.bf16 %v1290_v27, %v1289_v16  ;;  %v13390_v36 = vld [vmem:[#allocation175_spill] sm:$0xff]  ;;  %v797_v23 = vadd.f32 %v13392_v61, %v637_v25  ;;  %v13399_v45 = vld [vmem:[#allocation186_spill] sm:$0xff]  ;;  %v13400_v40 = vld [vmem:[#allocation84_spill] sm:$0xff] }
 0x2b7   : > { %v1094_v47 = vadd.f32 %v13386_v20, %v994_v42  ;;  %v798_v8 = vadd.f32 %v13389_v62, %v638_v11  ;;  %v13393_v52 = vld [vmem:[#allocation23_spill] sm:$0xff]  ;;  %v640_v33 = vadd.f32 %v6855_v43, %v13397_v55  ;;  %v13401_v1 = vld [vmem:[#allocation77_spill] sm:$0xff]  ;;  %v13406_v42 = vld [vmem:[#allocation26_spill] sm:$0xff] }
 0x2b8   : > { %v1093_v39 = vadd.f32 %v13390_v36, %v993_v31  ;;  %v897_v29 = vadd.f32 %v13395_v4, %v797_v23  ;;  %v13396_v12 = vld [vmem:[#allocation83_spill] sm:$0xff]  ;;  %v639_v34 = vadd.f32 %v13401_v1, %v13400_v40  ;;  %v13407_v16 = vld [vmem:[#allocation216_spill] sm:$0xff]  ;;  %v13410_v31 = vld [vmem:[#allocation29_spill] sm:$0xff]  ;;  %v1262_v36 = vpop.permute.xlu1 %1261 }
 0x2b9   : > { %v1194_v38 = vadd.f32 %v13391_v13, %v1094_v47  ;;  %v898_v48 = vadd.f32 %v13393_v52, %v798_v8  ;;  %v6853_v59 = vld [vmem:[#allocation2 + $0xf9] sm:$0xff]  ;;  %v6854_v0 = vld [vmem:[#allocation2 + $0x101] sm:$0xff]  ;;  %v13416_v13 = vld [vmem:[#allocation81_spill] sm:$0xff] }
 0x2ba   : > { %v1193_v49 = vadd.f32 %v13394_v22, %v1093_v39  ;;  %v5532_v60 = vpack.c.bf16 %v6854_v0, %v6853_v59  ;;  %v995_v58 = vadd.f32 %v13398_v15, %v897_v29  ;;  %v13402_v10 = vld [vmem:[#allocation115_spill] sm:$0xff]  ;;  %v13408_v11 = vld [vmem:[#allocation136_spill] sm:$0xff]  ;;  %v13413_v2 = vld [vmem:[#allocation142_spill] sm:$0xff] }
 0x2bb   : > { %v1292_v5 = vadd.f32 %v1254_v51, %v1194_v38  ;;  %v996_v21 = vadd.f32 %v13396_v12, %v898_v48  ;;  %v800_v6 = vadd.f32 %v13402_v10, %v640_v33  ;;  %v13403_v14 = vld [vmem:[#allocation179_spill] sm:$0xff]  ;;  %v13409_v41 = vld [vmem:[#allocation144_spill] sm:$0xff]  ;;  %v13414_v51 = vld [vmem:[#allocation190_spill] sm:$0xff] }
 0x2bc   : > { %v1291_v24 = vadd.f32 %v1252_v53, %v1193_v49  ;;  %v1095_v63 = vadd.f32 %v13403_v14, %v995_v58  ;;  %v13404_v50 = vld [vmem:[#allocation219_spill] sm:$0xff]  ;;  %v13411_v20 = vld [vmem:[#allocation28_spill] sm:$0xff]  ;;  %v1260_v49 = vpop.permute.xlu0 %1259  ;;  %v13421_v29 = vld [vmem:[#allocation25_spill] sm:$0xff] }
 0x2bd   : > { %1559 = vmatmul.mubr.bf16.gmra.mrb[28].mxu0 %v1317_v26  ;;  %1591 = vmatmul.mubr.bf16.gmra.mrb[12].mxu1 %v1325_v30  ;;  %v1096_v44 = vadd.f32 %v13399_v45, %v996_v21  ;;  %v13405_v28 = vld [vmem:[#allocation111_spill] sm:$0xff]  ;;  %v900_v46 = vadd.f32 %v13406_v42, %v800_v6  ;;  %v5535_v47 = vpack.c.bf16 %v13411_v20, %v13410_v31  ;;  %v13412_v30 = vld [vmem:[#allocation89_spill] sm:$0xff]  ;;  %v13417_v53 = vld [vmem:[#allocation116_spill] sm:$0xff] }
 0x2be   : > { %5530 = vmatprep.mubr.msk.bf16.mxu1 %vm8432_vm3, %v5529_v9  ;;  %v1327_v17 = vpack.c.bf16 %v1292_v5, %v1291_v24  ;;  %v799_v32 = vadd.f32 %v13405_v28, %v639_v34  ;;  %v1195_v37 = vadd.f32 %v13407_v16, %v1095_v63  ;;  %v6856_v26 = vld [vmem:[#allocation2 + $0xff] sm:$0xff]  ;;  %v13419_v48 = vld [vmem:[#allocation24_spill] sm:$0xff]  ;;  %v13420_v5 = vld [vmem:[#allocation113_spill] sm:$0xff]  ;;  %v1266_v34 = vpop.permute.xlu1 %1265 }
 0x2bf   : > { %v1196_v27 = vadd.f32 %v13404_v50, %v1096_v44  ;;  %v998_v9 = vadd.f32 %v13409_v41, %v900_v46  ;;  %v642_v3 = vadd.f32 %v6856_v26, %v13412_v30  ;;  %v13415_v39 = vld [vmem:[#allocation87_spill] sm:$0xff]  ;;  %v13422_v21 = vld [vmem:[#allocation218_spill] sm:$0xff]  ;;  %v13423_v43 = vld [vmem:[#allocation137_spill] sm:$0xff] }
 0x2c0   : > { %v899_v18 = vadd.f32 %v13408_v11, %v799_v32  ;;  %v1293_v54 = vadd.f32 %v1256_v7, %v1195_v37  ;;  %v641_v38 = vadd.f32 %v13416_v13, %v13415_v39  ;;  %v13418_v23 = vld [vmem:[#allocation183_spill] sm:$0xff]  ;;  %v13424_v33 = vld [vmem:[#allocation90_spill] sm:$0xff]  ;;  %v1264_v63 = vpop.permute.xlu0 %1263  ;;  %v13428_v50 = vld [vmem:[#allocation220_spill] sm:$0xff] }
 0x2c1   : > { %v1294_v35 = vadd.f32 %v1258_v56, %v1196_v27  ;;  %v1098_v62 = vadd.f32 %v13414_v51, %v998_v9  ;;  %v802_v61 = vadd.f32 %v13417_v53, %v642_v3  ;;  %v1299_v0 = vld [vmem:[#allocation2 + $0x119] sm:$0xff]  ;;  %v13426_v56 = vld [vmem:[#allocation193_spill] sm:$0xff] }
 0x2c2   : > { %v997_v25 = vadd.f32 %v13413_v2, %v899_v18  ;;  %v801_v4 = vadd.f32 %v13420_v5, %v641_v38  ;;  %v13425_v44 = vld [vmem:[#allocation143_spill] sm:$0xff] }
 0x2c3   : > { %v1329_v8 = vpack.c.bf16 %v1294_v35, %v1293_v54  ;;  %v1198_v22 = vadd.f32 %v13419_v48, %v1098_v62  ;;  %v902_v12 = vadd.f32 %v13421_v29, %v802_v61  ;;  %v13427_v10 = vld [vmem:[#allocation187_spill] sm:$0xff] }
 0x2c4   : > { %v1097_v52 = vadd.f32 %v13418_v23, %v997_v25  ;;  %v901_v55 = vadd.f32 %v13423_v43, %v801_v4  ;;  %v8971_v46 = vld [vmem:[%s12696_s2] ss:$0 sm:$0xff] }
 0x2c5   : > { %1599 = vmatmul.mubr.bf16.gmra.mrb[16].mxu1 %v1327_v17  ;;  %v1296_v59 = vadd.f32 %v1262_v36, %v1198_v22  ;;  %v1000_v15 = vadd.f32 %v13424_v33, %v902_v12 }
 0x2c6   : > { %5533 = vmatprep.mubr.msk.bf16.mxu1 %vm8432_vm3, %v5532_v60  ;;  %v1197_v24 = vadd.f32 %v13422_v21, %v1097_v52  ;;  %v1300_v60 = vld [vmem:[#allocation2 + $0x121] sm:$0xff]  ;;  %v999_v17 = vadd.f32 %v13425_v44, %v901_v55 }
 0x2c7   : > { %v5538_v45 = vpack.c.bf16 %v1300_v60, %v1299_v0  ;;  %v1100_v40 = vadd.f32 %v13426_v56, %v1000_v15 }
 0x2c8   : > { %v1295_v58 = vadd.f32 %v1260_v49, %v1197_v24  ;;  %v1099_v6 = vadd.f32 %v13427_v10, %v999_v17 }
 0x2c9   : > { %v1200_v14 = vadd.f32 %v8697_v57, %v1100_v40 }
 0x2ca   : > { %v1331_v1 = vpack.c.bf16 %v1296_v59, %v1295_v58  ;;  %v1199_v27 = vadd.f32 %v13428_v50, %v1099_v6 }
 0x2cb   : > { %v1298_v7 = vadd.f32 %v1266_v34, %v1200_v14 }
 0x2cc   : > { %v1297_v28 = vadd.f32 %v1264_v63, %v1199_v27 }
 0x2cd   : > { %1607 = vmatmul.mubr.bf16.gmra.mrb[20].mxu1 %v1329_v8 }
 0x2ce   : > { %5536 = vmatprep.mubr.msk.bf16.mxu1 %vm8432_vm3, %v5535_v47  ;;  %v1333_v32 = vpack.c.bf16 %v1298_v7, %v1297_v28 }
 0x2d5   : > { %1615 = vmatmul.mubr.bf16.gmra.mrb[24].mxu1 %v1331_v1 }
 0x2d6   : > { %5539 = vmatprep.mubr.msk.bf16.mxu1 %vm8432_vm3, %v5538_v45 }
 0x2dd   : > { %1623 = vmatmul.mubr.bf16.gmra.mrb[28].mxu1 %v1333_v32 }
 0x358   : > { %v5931_v42 = vpop.f32.mrb[0].mxu0 }
 0x359   : > { %v5932_v16 = vpop.f32.mrb[1].mxu0 }
 0x35a   : > { %v5933_v37 = vadd.f32 %v5932_v16, %v5931_v42  ;;  %v5934_v57 = vpop.f32.mrb[2].mxu0 }
 0x35b   : > { %v5935_v35 = vpop.f32.mrb[3].mxu0 }
 0x35c   : > { %v1505_v11 = vadd.f32 %v5933_v37, %v8971_v46  ;;  %v5936_v18 = vadd.f32 %v5935_v35, %v5934_v57 }
 0x35e   : > { %vm1631_vm4 = vcmp.ge.f32.partialorder %v1505_v11, 0.0  ;;  %v1663_v41 = vmul.f32 0.2, %v1505_v11  ;;  %v1508_v9 = vadd.f32 %v5936_v18, %v8971_v46 }
 0x360   : > { %v8975_v54 = vsel %vm1631_vm4, %v1505_v11, %v1663_v41  ;;  %vm1632_vm5 = vcmp.ge.f32.partialorder %v1508_v9, 0.0  ;;  %v1664_v31 = vmul.f32 0.2, %v1508_v9  ;;  %v5937_v20 = vpop.f32.mrb[4].mxu0 }
 0x361   : > { %1727 = vst [vmem:[#allocation2 + $0x18] sm:$0xff] %v8975_v54  ;;  %v5938_v47 = vpop.f32.mrb[5].mxu0  ;;  %1859 = vrot.lane.b32.xlu0 %v8975_v54, %s7184_s30 }
 0x362   : > { %v8980_v26 = vsel %vm1632_vm5, %v1508_v9, %v1664_v31  ;;  %v5939_v30 = vadd.f32 %v5938_v47, %v5937_v20  ;;  %v5940_v3 = vpop.f32.mrb[6].mxu0 }
 0x363   : > { %1728 = vst [vmem:[#allocation2 + $0x20] sm:$0xff] %v8980_v26  ;;  %v5941_v2 = vpop.f32.mrb[7].mxu0  ;;  %1861 = vrot.lane.b32.xlu1 %v8980_v26, %s7184_s30 }
 0x364   : > { %v1513_v25 = vadd.f32 %v5939_v30, %v8971_v46  ;;  %v5942_v51 = vadd.f32 %v5941_v2, %v5940_v3 }
 0x366   : > { %vm1633_vm6 = vcmp.ge.f32.partialorder %v1513_v25, 0.0  ;;  %v1665_v62 = vmul.f32 0.2, %v1513_v25  ;;  %v1516_v8 = vadd.f32 %v5942_v51, %v8971_v46 }
 0x368   : > { %v8987_v36 = vsel %vm1633_vm6, %v1513_v25, %v1665_v62  ;;  %vm1634_vm7 = vcmp.ge.f32.partialorder %v1516_v8, 0.0  ;;  %v1666_v39 = vmul.f32 0.2, %v1516_v8  ;;  %v5943_v13 = vpop.f32.mrb[8].mxu0 }
 0x369   : > { %1729 = vst [vmem:[#allocation2 + $0x28] sm:$0xff] %v8987_v36  ;;  %v5944_v38 = vpop.f32.mrb[9].mxu0  ;;  %1863 = vrot.lane.b32.xlu0 %v8987_v36, %s7184_s30 }
 0x36a   : > { %v8992_v53 = vsel %vm1634_vm7, %v1516_v8, %v1666_v39  ;;  %v5945_v61 = vadd.f32 %v5944_v38, %v5943_v13  ;;  %v5946_v23 = vpop.f32.mrb[10].mxu0 }
 0x36b   : > { %1730 = vst [vmem:[#allocation2 + $0x30] sm:$0xff] %v8992_v53  ;;  %v5947_v52 = vpop.f32.mrb[11].mxu0  ;;  %1865 = vrot.lane.b32.xlu1 %v8992_v53, %s7184_s30 }
 0x36c   : > { %v1521_v48 = vadd.f32 %v5945_v61, %v8971_v46  ;;  %v5948_v22 = vadd.f32 %v5947_v52, %v5946_v23 }
 0x36e   : > { %vm1635_vm8 = vcmp.ge.f32.partialorder %v1521_v48, 0.0  ;;  %v1667_v49 = vmul.f32 0.2, %v1521_v48  ;;  %v1524_v5 = vadd.f32 %v5948_v22, %v8971_v46 }
 0x370   : > { %v8999_v4 = vsel %vm1635_vm8, %v1521_v48, %v1667_v49  ;;  %vm1636_vm9 = vcmp.ge.f32.partialorder %v1524_v5, 0.0  ;;  %v1668_v29 = vmul.f32 0.2, %v1524_v5  ;;  %v5949_v12 = vpop.f32.mrb[12].mxu0 }
 0x371   : > { %1731 = vst [vmem:[#allocation2 + $0x38] sm:$0xff] %v8999_v4  ;;  %v5950_v21 = vpop.f32.mrb[13].mxu0  ;;  %1867 = vrot.lane.b32.xlu0 %v8999_v4, %s7184_s30 }
 0x372   : > { %v9004_v24 = vsel %vm1636_vm9, %v1524_v5, %v1668_v29  ;;  %v5951_v59 = vadd.f32 %v5950_v21, %v5949_v12  ;;  %v5952_v0 = vpop.f32.mrb[14].mxu0  ;;  %v9011_v58 = vld [vmem:[#allocation2 + $0x29] sm:$0xff] }
 0x373   : > { %1732 = vst [vmem:[#allocation2 + $0x40] sm:$0xff] %v9004_v24  ;;  %v5953_v60 = vpop.f32.mrb[15].mxu0  ;;  %1869 = vrot.lane.b32.xlu1 %v9004_v24, %s7184_s30 }
 0x374   : > { %v1529_v43 = vadd.f32 %v5951_v59, %v8971_v46  ;;  %v5954_v55 = vadd.f32 %v5953_v60, %v5952_v0 }
 0x376   : > { %vm1637_vm10 = vcmp.ge.f32.partialorder %v1529_v43, 0.0  ;;  %v1669_v33 = vmul.f32 0.2, %v1529_v43  ;;  %v1532_v15 = vadd.f32 %v5954_v55, %v8971_v46 }
 0x378   : > { %v9013_v45 = vsel %vm1637_vm10, %v1529_v43, %v1669_v33  ;;  %vm1638_vm11 = vcmp.ge.f32.partialorder %v1532_v15, 0.0  ;;  %v1670_v44 = vmul.f32 0.2, %v1532_v15  ;;  %v5955_v17 = vpop.f32.mrb[16].mxu0  ;;  %v5979_v56 = vpop.f32.mrb[0].mxu1  ;;  %v9015_v40 = vld [vmem:[#allocation2 + $0x31] sm:$0xff] }
 0x379   : > { %1733 = vst [vmem:[#allocation2 + $0x48] sm:$0xff] %v9013_v45  ;;  %v5956_v1 = vpop.f32.mrb[17].mxu0  ;;  %v5980_v34 = vpop.f32.mrb[1].mxu1  ;;  %v5558_v10 = vpack.c.bf16 %v9015_v40, %v9011_v58  ;;  %1871 = vrot.lane.b32.xlu0 %v9013_v45, %s7184_s30 }
 0x37a   : > { %v9022_v6 = vsel %vm1638_vm11, %v1532_v15, %v1670_v44  ;;  %v5957_v14 = vadd.f32 %v5956_v1, %v5955_v17  ;;  %v5981_v63 = vadd.f32 %v5980_v34, %v5979_v56  ;;  %v5958_v50 = vpop.f32.mrb[18].mxu0  ;;  %v5982_v27 = vpop.f32.mrb[2].mxu1 }
 0x37b   : > { %1734 = vst [vmem:[#allocation2 + $0x50] sm:$0xff] %v9022_v6  ;;  %v5959_v7 = vpop.f32.mrb[19].mxu0  ;;  %v5983_v28 = vpop.f32.mrb[3].mxu1  ;;  %5559 = vmatprep.mubr.msk.bf16.mxu1 %vm8432_vm3, %v5558_v10  ;;  %1873 = vrot.lane.b32.xlu1 %v9022_v6, %s7184_s30 }
 0x37c   : > { %v1537_v32 = vadd.f32 %v5957_v14, %v8971_v46  ;;  %v1569_v42 = vadd.f32 %v5981_v63, %v8971_v46  ;;  %v5960_v16 = vadd.f32 %v5959_v7, %v5958_v50  ;;  %v5984_v37 = vadd.f32 %v5983_v28, %v5982_v27 }
 0x37e   : > { %vm1639_vm12 = vcmp.ge.f32.partialorder %v1537_v32, 0.0  ;;  %v1671_v57 = vmul.f32 0.2, %v1537_v32  ;;  %vm1647_vm13 = vcmp.ge.f32.partialorder %v1569_v42, 0.0  ;;  %v1679_v35 = vmul.f32 0.2, %v1569_v42 }
 0x37f   : > { %v1540_v11 = vadd.f32 %v5960_v16, %v8971_v46  ;;  %v1572_v18 = vadd.f32 %v5984_v37, %v8971_v46 }
 0x380   : > { %v9033_v41 = vsel %vm1639_vm12, %v1537_v32, %v1671_v57  ;;  %v9035_v9 = vsel %vm1647_vm13, %v1569_v42, %v1679_v35  ;;  %v5961_v31 = vpop.f32.mrb[20].mxu0  ;;  %v5985_v20 = vpop.f32.mrb[4].mxu1 }
 0x381   : > { %1735 = vst [vmem:[#allocation2 + $0x58] sm:$0xff] %v9033_v41  ;;  %1743 = vst [vmem:[#allocation2 + $0x98] sm:$0xff] %v9035_v9  ;;  %vm1640_vm14 = vcmp.ge.f32.partialorder %v1540_v11, 0.0  ;;  %v1672_v47 = vmul.f32 0.2, %v1540_v11  ;;  %vm1648_vm15 = vcmp.ge.f32.partialorder %v1572_v18, 0.0  ;;  %1875 = vrot.lane.b32.xlu0 %v9033_v41, %s7184_s30 }
 0x382   : > { %v1680_v30 = vmul.f32 0.2, %v1572_v18  ;;  %v5962_v3 = vpop.f32.mrb[21].mxu0  ;;  %v5986_v2 = vpop.f32.mrb[5].mxu1 }
 0x383   : > { %v9041_v25 = vsel %vm1640_vm14, %v1540_v11, %v1672_v47  ;;  %v5963_v62 = vadd.f32 %v5962_v3, %v5961_v31  ;;  %v5987_v8 = vadd.f32 %v5986_v2, %v5985_v20  ;;  %v5964_v39 = vpop.f32.mrb[22].mxu0  ;;  %v5988_v13 = vpop.f32.mrb[6].mxu1 }
 0x384   : > { %v9043_v51 = vsel %vm1648_vm15, %v1572_v18, %v1680_v30  ;;  %1736 = vst [vmem:[#allocation2 + $0x60] sm:$0xff] %v9041_v25  ;;  %v5965_v38 = vpop.f32.mrb[23].mxu0  ;;  %v5989_v61 = vpop.f32.mrb[7].mxu1  ;;  %1877 = vrot.lane.b32.xlu1 %v9041_v25, %s7184_s30 }
 0x385   : > { %1744 = vst [vmem:[#allocation2 + $0xa0] sm:$0xff] %v9043_v51  ;;  %v1545_v23 = vadd.f32 %v5963_v62, %v8971_v46  ;;  %v1577_v52 = vadd.f32 %v5987_v8, %v8971_v46  ;;  %v5966_v48 = vadd.f32 %v5965_v38, %v5964_v39  ;;  %v5990_v22 = vadd.f32 %v5989_v61, %v5988_v13 }
 0x387   : > { %vm1641_vm2 = vcmp.ge.f32.partialorder %v1545_v23, 0.0  ;;  %v1673_v49 = vmul.f32 0.2, %v1545_v23  ;;  %vm1649_vm4 = vcmp.ge.f32.partialorder %v1577_v52, 0.0  ;;  %v1681_v5 = vmul.f32 0.2, %v1577_v52 }
 0x388   : > { %v1548_v29 = vadd.f32 %v5966_v48, %v8971_v46  ;;  %v1580_v12 = vadd.f32 %v5990_v22, %v8971_v46  ;;  %v5967_v21 = vpop.f32.mrb[24].mxu0  ;;  %v5991_v59 = vpop.f32.mrb[8].mxu1 }
 0x389   : > { %v9053_v0 = vsel %vm1641_vm2, %v1545_v23, %v1673_v49  ;;  %v9055_v60 = vsel %vm1649_vm4, %v1577_v52, %v1681_v5  ;;  %v5968_v43 = vpop.f32.mrb[25].mxu0  ;;  %v5992_v55 = vpop.f32.mrb[9].mxu1 }
 0x38a   : > { %1737 = vst [vmem:[#allocation2 + $0x68] sm:$0xff] %v9053_v0  ;;  %1745 = vst [vmem:[#allocation2 + $0xa8] sm:$0xff] %v9055_v60  ;;  %vm1642_vm5 = vcmp.ge.f32.partialorder %v1548_v29, 0.0  ;;  %v1674_v33 = vmul.f32 0.2, %v1548_v29  ;;  %vm1650_vm6 = vcmp.ge.f32.partialorder %v1580_v12, 0.0  ;;  %1879 = vrot.lane.b32.xlu0 %v9053_v0, %s7184_s30  ;;  %v5969_v44 = vadd.f32 %v5968_v43, %v5967_v21 }
 0x38b   : > { %v1682_v15 = vmul.f32 0.2, %v1580_v12  ;;  %v5993_v17 = vadd.f32 %v5992_v55, %v5991_v59  ;;  %v5970_v56 = vpop.f32.mrb[26].mxu0  ;;  %v5994_v1 = vpop.f32.mrb[10].mxu1 }
 0x38c   : > { %v9061_v34 = vsel %vm1642_vm5, %v1548_v29, %v1674_v33  ;;  %v5971_v14 = vpop.f32.mrb[27].mxu0  ;;  %v5995_v63 = vpop.f32.mrb[11].mxu1  ;;  %v1553_v50 = vadd.f32 %v5969_v44, %v8971_v46 }
 0x38d   : > { %v9063_v10 = vsel %vm1650_vm6, %v1580_v12, %v1682_v15  ;;  %1738 = vst [vmem:[#allocation2 + $0x70] sm:$0xff] %v9061_v34  ;;  %v1585_v27 = vadd.f32 %v5993_v17, %v8971_v46  ;;  %v5972_v7 = vadd.f32 %v5971_v14, %v5970_v56  ;;  %v5996_v28 = vadd.f32 %v5995_v63, %v5994_v1 }
 0x38e   : > { %1746 = vst [vmem:[#allocation2 + $0xb0] sm:$0xff] %v9063_v10  ;;  %1881 = vrot.lane.b32.xlu1 %v9061_v34, %s7184_s30  ;;  %vm1643_vm7 = vcmp.ge.f32.partialorder %v1553_v50, 0.0  ;;  %v1675_v32 = vmul.f32 0.2, %v1553_v50 }
 0x38f   : > { %vm1651_vm8 = vcmp.ge.f32.partialorder %v1585_v27, 0.0  ;;  %v1683_v42 = vmul.f32 0.2, %v1585_v27  ;;  %v1556_v16 = vadd.f32 %v5972_v7, %v8971_v46  ;;  %v1588_v37 = vadd.f32 %v5996_v28, %v8971_v46 }
 0x390   : > { %v5973_v57 = vpop.f32.mrb[28].mxu0  ;;  %v5997_v35 = vpop.f32.mrb[12].mxu1  ;;  %v9073_v11 = vsel %vm1643_vm7, %v1553_v50, %v1675_v32 }
 0x391   : > { %v9075_v18 = vsel %vm1651_vm8, %v1585_v27, %v1683_v42  ;;  %v5974_v31 = vpop.f32.mrb[29].mxu0  ;;  %v5998_v20 = vpop.f32.mrb[13].mxu1  ;;  %1739 = vst [vmem:[#allocation2 + $0x78] sm:$0xff] %v9073_v11  ;;  %vm1644_vm9 = vcmp.ge.f32.partialorder %v1556_v16, 0.0  ;;  %v1676_v47 = vmul.f32 0.2, %v1556_v16  ;;  %1883 = vrot.lane.b32.xlu0 %v9073_v11, %s7184_s30 }
 0x392   : > { %1747 = vst [vmem:[#allocation2 + $0xb8] sm:$0xff] %v9075_v18  ;;  %vm1652_vm10 = vcmp.ge.f32.partialorder %v1588_v37, 0.0  ;;  %v1684_v30 = vmul.f32 0.2, %v1588_v37  ;;  %v5975_v3 = vadd.f32 %v5974_v31, %v5973_v57  ;;  %v5999_v2 = vadd.f32 %v5998_v20, %v5997_v35  ;;  %v5976_v62 = vpop.f32.mrb[30].mxu0  ;;  %v6000_v8 = vpop.f32.mrb[14].mxu1 }
 0x393   : > { %v9081_v39 = vsel %vm1644_vm9, %v1556_v16, %v1676_v47  ;;  %v5977_v38 = vpop.f32.mrb[31].mxu0  ;;  %v6001_v61 = vpop.f32.mrb[15].mxu1 }
 0x394   : > { %v9083_v13 = vsel %vm1652_vm10, %v1588_v37, %v1684_v30  ;;  %1740 = vst [vmem:[#allocation2 + $0x80] sm:$0xff] %v9081_v39  ;;  %v1561_v23 = vadd.f32 %v5975_v3, %v8971_v46  ;;  %v1593_v52 = vadd.f32 %v5999_v2, %v8971_v46  ;;  %v5978_v48 = vadd.f32 %v5977_v38, %v5976_v62 }
 0x395   : > { %1748 = vst [vmem:[#allocation2 + $0xc0] sm:$0xff] %v9083_v13  ;;  %v6002_v22 = vadd.f32 %v6001_v61, %v6000_v8  ;;  %1885 = vrot.lane.b32.xlu1 %v9081_v39, %s7184_s30 }
 0x396   : > { %vm1645_vm11 = vcmp.ge.f32.partialorder %v1561_v23, 0.0  ;;  %v1677_v49 = vmul.f32 0.2, %v1561_v23  ;;  %vm1653_vm12 = vcmp.ge.f32.partialorder %v1593_v52, 0.0  ;;  %v1685_v5 = vmul.f32 0.2, %v1593_v52 }
 0x397   : > { %v1564_v29 = vadd.f32 %v5978_v48, %v8971_v46  ;;  %v1596_v12 = vadd.f32 %v6002_v22, %v8971_v46 }
 0x398   : > { %v6003_v21 = vpop.f32.mrb[16].mxu1  ;;  %v9093_v59 = vsel %vm1645_vm11, %v1561_v23, %v1677_v49  ;;  %v9095_v43 = vsel %vm1653_vm12, %v1593_v52, %v1685_v5 }
 0x399   : > { %v6004_v55 = vpop.f32.mrb[17].mxu1  ;;  %1741 = vst [vmem:[#allocation2 + $0x88] sm:$0xff] %v9093_v59  ;;  %1749 = vst [vmem:[#allocation2 + $0xc8] sm:$0xff] %v9095_v43  ;;  %vm1646_vm13 = vcmp.ge.f32.partialorder %v1564_v29, 0.0  ;;  %v1678_v33 = vmul.f32 0.2, %v1564_v29  ;;  %1887 = vrot.lane.b32.xlu0 %v9093_v59, %s7184_s30 }
 0x39a   : > { %vm1654_vm14 = vcmp.ge.f32.partialorder %v1596_v12, 0.0  ;;  %v1686_v15 = vmul.f32 0.2, %v1596_v12  ;;  %v6005_v44 = vadd.f32 %v6004_v55, %v6003_v21  ;;  %v6006_v17 = vpop.f32.mrb[18].mxu1 }
 0x39b   : > { %v9101_v56 = vsel %vm1646_vm13, %v1564_v29, %v1678_v33  ;;  %v6007_v14 = vpop.f32.mrb[19].mxu1 }
 0x39c   : > { %v9103_v1 = vsel %vm1654_vm14, %v1596_v12, %v1686_v15  ;;  %1742 = vst [vmem:[#allocation2 + $0x90] sm:$0xff] %v9101_v56  ;;  %v1601_v63 = vadd.f32 %v6005_v44, %v8971_v46  ;;  %v6008_v50 = vadd.f32 %v6007_v14, %v6006_v17  ;;  %1889 = vrot.lane.b32.xlu1 %v9101_v56, %s7184_s30 }
 0x39d   : > { %1750 = vst [vmem:[#allocation2 + $0xd0] sm:$0xff] %v9103_v1  ;;  %1891 = vrot.lane.b32.xlu0 %v9035_v9, %s7184_s30 }
 0x39e   : > { %vm1655_vm15 = vcmp.ge.f32.partialorder %v1601_v63, 0.0  ;;  %v1687_v27 = vmul.f32 0.2, %v1601_v63  ;;  %v1604_v7 = vadd.f32 %v6008_v50, %v8971_v46 }
 0x3a0   : > { %v6009_v28 = vpop.f32.mrb[20].mxu1  ;;  %v9113_v32 = vsel %vm1655_vm15, %v1601_v63, %v1687_v27  ;;  %vm1656_vm2 = vcmp.ge.f32.partialorder %v1604_v7, 0.0  ;;  %v1688_v42 = vmul.f32 0.2, %v1604_v7  ;;  %1893 = vrot.lane.b32.xlu1 %v9043_v51, %s7184_s30 }
 0x3a1   : > { %v6010_v16 = vpop.f32.mrb[21].mxu1  ;;  %1751 = vst [vmem:[#allocation2 + $0xd8] sm:$0xff] %v9113_v32  ;;  %1895 = vrot.lane.b32.xlu0 %v9055_v60, %s7184_s30 }
 0x3a2   : > { %v6011_v37 = vadd.f32 %v6010_v16, %v6009_v28  ;;  %v6012_v57 = vpop.f32.mrb[22].mxu1  ;;  %v9120_v35 = vsel %vm1656_vm2, %v1604_v7, %v1688_v42  ;;  %v1951_v28 = vld [vmem:[#allocation2 + $0x9] sm:$0xff] }
 0x3a3   : > { %v6013_v31 = vpop.f32.mrb[23].mxu1  ;;  %1752 = vst [vmem:[#allocation2 + $0xe0] sm:$0xff] %v9120_v35 }
 0x3a4   : > { %v1609_v20 = vadd.f32 %v6011_v37, %v8971_v46  ;;  %v6014_v47 = vadd.f32 %v6013_v31, %v6012_v57  ;;  %1897 = vrot.lane.b32.xlu1 %v9063_v10, %s7184_s30  ;;  %v1952_v37 = vld [vmem:[#allocation2 + $0x11] sm:$0xff] }
 0x3a5   : > { %1899 = vrot.lane.b32.xlu0 %v9075_v18, %s7184_s30  ;;  %v1984_v31 = vsel %vm418_vm0, %v1952_v37, 0.0 }
 0x3a6   : > { %vm1657_vm4 = vcmp.ge.f32.partialorder %v1609_v20, 0.0  ;;  %v1689_v30 = vmul.f32 0.2, %v1609_v20  ;;  %v1612_v3 = vadd.f32 %v6014_v47, %v8971_v46  ;;  %v1954_v47 = vld [vmem:[#allocation2 + $0x21] sm:$0xff] }
 0x3a8   : > { %v9129_v2 = vsel %vm1657_vm4, %v1609_v20, %v1689_v30  ;;  %vm1658_vm5 = vcmp.ge.f32.partialorder %v1612_v3, 0.0  ;;  %v1690_v62 = vmul.f32 0.2, %v1612_v3  ;;  %v6015_v8 = vpop.f32.mrb[24].mxu1  ;;  %1901 = vrot.lane.b32.xlu1 %v9083_v13, %s7184_s30  ;;  %v9173_v20 = vld [vmem:[#allocation2 + $0x19] sm:$0xff]  ;;  %v9179_v30 = vsel %vm418_vm0, %v1954_v47, 0.0 }
 0x3a9   : > { %1753 = vst [vmem:[#allocation2 + $0xe8] sm:$0xff] %v9129_v2  ;;  %v6016_v38 = vpop.f32.mrb[25].mxu1  ;;  %1903 = vrot.lane.b32.xlu0 %v9095_v43, %s7184_s30  ;;  %v1974_v47 = vld [vmem:[#allocation2 + $0xc1] sm:$0xff] }
 0x3aa   : > { %v9134_v61 = vsel %vm1658_vm5, %v1612_v3, %v1690_v62  ;;  %v6017_v23 = vadd.f32 %v6016_v38, %v6015_v8  ;;  %v6018_v52 = vpop.f32.mrb[26].mxu1  ;;  %v9188_v3 = vsel %vm418_vm0, %v9015_v40, 0.0  ;;  %v9192_v62 = vld [vmem:[#allocation2 + $0x39] sm:$0xff]  ;;  %v1958_v8 = vld [vmem:[#allocation2 + $0x41] sm:$0xff]  ;;  %v1960_v40 = vld [vmem:[#allocation2 + $0x51] sm:$0xff] }
 0x3ab   : > { %1754 = vst [vmem:[#allocation2 + $0xf0] sm:$0xff] %v9134_v61  ;;  %v6019_v48 = vpop.f32.mrb[27].mxu1  ;;  %v9198_v38 = vsel %vm418_vm0, %v1958_v8, 0.0  ;;  %v9278_v8 = vsel %vm418_vm0, %v1974_v47, 0.0 }
 0x3ac   : > { %v1617_v22 = vadd.f32 %v6017_v23, %v8971_v46  ;;  %v6020_v49 = vadd.f32 %v6019_v48, %v6018_v52  ;;  %1905 = vrot.lane.b32.xlu1 %v9103_v1, %s7184_s30  ;;  %v9202_v23 = vld [vmem:[#allocation2 + $0x49] sm:$0xff]  ;;  %v9208_v52 = vsel %vm418_vm0, %v1960_v40, 0.0  ;;  %v9212_v48 = vld [vmem:[#allocation2 + $0x59] sm:$0xff] }
 0x3ad   : > { %1907 = vrot.lane.b32.xlu0 %v9113_v32, %s7184_s30  ;;  %v9282_v40 = vld [vmem:[#allocation2 + $0xc9] sm:$0xff] }
 0x3ae   : > { %vm1659_vm6 = vcmp.ge.f32.partialorder %v1617_v22, 0.0  ;;  %v1691_v5 = vmul.f32 0.2, %v1617_v22  ;;  %v1620_v29 = vadd.f32 %v6020_v49, %v8971_v46  ;;  %13430 = vst [vmem:[#allocation27_spill] sm:$0xff] %v9282_v40 }
 0x3b0   : > { %v9145_v12 = vsel %vm1659_vm6, %v1617_v22, %v1691_v5  ;;  %vm1660_vm7 = vcmp.ge.f32.partialorder %v1620_v29, 0.0  ;;  %v1692_v21 = vmul.f32 0.2, %v1620_v29  ;;  %v6021_v55 = vpop.f32.mrb[28].mxu1  ;;  %1909 = vrot.lane.b32.xlu1 %v9120_v35, %s7184_s30  ;;  %v1962_v22 = vld [vmem:[#allocation2 + $0x61] sm:$0xff]  ;;  %v9222_v5 = vld [vmem:[#allocation2 + $0x69] sm:$0xff] }
 0x3b1   : > { %1755 = vst [vmem:[#allocation2 + $0xf8] sm:$0xff] %v9145_v12  ;;  %v6022_v33 = vpop.f32.mrb[29].mxu1  ;;  %1911 = vrot.lane.b32.xlu0 %v9129_v2, %s7184_s30  ;;  %v9218_v49 = vsel %vm418_vm0, %v1962_v22, 0.0  ;;  %v1976_v22 = vld [vmem:[#allocation2 + $0xd1] sm:$0xff] }
 0x3b2   : > { %v9150_v15 = vsel %vm1660_vm7, %v1620_v29, %v1692_v21  ;;  %v6023_v44 = vadd.f32 %v6022_v33, %v6021_v55  ;;  %v6024_v17 = vpop.f32.mrb[30].mxu1  ;;  %v1964_v29 = vld [vmem:[#allocation2 + $0x71] sm:$0xff]  ;;  %v9232_v55 = vld [vmem:[#allocation2 + $0x79] sm:$0xff]  ;;  %v1966_v33 = vld [vmem:[#allocation2 + $0x81] sm:$0xff] }
 0x3b3   : > { %1756 = vst [vmem:[#allocation2 + $0x100] sm:$0xff] %v9150_v15  ;;  %v6025_v14 = vpop.f32.mrb[31].mxu1  ;;  %v9228_v21 = vsel %vm418_vm0, %v1964_v29, 0.0  ;;  %v9284_v29 = vpop.permute.xlu0 %1855 }
 0x3b4   : > { %v1625_v63 = vadd.f32 %v6023_v44, %v8971_v46  ;;  %v6026_v50 = vadd.f32 %v6025_v14, %v6024_v17  ;;  %1913 = vrot.lane.b32.xlu1 %v9134_v61, %s7184_s30  ;;  %v9238_v44 = vsel %vm418_vm0, %v1966_v33, 0.0  ;;  %v9242_v17 = vld [vmem:[#allocation2 + $0x89] sm:$0xff]  ;;  %v1968_v14 = vld [vmem:[#allocation2 + $0x91] sm:$0xff]  ;;  %13431 = vst [vmem:[#allocation85_spill] sm:$0xff] %v9284_v29  ;;  %v9290_v33 = vsel %vm418_vm0, %v1976_v22, 0.0 }
 0x3b5   : > { %1915 = vrot.lane.b32.xlu0 %v9145_v12, %s7184_s30  ;;  %13432 = vst [vmem:[#allocation92_spill] sm:$0xff] %v9290_v33  ;;  %v9308_v22 = vld [vmem:[#allocation2 + $0xe9] sm:$0xff] }
 0x3b6   : > { %vm1661_vm8 = vcmp.ge.f32.partialorder %v1625_v63, 0.0  ;;  %v1693_v27 = vmul.f32 0.2, %v1625_v63  ;;  %v1628_v7 = vadd.f32 %v6026_v50, %v8971_v46  ;;  %v9252_v50 = vld [vmem:[#allocation2 + $0x99] sm:$0xff]  ;;  %13437 = vst [vmem:[#allocation94_spill] sm:$0xff] %v9308_v22 }
 0x3b8   : > { %v9161_v42 = vsel %vm1661_vm8, %v1625_v63, %v1693_v27  ;;  %vm1662_vm9 = vcmp.ge.f32.partialorder %v1628_v7, 0.0  ;;  %v1694_v16 = vmul.f32 0.2, %v1628_v7  ;;  %1917 = vrot.lane.b32.xlu1 %v9150_v15, %s7184_s30  ;;  %v9248_v63 = vsel %vm418_vm0, %v1968_v14, 0.0  ;;  %v1970_v27 = vld [vmem:[#allocation2 + $0xa1] sm:$0xff]  ;;  %v9292_v14 = vpop.permute.xlu1 %1857 }
 0x3b9   : > { %1757 = vst [vmem:[#allocation2 + $0x108] sm:$0xff] %v9161_v42  ;;  %2015 = vrot.lane.b32.xlu0 %v1951_v28, %s7185_s9  ;;  %v9262_v28 = vld [vmem:[#allocation2 + $0xa9] sm:$0xff]  ;;  %13433 = vst [vmem:[#allocation43_spill] sm:$0xff] %v9292_v14  ;;  %v1980_v14 = vld [vmem:[#allocation2 + $0xf1] sm:$0xff] }
 0x3ba   : > { %v9166_v57 = vsel %vm1662_vm9, %v1628_v7, %v1694_v16  ;;  %v9258_v7 = vsel %vm418_vm0, %v1970_v27, 0.0  ;;  %v1972_v16 = vld [vmem:[#allocation2 + $0xb1] sm:$0xff]  ;;  %v9296_v27 = vld [vmem:[#allocation2 + $0xd9] sm:$0xff] }
 0x3bb   : > { %1758 = vst [vmem:[#allocation2 + $0x110] sm:$0xff] %v9166_v57  ;;  %v9268_v37 = vsel %vm418_vm0, %v1972_v16, 0.0  ;;  %13434 = vst [vmem:[#allocation35_spill] sm:$0xff] %v9296_v27  ;;  %v1978_v16 = vld [vmem:[#allocation2 + $0xe1] sm:$0xff] }
 0x3bc   : > { %2017 = vrot.lane.b32.xlu1 %v1984_v31, %s7185_s9  ;;  %v9272_v31 = vld [vmem:[#allocation2 + $0xb9] sm:$0xff]  ;;  %v9304_v19 = vsel %vm418_vm0, %v1978_v16, 0.0 }
 0x3bd   : > { %2019 = vrot.lane.b32.xlu0 %v9173_v20, %s7185_s9  ;;  %13436 = vst [vmem:[#allocation32_spill] sm:$0xff] %v9304_v19  ;;  %v9322_v16 = vld [vmem:[#allocation2 + $0xf9] sm:$0xff] }
 0x3be   : > { %13441 = vst [vmem:[#allocation91_spill] sm:$0xff] %v9322_v16 }
 0x3c0   : > { %2021 = vrot.lane.b32.xlu1 %v9179_v30, %s7185_s9 }
 0x3c1   : > { %2023 = vrot.lane.b32.xlu0 %v9011_v58, %s7185_s9 }
 0x3c4   : > { %2025 = vrot.lane.b32.xlu1 %v9188_v3, %s7185_s9 }
 0x3c5   : > { %2027 = vrot.lane.b32.xlu0 %v9192_v62, %s7185_s9 }
 0x3c8   : > { %2029 = vrot.lane.b32.xlu1 %v9198_v38, %s7185_s9 }
 0x3c9   : > { %2031 = vrot.lane.b32.xlu0 %v9202_v23, %s7185_s9 }
 0x3cc   : > { %2033 = vrot.lane.b32.xlu1 %v9208_v52, %s7185_s9 }
 0x3cd   : > { %2035 = vrot.lane.b32.xlu0 %v9212_v48, %s7185_s9 }
 0x3d0   : > { %2037 = vrot.lane.b32.xlu1 %v9218_v49, %s7185_s9 }
 0x3d1   : > { %2039 = vrot.lane.b32.xlu0 %v9222_v5, %s7185_s9 }
 0x3d3   : > { %v9300_v47 = vpop.permute.xlu0 %1859 }
 0x3d4   : > { %2041 = vrot.lane.b32.xlu1 %v9228_v21, %s7185_s9  ;;  %13435 = vst [vmem:[#allocation36_spill] sm:$0xff] %v9300_v47  ;;  %v9318_v47 = vsel %vm418_vm0, %v1980_v14, 0.0 }
 0x3d5   : > { %2043 = vrot.lane.b32.xlu0 %v9232_v55, %s7185_s9  ;;  %v9312_v29 = vpop.permute.xlu1 %1861  ;;  %13440 = vst [vmem:[#allocation31_spill] sm:$0xff] %v9318_v47 }
 0x3d6   : > { %13438 = vst [vmem:[#allocation88_spill] sm:$0xff] %v9312_v29 }
 0x3d8   : > { %2045 = vrot.lane.b32.xlu1 %v9238_v44, %s7185_s9 }
 0x3d9   : > { %2047 = vrot.lane.b32.xlu0 %v9242_v17, %s7185_s9 }
 0x3dc   : > { %2049 = vrot.lane.b32.xlu1 %v9248_v63, %s7185_s9 }
 0x3dd   : > { %2051 = vrot.lane.b32.xlu0 %v9252_v50, %s7185_s9 }
 0x3e0   : > { %2053 = vrot.lane.b32.xlu1 %v9258_v7, %s7185_s9 }
 0x3e1   : > { %2055 = vrot.lane.b32.xlu0 %v9262_v28, %s7185_s9 }
 0x3e4   : > { %2057 = vrot.lane.b32.xlu1 %v9268_v37, %s7185_s9 }
 0x3e5   : > { %2059 = vrot.lane.b32.xlu0 %v9272_v31, %s7185_s9 }
 0x3e8   : > { %2061 = vrot.lane.b32.xlu1 %v9278_v8, %s7185_s9 }
 0x3e9   : > { %2063 = vrot.lane.b32.xlu0 %v9282_v40, %s7185_s9  ;;  %v9326_v40 = vpop.permute.xlu1 %1865 }
 0x3ea   : > { %13442 = vst [vmem:[#allocation42_spill] sm:$0xff] %v9326_v40  ;;  %v9344_v40 = vld [vmem:[#allocation2 + $0x1f] sm:$0xff] }
 0x3eb   : > { %13447 = vst [vmem:[#allocation38_spill] sm:$0xff] %v9344_v40 }
 0x3ec   : > { %2065 = vrot.lane.b32.xlu1 %v9290_v33, %s7185_s9  ;;  %v9314_v33 = vpop.permute.xlu0 %1863 }
 0x3ed   : > { %2067 = vrot.lane.b32.xlu0 %v9296_v27, %s7185_s9  ;;  %13439 = vst [vmem:[#allocation39_spill] sm:$0xff] %v9314_v33  ;;  %v1761_v27 = vld [vmem:[#allocation2 + $0x17] sm:$0xff] }
 0x3ee   : > { %v9336_v29 = vsel %vm415_vm1, %v1761_v27, 0.0  ;;  %v1765_v27 = vld [vmem:[#allocation2 + $0x37] sm:$0xff] }
 0x3ef   : > { %13445 = vst [vmem:[#allocation93_spill] sm:$0xff] %v9336_v29 }
 0x3f0   : > { %2069 = vrot.lane.b32.xlu1 %v9304_v19, %s7185_s9  ;;  %v1982_v19 = vld [vmem:[#allocation2 + $0x101] sm:$0xff] }
 0x3f1   : > { %2071 = vrot.lane.b32.xlu0 %v9308_v22, %s7185_s9  ;;  %v9328_v22 = vpop.permute.xlu0 %1867  ;;  %v9332_v33 = vsel %vm418_vm0, %v1982_v19, 0.0 }
 0x3f2   : > { %13443 = vst [vmem:[#allocation34_spill] sm:$0xff] %v9328_v22 }
 0x3f4   : > { %2073 = vrot.lane.b32.xlu1 %v9318_v47, %s7185_s9  ;;  %v1763_v47 = vld [vmem:[#allocation2 + $0x27] sm:$0xff] }
 0x3f5   : > { %2075 = vrot.lane.b32.xlu0 %v9322_v16, %s7185_s9  ;;  %v9342_v16 = vpop.permute.xlu1 %1869  ;;  %v9346_v22 = vpop.permute.xlu0 %1871  ;;  %v9350_v19 = vsel %vm415_vm1, %v1763_v47, 0.0  ;;  %v1767_v47 = vld [vmem:[#allocation2 + $0x47] sm:$0xff] }
 0x3f6   : > { %13446 = vst [vmem:[#allocation46_spill] sm:$0xff] %v9342_v16  ;;  %13448 = vst [vmem:[#allocation53_spill] sm:$0xff] %v9346_v22  ;;  %v9364_v22 = vsel %vm415_vm1, %v1765_v27, 0.0  ;;  %v1769_v27 = vld [vmem:[#allocation2 + $0x57] sm:$0xff] }
 0x3f7   : > { %13449 = vst [vmem:[#allocation62_spill] sm:$0xff] %v9350_v19  ;;  %13453 = vst [vmem:[#allocation104_spill] sm:$0xff] %v9364_v22 }
 0x3f8   : > { %2077 = vrot.lane.b32.xlu1 %v9332_v33, %s7185_s9 }
 0x3f9   : > { %2115 = vrot.lane.b32.xlu0 %v9336_v29, %s7186_s13  ;;  %v9356_v46 = vpop.permute.xlu1 %1873  ;;  %v9358_v29 = vld [vmem:[#allocation2 + $0x2f] sm:$0xff]  ;;  %v9360_v16 = vpop.permute.xlu0 %1875 }
 0x3fa   : > { %13450 = vst [vmem:[#allocation41_spill] sm:$0xff] %v9356_v46  ;;  %13451 = vst [vmem:[#allocation45_spill] sm:$0xff] %v9358_v29 }
 0x3fb   : > { %13452 = vst [vmem:[#allocation95_spill] sm:$0xff] %v9360_v16  ;;  %v9378_v16 = vsel %vm415_vm1, %v1767_v47, 0.0  ;;  %v1771_v47 = vld [vmem:[#allocation2 + $0x67] sm:$0xff] }
 0x3fc   : > { %2117 = vrot.lane.b32.xlu1 %v9344_v40, %s7186_s13  ;;  %13457 = vst [vmem:[#allocation49_spill] sm:$0xff] %v9378_v16 }
 0x3fd   : > { %2119 = vrot.lane.b32.xlu0 %v9350_v19, %s7186_s13  ;;  %v9370_v40 = vpop.permute.xlu1 %1877  ;;  %v9372_v19 = vld [vmem:[#allocation2 + $0x3f] sm:$0xff]  ;;  %v9374_v46 = vpop.permute.xlu0 %1879 }
 0x3fe   : > { %13454 = vst [vmem:[#allocation119_spill] sm:$0xff] %v9370_v40  ;;  %13455 = vst [vmem:[#allocation197_spill] sm:$0xff] %v9372_v19 }
 0x3ff   : > { %13456 = vst [vmem:[#allocation56_spill] sm:$0xff] %v9374_v46  ;;  %v9392_v46 = vsel %vm415_vm1, %v1769_v27, 0.0  ;;  %v1773_v27 = vld [vmem:[#allocation2 + $0x77] sm:$0xff] }
 0x400   : > { %2121 = vrot.lane.b32.xlu1 %v9358_v29, %s7186_s13  ;;  %13461 = vst [vmem:[#allocation117_spill] sm:$0xff] %v9392_v46 }
 0x401   : > { %2123 = vrot.lane.b32.xlu0 %v9364_v22, %s7186_s13  ;;  %v9384_v29 = vpop.permute.xlu1 %1881  ;;  %v9386_v22 = vld [vmem:[#allocation2 + $0x4f] sm:$0xff] }
 0x402   : > { %13458 = vst [vmem:[#allocation50_spill] sm:$0xff] %v9384_v29  ;;  %13459 = vst [vmem:[#allocation63_spill] sm:$0xff] %v9386_v22 }
 0x403   : > { %v9388_v40 = vpop.permute.xlu0 %1883 }
 0x404   : > { %2125 = vrot.lane.b32.xlu1 %v9372_v19, %s7186_s13  ;;  %13460 = vst [vmem:[#allocation54_spill] sm:$0xff] %v9388_v40  ;;  %v9406_v40 = vsel %vm415_vm1, %v1771_v47, 0.0  ;;  %v1775_v47 = vld [vmem:[#allocation2 + $0x87] sm:$0xff] }
 0x405   : > { %2127 = vrot.lane.b32.xlu0 %v9378_v16, %s7186_s13  ;;  %v9400_v16 = vld [vmem:[#allocation2 + $0x5f] sm:$0xff]  ;;  %13465 = vst [vmem:[#allocation64_spill] sm:$0xff] %v9406_v40 }
 0x406   : > { %13463 = vst [vmem:[#allocation127_spill] sm:$0xff] %v9400_v16 }
 0x407   : > { %v9398_v19 = vpop.permute.xlu1 %1885 }
 0x408   : > { %2129 = vrot.lane.b32.xlu1 %v9386_v22, %s7186_s13  ;;  %13462 = vst [vmem:[#allocation124_spill] sm:$0xff] %v9398_v19 }
 0x409   : > { %2131 = vrot.lane.b32.xlu0 %v9392_v46, %s7186_s13  ;;  %v9414_v46 = vld [vmem:[#allocation2 + $0x6f] sm:$0xff] }
 0x40a   : > { %13467 = vst [vmem:[#allocation75_spill] sm:$0xff] %v9414_v46 }
 0x40b   : > { %v9402_v29 = vpop.permute.xlu0 %1887 }
 0x40c   : > { %13464 = vst [vmem:[#allocation37_spill] sm:$0xff] %v9402_v29  ;;  %2133 = vrot.lane.b32.xlu1 %v9400_v16, %s7186_s13  ;;  %v9420_v29 = vsel %vm415_vm1, %v1773_v27, 0.0  ;;  %v1777_v27 = vld [vmem:[#allocation2 + $0x97] sm:$0xff] }
 0x40d   : > { %2135 = vrot.lane.b32.xlu0 %v9406_v40, %s7186_s13  ;;  %13469 = vst [vmem:[#allocation30_spill] sm:$0xff] %v9420_v29  ;;  %v9428_v40 = vld [vmem:[#allocation2 + $0x7f] sm:$0xff] }
 0x40e   : > { %v9412_v22 = vpop.permute.xlu1 %1889  ;;  %13471 = vst [vmem:[#allocation59_spill] sm:$0xff] %v9428_v40 }
 0x40f   : > { %13466 = vst [vmem:[#allocation57_spill] sm:$0xff] %v9412_v22  ;;  %v9416_v19 = vpop.permute.xlu0 %1891 }
 0x410   : > { %13468 = vst [vmem:[#allocation66_spill] sm:$0xff] %v9416_v19  ;;  %2137 = vrot.lane.b32.xlu1 %v9414_v46, %s7186_s13  ;;  %v9434_v19 = vsel %vm415_vm1, %v1775_v47, 0.0  ;;  %v1779_v47 = vld [vmem:[#allocation2 + $0xa7] sm:$0xff] }
 0x411   : > { %2139 = vrot.lane.b32.xlu0 %v9420_v29, %s7186_s13  ;;  %13473 = vst [vmem:[#allocation58_spill] sm:$0xff] %v9434_v19  ;;  %v9442_v29 = vld [vmem:[#allocation2 + $0x8f] sm:$0xff] }
 0x412   : > { %v9426_v16 = vpop.permute.xlu1 %1893  ;;  %13475 = vst [vmem:[#allocation61_spill] sm:$0xff] %v9442_v29 }
 0x413   : > { %13470 = vst [vmem:[#allocation48_spill] sm:$0xff] %v9426_v16  ;;  %v9430_v22 = vpop.permute.xlu0 %1895 }
 0x414   : > { %13472 = vst [vmem:[#allocation151_spill] sm:$0xff] %v9430_v22  ;;  %2141 = vrot.lane.b32.xlu1 %v9428_v40, %s7186_s13  ;;  %v9448_v22 = vsel %vm415_vm1, %v1777_v27, 0.0  ;;  %v1781_v27 = vld [vmem:[#allocation2 + $0xb7] sm:$0xff] }
 0x415   : > { %2143 = vrot.lane.b32.xlu0 %v9434_v19, %s7186_s13  ;;  %13477 = vst [vmem:[#allocation106_spill] sm:$0xff] %v9448_v22  ;;  %v9456_v19 = vld [vmem:[#allocation2 + $0x9f] sm:$0xff] }
 0x416   : > { %v9440_v46 = vpop.permute.xlu1 %1897  ;;  %13479 = vst [vmem:[#allocation160_spill] sm:$0xff] %v9456_v19 }
 0x417   : > { %13474 = vst [vmem:[#allocation68_spill] sm:$0xff] %v9440_v46  ;;  %v9444_v16 = vpop.permute.xlu0 %1899 }
 0x418   : > { %13476 = vst [vmem:[#allocation99_spill] sm:$0xff] %v9444_v16  ;;  %2145 = vrot.lane.b32.xlu1 %v9442_v29, %s7186_s13  ;;  %v9462_v16 = vsel %vm415_vm1, %v1779_v47, 0.0  ;;  %v1783_v47 = vld [vmem:[#allocation2 + $0xc7] sm:$0xff] }
 0x419   : > { %2147 = vrot.lane.b32.xlu0 %v9448_v22, %s7186_s13  ;;  %13481 = vst [vmem:[#allocation201_spill] sm:$0xff] %v9462_v16  ;;  %v9470_v22 = vld [vmem:[#allocation2 + $0xaf] sm:$0xff] }
 0x41a   : > { %v9454_v40 = vpop.permute.xlu1 %1901  ;;  %13483 = vst [vmem:[#allocation101_spill] sm:$0xff] %v9470_v22 }
 0x41b   : > { %13478 = vst [vmem:[#allocation146_spill] sm:$0xff] %v9454_v40  ;;  %v9458_v46 = vpop.permute.xlu0 %1903 }
 0x41c   : > { %13480 = vst [vmem:[#allocation167_spill] sm:$0xff] %v9458_v46  ;;  %2149 = vrot.lane.b32.xlu1 %v9456_v19, %s7186_s13  ;;  %v9476_v46 = vsel %vm415_vm1, %v1781_v27, 0.0  ;;  %v1785_v27 = vld [vmem:[#allocation2 + $0xd7] sm:$0xff] }
 0x41d   : > { %2151 = vrot.lane.b32.xlu0 %v9462_v16, %s7186_s13  ;;  %13485 = vst [vmem:[#allocation129_spill] sm:$0xff] %v9476_v46  ;;  %v9484_v16 = vld [vmem:[#allocation2 + $0xbf] sm:$0xff] }
 0x41e   : > { %v9468_v29 = vpop.permute.xlu1 %1905  ;;  %13487 = vst [vmem:[#allocation206_spill] sm:$0xff] %v9484_v16 }
 0x41f   : > { %13482 = vst [vmem:[#allocation96_spill] sm:$0xff] %v9468_v29  ;;  %v9472_v40 = vpop.permute.xlu0 %1907 }
 0x420   : > { %13484 = vst [vmem:[#allocation121_spill] sm:$0xff] %v9472_v40  ;;  %2153 = vrot.lane.b32.xlu1 %v9470_v22, %s7186_s13  ;;  %v9490_v40 = vsel %vm415_vm1, %v1783_v47, 0.0  ;;  %v1787_v47 = vld [vmem:[#allocation2 + $0xe7] sm:$0xff] }
 0x421   : > { %2155 = vrot.lane.b32.xlu0 %v9476_v46, %s7186_s13  ;;  %13489 = vst [vmem:[#allocation70_spill] sm:$0xff] %v9490_v40  ;;  %v9498_v46 = vld [vmem:[#allocation2 + $0xcf] sm:$0xff] }
 0x422   : > { %v9482_v19 = vpop.permute.xlu1 %1909  ;;  %13491 = vst [vmem:[#allocation126_spill] sm:$0xff] %v9498_v46 }
 0x423   : > { %13486 = vst [vmem:[#allocation199_spill] sm:$0xff] %v9482_v19  ;;  %v9486_v29 = vpop.permute.xlu0 %1911 }
 0x424   : > { %13488 = vst [vmem:[#allocation209_spill] sm:$0xff] %v9486_v29  ;;  %2157 = vrot.lane.b32.xlu1 %v9484_v16, %s7186_s13  ;;  %v9504_v29 = vsel %vm415_vm1, %v1785_v27, 0.0  ;;  %v1789_v27 = vld [vmem:[#allocation2 + $0xf7] sm:$0xff] }
 0x425   : > { %2159 = vrot.lane.b32.xlu0 %v9490_v40, %s7186_s13  ;;  %13493 = vst [vmem:[#allocation67_spill] sm:$0xff] %v9504_v29  ;;  %v9512_v40 = vld [vmem:[#allocation2 + $0xdf] sm:$0xff] }
 0x426   : > { %v9496_v22 = vpop.permute.xlu1 %1913  ;;  %13495 = vst [vmem:[#allocation52_spill] sm:$0xff] %v9512_v40 }
 0x427   : > { %13490 = vst [vmem:[#allocation118_spill] sm:$0xff] %v9496_v22  ;;  %v9500_v19 = vpop.permute.xlu0 %1915 }
 0x428   : > { %13492 = vst [vmem:[#allocation47_spill] sm:$0xff] %v9500_v19  ;;  %2161 = vrot.lane.b32.xlu1 %v9498_v46, %s7186_s13  ;;  %v9518_v19 = vsel %vm415_vm1, %v1787_v47, 0.0  ;;  %v2111_v47 = vld [vmem:[#allocation2 + $0x107] sm:$0xff] }
 0x429   : > { %2163 = vrot.lane.b32.xlu0 %v9504_v29, %s7186_s13  ;;  %13497 = vst [vmem:[#allocation22_spill] sm:$0xff] %v9518_v19  ;;  %v9526_v29 = vld [vmem:[#allocation2 + $0xef] sm:$0xff] }
 0x42a   : > { %v9510_v16 = vpop.permute.xlu1 %1917  ;;  %13499 = vst [vmem:[#allocation100_spill] sm:$0xff] %v9526_v29 }
 0x42b   : > { %13494 = vst [vmem:[#allocation33_spill] sm:$0xff] %v9510_v16  ;;  %v9514_v22 = vpop.permute.xlu0 %2015 }
 0x42c   : > { %13496 = vst [vmem:[#allocation155_spill] sm:$0xff] %v9514_v22  ;;  %2165 = vrot.lane.b32.xlu1 %v9512_v40, %s7186_s13  ;;  %v9532_v22 = vsel %vm415_vm1, %v1789_v27, 0.0  ;;  %v9548_v27 = vsel %vm415_vm1, %v2111_v47, 0.0 }
 0x42d   : > { %2167 = vrot.lane.b32.xlu0 %v9518_v19, %s7186_s13  ;;  %13501 = vst [vmem:[#allocation148_spill] sm:$0xff] %v9532_v22  ;;  %v9540_v19 = vld [vmem:[#allocation2 + $0xff] sm:$0xff] }
 0x42e   : > { %v9524_v46 = vpop.permute.xlu1 %2017 }
 0x42f   : > { %13498 = vst [vmem:[#allocation97_spill] sm:$0xff] %v9524_v46  ;;  %v9528_v16 = vpop.permute.xlu0 %2019 }
 0x430   : > { %13500 = vst [vmem:[#allocation108_spill] sm:$0xff] %v9528_v16  ;;  %2169 = vrot.lane.b32.xlu1 %v9526_v29, %s7186_s13  ;;  %v9556_v29 = vld [vmem:[#allocation2 + $0x10f] sm:$0xff] }
 0x431   : > { %2171 = vrot.lane.b32.xlu0 %v9532_v22, %s7186_s13 }
 0x432   : > { %v9538_v40 = vpop.permute.xlu1 %2021 }
 0x433   : > { %13502 = vst [vmem:[#allocation164_spill] sm:$0xff] %v9538_v40  ;;  %v9542_v46 = vpop.permute.xlu0 %2023 }
 0x434   : > { %13503 = vst [vmem:[#allocation203_spill] sm:$0xff] %v9542_v46  ;;  %2173 = vrot.lane.b32.xlu1 %v9540_v19, %s7186_s13 }
 0x435   : > { %2175 = vrot.lane.b32.xlu0 %v9548_v27, %s7186_s13 }
 0x436   : > { %v9552_v16 = vpop.permute.xlu1 %2025 }
 0x437   : > { %v9554_v22 = vpop.permute.xlu0 %2027 }
 0x438   : > { %13504 = vst [vmem:[#allocation211_spill] sm:$0xff] %v9554_v22  ;;  %2177 = vrot.lane.b32.xlu1 %v9556_v29, %s7186_s13 }
 0x439   : > { %2213 = vrot.lane.b32.xlu0 %v8975_v54, %s7187_s15 }
 0x43a   : > { %v9562_v46 = vpop.permute.xlu1 %2029 }
 0x43b   : > { %13505 = vst [vmem:[#allocation103_spill] sm:$0xff] %v9562_v46  ;;  %v9564_v40 = vpop.permute.xlu0 %2031 }
 0x43c   : > { %2215 = vrot.lane.b32.xlu1 %v8980_v26, %s7187_s15 }
 0x43d   : > { %2217 = vrot.lane.b32.xlu0 %v8987_v36, %s7187_s15 }
 0x43e   : > { %v9570_v47 = vpop.permute.xlu1 %2033 }
 0x43f   : > { %v9572_v22 = vpop.permute.xlu0 %2035 }
 0x440   : > { %13506 = vst [vmem:[#allocation123_spill] sm:$0xff] %v9572_v22  ;;  %2219 = vrot.lane.b32.xlu1 %v8992_v53, %s7187_s15 }
 0x441   : > { %2221 = vrot.lane.b32.xlu0 %v8999_v4, %s7187_s15 }
 0x442   : > { %v9578_v54 = vpop.permute.xlu1 %2037 }
 0x443   : > { %13507 = vst [vmem:[#allocation131_spill] sm:$0xff] %v9578_v54  ;;  %v9580_v46 = vpop.permute.xlu0 %2039 }
 0x444   : > { %13508 = vst [vmem:[#allocation200_spill] sm:$0xff] %v9580_v46  ;;  %2223 = vrot.lane.b32.xlu1 %v9004_v24, %s7187_s15 }
 0x445   : > { %2225 = vrot.lane.b32.xlu0 %v9013_v45, %s7187_s15 }
 0x446   : > { %v9586_v26 = vpop.permute.xlu1 %2041 }
 0x447   : > { %13509 = vst [vmem:[#allocation208_spill] sm:$0xff] %v9586_v26  ;;  %v9588_v36 = vpop.permute.xlu0 %2043 }
 0x448   : > { %13510 = vst [vmem:[#allocation72_spill] sm:$0xff] %v9588_v36  ;;  %2227 = vrot.lane.b32.xlu1 %v9022_v6, %s7187_s15  ;;  %v6707_v36 = vld [vmem:[#allocation8 + $0x20] sm:$0xff]  }
 0x449   : > { %2229 = vrot.lane.b32.xlu0 %v9033_v41, %s7187_s15 }
 0x44a   : > { %v9594_v53 = vpop.permute.xlu1 %2045 }
 0x44b   : > { %13511 = vst [vmem:[#allocation65_spill] sm:$0xff] %v9594_v53  ;;  %v9596_v4 = vpop.permute.xlu0 %2047  ;;  %v13584_v53 = vld [vmem:[#allocation61_spill] sm:$0xff] }
 0x44c   : > { %13512 = vst [vmem:[#allocation74_spill] sm:$0xff] %v9596_v4  ;;  %2231 = vrot.lane.b32.xlu1 %v9041_v25, %s7187_s15  ;;  %v13576_v4 = vld [vmem:[#allocation75_spill] sm:$0xff] }
 0x44d   : > { %2233 = vrot.lane.b32.xlu0 %v9053_v0, %s7187_s15 }
 0x44e   : > { %v9602_v24 = vpop.permute.xlu1 %2049 }
 0x44f   : > { %13513 = vst [vmem:[#allocation120_spill] sm:$0xff] %v9602_v24  ;;  %v9604_v45 = vpop.permute.xlu0 %2051 }
 0x450   : > { %13514 = vst [vmem:[#allocation128_spill] sm:$0xff] %v9604_v45  ;;  %2235 = vrot.lane.b32.xlu1 %v9061_v34, %s7187_s15  ;;  %v6704_v45 = vld [vmem:[#allocation8 + $0x58] sm:$0xff]  }
 0x451   : > { %2237 = vrot.lane.b32.xlu0 %v9073_v11, %s7187_s15 }
 0x452   : > { %v9610_v6 = vpop.permute.xlu1 %2053 }
 0x453   : > { %13515 = vst [vmem:[#allocation51_spill] sm:$0xff] %v9610_v6  ;;  %v9612_v41 = vpop.permute.xlu0 %2055 }
 0x454   : > { %13516 = vst [vmem:[#allocation71_spill] sm:$0xff] %v9612_v41  ;;  %2239 = vrot.lane.b32.xlu1 %v9081_v39, %s7187_s15  ;;  %v13568_v41 = vld [vmem:[#allocation63_spill] sm:$0xff] }
 0x455   : > { %2241 = vrot.lane.b32.xlu0 %v9093_v59, %s7187_s15 }
 0x456   : > { %v9618_v25 = vpop.permute.xlu1 %2057 }
 0x457   : > { %13517 = vst [vmem:[#allocation40_spill] sm:$0xff] %v9618_v25  ;;  %v9620_v0 = vpop.permute.xlu0 %2059 }
 0x458   : > { %13518 = vst [vmem:[#allocation60_spill] sm:$0xff] %v9620_v0  ;;  %2243 = vrot.lane.b32.xlu1 %v9101_v56, %s7187_s15  ;;  %v6702_v0 = vld [vmem:[#allocation8 + $0x50] sm:$0xff]  }
 0x459   : > { %2245 = vrot.lane.b32.xlu0 %v9035_v9, %s7187_s15 }
 0x45a   : > { %v9626_v34 = vpop.permute.xlu1 %2061 }
 0x45b   : > { %13519 = vst [vmem:[#allocation159_spill] sm:$0xff] %v9626_v34  ;;  %v9628_v11 = vpop.permute.xlu0 %2063 }
 0x45c   : > { %13520 = vst [vmem:[#allocation174_spill] sm:$0xff] %v9628_v11  ;;  %2247 = vrot.lane.b32.xlu1 %v9043_v51, %s7187_s15  ;;  %v6700_v11 = vld [vmem:[#allocation8 + $0x48] sm:$0xff]  }
 0x45d   : > { %2249 = vrot.lane.b32.xlu0 %v9055_v60, %s7187_s15 }
 0x45e   : > { %v9634_v39 = vpop.permute.xlu1 %2065 }
 0x45f   : > { %13521 = vst [vmem:[#allocation98_spill] sm:$0xff] %v9634_v39  ;;  %v9636_v59 = vpop.permute.xlu0 %2067 }
 0x460   : > { %13522 = vst [vmem:[#allocation102_spill] sm:$0xff] %v9636_v59  ;;  %2251 = vrot.lane.b32.xlu1 %v9063_v10, %s7187_s15 }
 0x461   : > { %2253 = vrot.lane.b32.xlu0 %v9075_v18, %s7187_s15 }
 0x462   : > { %v9642_v9 = vpop.permute.xlu1 %2069 }
 0x463   : > { %13523 = vst [vmem:[#allocation110_spill] sm:$0xff] %v9642_v9  ;;  %v9644_v56 = vpop.permute.xlu0 %2071 }
 0x464   : > { %13524 = vst [vmem:[#allocation152_spill] sm:$0xff] %v9644_v56  ;;  %2255 = vrot.lane.b32.xlu1 %v9083_v13, %s7187_s15 }
 0x465   : > { %2257 = vrot.lane.b32.xlu0 %v9095_v43, %s7187_s15 }
 0x466   : > { %v9650_v51 = vpop.permute.xlu1 %2073 }
 0x467   : > { %13525 = vst [vmem:[#allocation168_spill] sm:$0xff] %v9650_v51  ;;  %v9652_v60 = vpop.permute.xlu0 %2075 }
 0x468   : > { %13526 = vst [vmem:[#allocation205_spill] sm:$0xff] %v9652_v60  ;;  %2259 = vrot.lane.b32.xlu1 %v9103_v1, %s7187_s15 }
 0x469   : > { %2261 = vrot.lane.b32.xlu0 %v9113_v32, %s7187_s15 }
 0x46a   : > { %v9658_v10 = vpop.permute.xlu1 %2077 }
 0x46b   : > { %13527 = vst [vmem:[#allocation213_spill] sm:$0xff] %v9658_v10  ;;  %v9660_v18 = vpop.permute.xlu0 %2115 }
 0x46c   : > { %2263 = vrot.lane.b32.xlu1 %v9120_v35, %s7187_s15 }
 0x46d   : > { %2265 = vrot.lane.b32.xlu0 %v9129_v2, %s7187_s15 }
 0x46e   : > { %v9666_v13 = vpop.permute.xlu1 %2117 }
 0x46f   : > { %v9668_v43 = vpop.permute.xlu0 %2119 }
 0x470   : > { %2267 = vrot.lane.b32.xlu1 %v9134_v61, %s7187_s15 }
 0x471   : > { %2269 = vrot.lane.b32.xlu0 %v9145_v12, %s7187_s15 }
 0x472   : > { %v9674_v1 = vpop.permute.xlu1 %2121 }
 0x473   : > { %v9676_v32 = vpop.permute.xlu0 %2123 }
 0x474   : > { %2271 = vrot.lane.b32.xlu1 %v9150_v15, %s7187_s15 }
 0x475   : > { %2273 = vrot.lane.b32.xlu0 %v9161_v42, %s7187_s15 }
 0x476   : > { %v9682_v35 = vpop.permute.xlu1 %2125 }
 0x477   : > { %v9684_v2 = vpop.permute.xlu0 %2127 }
 0x478   : > { %2275 = vrot.lane.b32.xlu1 %v9166_v57, %s7187_s15 }
 0x479   : > { %2313 = vrot.lane.b32.xlu0 %v9173_v20, %s7188_s10 }
 0x47a   : > { %v9690_v61 = vpop.permute.xlu1 %2129 }
 0x47b   : > { %v9692_v60 = vpop.permute.xlu0 %2131 }
 0x47c   : > { %2315 = vrot.lane.b32.xlu1 %v9179_v30, %s7188_s10 }
 0x47d   : > { %2317 = vrot.lane.b32.xlu0 %v9011_v58, %s7188_s10 }
 0x47e   : > { %v9698_v10 = vpop.permute.xlu1 %2133 }
 0x47f   : > { %v9700_v56 = vpop.permute.xlu0 %2135 }
 0x480   : > { %13528 = vst [vmem:[#allocation105_spill] sm:$0xff] %v9700_v56  ;;  %2319 = vrot.lane.b32.xlu1 %v9188_v3, %s7188_s10 }
 0x481   : > { %2321 = vrot.lane.b32.xlu0 %v9192_v62, %s7188_s10 }
 0x482   : > { %v9706_v20 = vpop.permute.xlu1 %2137 }
 0x483   : > { %13529 = vst [vmem:[#allocation125_spill] sm:$0xff] %v9706_v20  ;;  %v9708_v51 = vpop.permute.xlu0 %2139 }
 0x484   : > { %13530 = vst [vmem:[#allocation133_spill] sm:$0xff] %v9708_v51  ;;  %2323 = vrot.lane.b32.xlu1 %v9198_v38, %s7188_s10 }
 0x485   : > { %2325 = vrot.lane.b32.xlu0 %v9202_v23, %s7188_s10 }
 0x486   : > { %v9714_v58 = vpop.permute.xlu1 %2141 }
 0x487   : > { %13531 = vst [vmem:[#allocation202_spill] sm:$0xff] %v9714_v58  ;;  %v9716_v30 = vpop.permute.xlu0 %2143  ;;  %v6862_v58 = vld [vmem:[#allocation2 + $0x50] sm:$0xff] }
 0x488   : > { %13532 = vst [vmem:[#allocation210_spill] sm:$0xff] %v9716_v30  ;;  %2327 = vrot.lane.b32.xlu1 %v9208_v52, %s7188_s10  ;;  %v13580_v30 = vld [vmem:[#allocation59_spill] sm:$0xff] }
 0x489   : > { %2329 = vrot.lane.b32.xlu0 %v9212_v48, %s7188_s10 }
 0x48a   : > { %v9722_v3 = vpop.permute.xlu1 %2145 }
 0x48b   : > { %13533 = vst [vmem:[#allocation78_spill] sm:$0xff] %v9722_v3  ;;  %v9724_v62 = vpop.permute.xlu0 %2147  ;;  %v6706_v3 = vld [vmem:[#allocation8 + $0x60] sm:$0xff]  }
 0x48c   : > { %13534 = vst [vmem:[#allocation122_spill] sm:$0xff] %v9724_v62  ;;  %2331 = vrot.lane.b32.xlu1 %v9218_v49, %s7188_s10 }
 0x48d   : > { %2333 = vrot.lane.b32.xlu0 %v9222_v5, %s7188_s10 }
 0x48e   : > { %v9730_v38 = vpop.permute.xlu1 %2149 }
 0x48f   : > { %13535 = vst [vmem:[#allocation130_spill] sm:$0xff] %v9730_v38  ;;  %v9732_v23 = vpop.permute.xlu0 %2151  ;;  %v6705_v38 = vld [vmem:[#allocation8 + $0x18] sm:$0xff]  }
 0x490   : > { %13536 = vst [vmem:[#allocation55_spill] sm:$0xff] %v9732_v23  ;;  %2335 = vrot.lane.b32.xlu1 %v9228_v21, %s7188_s10 }
 0x491   : > { %2337 = vrot.lane.b32.xlu0 %v9232_v55, %s7188_s10 }
 0x492   : > { %v9738_v52 = vpop.permute.xlu1 %2153 }
 0x493   : > { %13537 = vst [vmem:[#allocation140_spill] sm:$0xff] %v9738_v52  ;;  %v9740_v48 = vpop.permute.xlu0 %2155  ;;  %v13572_v52 = vld [vmem:[#allocation127_spill] sm:$0xff] }
 0x494   : > { %13538 = vst [vmem:[#allocation44_spill] sm:$0xff] %v9740_v48  ;;  %2339 = vrot.lane.b32.xlu1 %v9238_v44, %s7188_s10 }
 0x495   : > { %2341 = vrot.lane.b32.xlu0 %v9242_v17, %s7188_s10 }
 0x496   : > { %v9746_v49 = vpop.permute.xlu1 %2157 }
 0x497   : > { %13539 = vst [vmem:[#allocation138_spill] sm:$0xff] %v9746_v49  ;;  %v9748_v5 = vpop.permute.xlu0 %2159  ;;  %v6703_v49 = vld [vmem:[#allocation8 + $0x10] sm:$0xff]  }
 0x498   : > { %13540 = vst [vmem:[#allocation163_spill] sm:$0xff] %v9748_v5  ;;  %2343 = vrot.lane.b32.xlu1 %v9248_v63, %s7188_s10 }
 0x499   : > { %2345 = vrot.lane.b32.xlu0 %v9252_v50, %s7188_s10 }
 0x49a   : > { %v9754_v21 = vpop.permute.xlu1 %2161 }
 0x49b   : > { %13541 = vst [vmem:[#allocation178_spill] sm:$0xff] %v9754_v21  ;;  %v9756_v55 = vpop.permute.xlu0 %2163  ;;  %v13564_v21 = vld [vmem:[#allocation197_spill] sm:$0xff] }
 0x49c   : > { %13542 = vst [vmem:[#allocation76_spill] sm:$0xff] %v9756_v55  ;;  %2347 = vrot.lane.b32.xlu1 %v9258_v7, %s7188_s10  ;;  %v13547_v7 = vld [vmem:[#allocation27_spill] sm:$0xff]  ;;  %v9810_v55 = vld [vmem:[#allocation2 + $0x111] sm:$0xff] }
 0x49d   : > { %2349 = vrot.lane.b32.xlu0 %v9262_v28, %s7188_s10  ;;  %13558 = vst [vmem:[#allocation204_spill] sm:$0xff] %v9810_v55 }
 0x49e   : > { %v9762_v44 = vpop.permute.xlu1 %2165 }
 0x49f   : > { %13543 = vst [vmem:[#allocation69_spill] sm:$0xff] %v9762_v44  ;;  %v9764_v17 = vpop.permute.xlu0 %2167 }
 0x4a0   : > { %13544 = vst [vmem:[#allocation112_spill] sm:$0xff] %v9764_v17  ;;  %2351 = vrot.lane.b32.xlu1 %v9268_v37, %s7188_s10  ;;  %v13550_v17 = vld [vmem:[#allocation92_spill] sm:$0xff]  ;;  %v13551_v37 = vld [vmem:[#allocation35_spill] sm:$0xff] }
 0x4a1   : > { %2353 = vrot.lane.b32.xlu0 %v9272_v31, %s7188_s10 }
 0x4a2   : > { %v9770_v63 = vpop.permute.xlu1 %2169 }
 0x4a3   : > { %13545 = vst [vmem:[#allocation156_spill] sm:$0xff] %v9770_v63  ;;  %v9772_v50 = vpop.permute.xlu0 %2171 }
 0x4a4   : > { %13546 = vst [vmem:[#allocation171_spill] sm:$0xff] %v9772_v50  ;;  %2355 = vrot.lane.b32.xlu1 %v9278_v8, %s7188_s10  ;;  %v13553_v50 = vld [vmem:[#allocation32_spill] sm:$0xff]  ;;  %v13554_v8 = vld [vmem:[#allocation94_spill] sm:$0xff] }
 0x4a5   : > { %2357 = vrot.lane.b32.xlu0 %v13547_v7, %s7188_s10 }
 0x4a6   : > { %v9778_v28 = vpop.permute.xlu1 %2173 }
 0x4a7   : > { %13548 = vst [vmem:[#allocation207_spill] sm:$0xff] %v9778_v28  ;;  %v9780_v59 = vpop.permute.xlu0 %2175 }
 0x4a8   : > { %13549 = vst [vmem:[#allocation215_spill] sm:$0xff] %v9780_v59  ;;  %2359 = vrot.lane.b32.xlu1 %v13550_v17, %s7188_s10  ;;  %v13555_v59 = vld [vmem:[#allocation31_spill] sm:$0xff]  ;;  %v6698_v17 = vld [vmem:[#allocation8 + $0x40] sm:$0xff]  }
 0x4a9   : > { %2361 = vrot.lane.b32.xlu0 %v13551_v37, %s7188_s10  ;;  %v13556_v37 = vld [vmem:[#allocation91_spill] sm:$0xff]  ;;  %6027 = vmatprep.subr.bf16.mxu1 %v6698_v17  ;;  %v2312_v17 = vsel %vm418_vm0, %v9810_v55, 0.0 }
 0x4aa   : > { %v9786_v31 = vpop.permute.xlu1 %2177 }
 0x4ab   : > { %13552 = vst [vmem:[#allocation107_spill] sm:$0xff] %v9786_v31  ;;  %v9788_v63 = vpop.permute.xlu0 %2213 }
 0x4ac   : > { %2363 = vrot.lane.b32.xlu1 %v13553_v50, %s7188_s10  ;;  %v6699_v50 = vld [vmem:[#allocation8] sm:$0xff]  }
 0x4ad   : > { %2365 = vrot.lane.b32.xlu0 %v13554_v8, %s7188_s10  ;;  %v9808_v8 = vld [vmem:[#allocation2 + $0x109] sm:$0xff]  ;;  %6028 = vmatpush3.bf16.msra.mxu1 %v6699_v50  ;;  %v6701_v50 = vld [vmem:[#allocation8 + $0x8] sm:$0xff]  }
 0x4ae   : > { %v9794_v7 = vpop.permute.xlu1 %2215  ;;  %13557 = vst [vmem:[#allocation135_spill] sm:$0xff] %v9808_v8  ;;  %6029 = vmatprep.subr.bf16.mxu1 %v6700_v11  ;;  %v13565_v11 = vld [vmem:[#allocation49_spill] sm:$0xff] }
 0x4af   : > { %v9796_v28 = vpop.permute.xlu0 %2217 }
 0x4b0   : > { %2367 = vrot.lane.b32.xlu1 %v13555_v59, %s7188_s10 }
 0x4b1   : > { %2369 = vrot.lane.b32.xlu0 %v13556_v37, %s7188_s10  ;;  %v13562_v37 = vld [vmem:[#allocation104_spill] sm:$0xff]  ;;  %6030 = vmatpush3.bf16.msra.mxu1 %v6701_v50  ;;  %v13569_v50 = vld [vmem:[#allocation117_spill] sm:$0xff] }
 0x4b2   : > { %v9802_v31 = vpop.permute.xlu1 %2219  ;;  %6031 = vmatprep.subr.bf16.mxu1 %v6702_v0  ;;  %v13573_v0 = vld [vmem:[#allocation64_spill] sm:$0xff] }
 0x4b3   : > { %v9804_v9 = vpop.permute.xlu0 %2221 }
 0x4b4   : > { %2371 = vrot.lane.b32.xlu1 %v9332_v33, %s7188_s10  ;;  %v13560_v33 = vld [vmem:[#allocation62_spill] sm:$0xff] }
 0x4b5   : > { %2373 = vrot.lane.b32.xlu0 %v9808_v8, %s7188_s10  ;;  %v13561_v8 = vld [vmem:[#allocation45_spill] sm:$0xff]  ;;  %6032 = vmatpush3.bf16.msra.mxu1 %v6703_v49  ;;  %v13577_v49 = vld [vmem:[#allocation30_spill] sm:$0xff] }
 0x4b6   : > { %v9814_v59 = vpop.permute.xlu1 %2223  ;;  %6033 = vmatprep.subr.bf16.mxu1 %v6704_v45  ;;  %v13581_v45 = vld [vmem:[#allocation58_spill] sm:$0xff] }
 0x4b7   : > { %v9819_v44 = vpop.permute.xlu0 %2225 }
 0x4b8   : > { %2375 = vrot.lane.b32.xlu1 %v2312_v17, %s7188_s10 }
 0x4b9   : > { %2413 = vrot.lane.b32.xlu0 %v13560_v33, %s7189_s14  ;;  %6034 = vmatpush3.bf16.msra.mxu1 %v6705_v38  ;;  %v13585_v38 = vld [vmem:[#allocation106_spill] sm:$0xff] }
 0x4ba   : > { %v9824_v39 = vpop.permute.xlu1 %2227  ;;  %6035 = vmatprep.subr.bf16.mxu1 %v6706_v3  ;;  %v13589_v3 = vld [vmem:[#allocation201_spill] sm:$0xff] }
 0x4bb   : > { %v9826_v5 = vpop.permute.xlu0 %2229 }
 0x4bc   : > { %2415 = vrot.lane.b32.xlu1 %v13561_v8, %s7189_s14 }
 0x4bd   : > { %2417 = vrot.lane.b32.xlu0 %v13562_v37, %s7189_s14  ;;  %6036 = vmatpush3.bf16.msra.mxu1 %v6707_v36  ;;  %v13593_v36 = vld [vmem:[#allocation129_spill] sm:$0xff] }
 0x4be   : > { %v9832_v55 = vpop.permute.xlu1 %2231 }
 0x4bf   : > { %v9834_v17 = vpop.permute.xlu0 %2233 }
 0x4c0   : > { %13563 = vst [vmem:[#allocation212_spill] sm:$0xff] %v9834_v17  ;;  %2419 = vrot.lane.b32.xlu1 %v13564_v21, %s7189_s14 }
 0x4c1   : > { %2421 = vrot.lane.b32.xlu0 %v13565_v11, %s7189_s14 }
 0x4c2   : > { %v9840_v34 = vpop.permute.xlu1 %2235 }
 0x4c3   : > { %13566 = vst [vmem:[#allocation132_spill] sm:$0xff] %v9840_v34  ;;  %v9842_v48 = vpop.permute.xlu0 %2237 }
 0x4c4   : > { %13567 = vst [vmem:[#allocation79_spill] sm:$0xff] %v9842_v48  ;;  %2423 = vrot.lane.b32.xlu1 %v13568_v41, %s7189_s14 }
 0x4c5   : > { %2425 = vrot.lane.b32.xlu0 %v13569_v50, %s7189_s14 }
 0x4c6   : > { %v9848_v25 = vpop.permute.xlu1 %2239 }
 0x4c7   : > { %13570 = vst [vmem:[#allocation82_spill] sm:$0xff] %v9848_v25  ;;  %v9850_v23 = vpop.permute.xlu0 %2241  ;;  %v6860_v25 = vld [vmem:[#allocation2 + $0x40] sm:$0xff] }
 0x4c8   : > { %13571 = vst [vmem:[#allocation139_spill] sm:$0xff] %v9850_v23  ;;  %2427 = vrot.lane.b32.xlu1 %v13572_v52, %s7189_s14 }
 0x4c9   : > { %2429 = vrot.lane.b32.xlu0 %v13573_v0, %s7189_s14 }
 0x4ca   : > { %v9856_v6 = vpop.permute.xlu1 %2243 }
 0x4cb   : > { %13574 = vst [vmem:[#allocation182_spill] sm:$0xff] %v9856_v6  ;;  %v9858_v62 = vpop.permute.xlu0 %2245 }
 0x4cc   : > { %13575 = vst [vmem:[#allocation80_spill] sm:$0xff] %v9858_v62  ;;  %2431 = vrot.lane.b32.xlu1 %v13576_v4, %s7189_s14 }
 0x4cd   : > { %2433 = vrot.lane.b32.xlu0 %v13577_v49, %s7189_s14 }
 0x4ce   : > { %v9864_v24 = vpop.permute.xlu1 %2247 }
 0x4cf   : > { %13578 = vst [vmem:[#allocation73_spill] sm:$0xff] %v9864_v24  ;;  %v9866_v23 = vpop.permute.xlu0 %2249  ;;  %v13588_v24 = vld [vmem:[#allocation160_spill] sm:$0xff] }
 0x4d0   : > { %13579 = vst [vmem:[#allocation114_spill] sm:$0xff] %v9866_v23  ;;  %2435 = vrot.lane.b32.xlu1 %v13580_v30, %s7189_s14 }
 0x4d1   : > { %2437 = vrot.lane.b32.xlu0 %v13581_v45, %s7189_s14  ;;  %v6708_v45 = vld [vmem:[#allocation8 + $0x68] sm:$0xff]  }
 0x4d2   : > { %v9872_v62 = vpop.permute.xlu1 %2251  ;;  %6037 = vmatprep.subr.bf16.mxu1 %v6708_v45  ;;  %v13597_v45 = vld [vmem:[#allocation70_spill] sm:$0xff] }
 0x4d3   : > { %13582 = vst [vmem:[#allocation175_spill] sm:$0xff] %v9872_v62  ;;  %v9874_v6 = vpop.permute.xlu0 %2253 }
 0x4d4   : > { %13583 = vst [vmem:[#allocation217_spill] sm:$0xff] %v9874_v6  ;;  %2439 = vrot.lane.b32.xlu1 %v13584_v53, %s7189_s14  ;;  %v6709_v53 = vld [vmem:[#allocation8 + $0x28] sm:$0xff]  }
 0x4d5   : > { %2441 = vrot.lane.b32.xlu0 %v13585_v38, %s7189_s14  ;;  %v13592_v38 = vld [vmem:[#allocation101_spill] sm:$0xff]  ;;  %6038 = vmatpush3.bf16.msra.mxu1 %v6709_v53  ;;  %v13601_v53 = vld [vmem:[#allocation67_spill] sm:$0xff] }
 0x4d6   : > { %v9880_v23 = vpop.permute.xlu1 %2255 }
 0x4d7   : > { %13586 = vst [vmem:[#allocation109_spill] sm:$0xff] %v9880_v23  ;;  %v9882_v30 = vpop.permute.xlu0 %2257  ;;  %v13596_v23 = vld [vmem:[#allocation206_spill] sm:$0xff] }
 0x4d8   : > { %13587 = vst [vmem:[#allocation23_spill] sm:$0xff] %v9882_v30  ;;  %2443 = vrot.lane.b32.xlu1 %v13588_v24, %s7189_s14 }
 0x4d9   : > { %2445 = vrot.lane.b32.xlu0 %v13589_v3, %s7189_s14  ;;  %v6710_v3 = vld [vmem:[#allocation8 + $0x70] sm:$0xff]  }
 0x4da   : > { %v9888_v6 = vpop.permute.xlu1 %2259  ;;  %6039 = vmatprep.subr.bf16.mxu1 %v6710_v3  ;;  %v13605_v3 = vld [vmem:[#allocation22_spill] sm:$0xff] }
 0x4db   : > { %13590 = vst [vmem:[#allocation214_spill] sm:$0xff] %v9888_v6  ;;  %v9890_v62 = vpop.permute.xlu0 %2261 }
 0x4dc   : > { %13591 = vst [vmem:[#allocation134_spill] sm:$0xff] %v9890_v62  ;;  %2447 = vrot.lane.b32.xlu1 %v13592_v38, %s7189_s14  ;;  %v6711_v38 = vld [vmem:[#allocation8 + $0x30] sm:$0xff]  }
 0x4dd   : > { %2449 = vrot.lane.b32.xlu0 %v13593_v36, %s7189_s14  ;;  %v13600_v36 = vld [vmem:[#allocation126_spill] sm:$0xff]  ;;  %6040 = vmatpush3.bf16.msra.mxu1 %v6711_v38  ;;  %v13608_v38 = vld [vmem:[#allocation148_spill] sm:$0xff] }
 0x4de   : > { %v9896_v30 = vpop.permute.xlu1 %2263 }
 0x4df   : > { %13594 = vst [vmem:[#allocation83_spill] sm:$0xff] %v9896_v30  ;;  %v9898_v24 = vpop.permute.xlu0 %2265  ;;  %v13604_v30 = vld [vmem:[#allocation52_spill] sm:$0xff] }
 0x4e0   : > { %13595 = vst [vmem:[#allocation86_spill] sm:$0xff] %v9898_v24  ;;  %2451 = vrot.lane.b32.xlu1 %v13596_v23, %s7189_s14 }
 0x4e1   : > { %2453 = vrot.lane.b32.xlu0 %v13597_v45, %s7189_s14  ;;  %v6712_v45 = vld [vmem:[#allocation8 + $0x78] sm:$0xff]  }
 0x4e2   : > { %v9904_v62 = vpop.permute.xlu1 %2267  ;;  %6041 = vmatprep.subr.bf16.mxu1 %v6712_v45  ;;  %v2409_v45 = vld [vmem:[#allocation2 + $0x117] sm:$0xff] }
 0x4e3   : > { %13598 = vst [vmem:[#allocation141_spill] sm:$0xff] %v9904_v62  ;;  %v9906_v6 = vpop.permute.xlu0 %2269 }
 0x4e4   : > { %13599 = vst [vmem:[#allocation186_spill] sm:$0xff] %v9906_v6  ;;  %2455 = vrot.lane.b32.xlu1 %v13600_v36, %s7189_s14  ;;  %v6713_v36 = vld [vmem:[#allocation8 + $0x38] sm:$0xff]  }
 0x4e5   : > { %2457 = vrot.lane.b32.xlu0 %v13601_v53, %s7189_s14  ;;  %v13607_v53 = vld [vmem:[#allocation100_spill] sm:$0xff]  ;;  %6042 = vmatpush3.bf16.msra.mxu1 %v6713_v36  ;;  %v2410_v36 = vld [vmem:[#allocation2 + $0x11f] sm:$0xff] }
 0x4e6   : > { %v9912_v24 = vpop.permute.xlu1 %2271 }
 0x4e7   : > { %13602 = vst [vmem:[#allocation84_spill] sm:$0xff] %v9912_v24  ;;  %v9914_v23 = vpop.permute.xlu0 %2273 }
 0x4e8   : > { %13603 = vst [vmem:[#allocation77_spill] sm:$0xff] %v9914_v23  ;;  %2459 = vrot.lane.b32.xlu1 %v13604_v30, %s7189_s14 }
 0x4e9   : > { %2461 = vrot.lane.b32.xlu0 %v13605_v3, %s7189_s14 }
 0x4ea   : > { %v9920_v6 = vpop.permute.xlu1 %2275 }
 0x4eb   : > { %13606 = vst [vmem:[#allocation115_spill] sm:$0xff] %v9920_v6  ;;  %v9922_v62 = vpop.permute.xlu0 %2313 }
 0x4ec   : > { %2463 = vrot.lane.b32.xlu1 %v13607_v53, %s7189_s14  ;;  %v2411_v53 = vsel %vm415_vm1, %v2409_v45, 0.0  ;;  %v6859_v45 = vld [vmem:[#allocation2 + $0x38] sm:$0xff] }
 0x4ed   : > { %2465 = vrot.lane.b32.xlu0 %v13608_v38, %s7189_s14 }
 0x4ee   : > { %v9928_v23 = vpop.permute.xlu1 %2315 }
 0x4ef   : > { %v9930_v30 = vpop.permute.xlu0 %2317 }
 0x4f0   : > { %2467 = vrot.lane.b32.xlu1 %v9540_v19, %s7189_s14 }
 0x4f1   : > { %2469 = vrot.lane.b32.xlu0 %v9548_v27, %s7189_s14  ;;  %v6857_v27 = vld [vmem:[#allocation2 + $0x28] sm:$0xff] }
 0x4f2   : > { %v9936_v6 = vpop.permute.xlu1 %2319 }
 0x4f3   : > { %v9938_v24 = vpop.permute.xlu0 %2321 }
 0x4f4   : > { %2471 = vrot.lane.b32.xlu1 %v9556_v29, %s7189_s14  ;;  %v6858_v29 = vld [vmem:[#allocation2 + $0x30] sm:$0xff] }
 0x4f5   : > { %2473 = vrot.lane.b32.xlu0 %v2411_v53, %s7189_s14 }
 0x4f6   : > { %v9945_v38 = vpop.permute.xlu1 %2323 }
 0x4f7   : > { %v9947_v19 = vpop.permute.xlu0 %2325 }
 0x4f8   : > { %2475 = vrot.lane.b32.xlu1 %v2410_v36, %s7189_s14  ;;  %v6861_v36 = vld [vmem:[#allocation2 + $0x48] sm:$0xff] }
 0x4f9   : > { %2511 = vrot.lane.b32.xlu0 %v6857_v27, %s7191_s12 }
 0x4fa   : > { %v9951_v3 = vpop.permute.xlu1 %2327 }
 0x4fb   : > { %v9953_v49 = vpop.permute.xlu0 %2329 }
 0x4fc   : > { %13609 = vst [vmem:[#allocation179_spill] sm:$0xff] %v9953_v49  ;;  %2513 = vrot.lane.b32.xlu1 %v6858_v29, %s7191_s12  ;;  %v6863_v29 = vld [vmem:[#allocation2 + $0x58] sm:$0xff] }
 0x4fd   : > { %2515 = vrot.lane.b32.xlu0 %v6859_v45, %s7191_s12 }
 0x4fe   : > { %v9957_v53 = vpop.permute.xlu1 %2331 }
 0x4ff   : > { %13610 = vst [vmem:[#allocation219_spill] sm:$0xff] %v9957_v53  ;;  %v9959_v48 = vpop.permute.xlu0 %2333 }
 0x500   : > { %13611 = vst [vmem:[#allocation111_spill] sm:$0xff] %v9959_v48  ;;  %2517 = vrot.lane.b32.xlu1 %v6860_v25, %s7191_s12  ;;  %v6864_v48 = vld [vmem:[#allocation2 + $0x60] sm:$0xff]  ;;  %v6865_v25 = vld [vmem:[#allocation2 + $0x68] sm:$0xff] }
 0x501   : > { %2519 = vrot.lane.b32.xlu0 %v6861_v36, %s7191_s12 }
 0x502   : > { %v9963_v27 = vpop.permute.xlu1 %2335 }
 0x503   : > { %13612 = vst [vmem:[#allocation26_spill] sm:$0xff] %v9963_v27  ;;  %v9965_v51 = vpop.permute.xlu0 %2337 }
 0x504   : > { %13613 = vst [vmem:[#allocation216_spill] sm:$0xff] %v9965_v51  ;;  %2521 = vrot.lane.b32.xlu1 %v6862_v58, %s7191_s12  ;;  %v6866_v51 = vld [vmem:[#allocation2 + $0x70] sm:$0xff]  ;;  %v6867_v58 = vld [vmem:[#allocation2 + $0x78] sm:$0xff] }
 0x505   : > { %2523 = vrot.lane.b32.xlu0 %v6863_v29, %s7191_s12 }
 0x506   : > { %v9969_v45 = vpop.permute.xlu1 %2339 }
 0x507   : > { %13614 = vst [vmem:[#allocation136_spill] sm:$0xff] %v9969_v45  ;;  %v9971_v46 = vpop.permute.xlu0 %2341 }
 0x508   : > { %13615 = vst [vmem:[#allocation144_spill] sm:$0xff] %v9971_v46  ;;  %2525 = vrot.lane.b32.xlu1 %v6864_v48, %s7191_s12  ;;  %v6868_v46 = vld [vmem:[#allocation2 + $0x80] sm:$0xff]  ;;  %v6869_v48 = vld [vmem:[#allocation2 + $0x88] sm:$0xff] }
 0x509   : > { %2527 = vrot.lane.b32.xlu0 %v6865_v25, %s7191_s12 }
 0x50a   : > { %v9975_v36 = vpop.permute.xlu1 %2343 }
 0x50b   : > { %13616 = vst [vmem:[#allocation29_spill] sm:$0xff] %v9975_v36  ;;  %v9977_v26 = vpop.permute.xlu0 %2345 }
 0x50c   : > { %13617 = vst [vmem:[#allocation28_spill] sm:$0xff] %v9977_v26  ;;  %2529 = vrot.lane.b32.xlu1 %v6866_v51, %s7191_s12  ;;  %v6870_v26 = vld [vmem:[#allocation2 + $0x90] sm:$0xff]  ;;  %v6871_v51 = vld [vmem:[#allocation2 + $0x98] sm:$0xff] }
 0x50d   : > { %2531 = vrot.lane.b32.xlu0 %v6867_v58, %s7191_s12 }
 0x50e   : > { %v9981_v29 = vpop.permute.xlu1 %2347 }
 0x50f   : > { %13618 = vst [vmem:[#allocation89_spill] sm:$0xff] %v9981_v29  ;;  %v9983_v45 = vpop.permute.xlu0 %2349 }
 0x510   : > { %13619 = vst [vmem:[#allocation142_spill] sm:$0xff] %v9983_v45  ;;  %2533 = vrot.lane.b32.xlu1 %v6868_v46, %s7191_s12  ;;  %v6872_v45 = vld [vmem:[#allocation2 + $0xa0] sm:$0xff]  ;;  %v6873_v46 = vld [vmem:[#allocation2 + $0xa8] sm:$0xff] }
 0x511   : > { %2535 = vrot.lane.b32.xlu0 %v6869_v48, %s7191_s12 }
 0x512   : > { %v9987_v25 = vpop.permute.xlu1 %2351 }
 0x513   : > { %13620 = vst [vmem:[#allocation190_spill] sm:$0xff] %v9987_v25  ;;  %v9989_v36 = vpop.permute.xlu0 %2353 }
 0x514   : > { %13621 = vst [vmem:[#allocation87_spill] sm:$0xff] %v9989_v36  ;;  %2537 = vrot.lane.b32.xlu1 %v6870_v26, %s7191_s12  ;;  %v6874_v36 = vld [vmem:[#allocation2 + $0xb0] sm:$0xff]  ;;  %v6875_v26 = vld [vmem:[#allocation2 + $0xb8] sm:$0xff] }
 0x515   : > { %2539 = vrot.lane.b32.xlu0 %v6871_v51, %s7191_s12 }
 0x516   : > { %v9993_v58 = vpop.permute.xlu1 %2355 }
 0x517   : > { %13622 = vst [vmem:[#allocation81_spill] sm:$0xff] %v9993_v58  ;;  %v9995_v29 = vpop.permute.xlu0 %2357 }
 0x518   : > { %13623 = vst [vmem:[#allocation116_spill] sm:$0xff] %v9995_v29  ;;  %2541 = vrot.lane.b32.xlu1 %v6872_v45, %s7191_s12  ;;  %v6876_v29 = vld [vmem:[#allocation2 + $0xc0] sm:$0xff]  ;;  %v6877_v45 = vld [vmem:[#allocation2 + $0xc8] sm:$0xff] }
 0x519   : > { %2543 = vrot.lane.b32.xlu0 %v6873_v46, %s7191_s12 }
 0x51a   : > { %v9999_v48 = vpop.permute.xlu1 %2359 }
 0x51b   : > { %13624 = vst [vmem:[#allocation183_spill] sm:$0xff] %v9999_v48  ;;  %v10001_v25 = vpop.permute.xlu0 %2361 }
 0x51c   : > { %13625 = vst [vmem:[#allocation24_spill] sm:$0xff] %v10001_v25  ;;  %2545 = vrot.lane.b32.xlu1 %v6874_v36, %s7191_s12  ;;  %v6878_v25 = vld [vmem:[#allocation2 + $0xd0] sm:$0xff]  ;;  %v6879_v36 = vld [vmem:[#allocation2 + $0xd8] sm:$0xff] }
 0x51d   : > { %2547 = vrot.lane.b32.xlu0 %v6875_v26, %s7191_s12 }
 0x51e   : > { %v10005_v51 = vpop.permute.xlu1 %2363 }
 0x51f   : > { %13626 = vst [vmem:[#allocation113_spill] sm:$0xff] %v10005_v51  ;;  %v10007_v58 = vpop.permute.xlu0 %2365 }
 0x520   : > { %13627 = vst [vmem:[#allocation25_spill] sm:$0xff] %v10007_v58  ;;  %2549 = vrot.lane.b32.xlu1 %v6876_v29, %s7191_s12  ;;  %v6880_v58 = vld [vmem:[#allocation2 + $0xe0] sm:$0xff]  ;;  %v6881_v29 = vld [vmem:[#allocation2 + $0xe8] sm:$0xff] }
 0x521   : > { %2551 = vrot.lane.b32.xlu0 %v6877_v45, %s7191_s12 }
 0x522   : > { %v10011_v46 = vpop.permute.xlu1 %2367 }
 0x523   : > { %13628 = vst [vmem:[#allocation218_spill] sm:$0xff] %v10011_v46  ;;  %v10013_v48 = vpop.permute.xlu0 %2369 }
 0x524   : > { %13629 = vst [vmem:[#allocation137_spill] sm:$0xff] %v10013_v48  ;;  %2553 = vrot.lane.b32.xlu1 %v6878_v25, %s7191_s12  ;;  %v6882_v48 = vld [vmem:[#allocation2 + $0xf0] sm:$0xff] }
 0x525   : > { %2555 = vrot.lane.b32.xlu0 %v6879_v36, %s7191_s12 }
 0x526   : > { %v10017_v26 = vpop.permute.xlu1 %2371 }
 0x527   : > { %13630 = vst [vmem:[#allocation90_spill] sm:$0xff] %v10017_v26  ;;  %v10019_v51 = vpop.permute.xlu0 %2373 }
 0x528   : > { %13631 = vst [vmem:[#allocation143_spill] sm:$0xff] %v10019_v51  ;;  %2557 = vrot.lane.b32.xlu1 %v6880_v58, %s7191_s12 }
 0x529   : > { %2559 = vrot.lane.b32.xlu0 %v6881_v29, %s7191_s12 }
 0x52a   : > { %v10023_v45 = vpop.permute.xlu1 %2375 }
 0x52b   : > { %13632 = vst [vmem:[#allocation193_spill] sm:$0xff] %v10023_v45  ;;  %v2414_v46 = vpop.permute.xlu0 %2413 }
 0x52c   : > { %2561 = vrot.lane.b32.xlu1 %v6882_v48, %s7191_s12  ;;  %v6883_v48 = vld [vmem:[#allocation2 + $0x8] sm:$0xff] }
 0x52d   : > { %2563 = vrot.lane.b32.xlu0 %v9145_v12, %s7191_s12 }
 0x52e   : > { %v2416_v25 = vpop.permute.xlu1 %2415 }
 0x52f   : > { %v10028_v36 = vpop.permute.xlu0 %2417 }
 0x530   : > { %2565 = vrot.lane.b32.xlu1 %v9150_v15, %s7191_s12 }
 0x531   : > { %2567 = vrot.lane.b32.xlu0 %v9161_v42, %s7191_s12 }
 0x532   : > { %v10034_v58 = vpop.permute.xlu1 %2419 }
 0x533   : > { %v10036_v29 = vpop.permute.xlu0 %2421 }
 0x534   : > { %2569 = vrot.lane.b32.xlu1 %v9166_v57, %s7191_s12 }
 0x535   : > { %2571 = vrot.lane.b32.xlu0 %v6883_v48, %s7191_s12 }
 0x536   : > { %v10041_v12 = vpop.permute.xlu1 %2423 }
 0x537   : > { %v10043_v51 = vpop.permute.xlu0 %2425 }
 0x538   : > { %2573 = vrot.lane.b32.xlu1 %v6883_v48, %s7191_s12 }
 0x539   : > { %3163 = vrot.lane.b32.xlu0 %v6883_v48, %s7184_s30 }
 0x53a   : > { %v10047_v15 = vpop.permute.xlu1 %2427 }
 0x53b   : > { %v10049_v42 = vpop.permute.xlu0 %2429 }
 0x53c   : > { %13633 = vst [vmem:[#allocation187_spill] sm:$0xff] %v10049_v42  ;;  %3165 = vrot.lane.b32.xlu1 %v6883_v48, %s7184_s30 }
 0x53e   : > { %v10052_v45 = vpop.permute.xlu1 %2431 }
 0x53f   : > { %13634 = vst [vmem:[#allocation220_spill] sm:$0xff] %v10052_v45  ;;  %v10054_v57 = vpop.permute.xlu0 %2433 }
 0x540   : > { %13635 = vst [vmem:[#allocation27_spill] sm:$0xff] %v10054_v57 }
 0x542   : > { %v10056_v26 = vpop.permute.xlu1 %2435 }
 0x543   : > { %13636 = vst [vmem:[#allocation92_spill] sm:$0xff] %v10056_v26  ;;  %v10058_v0 = vpop.permute.xlu0 %2437 }
 0x544   : > { %13637 = vst [vmem:[#allocation35_spill] sm:$0xff] %v10058_v0 }
 0x546   : > { %v10060_v27 = vpop.permute.xlu1 %2439 }
 0x547   : > { %13638 = vst [vmem:[#allocation32_spill] sm:$0xff] %v10060_v27  ;;  %v10062_v17 = vpop.permute.xlu0 %2441 }
 0x548   : > { %13639 = vst [vmem:[#allocation94_spill] sm:$0xff] %v10062_v17  ;;  %v1759_v17 = vld [vmem:[#allocation2 + $0x7] sm:$0xff] }
 0x54a   : > { %v10064_v4 = vpop.permute.xlu1 %2443 }
 0x54b   : > { %13640 = vst [vmem:[#allocation31_spill] sm:$0xff] %v10064_v4  ;;  %v10066_v34 = vpop.permute.xlu0 %2445 }
 0x54c   : > { %13641 = vst [vmem:[#allocation91_spill] sm:$0xff] %v10066_v34 }
 0x54e   : > { %v10068_v56 = vpop.permute.xlu1 %2447 }
 0x54f   : > { %13642 = vst [vmem:[#allocation62_spill] sm:$0xff] %v10068_v56  ;;  %v10070_v42 = vpop.permute.xlu0 %2449  ;;  %v1760_v56 = vld [vmem:[#allocation2 + $0xf] sm:$0xff] }
 0x550   : > { %13643 = vst [vmem:[#allocation45_spill] sm:$0xff] %v10070_v42  ;;  %v1791_v42 = vsel %vm415_vm1, %v1759_v17, 0.0 }
 0x552   : > { %v10072_v48 = vpop.permute.xlu1 %2451 }
 0x553   : > { %13644 = vst [vmem:[#allocation104_spill] sm:$0xff] %v10072_v48  ;;  %v10074_v20 = vpop.permute.xlu0 %2453 }
 0x554   : > { %13645 = vst [vmem:[#allocation197_spill] sm:$0xff] %v10074_v20  ;;  %v13653_v20 = vld [vmem:[#allocation85_spill] sm:$0xff] }
 0x555   : > { %v1919_v22 = vadd.f32 %v13653_v20, %v1791_v42 }
 0x556   : > { %v10076_v57 = vpop.permute.xlu1 %2455 }
 0x557   : > { %13646 = vst [vmem:[#allocation49_spill] sm:$0xff] %v10076_v57  ;;  %v10078_v26 = vpop.permute.xlu0 %2457  ;;  %v13654_v57 = vld [vmem:[#allocation43_spill] sm:$0xff] }
 0x558   : > { %13647 = vst [vmem:[#allocation63_spill] sm:$0xff] %v10078_v26  ;;  %v1920_v45 = vadd.f32 %v13654_v57, %v1760_v56 }
 0x55a   : > { %v10080_v0 = vpop.permute.xlu1 %2459 }
 0x55b   : > { %13648 = vst [vmem:[#allocation127_spill] sm:$0xff] %v10080_v0  ;;  %v10082_v27 = vpop.permute.xlu0 %2461  ;;  %v13655_v0 = vld [vmem:[#allocation155_spill] sm:$0xff] }
 0x55c   : > { %13649 = vst [vmem:[#allocation59_spill] sm:$0xff] %v10082_v27  ;;  %v2079_v49 = vadd.f32 %v13655_v0, %v1919_v22  ;;  %v13656_v27 = vld [vmem:[#allocation97_spill] sm:$0xff]  ;;  %v13662_v0 = vld [vmem:[#allocation36_spill] sm:$0xff] }
 0x55d   : > { %v2080_v54 = vadd.f32 %v13656_v27, %v1920_v45  ;;  %v13661_v22 = vld [vmem:[#allocation93_spill] sm:$0xff]  ;;  %v13663_v45 = vld [vmem:[#allocation164_spill] sm:$0xff] }
 0x55e   : > { %v10084_v4 = vpop.permute.xlu1 %2463  ;;  %v1921_v27 = vadd.f32 %v13662_v0, %v13661_v22 }
 0x55f   : > { %13650 = vst [vmem:[#allocation61_spill] sm:$0xff] %v10084_v4  ;;  %v10086_v34 = vpop.permute.xlu0 %2465  ;;  %v2180_v14 = vadd.f32 %v9666_v13, %v2080_v54  ;;  %v13658_v4 = vld [vmem:[#allocation38_spill] sm:$0xff] }
 0x560   : > { %13651 = vst [vmem:[#allocation160_spill] sm:$0xff] %v10086_v34  ;;  %v2179_v34 = vadd.f32 %v9660_v18, %v2079_v49  ;;  %v13664_v49 = vld [vmem:[#allocation108_spill] sm:$0xff] }
 0x561   : > { %v2278_v56 = vadd.f32 %v9794_v7, %v2180_v14 }
 0x562   : > { %v10090_v48 = vpop.permute.xlu1 %2467  ;;  %v2277_v20 = vadd.f32 %v9788_v63, %v2179_v34 }
 0x563   : > { %13652 = vst [vmem:[#allocation101_spill] sm:$0xff] %v10090_v48  ;;  %v10094_v26 = vpop.permute.xlu0 %2469  ;;  %v13659_v48 = vld [vmem:[#allocation88_spill] sm:$0xff]  ;;  %v2378_v54 = vadd.f32 %v9928_v23, %v2278_v56 }
 0x564   : > { %v1922_v53 = vadd.f32 %v13659_v48, %v13658_v4  ;;  %v2377_v18 = vadd.f32 %v9922_v62, %v2277_v20 }
 0x565   : > { %v2478_v34 = vadd.f32 %v2416_v25, %v2378_v54  ;;  %v13666_v25 = vld [vmem:[#allocation39_spill] sm:$0xff] }
 0x566   : > { %v10098_v50 = vpop.permute.xlu1 %2471  ;;  %v2082_v57 = vadd.f32 %v13663_v45, %v1922_v53  ;;  %v2477_v48 = vadd.f32 %v2414_v46, %v2377_v18  ;;  %v13665_v53 = vld [vmem:[#allocation42_spill] sm:$0xff]  ;;  %v1923_v45 = vadd.f32 %v13666_v25, %v13560_v33 }
 0x567   : > { %v10102_v17 = vpop.permute.xlu0 %2473  ;;  %v1924_v0 = vadd.f32 %v13665_v53, %v13561_v8 }
 0x568   : > { %13657 = vst [vmem:[#allocation206_spill] sm:$0xff] %v10102_v17  ;;  %v2081_v17 = vadd.f32 %v13664_v49, %v1921_v27  ;;  %v2182_v4 = vadd.f32 %v9674_v1, %v2082_v57  ;;  %v6884_v27 = vld [vmem:[#allocation2 + $0x39] sm:$0xff]  ;;  %v6885_v1 = vld [vmem:[#allocation2 + $0x41] sm:$0xff] }
 0x569   : > { %v5561_v46 = vpack.c.bf16 %v6885_v1, %v6884_v27 }
 0x56a   : > { %v10108_v42 = vpop.permute.xlu1 %2475  ;;  %v2181_v14 = vadd.f32 %v9668_v43, %v2081_v17  ;;  %v2280_v7 = vadd.f32 %v9802_v31, %v2182_v4  ;;  %v2084_v43 = vadd.f32 %v9552_v16, %v1924_v0 }
 0x56b   : > { %13660 = vst [vmem:[#allocation126_spill] sm:$0xff] %v10108_v42  ;;  %v2512_v13 = vpop.permute.xlu0 %2511 }
 0x56c   : > { %v2575_v42 = vadd.f32 %v2512_v13, %v2477_v48  ;;  %v2279_v62 = vadd.f32 %v9796_v28, %v2181_v14  ;;  %v2380_v23 = vadd.f32 %v9936_v6, %v2280_v7  ;;  %v13668_v6 = vld [vmem:[#allocation203_spill] sm:$0xff]  ;;  %v6887_v14 = vld [vmem:[#allocation2 + $0x51] sm:$0xff] }
 0x56d   : > { %v2083_v28 = vadd.f32 %v13668_v6, %v1923_v45  ;;  %v6888_v45 = vld [vmem:[#allocation2 + $0x59] sm:$0xff] }
 0x56e   : > { %v2514_v63 = vpop.permute.xlu1 %2513  ;;  %v2379_v31 = vadd.f32 %v9930_v30, %v2279_v62  ;;  %v2480_v17 = vadd.f32 %v10034_v58, %v2380_v23  ;;  %v13669_v30 = vld [vmem:[#allocation46_spill] sm:$0xff] }
 0x56f   : > { %v2576_v22 = vadd.f32 %v2514_v63, %v2478_v34  ;;  %v2516_v8 = vpop.permute.xlu0 %2515  ;;  %v2183_v33 = vadd.f32 %v9676_v32, %v2083_v28  ;;  %v1926_v58 = vadd.f32 %v13669_v30, %v13564_v21  ;;  %v6886_v63 = vld [vmem:[#allocation2 + $0x49] sm:$0xff] }
 0x570   : > { %v2479_v18 = vadd.f32 %v10028_v36, %v2379_v31  ;;  %v13670_v36 = vld [vmem:[#allocation34_spill] sm:$0xff]  ;;  %v13677_v30 = vld [vmem:[#allocation117_spill] sm:$0xff] }
 0x571   : > { %v2611_v20 = vpack.c.bf16 %v2576_v22, %v2575_v42  ;;  %v2184_v42 = vadd.f32 %v9682_v35, %v2084_v43  ;;  %v2281_v49 = vadd.f32 %v9804_v9, %v2183_v33  ;;  %v5564_v35 = vpack.c.bf16 %v6887_v14, %v6886_v63  ;;  %v13671_v22 = vld [vmem:[#allocation103_spill] sm:$0xff]  ;;  %v13683_v14 = vld [vmem:[#allocation125_spill] sm:$0xff] }
 0x572   : > { %v2518_v56 = vpop.permute.xlu1 %2517  ;;  %v2577_v13 = vadd.f32 %v2516_v8, %v2479_v18  ;;  %v1925_v7 = vadd.f32 %v13670_v36, %v13562_v37  ;;  %v2086_v32 = vadd.f32 %v13671_v22, %v1926_v58  ;;  %v13672_v9 = vld [vmem:[#allocation211_spill] sm:$0xff] }
 0x573   : > { %2811 = vmatmul.mubr.bf16.vlgmr.msra.gmra.mrb[32].mxu1 %v2611_v20  ;;  %v2578_v54 = vadd.f32 %v2518_v56, %v2480_v17  ;;  %v2282_v16 = vadd.f32 %v9814_v59, %v2184_v42  ;;  %v2381_v59 = vadd.f32 %v9938_v24, %v2281_v49  ;;  %v2520_v21 = vpop.permute.xlu0 %2519  ;;  %v13673_v24 = vld [vmem:[#allocation41_spill] sm:$0xff]  ;;  %v6889_v43 = vld [vmem:[#allocation2 + $0x61] sm:$0xff] }
 0x574   : > { %5562 = vmatprep.mubr.msk.bf16.mxu1 %vm8432_vm3, %v5561_v46  ;;  %v2186_v0 = vadd.f32 %v9690_v61, %v2086_v32  ;;  %v5567_v61 = vpack.c.bf16 %v6889_v43, %v6888_v45  ;;  %v13676_v18 = vld [vmem:[#allocation219_spill] sm:$0xff]  ;;  %v13685_v32 = vld [vmem:[#allocation105_spill] sm:$0xff]  ;;  %v13692_v45 = vld [vmem:[#allocation56_spill] sm:$0xff] }
 0x575   : > { %v2382_v4 = vadd.f32 %v9945_v38, %v2282_v16  ;;  %v2613_v48 = vpack.c.bf16 %v2578_v54, %v2577_v13  ;;  %v2085_v38 = vadd.f32 %v13672_v9, %v1925_v7  ;;  %v2481_v62 = vadd.f32 %v10036_v29, %v2381_v59  ;;  %v13674_v29 = vld [vmem:[#allocation53_spill] sm:$0xff]  ;;  %v13679_v49 = vld [vmem:[#allocation131_spill] sm:$0xff] }
 0x576   : > { %v2522_v34 = vpop.permute.xlu1 %2521  ;;  %v2284_v20 = vadd.f32 %v9824_v39, %v2186_v0  ;;  %v1927_v31 = vadd.f32 %v13674_v29, %v13565_v11  ;;  %v6891_v13 = vld [vmem:[#allocation2 + $0x71] sm:$0xff]  ;;  %v13684_v36 = vld [vmem:[#allocation187_spill] sm:$0xff] }
 0x577   : > { %v2482_v53 = vadd.f32 %v10041_v12, %v2382_v4  ;;  %v2185_v37 = vadd.f32 %v9684_v2, %v2085_v38  ;;  %v2579_v56 = vadd.f32 %v2520_v21, %v2481_v62  ;;  %v1928_v12 = vadd.f32 %v13673_v24, %v13568_v41  ;;  %v2524_v41 = vpop.permute.xlu0 %2523  ;;  %v13680_v4 = vld [vmem:[#allocation179_spill] sm:$0xff]  ;;  %v13688_v0 = vld [vmem:[#allocation50_spill] sm:$0xff] }
 0x578   : > { %v2384_v1 = vadd.f32 %v9951_v3, %v2284_v20  ;;  %v13687_v38 = vld [vmem:[#allocation75_spill] sm:$0xff]  ;;  %v13690_v20 = vld [vmem:[#allocation26_spill] sm:$0xff] }
 0x579   : > { %v2580_v23 = vadd.f32 %v2522_v34, %v2482_v53  ;;  %v2283_v27 = vadd.f32 %v9819_v44, %v2185_v37  ;;  %v2088_v2 = vadd.f32 %v9570_v47, %v1928_v12  ;;  %v2087_v44 = vadd.f32 %v9564_v40, %v1927_v31  ;;  %v6890_v40 = vld [vmem:[#allocation2 + $0x69] sm:$0xff]  ;;  %v13694_v31 = vld [vmem:[#allocation111_spill] sm:$0xff] }
 0x57a   : > { %v2526_v25 = vpop.permute.xlu1 %2525  ;;  %v2484_v17 = vadd.f32 %v10047_v15, %v2384_v1  ;;  %v13686_v53 = vld [vmem:[#allocation132_spill] sm:$0xff]  ;;  %v1932_v62 = vadd.f32 %v13688_v0, %v13687_v38 }
 0x57b   : > { %2819 = vmatmul.mubr.bf16.gmra.mrb[36].mxu1 %v2613_v48  ;;  %v2615_v46 = vpack.c.bf16 %v2580_v23, %v2579_v56  ;;  %v2383_v39 = vadd.f32 %v9947_v19, %v2283_v27  ;;  %v2188_v3 = vadd.f32 %v9698_v10, %v2088_v2  ;;  %v2187_v11 = vadd.f32 %v9692_v60, %v2087_v44  ;;  %v13675_v19 = vld [vmem:[#allocation119_spill] sm:$0xff]  ;;  %v13681_v48 = vld [vmem:[#allocation220_spill] sm:$0xff] }
 0x57c   : > { %5565 = vmatprep.mubr.msk.bf16.mxu1 %vm8432_vm3, %v5564_v35  ;;  %v2582_v6 = vadd.f32 %v2526_v25, %v2484_v17  ;;  %v1930_v15 = vadd.f32 %v13675_v19, %v13572_v52  ;;  %v5570_v10 = vpack.c.bf16 %v6891_v13, %v6890_v40  ;;  %v2528_v52 = vpop.permute.xlu0 %2527  ;;  %v13689_v23 = vld [vmem:[#allocation212_spill] sm:$0xff]  ;;  %v6892_v27 = vld [vmem:[#allocation2 + $0x79] sm:$0xff]  ;;  %v13699_v19 = vld [vmem:[#allocation133_spill] sm:$0xff] }
 0x57d   : > { %v2483_v8 = vadd.f32 %v10043_v51, %v2383_v39  ;;  %v2286_v47 = vadd.f32 %v9832_v55, %v2188_v3  ;;  %v2285_v42 = vadd.f32 %v9826_v5, %v2187_v11  ;;  %v13678_v51 = vld [vmem:[#allocation95_spill] sm:$0xff]  ;;  %v13691_v25 = vld [vmem:[#allocation64_spill] sm:$0xff] }
 0x57e   : > { %v2530_v16 = vpop.permute.xlu1 %2529  ;;  %v1929_v58 = vadd.f32 %v13678_v51, %v13677_v30  ;;  %v2090_v60 = vadd.f32 %v13679_v49, %v1930_v15  ;;  %v13682_v5 = vld [vmem:[#allocation123_spill] sm:$0xff]  ;;  %v1931_v43 = vadd.f32 %v13692_v45, %v13691_v25  ;;  %v13695_v39 = vld [vmem:[#allocation92_spill] sm:$0xff]  ;;  %v13716_v25 = vld [vmem:[#allocation29_spill] sm:$0xff] }
 0x57f   : > { %v2581_v28 = vadd.f32 %v2524_v41, %v2483_v8  ;;  %v2386_v54 = vadd.f32 %v13676_v18, %v2286_v47  ;;  %v2385_v55 = vadd.f32 %v13680_v4, %v2285_v42  ;;  %v6893_v1 = vld [vmem:[#allocation2 + $0x81] sm:$0xff]  ;;  %v13697_v8 = vld [vmem:[#allocation202_spill] sm:$0xff] }
 0x580   : > { %v2089_v63 = vadd.f32 %v13682_v5, %v1929_v58  ;;  %v2190_v35 = vadd.f32 %v13683_v14, %v2090_v60  ;;  %v2532_v41 = vpop.permute.xlu0 %2531  ;;  %v13696_v44 = vld [vmem:[#allocation200_spill] sm:$0xff]  ;;  %v13698_v11 = vld [vmem:[#allocation27_spill] sm:$0xff]  ;;  %v13700_v42 = vld [vmem:[#allocation82_spill] sm:$0xff] }
 0x581   : > { %v2617_v33 = vpack.c.bf16 %v2582_v6, %v2581_v28  ;;  %v2486_v34 = vadd.f32 %v13681_v48, %v2386_v54  ;;  %v2485_v7 = vadd.f32 %v13684_v36, %v2385_v55  ;;  %v2091_v3 = vadd.f32 %v13696_v44, %v1931_v43  ;;  %v13702_v13 = vld [vmem:[#allocation79_spill] sm:$0xff]  ;;  %v13703_v30 = vld [vmem:[#allocation136_spill] sm:$0xff]  ;;  %v6896_v4 = vld [vmem:[#allocation2 + $0x91] sm:$0xff] }
 0x582   : > { %v2189_v59 = vadd.f32 %v13685_v32, %v2089_v63  ;;  %v2288_v21 = vadd.f32 %v13686_v53, %v2190_v35  ;;  %v2534_v12 = vpop.permute.xlu1 %2533  ;;  %v6895_v60 = vld [vmem:[#allocation2 + $0x89] sm:$0xff]  ;;  %v13704_v48 = vld [vmem:[#allocation30_spill] sm:$0xff] }
 0x583   : > { %2827 = vmatmul.mubr.bf16.gmra.mrb[40].mxu1 %v2615_v46  ;;  %v2584_v22 = vadd.f32 %v2530_v16, %v2486_v34  ;;  %v2583_v9 = vadd.f32 %v2528_v52, %v2485_v7  ;;  %v5573_v46 = vpack.c.bf16 %v6893_v1, %v6892_v27  ;;  %v2191_v15 = vadd.f32 %v13699_v19, %v2091_v3  ;;  %v13701_v16 = vld [vmem:[#allocation124_spill] sm:$0xff]  ;;  %v13705_v34 = vld [vmem:[#allocation54_spill] sm:$0xff]  ;;  %v13706_v5 = vld [vmem:[#allocation65_spill] sm:$0xff] }
 0x584   : > { %5568 = vmatprep.mubr.msk.bf16.mxu1 %vm8432_vm3, %v5567_v61  ;;  %v2287_v37 = vadd.f32 %v13689_v23, %v2189_v59  ;;  %v2388_v56 = vadd.f32 %v13690_v20, %v2288_v21  ;;  %v13693_v61 = vld [vmem:[#allocation208_spill] sm:$0xff]  ;;  %v5576_v55 = vpack.c.bf16 %v6896_v4, %v6895_v60  ;;  %v1933_v52 = vadd.f32 %v13705_v34, %v13704_v48  ;;  %v13710_v53 = vld [vmem:[#allocation78_spill] sm:$0xff]  ;;  %v13715_v1 = vld [vmem:[#allocation139_spill] sm:$0xff] }
 0x585   : > { %v2619_v24 = vpack.c.bf16 %v2584_v22, %v2583_v9  ;;  %v2092_v29 = vadd.f32 %v13693_v61, %v1932_v62  ;;  %v13707_v14 = vld [vmem:[#allocation216_spill] sm:$0xff]  ;;  %v2536_v22 = vpop.permute.xlu0 %2535  ;;  %v13711_v9 = vld [vmem:[#allocation35_spill] sm:$0xff]  ;;  %v13712_v62 = vld [vmem:[#allocation210_spill] sm:$0xff] }
 0x586   : > { %v2387_v2 = vadd.f32 %v13694_v31, %v2287_v37  ;;  %v2488_v17 = vadd.f32 %v13695_v39, %v2388_v56  ;;  %v2538_v49 = vpop.permute.xlu1 %2537  ;;  %v13708_v36 = vld [vmem:[#allocation32_spill] sm:$0xff]  ;;  %v13713_v37 = vld [vmem:[#allocation182_spill] sm:$0xff]  ;;  %v13729_v48 = vld [vmem:[#allocation89_spill] sm:$0xff] }
 0x587   : > { %v2192_v6 = vadd.f32 %v13697_v8, %v2092_v29  ;;  %v13709_v32 = vld [vmem:[#allocation72_spill] sm:$0xff]  ;;  %v6898_v29 = vld [vmem:[#allocation2 + $0x99] sm:$0xff] }
 0x588   : > { %v2487_v47 = vadd.f32 %v13698_v11, %v2387_v2  ;;  %v2586_v28 = vadd.f32 %v2534_v12, %v2488_v17  ;;  %v2093_v59 = vadd.f32 %v13709_v32, %v1933_v52  ;;  %v13714_v12 = vld [vmem:[#allocation57_spill] sm:$0xff]  ;;  %v6899_v31 = vld [vmem:[#allocation2 + $0xa1] sm:$0xff]  ;;  %v13717_v39 = vld [vmem:[#allocation58_spill] sm:$0xff] }
 0x589   : > { %v2290_v18 = vadd.f32 %v13700_v42, %v2192_v6  ;;  %v5579_v2 = vpack.c.bf16 %v6899_v31, %v6898_v29  ;;  %v13718_v17 = vld [vmem:[#allocation37_spill] sm:$0xff]  ;;  %v13719_v44 = vld [vmem:[#allocation120_spill] sm:$0xff]  ;;  %v13721_v11 = vld [vmem:[#allocation31_spill] sm:$0xff] }
 0x58a   : > { %v2585_v54 = vadd.f32 %v2532_v41, %v2487_v47  ;;  %v2193_v23 = vadd.f32 %v13712_v62, %v2093_v59  ;;  %v2542_v61 = vpop.permute.xlu1 %2541  ;;  %v1935_v41 = vadd.f32 %v13718_v17, %v13717_v39  ;;  %v13720_v8 = vld [vmem:[#allocation144_spill] sm:$0xff]  ;;  %v13722_v19 = vld [vmem:[#allocation74_spill] sm:$0xff]  ;;  %v13732_v32 = vld [vmem:[#allocation51_spill] sm:$0xff] }
 0x58b   : > { %2835 = vmatmul.mubr.bf16.gmra.mrb[44].mxu1 %v2617_v33  ;;  %v6894_v33 = vld [vmem:[#allocation2 + $0x7f] sm:$0xff]  ;;  %v2390_v51 = vadd.f32 %v13703_v30, %v2290_v18  ;;  %v13728_v4 = vld [vmem:[#allocation80_spill] sm:$0xff] }
 0x58c   : > { %5571 = vmatprep.mubr.msk.bf16.mxu1 %vm8432_vm3, %v5570_v10  ;;  %v1934_v40 = vadd.f32 %v6894_v33, %v13701_v16  ;;  %v2289_v10 = vadd.f32 %v13702_v13, %v2191_v15  ;;  %v2621_v58 = vpack.c.bf16 %v2586_v28, %v2585_v54  ;;  %v2540_v28 = vpop.permute.xlu0 %2539  ;;  %v2095_v15 = vadd.f32 %v13722_v19, %v1935_v41  ;;  %v13723_v42 = vld [vmem:[#allocation130_spill] sm:$0xff]  ;;  %v13735_v62 = vld [vmem:[#allocation128_spill] sm:$0xff] }
 0x58d   : > { %v2490_v7 = vadd.f32 %v13708_v36, %v2390_v51  ;;  %v13724_v54 = vld [vmem:[#allocation94_spill] sm:$0xff]  ;;  %v13745_v19 = vld [vmem:[#allocation40_spill] sm:$0xff] }
 0x58e   : > { %v2094_v63 = vadd.f32 %v13706_v5, %v1934_v40  ;;  %v2389_v35 = vadd.f32 %v13707_v14, %v2289_v10  ;;  %v13725_v40 = vld [vmem:[#allocation122_spill] sm:$0xff]  ;;  %v13726_v10 = vld [vmem:[#allocation73_spill] sm:$0xff]  ;;  %v2546_v5 = vpop.permute.xlu1 %2545 }
 0x58f   : > { %v2588_v0 = vadd.f32 %v2538_v49, %v2490_v7  ;;  %v2195_v13 = vadd.f32 %v13725_v40, %v2095_v15  ;;  %v13727_v49 = vld [vmem:[#allocation48_spill] sm:$0xff]  ;;  %v6902_v14 = vld [vmem:[#allocation2 + $0xb1] sm:$0xff]  ;;  %v13748_v40 = vld [vmem:[#allocation71_spill] sm:$0xff] }
 0x590   : > { %v2194_v21 = vadd.f32 %v13710_v53, %v2094_v63  ;;  %v2489_v38 = vadd.f32 %v13711_v9, %v2389_v35  ;;  %v6901_v63 = vld [vmem:[#allocation2 + $0xa9] sm:$0xff]  ;;  %v13730_v36 = vld [vmem:[#allocation106_spill] sm:$0xff] }
 0x591   : > { %v5582_v35 = vpack.c.bf16 %v6902_v14, %v6901_v63  ;;  %v13731_v7 = vld [vmem:[#allocation66_spill] sm:$0xff]  ;;  %v13733_v53 = vld [vmem:[#allocation28_spill] sm:$0xff]  ;;  %v13754_v14 = vld [vmem:[#allocation217_spill] sm:$0xff] }
 0x592   : > { %v2292_v20 = vadd.f32 %v13713_v37, %v2194_v21  ;;  %v2587_v56 = vadd.f32 %v2536_v22, %v2489_v38  ;;  %v1937_v22 = vadd.f32 %v13731_v7, %v13730_v36  ;;  %v13734_v9 = vld [vmem:[#allocation62_spill] sm:$0xff]  ;;  %v13736_v37 = vld [vmem:[#allocation140_spill] sm:$0xff]  ;;  %v13755_v36 = vld [vmem:[#allocation81_spill] sm:$0xff] }
 0x593   : > { %2843 = vmatmul.mubr.bf16.gmra.mrb[48].mxu1 %v2619_v24  ;;  %v6897_v24 = vld [vmem:[#allocation2 + $0x8f] sm:$0xff]  ;;  %v13741_v31 = vld [vmem:[#allocation114_spill] sm:$0xff] }
 0x594   : > { %5574 = vmatprep.mubr.msk.bf16.mxu1 %vm8432_vm3, %v5573_v46  ;;  %v1936_v27 = vadd.f32 %v6897_v24, %v13714_v12  ;;  %v2291_v46 = vadd.f32 %v13715_v1, %v2193_v23  ;;  %v2392_v45 = vadd.f32 %v13716_v25, %v2292_v20  ;;  %v2623_v43 = vpack.c.bf16 %v2588_v0, %v2587_v56  ;;  %v2544_v0 = vpop.permute.xlu0 %2543  ;;  %v13737_v56 = vld [vmem:[#allocation91_spill] sm:$0xff]  ;;  %v13742_v39 = vld [vmem:[#allocation190_spill] sm:$0xff] }
 0x595   : > { %v2097_v23 = vadd.f32 %v13735_v62, %v1937_v22  ;;  %v13758_v62 = vld [vmem:[#allocation159_spill] sm:$0xff] }
 0x596   : > { %v2096_v3 = vadd.f32 %v13719_v44, %v1936_v27  ;;  %v2391_v6 = vadd.f32 %v13720_v8, %v2291_v46  ;;  %v2492_v47 = vadd.f32 %v13721_v11, %v2392_v45  ;;  %v13738_v27 = vld [vmem:[#allocation55_spill] sm:$0xff]  ;;  %v2550_v44 = vpop.permute.xlu1 %2549  ;;  %v13743_v11 = vld [vmem:[#allocation201_spill] sm:$0xff] }
 0x597   : > { %v2197_v1 = vadd.f32 %v13738_v27, %v2097_v23  ;;  %v13739_v46 = vld [vmem:[#allocation175_spill] sm:$0xff]  ;;  %v13761_v27 = vld [vmem:[#allocation60_spill] sm:$0xff] }
 0x598   : > { %v2196_v18 = vadd.f32 %v13723_v42, %v2096_v3  ;;  %v2491_v33 = vadd.f32 %v13724_v54, %v2391_v6  ;;  %v2590_v16 = vadd.f32 %v2542_v61, %v2492_v47  ;;  %v13740_v61 = vld [vmem:[#allocation68_spill] sm:$0xff]  ;;  %v6904_v3 = vld [vmem:[#allocation2 + $0xb9] sm:$0xff] }
 0x599   : > { %v6905_v8 = vld [vmem:[#allocation2 + $0xc1] sm:$0xff]  ;;  %v13746_v42 = vld [vmem:[#allocation142_spill] sm:$0xff] }
 0x59a   : > { %v2294_v30 = vadd.f32 %v13726_v10, %v2196_v18  ;;  %v2589_v51 = vadd.f32 %v2540_v28, %v2491_v33  ;;  %v5585_v6 = vpack.c.bf16 %v6905_v8, %v6904_v3  ;;  %v13744_v47 = vld [vmem:[#allocation151_spill] sm:$0xff]  ;;  %v13747_v54 = vld [vmem:[#allocation104_spill] sm:$0xff]  ;;  %v13749_v10 = vld [vmem:[#allocation138_spill] sm:$0xff] }
 0x59b   : > { %2851 = vmatmul.mubr.bf16.gmra.mrb[52].mxu1 %v2621_v58  ;;  %v6900_v58 = vld [vmem:[#allocation2 + $0x9f] sm:$0xff]  ;;  %v1939_v28 = vadd.f32 %v13744_v47, %v13743_v11 }
 0x59c   : > { %5577 = vmatprep.mubr.msk.bf16.mxu1 %vm8432_vm3, %v5576_v55  ;;  %v1938_v60 = vadd.f32 %v6900_v58, %v13727_v49  ;;  %v2293_v55 = vadd.f32 %v13728_v4, %v2195_v13  ;;  %v2394_v34 = vadd.f32 %v13729_v48, %v2294_v30  ;;  %v2625_v52 = vpack.c.bf16 %v2590_v16, %v2589_v51  ;;  %v2548_v16 = vpop.permute.xlu0 %2547  ;;  %v13750_v51 = vld [vmem:[#allocation45_spill] sm:$0xff]  ;;  %v13767_v8 = vld [vmem:[#allocation23_spill] sm:$0xff] }
 0x59d   : > { %v2099_v13 = vadd.f32 %v13748_v40, %v1939_v28  ;;  %v13768_v11 = vld [vmem:[#allocation183_spill] sm:$0xff]  ;;  %v13771_v40 = vld [vmem:[#allocation98_spill] sm:$0xff] }
 0x59e   : > { %v2098_v59 = vadd.f32 %v13732_v32, %v1938_v60  ;;  %v2393_v21 = vadd.f32 %v13733_v53, %v2293_v55  ;;  %v2494_v38 = vadd.f32 %v13734_v9, %v2394_v34  ;;  %v13751_v60 = vld [vmem:[#allocation44_spill] sm:$0xff]  ;;  %v13752_v55 = vld [vmem:[#allocation109_spill] sm:$0xff]  ;;  %v2554_v32 = vpop.permute.xlu1 %2553 }
 0x59f   : > { %v2199_v4 = vadd.f32 %v13751_v60, %v2099_v13  ;;  %v6908_v53 = vld [vmem:[#allocation2 + $0xd1] sm:$0xff] }
 0x5a0   : > { %v2198_v20 = vadd.f32 %v13736_v37, %v2098_v59  ;;  %v2493_v24 = vadd.f32 %v13737_v56, %v2393_v21  ;;  %v2592_v12 = vadd.f32 %v2546_v5, %v2494_v38  ;;  %v13753_v5 = vld [vmem:[#allocation146_spill] sm:$0xff]  ;;  %v6907_v59 = vld [vmem:[#allocation2 + $0xc9] sm:$0xff]  ;;  %v13757_v38 = vld [vmem:[#allocation99_spill] sm:$0xff] }
 0x5a1   : > { %v5588_v21 = vpack.c.bf16 %v6908_v53, %v6907_v59  ;;  %v13756_v9 = vld [vmem:[#allocation129_spill] sm:$0xff]  ;;  %v13759_v37 = vld [vmem:[#allocation87_spill] sm:$0xff]  ;;  %v13774_v60 = vld [vmem:[#allocation174_spill] sm:$0xff] }
 0x5a2   : > { %v2296_v25 = vadd.f32 %v13739_v46, %v2198_v20  ;;  %v2591_v45 = vadd.f32 %v2544_v0, %v2493_v24  ;;  %v1941_v0 = vadd.f32 %v13757_v38, %v13756_v9  ;;  %v13760_v56 = vld [vmem:[#allocation49_spill] sm:$0xff]  ;;  %v13762_v46 = vld [vmem:[#allocation178_spill] sm:$0xff] }
 0x5a3   : > { %2859 = vmatmul.mubr.bf16.gmra.mrb[56].mxu1 %v2623_v43  ;;  %v6903_v43 = vld [vmem:[#allocation2 + $0xaf] sm:$0xff]  ;;  %v13780_v53 = vld [vmem:[#allocation134_spill] sm:$0xff] }
 0x5a4   : > { %5580 = vmatprep.mubr.msk.bf16.mxu1 %vm8432_vm3, %v5579_v2  ;;  %v1940_v29 = vadd.f32 %v6903_v43, %v13740_v61  ;;  %v2295_v2 = vadd.f32 %v13741_v31, %v2197_v1  ;;  %v2396_v17 = vadd.f32 %v13742_v39, %v2296_v25  ;;  %v2627_v41 = vpack.c.bf16 %v2592_v12, %v2591_v45  ;;  %v2552_v12 = vpop.permute.xlu0 %2551  ;;  %v13763_v45 = vld [vmem:[#allocation197_spill] sm:$0xff] }
 0x5a5   : > { %v2101_v1 = vadd.f32 %v13761_v27, %v1941_v0  ;;  %v13781_v9 = vld [vmem:[#allocation113_spill] sm:$0xff]  ;;  %v13784_v27 = vld [vmem:[#allocation110_spill] sm:$0xff] }
 0x5a6   : > { %v2100_v15 = vadd.f32 %v13745_v19, %v1940_v29  ;;  %v2395_v18 = vadd.f32 %v13746_v42, %v2295_v2  ;;  %v2496_v33 = vadd.f32 %v13747_v54, %v2396_v17  ;;  %v13764_v29 = vld [vmem:[#allocation163_spill] sm:$0xff]  ;;  %v13765_v2 = vld [vmem:[#allocation214_spill] sm:$0xff]  ;;  %v2558_v19 = vpop.permute.xlu1 %2557 }
 0x5a7   : > { %v2201_v31 = vadd.f32 %v13764_v29, %v2101_v1  ;;  %v6911_v42 = vld [vmem:[#allocation2 + $0xe1] sm:$0xff]  ;;  %v13769_v54 = vld [vmem:[#allocation70_spill] sm:$0xff] }
 0x5a8   : > { %v2200_v30 = vadd.f32 %v13749_v10, %v2100_v15  ;;  %v2495_v58 = vadd.f32 %v13750_v51, %v2395_v18  ;;  %v2594_v49 = vadd.f32 %v2550_v44, %v2496_v33  ;;  %v13766_v44 = vld [vmem:[#allocation96_spill] sm:$0xff]  ;;  %v6910_v15 = vld [vmem:[#allocation2 + $0xd9] sm:$0xff] }
 0x5a9   : > { %v5591_v18 = vpack.c.bf16 %v6911_v42, %v6910_v15  ;;  %v13770_v33 = vld [vmem:[#allocation167_spill] sm:$0xff]  ;;  %v13772_v10 = vld [vmem:[#allocation116_spill] sm:$0xff]  ;;  %v13787_v29 = vld [vmem:[#allocation102_spill] sm:$0xff] }
 0x5aa   : > { %v2298_v48 = vadd.f32 %v13752_v55, %v2200_v30  ;;  %v2593_v34 = vadd.f32 %v2548_v16, %v2495_v58  ;;  %v1943_v16 = vadd.f32 %v13770_v33, %v13769_v54  ;;  %v13773_v51 = vld [vmem:[#allocation127_spill] sm:$0xff]  ;;  %v13775_v55 = vld [vmem:[#allocation69_spill] sm:$0xff]  ;;  %v13793_v42 = vld [vmem:[#allocation86_spill] sm:$0xff] }
 0x5ab   : > { %2867 = vmatmul.mubr.bf16.gmra.mrb[60].mxu1 %v2625_v52  ;;  %v6906_v52 = vld [vmem:[#allocation2 + $0xbf] sm:$0xff] }
 0x5ac   : > { %5583 = vmatprep.mubr.msk.bf16.mxu1 %vm8432_vm3, %v5582_v35  ;;  %v1942_v63 = vadd.f32 %v6906_v52, %v13753_v5  ;;  %v2297_v35 = vadd.f32 %v13754_v14, %v2199_v4  ;;  %v2398_v7 = vadd.f32 %v13755_v36, %v2298_v48  ;;  %v2629_v22 = vpack.c.bf16 %v2594_v49, %v2593_v34  ;;  %v2556_v49 = vpop.permute.xlu0 %2555  ;;  %v13776_v34 = vld [vmem:[#allocation63_spill] sm:$0xff]  ;;  %v13794_v54 = vld [vmem:[#allocation218_spill] sm:$0xff] }
 0x5ad   : > { %v2103_v4 = vadd.f32 %v13774_v60, %v1943_v16  ;;  %v13797_v60 = vld [vmem:[#allocation168_spill] sm:$0xff] }
 0x5ae   : > { %v2102_v23 = vadd.f32 %v13758_v62, %v1942_v63  ;;  %v2397_v20 = vadd.f32 %v13759_v37, %v2297_v35  ;;  %v2498_v24 = vadd.f32 %v13760_v56, %v2398_v7  ;;  %v13777_v63 = vld [vmem:[#allocation76_spill] sm:$0xff]  ;;  %v13778_v35 = vld [vmem:[#allocation83_spill] sm:$0xff]  ;;  %v2562_v62 = vpop.permute.xlu1 %2561  ;;  %v6914_v37 = vld [vmem:[#allocation2 + $0xf1] sm:$0xff] }
 0x5af   : > { %v2203_v14 = vadd.f32 %v13777_v63, %v2103_v4  ;;  %v13782_v56 = vld [vmem:[#allocation67_spill] sm:$0xff]  ;;  %v13800_v63 = vld [vmem:[#allocation152_spill] sm:$0xff] }
 0x5b0   : > { %v2202_v25 = vadd.f32 %v13762_v46, %v2102_v23  ;;  %v2497_v43 = vadd.f32 %v13763_v45, %v2397_v20  ;;  %v2596_v61 = vadd.f32 %v2554_v32, %v2498_v24  ;;  %v13779_v32 = vld [vmem:[#allocation199_spill] sm:$0xff]  ;;  %v6913_v23 = vld [vmem:[#allocation2 + $0xe9] sm:$0xff] }
 0x5b1   : > { %v5594_v20 = vpack.c.bf16 %v6914_v37, %v6913_v23  ;;  %v13783_v24 = vld [vmem:[#allocation121_spill] sm:$0xff]  ;;  %v13785_v46 = vld [vmem:[#allocation24_spill] sm:$0xff]  ;;  %v13806_v37 = vld [vmem:[#allocation186_spill] sm:$0xff] }
 0x5b2   : > { %v2300_v39 = vadd.f32 %v13765_v2, %v2202_v25  ;;  %v2595_v17 = vadd.f32 %v2552_v12, %v2497_v43  ;;  %v1945_v12 = vadd.f32 %v13783_v24, %v13782_v56  ;;  %v13786_v45 = vld [vmem:[#allocation61_spill] sm:$0xff]  ;;  %v13788_v2 = vld [vmem:[#allocation156_spill] sm:$0xff]  ;;  %v13807_v56 = vld [vmem:[#allocation90_spill] sm:$0xff] }
 0x5b3   : > { %2875 = vmatmul.mubr.bf16.gmra.mrb[64].mxu1 %v2627_v41  ;;  %v6909_v41 = vld [vmem:[#allocation2 + $0xcf] sm:$0xff] }
 0x5b4   : > { %5586 = vmatprep.mubr.msk.bf16.mxu1 %vm8432_vm3, %v5585_v6  ;;  %v1944_v3 = vadd.f32 %v6909_v41, %v13766_v44  ;;  %v2299_v6 = vadd.f32 %v13767_v8, %v2201_v31  ;;  %v2400_v47 = vadd.f32 %v13768_v11, %v2300_v39  ;;  %v2631_v28 = vpack.c.bf16 %v2596_v61, %v2595_v17  ;;  %v2560_v61 = vpop.permute.xlu0 %2559  ;;  %v13789_v17 = vld [vmem:[#allocation59_spill] sm:$0xff] }
 0x5b5   : > { %v2105_v31 = vadd.f32 %v13787_v29, %v1945_v12  ;;  %v13812_v29 = vld [vmem:[#allocation213_spill] sm:$0xff] }
 0x5b6   : > { %v2104_v13 = vadd.f32 %v13771_v40, %v1944_v3  ;;  %v2399_v30 = vadd.f32 %v13772_v10, %v2299_v6  ;;  %v2500_v58 = vadd.f32 %v13773_v51, %v2400_v47  ;;  %v13790_v3 = vld [vmem:[#allocation112_spill] sm:$0xff]  ;;  %v13791_v6 = vld [vmem:[#allocation141_spill] sm:$0xff]  ;;  %v2566_v40 = vpop.permute.xlu1 %2565  ;;  %v13795_v51 = vld [vmem:[#allocation22_spill] sm:$0xff] }
 0x5b7   : > { %v2205_v8 = vadd.f32 %v13790_v3, %v2105_v31  ;;  %v6917_v10 = vld [vmem:[#allocation2 + $0x101] sm:$0xff] }
 0x5b8   : > { %v2204_v48 = vadd.f32 %v13775_v55, %v2104_v13  ;;  %v2499_v52 = vadd.f32 %v13776_v34, %v2399_v30  ;;  %v2598_v5 = vadd.f32 %v2558_v19, %v2500_v58  ;;  %v13792_v19 = vld [vmem:[#allocation118_spill] sm:$0xff]  ;;  %v13796_v58 = vld [vmem:[#allocation209_spill] sm:$0xff] }
 0x5b9   : > { %v6916_v13 = vld [vmem:[#allocation2 + $0xf9] sm:$0xff]  ;;  %v13798_v55 = vld [vmem:[#allocation25_spill] sm:$0xff] }
 0x5ba   : > { %v2302_v36 = vadd.f32 %v13778_v35, %v2204_v48  ;;  %v2597_v7 = vadd.f32 %v2556_v49, %v2499_v52  ;;  %v5597_v30 = vpack.c.bf16 %v6917_v10, %v6916_v13  ;;  %v1947_v49 = vadd.f32 %v13796_v58, %v13795_v51  ;;  %v13799_v34 = vld [vmem:[#allocation101_spill] sm:$0xff]  ;;  %v13801_v35 = vld [vmem:[#allocation207_spill] sm:$0xff] }
 0x5bb   : > { %2883 = vmatmul.mubr.bf16.gmra.mrb[68].mxu1 %v2629_v22  ;;  %v6912_v22 = vld [vmem:[#allocation2 + $0xdf] sm:$0xff]  ;;  %v13819_v13 = vld [vmem:[#allocation193_spill] sm:$0xff] }
 0x5bc   : > { %5589 = vmatprep.mubr.msk.bf16.mxu1 %vm8432_vm3, %v5588_v21  ;;  %v1946_v59 = vadd.f32 %v6912_v22, %v13779_v32  ;;  %v2301_v21 = vadd.f32 %v13780_v53, %v2203_v14  ;;  %v2402_v38 = vadd.f32 %v13781_v9, %v2302_v36  ;;  %v2633_v0 = vpack.c.bf16 %v2598_v5, %v2597_v7  ;;  %v2564_v5 = vpop.permute.xlu0 %2563  ;;  %v13802_v7 = vld [vmem:[#allocation160_spill] sm:$0xff]  ;;  %v13820_v58 = vld [vmem:[#allocation143_spill] sm:$0xff] }
 0x5bd   : > { %v2107_v14 = vadd.f32 %v13800_v63, %v1947_v49 }
 0x5be   : > { %v2106_v1 = vadd.f32 %v13784_v27, %v1946_v59  ;;  %v2401_v25 = vadd.f32 %v13785_v46, %v2301_v21  ;;  %v2502_v43 = vadd.f32 %v13786_v45, %v2402_v38  ;;  %v13803_v59 = vld [vmem:[#allocation171_spill] sm:$0xff]  ;;  %v13804_v21 = vld [vmem:[#allocation84_spill] sm:$0xff]  ;;  %v2570_v27 = vpop.permute.xlu1 %2569 }
 0x5bf   : > { %v2207_v53 = vadd.f32 %v13803_v59, %v2107_v14  ;;  %v13809_v46 = vld [vmem:[#allocation204_spill] sm:$0xff]  ;;  %v10346_v14 = vld [vmem:[%s12698_s4] ss:$0 sm:$0xff] }
 0x5c0   : > { %v2206_v39 = vadd.f32 %v13788_v2, %v2106_v1  ;;  %v2501_v41 = vadd.f32 %v13789_v17, %v2401_v25  ;;  %v2600_v44 = vadd.f32 %v2562_v62, %v2502_v43  ;;  %v13805_v62 = vld [vmem:[#allocation33_spill] sm:$0xff]  ;;  %v13808_v1 = vld [vmem:[#allocation135_spill] sm:$0xff]  ;;  %v13810_v45 = vld [vmem:[#allocation148_spill] sm:$0xff] }
 0x5c1   : > { %v5600_v25 = vpack.c.bf16 %v13809_v46, %v13808_v1  ;;  %v13811_v43 = vld [vmem:[#allocation47_spill] sm:$0xff]  ;;  %v13813_v2 = vld [vmem:[#allocation137_spill] sm:$0xff] }
 0x5c2   : > { %v2304_v11 = vadd.f32 %v13791_v6, %v2206_v39  ;;  %v2599_v47 = vadd.f32 %v2560_v61, %v2501_v41  ;;  %v1949_v61 = vadd.f32 %v13811_v43, %v13810_v45  ;;  %v2568_v41 = vpop.permute.xlu0 %2567  ;;  %v2574_v51 = vpop.permute.xlu1 %2573 }
 0x5c3   : > { %2891 = vmatmul.mubr.bf16.gmra.mrb[72].mxu1 %v2631_v28  ;;  %v6915_v28 = vld [vmem:[#allocation2 + $0xef] sm:$0xff] }
 0x5c4   : > { %5592 = vmatprep.mubr.msk.bf16.mxu1 %vm8432_vm3, %v5591_v18  ;;  %v1948_v15 = vadd.f32 %v6915_v28, %v13792_v19  ;;  %v2303_v18 = vadd.f32 %v13793_v42, %v2205_v8  ;;  %v2404_v33 = vadd.f32 %v13794_v54, %v2304_v11  ;;  %v2635_v16 = vpack.c.bf16 %v2600_v44, %v2599_v47  ;;  %v13814_v44 = vld [vmem:[#allocation205_spill] sm:$0xff]  ;;  %v13815_v8 = vld [vmem:[#allocation107_spill] sm:$0xff] }
 0x5c5   : > { %v2109_v3 = vadd.f32 %v13814_v44, %v1949_v61  ;;  %v2607_v28 = vld [vmem:[#allocation2 + $0x119] sm:$0xff]  ;;  %v2608_v19 = vld [vmem:[#allocation2 + $0x121] sm:$0xff] }
 0x5c6   : > { %v2108_v4 = vadd.f32 %v13797_v60, %v1948_v15  ;;  %v2403_v48 = vadd.f32 %v13798_v55, %v2303_v18  ;;  %v2504_v52 = vadd.f32 %v13799_v34, %v2404_v33  ;;  %v13816_v15 = vld [vmem:[#allocation215_spill] sm:$0xff]  ;;  %v13821_v60 = vld [vmem:[#allocation126_spill] sm:$0xff] }
 0x5c7   : > { %v2209_v42 = vadd.f32 %v13816_v15, %v2109_v3  ;;  %v13817_v18 = vld [vmem:[#allocation115_spill] sm:$0xff]  ;;  %v13822_v55 = vld [vmem:[#allocation206_spill] sm:$0xff] }
 0x5c8   : > { %v2208_v36 = vadd.f32 %v13801_v35, %v2108_v4  ;;  %v2503_v22 = vadd.f32 %v13802_v7, %v2403_v48  ;;  %v2602_v32 = vadd.f32 %v2566_v40, %v2504_v52 }
 0x5ca   : > { %v2306_v9 = vadd.f32 %v13804_v21, %v2208_v36  ;;  %v2601_v38 = vadd.f32 %v2564_v5, %v2503_v22 }
 0x5cb   : > { %2899 = vmatmul.mubr.bf16.gmra.mrb[76].mxu1 %v2633_v0  ;;  %v6918_v0 = vld [vmem:[#allocation2 + $0xff] sm:$0xff] }
 0x5cc   : > { %5595 = vmatprep.mubr.msk.bf16.mxu1 %vm8432_vm3, %v5594_v20  ;;  %v1950_v23 = vadd.f32 %v6918_v0, %v13805_v62  ;;  %v2305_v20 = vadd.f32 %v13806_v37, %v2207_v53  ;;  %v2406_v24 = vadd.f32 %v13807_v56, %v2306_v9  ;;  %v2637_v12 = vpack.c.bf16 %v2602_v32, %v2601_v38 }
 0x5ce   : > { %v2110_v31 = vadd.f32 %v13812_v29, %v1950_v23  ;;  %v2405_v39 = vadd.f32 %v13813_v2, %v2305_v20  ;;  %v2506_v17 = vadd.f32 %v10098_v50, %v2406_v24  ;;  %v5603_v50 = vpack.c.bf16 %v2608_v19, %v2607_v28 }
 0x5d0   : > { %v2210_v6 = vadd.f32 %v13815_v8, %v2110_v31  ;;  %v2505_v11 = vadd.f32 %v10094_v26, %v2405_v39  ;;  %v2604_v47 = vadd.f32 %v2570_v27, %v2506_v17  ;;  %v2572_v26 = vpop.permute.xlu0 %2571 }
 0x5d2   : > { %v2308_v54 = vadd.f32 %v13817_v18, %v2210_v6  ;;  %v2603_v33 = vadd.f32 %v2568_v41, %v2505_v11 }
 0x5d3   : > { %2907 = vmatmul.mubr.bf16.gmra.mrb[80].mxu1 %v2635_v16  ;;  %v13818_v16 = vld [vmem:[#allocation77_spill] sm:$0xff] }
 0x5d4   : > { %5598 = vmatprep.mubr.msk.bf16.mxu1 %vm8432_vm3, %v5597_v30  ;;  %v2307_v40 = vadd.f32 %v13818_v16, %v2209_v42  ;;  %v2408_v10 = vadd.f32 %v13819_v13, %v2308_v54  ;;  %v2639_v30 = vpack.c.bf16 %v2604_v47, %v2603_v33 }
 0x5d6   : > { %v2407_v49 = vadd.f32 %v13820_v58, %v2307_v40  ;;  %v2508_v4 = vadd.f32 %v13821_v60, %v2408_v10 }
 0x5d8   : > { %v2507_v48 = vadd.f32 %v13822_v55, %v2407_v49  ;;  %v2606_v34 = vadd.f32 %v2574_v51, %v2508_v4 }
 0x5da   : > { %v2605_v52 = vadd.f32 %v2572_v26, %v2507_v48 }
 0x5db   : > { %2915 = vmatmul.mubr.bf16.gmra.mrb[84].mxu1 %v2637_v12 }
 0x5dc   : > { %5601 = vmatprep.mubr.msk.bf16.mxu1 %vm8432_vm3, %v5600_v25  ;;  %v2641_v5 = vpack.c.bf16 %v2606_v34, %v2605_v52 }
 0x5e3   : > { %2923 = vmatmul.mubr.bf16.gmra.mrb[88].mxu1 %v2639_v30 }
 0x5e4   : > { %5604 = vmatprep.mubr.msk.bf16.mxu1 %vm8432_vm3, %v5603_v50 }
 0x5eb   : > { %2931 = vmatmul.mubr.bf16.gmra.mrb[92].mxu1 %v2641_v5 }
 0x646   : > { %v6043_v63 = vpop.f32.mrb[32].mxu1 }
 0x647   : > { %v6044_v35 = vpop.f32.mrb[33].mxu1 }
 0x648   : > { %v6045_v36 = vadd.f32 %v6044_v35, %v6043_v63  ;;  %v6046_v7 = vpop.f32.mrb[34].mxu1 }
 0x649   : > { %v6047_v22 = vpop.f32.mrb[35].mxu1 }
 0x64a   : > { %v2813_v32 = vadd.f32 %v6045_v36, %v10346_v14  ;;  %v6048_v59 = vadd.f32 %v6047_v22, %v6046_v7 }
 0x64c   : > { %vm2939_vm10 = vcmp.ge.f32.partialorder %v2813_v32, 0.0  ;;  %v2971_v53 = vmul.f32 0.2, %v2813_v32  ;;  %v2816_v21 = vadd.f32 %v6048_v59, %v10346_v14 }
 0x64e   : > { %v10350_v9 = vsel %vm2939_vm10, %v2813_v32, %v2971_v53  ;;  %vm2940_vm11 = vcmp.ge.f32.partialorder %v2816_v21, 0.0  ;;  %v2972_v38 = vmul.f32 0.2, %v2816_v21  ;;  %v6049_v0 = vpop.f32.mrb[36].mxu1 }
 0x64f   : > { %3035 = vst [vmem:[#allocation2 + $0x18] sm:$0xff] %v10350_v9  ;;  %v6050_v62 = vpop.f32.mrb[37].mxu1  ;;  %3167 = vrot.lane.b32.xlu0 %v10350_v9, %s7184_s30 }
 0x650   : > { %v10355_v23 = vsel %vm2940_vm11, %v2816_v21, %v2972_v38  ;;  %v6051_v37 = vadd.f32 %v6050_v62, %v6049_v0  ;;  %v6052_v20 = vpop.f32.mrb[38].mxu1 }
 0x651   : > { %3036 = vst [vmem:[#allocation2 + $0x20] sm:$0xff] %v10355_v23  ;;  %v6053_v56 = vpop.f32.mrb[39].mxu1  ;;  %3169 = vrot.lane.b32.xlu1 %v10355_v23, %s7184_s30 }
 0x652   : > { %v2821_v24 = vadd.f32 %v6051_v37, %v10346_v14  ;;  %v6054_v12 = vadd.f32 %v6053_v56, %v6052_v20 }
 0x654   : > { %vm2941_vm12 = vcmp.ge.f32.partialorder %v2821_v24, 0.0  ;;  %v2973_v27 = vmul.f32 0.2, %v2821_v24  ;;  %v2824_v1 = vadd.f32 %v6054_v12, %v10346_v14 }
 0x656   : > { %v10362_v46 = vsel %vm2941_vm12, %v2821_v24, %v2973_v27  ;;  %vm2942_vm13 = vcmp.ge.f32.partialorder %v2824_v1, 0.0  ;;  %v2974_v25 = vmul.f32 0.2, %v2824_v1  ;;  %v6055_v45 = vpop.f32.mrb[40].mxu1 }
 0x657   : > { %3037 = vst [vmem:[#allocation2 + $0x28] sm:$0xff] %v10362_v46  ;;  %v6056_v43 = vpop.f32.mrb[41].mxu1  ;;  %3171 = vrot.lane.b32.xlu0 %v10362_v46, %s7184_s30 }
 0x658   : > { %v10367_v61 = vsel %vm2942_vm13, %v2824_v1, %v2974_v25  ;;  %v6057_v29 = vadd.f32 %v6056_v43, %v6055_v45  ;;  %v6058_v31 = vpop.f32.mrb[42].mxu1 }
 0x659   : > { %3038 = vst [vmem:[#allocation2 + $0x30] sm:$0xff] %v10367_v61  ;;  %v6059_v2 = vpop.f32.mrb[43].mxu1  ;;  %3173 = vrot.lane.b32.xlu1 %v10367_v61, %s7184_s30 }
 0x65a   : > { %v2829_v39 = vadd.f32 %v6057_v29, %v10346_v14  ;;  %v6060_v17 = vadd.f32 %v6059_v2, %v6058_v31 }
 0x65c   : > { %vm2943_vm14 = vcmp.ge.f32.partialorder %v2829_v39, 0.0  ;;  %v2975_v41 = vmul.f32 0.2, %v2829_v39  ;;  %v2832_v44 = vadd.f32 %v6060_v17, %v10346_v14 }
 0x65e   : > { %v10374_v3 = vsel %vm2943_vm14, %v2829_v39, %v2975_v41  ;;  %vm2944_vm15 = vcmp.ge.f32.partialorder %v2832_v44, 0.0  ;;  %v2976_v8 = vmul.f32 0.2, %v2832_v44  ;;  %v6061_v6 = vpop.f32.mrb[44].mxu1 }
 0x65f   : > { %3039 = vst [vmem:[#allocation2 + $0x38] sm:$0xff] %v10374_v3  ;;  %v6062_v11 = vpop.f32.mrb[45].mxu1  ;;  %3175 = vrot.lane.b32.xlu0 %v10374_v3, %s7184_s30 }
 0x660   : > { %v10379_v47 = vsel %vm2944_vm15, %v2832_v44, %v2976_v8  ;;  %v6063_v28 = vadd.f32 %v6062_v11, %v6061_v6  ;;  %v6064_v19 = vpop.f32.mrb[46].mxu1  ;;  %v10388_v13 = vld [vmem:[#allocation2 + $0x29] sm:$0xff] }
 0x661   : > { %3040 = vst [vmem:[#allocation2 + $0x40] sm:$0xff] %v10379_v47  ;;  %v6065_v15 = vpop.f32.mrb[47].mxu1  ;;  %3177 = vrot.lane.b32.xlu1 %v10379_v47, %s7184_s30 }
 0x662   : > { %v2837_v42 = vadd.f32 %v6063_v28, %v10346_v14  ;;  %v6066_v18 = vadd.f32 %v6065_v15, %v6064_v19 }
 0x664   : > { %vm2945_vm2 = vcmp.ge.f32.partialorder %v2837_v42, 0.0  ;;  %v2977_v54 = vmul.f32 0.2, %v2837_v42  ;;  %v2840_v33 = vadd.f32 %v6066_v18, %v10346_v14 }
 0x666   : > { %v10386_v50 = vsel %vm2945_vm2, %v2837_v42, %v2977_v54  ;;  %vm2946_vm4 = vcmp.ge.f32.partialorder %v2840_v33, 0.0  ;;  %v2978_v16 = vmul.f32 0.2, %v2840_v33  ;;  %v6067_v40 = vpop.f32.mrb[48].mxu1  ;;  %v10390_v10 = vld [vmem:[#allocation2 + $0x31] sm:$0xff] }
 0x667   : > { %3041 = vst [vmem:[#allocation2 + $0x48] sm:$0xff] %v10386_v50  ;;  %v6068_v30 = vpop.f32.mrb[49].mxu1  ;;  %v5623_v51 = vpack.c.bf16 %v10390_v10, %v10388_v13  ;;  %3179 = vrot.lane.b32.xlu0 %v10386_v50, %s7184_s30 }
 0x668   : > { %v10397_v58 = vsel %vm2946_vm4, %v2840_v33, %v2978_v16  ;;  %v6069_v49 = vadd.f32 %v6068_v30, %v6067_v40  ;;  %v6070_v60 = vpop.f32.mrb[50].mxu1 }
 0x669   : > { %3042 = vst [vmem:[#allocation2 + $0x50] sm:$0xff] %v10397_v58  ;;  %v6071_v4 = vpop.f32.mrb[51].mxu1  ;;  %5624 = vmatprep.mubr.msk.bf16.mxu0 %vm8432_vm3, %v5623_v51  ;;  %3181 = vrot.lane.b32.xlu1 %v10397_v58, %s7184_s30 }
 0x66a   : > { %v2845_v26 = vadd.f32 %v6069_v49, %v10346_v14  ;;  %v6072_v55 = vadd.f32 %v6071_v4, %v6070_v60 }
 0x66c   : > { %vm2947_vm5 = vcmp.ge.f32.partialorder %v2845_v26, 0.0  ;;  %v2979_v48 = vmul.f32 0.2, %v2845_v26  ;;  %v2848_v34 = vadd.f32 %v6072_v55, %v10346_v14 }
 0x66e   : > { %v10406_v52 = vsel %vm2947_vm5, %v2845_v26, %v2979_v48  ;;  %vm2948_vm6 = vcmp.ge.f32.partialorder %v2848_v34, 0.0  ;;  %v2980_v5 = vmul.f32 0.2, %v2848_v34  ;;  %v6073_v63 = vpop.f32.mrb[52].mxu1 }
 0x66f   : > { %3043 = vst [vmem:[#allocation2 + $0x58] sm:$0xff] %v10406_v52  ;;  %v6074_v35 = vpop.f32.mrb[53].mxu1  ;;  %3183 = vrot.lane.b32.xlu0 %v10406_v52, %s7184_s30 }
 0x670   : > { %v10411_v36 = vsel %vm2948_vm6, %v2848_v34, %v2980_v5  ;;  %v6075_v7 = vadd.f32 %v6074_v35, %v6073_v63  ;;  %v6076_v22 = vpop.f32.mrb[54].mxu1 }
 0x671   : > { %3044 = vst [vmem:[#allocation2 + $0x60] sm:$0xff] %v10411_v36  ;;  %v6077_v32 = vpop.f32.mrb[55].mxu1  ;;  %3185 = vrot.lane.b32.xlu1 %v10411_v36, %s7184_s30 }
 0x672   : > { %v2853_v59 = vadd.f32 %v6075_v7, %v10346_v14  ;;  %v6078_v53 = vadd.f32 %v6077_v32, %v6076_v22 }
 0x674   : > { %vm2949_vm7 = vcmp.ge.f32.partialorder %v2853_v59, 0.0  ;;  %v2981_v21 = vmul.f32 0.2, %v2853_v59  ;;  %v2856_v38 = vadd.f32 %v6078_v53, %v10346_v14 }
 0x676   : > { %v10418_v0 = vsel %vm2949_vm7, %v2853_v59, %v2981_v21  ;;  %vm2950_vm8 = vcmp.ge.f32.partialorder %v2856_v38, 0.0  ;;  %v2982_v62 = vmul.f32 0.2, %v2856_v38  ;;  %v6079_v37 = vpop.f32.mrb[56].mxu1 }
 0x677   : > { %3045 = vst [vmem:[#allocation2 + $0x68] sm:$0xff] %v10418_v0  ;;  %v6080_v20 = vpop.f32.mrb[57].mxu1  ;;  %3187 = vrot.lane.b32.xlu0 %v10418_v0, %s7184_s30 }
 0x678   : > { %v10423_v56 = vsel %vm2950_vm8, %v2856_v38, %v2982_v62  ;;  %v6081_v24 = vadd.f32 %v6080_v20, %v6079_v37  ;;  %v6082_v12 = vpop.f32.mrb[58].mxu1 }
 0x679   : > { %3046 = vst [vmem:[#allocation2 + $0x70] sm:$0xff] %v10423_v56  ;;  %v6083_v27 = vpop.f32.mrb[59].mxu1  ;;  %3189 = vrot.lane.b32.xlu1 %v10423_v56, %s7184_s30 }
 0x67a   : > { %v2861_v1 = vadd.f32 %v6081_v24, %v10346_v14  ;;  %v6084_v25 = vadd.f32 %v6083_v27, %v6082_v12 }
 0x67c   : > { %vm2951_vm9 = vcmp.ge.f32.partialorder %v2861_v1, 0.0  ;;  %v2983_v45 = vmul.f32 0.2, %v2861_v1  ;;  %v2864_v43 = vadd.f32 %v6084_v25, %v10346_v14 }
 0x67e   : > { %v10430_v29 = vsel %vm2951_vm9, %v2861_v1, %v2983_v45  ;;  %vm2952_vm10 = vcmp.ge.f32.partialorder %v2864_v43, 0.0  ;;  %v2984_v31 = vmul.f32 0.2, %v2864_v43  ;;  %v6085_v2 = vpop.f32.mrb[60].mxu1 }
 0x67f   : > { %3047 = vst [vmem:[#allocation2 + $0x78] sm:$0xff] %v10430_v29  ;;  %v6086_v39 = vpop.f32.mrb[61].mxu1  ;;  %3191 = vrot.lane.b32.xlu0 %v10430_v29, %s7184_s30 }
 0x680   : > { %v10435_v17 = vsel %vm2952_vm10, %v2864_v43, %v2984_v31  ;;  %v6087_v41 = vadd.f32 %v6086_v39, %v6085_v2  ;;  %v6088_v44 = vpop.f32.mrb[62].mxu1 }
 0x681   : > { %3048 = vst [vmem:[#allocation2 + $0x80] sm:$0xff] %v10435_v17  ;;  %v6089_v8 = vpop.f32.mrb[63].mxu1  ;;  %3193 = vrot.lane.b32.xlu1 %v10435_v17, %s7184_s30 }
 0x682   : > { %v2869_v6 = vadd.f32 %v6087_v41, %v10346_v14  ;;  %v6090_v11 = vadd.f32 %v6089_v8, %v6088_v44 }
 0x684   : > { %vm2953_vm11 = vcmp.ge.f32.partialorder %v2869_v6, 0.0  ;;  %v2985_v28 = vmul.f32 0.2, %v2869_v6  ;;  %v2872_v19 = vadd.f32 %v6090_v11, %v10346_v14 }
 0x686   : > { %v10442_v15 = vsel %vm2953_vm11, %v2869_v6, %v2985_v28  ;;  %vm2954_vm12 = vcmp.ge.f32.partialorder %v2872_v19, 0.0  ;;  %v2986_v42 = vmul.f32 0.2, %v2872_v19  ;;  %v6091_v18 = vpop.f32.mrb[64].mxu1 }
 0x687   : > { %3049 = vst [vmem:[#allocation2 + $0x88] sm:$0xff] %v10442_v15  ;;  %v6092_v54 = vpop.f32.mrb[65].mxu1  ;;  %3195 = vrot.lane.b32.xlu0 %v10442_v15, %s7184_s30 }
 0x688   : > { %v10447_v33 = vsel %vm2954_vm12, %v2872_v19, %v2986_v42  ;;  %v6093_v16 = vadd.f32 %v6092_v54, %v6091_v18  ;;  %v6094_v40 = vpop.f32.mrb[66].mxu1 }
 0x689   : > { %3050 = vst [vmem:[#allocation2 + $0x90] sm:$0xff] %v10447_v33  ;;  %v6095_v30 = vpop.f32.mrb[67].mxu1  ;;  %3197 = vrot.lane.b32.xlu1 %v10447_v33, %s7184_s30 }
 0x68a   : > { %v2877_v51 = vadd.f32 %v6093_v16, %v10346_v14  ;;  %v6096_v49 = vadd.f32 %v6095_v30, %v6094_v40 }
 0x68c   : > { %vm2955_vm13 = vcmp.ge.f32.partialorder %v2877_v51, 0.0  ;;  %v2987_v60 = vmul.f32 0.2, %v2877_v51  ;;  %v2880_v4 = vadd.f32 %v6096_v49, %v10346_v14 }
 0x68e   : > { %v10454_v26 = vsel %vm2955_vm13, %v2877_v51, %v2987_v60  ;;  %vm2956_vm14 = vcmp.ge.f32.partialorder %v2880_v4, 0.0  ;;  %v2988_v55 = vmul.f32 0.2, %v2880_v4  ;;  %v6097_v48 = vpop.f32.mrb[68].mxu1 }
 0x68f   : > { %3051 = vst [vmem:[#allocation2 + $0x98] sm:$0xff] %v10454_v26  ;;  %v6098_v34 = vpop.f32.mrb[69].mxu1  ;;  %3199 = vrot.lane.b32.xlu0 %v10454_v26, %s7184_s30 }
 0x690   : > { %v10459_v5 = vsel %vm2956_vm14, %v2880_v4, %v2988_v55  ;;  %v6099_v63 = vadd.f32 %v6098_v34, %v6097_v48  ;;  %v6100_v35 = vpop.f32.mrb[70].mxu1 }
 0x691   : > { %3052 = vst [vmem:[#allocation2 + $0xa0] sm:$0xff] %v10459_v5  ;;  %v6101_v7 = vpop.f32.mrb[71].mxu1  ;;  %3201 = vrot.lane.b32.xlu1 %v10459_v5, %s7184_s30 }
 0x692   : > { %v2885_v22 = vadd.f32 %v6099_v63, %v10346_v14  ;;  %v6102_v32 = vadd.f32 %v6101_v7, %v6100_v35 }
 0x694   : > { %vm2957_vm15 = vcmp.ge.f32.partialorder %v2885_v22, 0.0  ;;  %v2989_v59 = vmul.f32 0.2, %v2885_v22  ;;  %v2888_v53 = vadd.f32 %v6102_v32, %v10346_v14 }
 0x696   : > { %v10466_v21 = vsel %vm2957_vm15, %v2885_v22, %v2989_v59  ;;  %vm2958_vm2 = vcmp.ge.f32.partialorder %v2888_v53, 0.0  ;;  %v2990_v38 = vmul.f32 0.2, %v2888_v53  ;;  %v6103_v62 = vpop.f32.mrb[72].mxu1 }
 0x697   : > { %3053 = vst [vmem:[#allocation2 + $0xa8] sm:$0xff] %v10466_v21  ;;  %v6104_v37 = vpop.f32.mrb[73].mxu1  ;;  %3203 = vrot.lane.b32.xlu0 %v10466_v21, %s7184_s30 }
 0x698   : > { %v10471_v20 = vsel %vm2958_vm2, %v2888_v53, %v2990_v38  ;;  %v6105_v24 = vadd.f32 %v6104_v37, %v6103_v62  ;;  %v6106_v12 = vpop.f32.mrb[74].mxu1 }
 0x699   : > { %3054 = vst [vmem:[#allocation2 + $0xb0] sm:$0xff] %v10471_v20  ;;  %v6107_v27 = vpop.f32.mrb[75].mxu1  ;;  %3205 = vrot.lane.b32.xlu1 %v10471_v20, %s7184_s30 }
 0x69a   : > { %v2893_v1 = vadd.f32 %v6105_v24, %v10346_v14  ;;  %v6108_v25 = vadd.f32 %v6107_v27, %v6106_v12 }
 0x69c   : > { %vm2959_vm4 = vcmp.ge.f32.partialorder %v2893_v1, 0.0  ;;  %v2991_v45 = vmul.f32 0.2, %v2893_v1  ;;  %v2896_v43 = vadd.f32 %v6108_v25, %v10346_v14 }
 0x69e   : > { %v10478_v31 = vsel %vm2959_vm4, %v2893_v1, %v2991_v45  ;;  %vm2960_vm5 = vcmp.ge.f32.partialorder %v2896_v43, 0.0  ;;  %v2992_v2 = vmul.f32 0.2, %v2896_v43  ;;  %v6109_v39 = vpop.f32.mrb[76].mxu1 }
 0x69f   : > { %3055 = vst [vmem:[#allocation2 + $0xb8] sm:$0xff] %v10478_v31  ;;  %v6110_v41 = vpop.f32.mrb[77].mxu1  ;;  %3207 = vrot.lane.b32.xlu0 %v10478_v31, %s7184_s30 }
 0x6a0   : > { %v10483_v44 = vsel %vm2960_vm5, %v2896_v43, %v2992_v2  ;;  %v6111_v8 = vadd.f32 %v6110_v41, %v6109_v39  ;;  %v6112_v6 = vpop.f32.mrb[78].mxu1 }
 0x6a1   : > { %3056 = vst [vmem:[#allocation2 + $0xc0] sm:$0xff] %v10483_v44  ;;  %v6113_v11 = vpop.f32.mrb[79].mxu1  ;;  %3209 = vrot.lane.b32.xlu1 %v10483_v44, %s7184_s30 }
 0x6a2   : > { %v2901_v28 = vadd.f32 %v6111_v8, %v10346_v14  ;;  %v6114_v19 = vadd.f32 %v6113_v11, %v6112_v6 }
 0x6a4   : > { %vm2961_vm6 = vcmp.ge.f32.partialorder %v2901_v28, 0.0  ;;  %v2993_v42 = vmul.f32 0.2, %v2901_v28  ;;  %v2904_v18 = vadd.f32 %v6114_v19, %v10346_v14 }
 0x6a6   : > { %v10490_v54 = vsel %vm2961_vm6, %v2901_v28, %v2993_v42  ;;  %vm2962_vm7 = vcmp.ge.f32.partialorder %v2904_v18, 0.0  ;;  %v2994_v16 = vmul.f32 0.2, %v2904_v18  ;;  %v6115_v40 = vpop.f32.mrb[80].mxu1 }
 0x6a7   : > { %3057 = vst [vmem:[#allocation2 + $0xc8] sm:$0xff] %v10490_v54  ;;  %v6116_v30 = vpop.f32.mrb[81].mxu1  ;;  %3211 = vrot.lane.b32.xlu0 %v10490_v54, %s7184_s30 }
 0x6a8   : > { %v10495_v51 = vsel %vm2962_vm7, %v2904_v18, %v2994_v16  ;;  %v6117_v49 = vadd.f32 %v6116_v30, %v6115_v40  ;;  %v6118_v60 = vpop.f32.mrb[82].mxu1 }
 0x6a9   : > { %3058 = vst [vmem:[#allocation2 + $0xd0] sm:$0xff] %v10495_v51  ;;  %v6119_v4 = vpop.f32.mrb[83].mxu1  ;;  %3213 = vrot.lane.b32.xlu1 %v10495_v51, %s7184_s30 }
 0x6aa   : > { %v2909_v55 = vadd.f32 %v6117_v49, %v10346_v14  ;;  %v6120_v48 = vadd.f32 %v6119_v4, %v6118_v60  ;;  %v3259_v4 = vld [vmem:[#allocation2 + $0x9] sm:$0xff] }
 0x6ac   : > { %vm2963_vm8 = vcmp.ge.f32.partialorder %v2909_v55, 0.0  ;;  %v2995_v34 = vmul.f32 0.2, %v2909_v55  ;;  %v2912_v63 = vadd.f32 %v6120_v48, %v10346_v14  ;;  %v3260_v48 = vld [vmem:[#allocation2 + $0x11] sm:$0xff] }
 0x6ae   : > { %v10502_v35 = vsel %vm2963_vm8, %v2909_v55, %v2995_v34  ;;  %vm2964_vm9 = vcmp.ge.f32.partialorder %v2912_v63, 0.0  ;;  %v2996_v7 = vmul.f32 0.2, %v2912_v63  ;;  %v6121_v22 = vpop.f32.mrb[84].mxu1 }
 0x6af   : > { %3059 = vst [vmem:[#allocation2 + $0xd8] sm:$0xff] %v10502_v35  ;;  %v6122_v32 = vpop.f32.mrb[85].mxu1  ;;  %3215 = vrot.lane.b32.xlu0 %v10502_v35, %s7184_s30 }
 0x6b0   : > { %v10507_v59 = vsel %vm2964_vm9, %v2912_v63, %v2996_v7  ;;  %v6123_v53 = vadd.f32 %v6122_v32, %v6121_v22  ;;  %v6124_v38 = vpop.f32.mrb[86].mxu1 }
 0x6b1   : > { %3060 = vst [vmem:[#allocation2 + $0xe0] sm:$0xff] %v10507_v59  ;;  %v6125_v62 = vpop.f32.mrb[87].mxu1  ;;  %3217 = vrot.lane.b32.xlu1 %v10507_v59, %s7184_s30 }
 0x6b2   : > { %v2917_v37 = vadd.f32 %v6123_v53, %v10346_v14  ;;  %v6126_v24 = vadd.f32 %v6125_v62, %v6124_v38  ;;  %v3292_v53 = vsel %vm418_vm0, %v3260_v48, 0.0  ;;  %v3262_v38 = vld [vmem:[#allocation2 + $0x21] sm:$0xff] }
 0x6b3   : > { %v3278_v48 = vld [vmem:[#allocation2 + $0xa1] sm:$0xff] }
 0x6b4   : > { %vm2965_vm10 = vcmp.ge.f32.partialorder %v2917_v37, 0.0  ;;  %v2997_v12 = vmul.f32 0.2, %v2917_v37  ;;  %v2920_v27 = vadd.f32 %v6126_v24, %v10346_v14  ;;  %v10544_v24 = vld [vmem:[#allocation2 + $0x19] sm:$0xff] }
 0x6b6   : > { %v10514_v1 = vsel %vm2965_vm10, %v2917_v37, %v2997_v12  ;;  %vm2966_vm11 = vcmp.ge.f32.partialorder %v2920_v27, 0.0  ;;  %v2998_v25 = vmul.f32 0.2, %v2920_v27  ;;  %v6127_v45 = vpop.f32.mrb[88].mxu1 }
 0x6b7   : > { %3061 = vst [vmem:[#allocation2 + $0xe8] sm:$0xff] %v10514_v1  ;;  %v6128_v43 = vpop.f32.mrb[89].mxu1  ;;  %3219 = vrot.lane.b32.xlu0 %v10514_v1, %s7184_s30 }
 0x6b8   : > { %v10519_v2 = vsel %vm2966_vm11, %v2920_v27, %v2998_v25  ;;  %v6129_v39 = vadd.f32 %v6128_v43, %v6127_v45  ;;  %v6130_v41 = vpop.f32.mrb[90].mxu1  ;;  %v10563_v27 = vsel %vm418_vm0, %v10390_v10, 0.0  ;;  %v3266_v25 = vld [vmem:[#allocation2 + $0x41] sm:$0xff]  ;;  %v10567_v45 = vld [vmem:[#allocation2 + $0x39] sm:$0xff] }
 0x6b9   : > { %3062 = vst [vmem:[#allocation2 + $0xf0] sm:$0xff] %v10519_v2  ;;  %v6131_v8 = vpop.f32.mrb[91].mxu1  ;;  %3221 = vrot.lane.b32.xlu1 %v10519_v2, %s7184_s30  ;;  %v10573_v43 = vsel %vm418_vm0, %v3266_v25, 0.0 }
 0x6ba   : > { %v2925_v6 = vadd.f32 %v6129_v39, %v10346_v14  ;;  %v6132_v11 = vadd.f32 %v6131_v8, %v6130_v41  ;;  %v3268_v39 = vld [vmem:[#allocation2 + $0x51] sm:$0xff]  ;;  %v10577_v41 = vld [vmem:[#allocation2 + $0x49] sm:$0xff]  ;;  %v3270_v8 = vld [vmem:[#allocation2 + $0x61] sm:$0xff] }
 0x6bb   : > { %v10583_v10 = vsel %vm418_vm0, %v3268_v39, 0.0  ;;  %v3284_v39 = vld [vmem:[#allocation2 + $0xd1] sm:$0xff] }
 0x6bc   : > { %vm2967_vm12 = vcmp.ge.f32.partialorder %v2925_v6, 0.0  ;;  %v2999_v28 = vmul.f32 0.2, %v2925_v6  ;;  %v2928_v19 = vadd.f32 %v6132_v11, %v10346_v14  ;;  %v10593_v11 = vsel %vm418_vm0, %v3270_v8, 0.0  ;;  %v10657_v8 = vld [vmem:[#allocation2 + $0xc9] sm:$0xff] }
 0x6bd   : > { %13825 = vst [vmem:[#allocation100_spill] sm:$0xff] %v10657_v8 }
 0x6be   : > { %v10526_v42 = vsel %vm2967_vm12, %v2925_v6, %v2999_v28  ;;  %vm2968_vm13 = vcmp.ge.f32.partialorder %v2928_v19, 0.0  ;;  %v3000_v18 = vmul.f32 0.2, %v2928_v19  ;;  %v6133_v16 = vpop.f32.mrb[92].mxu1  ;;  %v10587_v6 = vld [vmem:[#allocation2 + $0x59] sm:$0xff]  ;;  %v3272_v28 = vld [vmem:[#allocation2 + $0x71] sm:$0xff] }
 0x6bf   : > { %3063 = vst [vmem:[#allocation2 + $0xf8] sm:$0xff] %v10526_v42  ;;  %v6134_v40 = vpop.f32.mrb[93].mxu1  ;;  %3223 = vrot.lane.b32.xlu0 %v10526_v42, %s7184_s30 }
 0x6c0   : > { %v10531_v30 = vsel %vm2968_vm13, %v2928_v19, %v3000_v18  ;;  %v6135_v49 = vadd.f32 %v6134_v40, %v6133_v16  ;;  %v6136_v60 = vpop.f32.mrb[94].mxu1  ;;  %v10597_v19 = vld [vmem:[#allocation2 + $0x69] sm:$0xff]  ;;  %v10603_v18 = vsel %vm418_vm0, %v3272_v28, 0.0  ;;  %v3274_v16 = vld [vmem:[#allocation2 + $0x81] sm:$0xff]  ;;  %v10607_v40 = vld [vmem:[#allocation2 + $0x79] sm:$0xff]  ;;  %v10659_v28 = vpop.permute.xlu0 %3163 }
 0x6c1   : > { %3064 = vst [vmem:[#allocation2 + $0x100] sm:$0xff] %v10531_v30  ;;  %v6137_v55 = vpop.f32.mrb[95].mxu1  ;;  %3225 = vrot.lane.b32.xlu1 %v10531_v30, %s7184_s30  ;;  %13826 = vst [vmem:[#allocation85_spill] sm:$0xff] %v10659_v28 }
 0x6c2   : > { %v2933_v34 = vadd.f32 %v6135_v49, %v10346_v14  ;;  %v6138_v63 = vadd.f32 %v6137_v55, %v6136_v60  ;;  %v10613_v49 = vsel %vm418_vm0, %v3274_v16, 0.0  ;;  %v3276_v60 = vld [vmem:[#allocation2 + $0x91] sm:$0xff]  ;;  %v10665_v16 = vsel %vm418_vm0, %v3284_v39, 0.0 }
 0x6c3   : > { %3323 = vrot.lane.b32.xlu0 %v3259_v4, %s7185_s9  ;;  %v10617_v4 = vld [vmem:[#allocation2 + $0x89] sm:$0xff]  ;;  %v10623_v55 = vsel %vm418_vm0, %v3276_v60, 0.0  ;;  %13827 = vst [vmem:[#allocation43_spill] sm:$0xff] %v10665_v16  ;;  %v10667_v60 = vpop.permute.xlu1 %3165 }
 0x6c4   : > { %vm2969_vm14 = vcmp.ge.f32.partialorder %v2933_v34, 0.0  ;;  %v3001_v7 = vmul.f32 0.2, %v2933_v34  ;;  %v2936_v22 = vadd.f32 %v6138_v63, %v10346_v14  ;;  %v10553_v14 = vsel %vm418_vm0, %v3262_v38, 0.0  ;;  %v3282_v38 = vld [vmem:[#allocation2 + $0xc1] sm:$0xff]  ;;  %13828 = vst [vmem:[#allocation155_spill] sm:$0xff] %v10667_v60  ;;  %v10679_v57 = vpop.permute.xlu0 %3167 }
 0x6c5   : > { %3325 = vrot.lane.b32.xlu1 %v3292_v53, %s7185_s9  ;;  %v10633_v63 = vsel %vm418_vm0, %v3278_v48, 0.0  ;;  %v10653_v25 = vsel %vm418_vm0, %v3282_v38, 0.0  ;;  %v3286_v48 = vld [vmem:[#allocation2 + $0xe1] sm:$0xff]  ;;  %13831 = vst [vmem:[#allocation88_spill] sm:$0xff] %v10679_v57  ;;  %v10683_v60 = vld [vmem:[#allocation2 + $0xe9] sm:$0xff] }
 0x6c6   : > { %v10542_v62 = vsel %vm2969_vm14, %v2933_v34, %v3001_v7  ;;  %vm2970_vm15 = vcmp.ge.f32.partialorder %v2936_v22, 0.0  ;;  %v3002_v37 = vmul.f32 0.2, %v2936_v22  ;;  %v10627_v34 = vld [vmem:[#allocation2 + $0x99] sm:$0xff]  ;;  %v3280_v7 = vld [vmem:[#allocation2 + $0xb1] sm:$0xff]  ;;  %13824 = vst [vmem:[#allocation52_spill] sm:$0xff] %v10653_v25 }
 0x6c7   : > { %3065 = vst [vmem:[#allocation2 + $0x108] sm:$0xff] %v10542_v62  ;;  %3327 = vrot.lane.b32.xlu0 %v10544_v24, %s7185_s9  ;;  %v10643_v53 = vsel %vm418_vm0, %v3280_v7, 0.0  ;;  %v10671_v7 = vld [vmem:[#allocation2 + $0xd9] sm:$0xff]  ;;  %v10677_v38 = vsel %vm418_vm0, %v3286_v48, 0.0  ;;  %v3288_v39 = vld [vmem:[#allocation2 + $0xf1] sm:$0xff]  ;;  %13832 = vst [vmem:[#allocation93_spill] sm:$0xff] %v10683_v60  ;;  %v10685_v28 = vpop.permute.xlu1 %3169 }
 0x6c8   : > { %v10549_v12 = vsel %vm2970_vm15, %v2936_v22, %v3002_v37  ;;  %v10637_v22 = vld [vmem:[#allocation2 + $0xa9] sm:$0xff]  ;;  %v10647_v37 = vld [vmem:[#allocation2 + $0xb9] sm:$0xff]  ;;  %13829 = vst [vmem:[#allocation97_spill] sm:$0xff] %v10671_v7  ;;  %13830 = vst [vmem:[#allocation38_spill] sm:$0xff] %v10677_v38 }
 0x6c9   : > { %3066 = vst [vmem:[#allocation2 + $0x110] sm:$0xff] %v10549_v12  ;;  %3329 = vrot.lane.b32.xlu1 %v10553_v14, %s7185_s9  ;;  %13833 = vst [vmem:[#allocation36_spill] sm:$0xff] %v10685_v28  ;;  %v10697_v57 = vld [vmem:[#allocation2 + $0xf9] sm:$0xff] }
 0x6cb   : > { %3331 = vrot.lane.b32.xlu0 %v10388_v13, %s7185_s9 }
 0x6cd   : > { %3333 = vrot.lane.b32.xlu1 %v10563_v27, %s7185_s9 }
 0x6ce   : > { %v3290_v48 = vld [vmem:[#allocation2 + $0x101] sm:$0xff] }
 0x6cf   : > { %3335 = vrot.lane.b32.xlu0 %v10567_v45, %s7185_s9  ;;  %v10705_v28 = vsel %vm418_vm0, %v3290_v48, 0.0 }
 0x6d1   : > { %3337 = vrot.lane.b32.xlu1 %v10573_v43, %s7185_s9 }
 0x6d3   : > { %3339 = vrot.lane.b32.xlu0 %v10577_v41, %s7185_s9 }
 0x6d5   : > { %3341 = vrot.lane.b32.xlu1 %v10583_v10, %s7185_s9 }
 0x6d7   : > { %3343 = vrot.lane.b32.xlu0 %v10587_v6, %s7185_s9 }
 0x6d9   : > { %3345 = vrot.lane.b32.xlu1 %v10593_v11, %s7185_s9 }
 0x6db   : > { %3347 = vrot.lane.b32.xlu0 %v10597_v19, %s7185_s9 }
 0x6dd   : > { %3349 = vrot.lane.b32.xlu1 %v10603_v18, %s7185_s9 }
 0x6df   : > { %3351 = vrot.lane.b32.xlu0 %v10607_v40, %s7185_s9 }
 0x6e1   : > { %3353 = vrot.lane.b32.xlu1 %v10613_v49, %s7185_s9 }
 0x6e3   : > { %3355 = vrot.lane.b32.xlu0 %v10617_v4, %s7185_s9 }
 0x6e5   : > { %3357 = vrot.lane.b32.xlu1 %v10623_v55, %s7185_s9 }
 0x6e7   : > { %3359 = vrot.lane.b32.xlu0 %v10627_v34, %s7185_s9 }
 0x6e9   : > { %3361 = vrot.lane.b32.xlu1 %v10633_v63, %s7185_s9 }
 0x6eb   : > { %3363 = vrot.lane.b32.xlu0 %v10637_v22, %s7185_s9 }
 0x6ed   : > { %3365 = vrot.lane.b32.xlu1 %v10643_v53, %s7185_s9 }
 0x6ef   : > { %3367 = vrot.lane.b32.xlu0 %v10647_v37, %s7185_s9 }
 0x6f1   : > { %3369 = vrot.lane.b32.xlu1 %v10653_v25, %s7185_s9 }
 0x6f3   : > { %3371 = vrot.lane.b32.xlu0 %v10657_v8, %s7185_s9  ;;  %v10699_v8 = vpop.permute.xlu1 %3173 }
 0x6f4   : > { %13836 = vst [vmem:[#allocation42_spill] sm:$0xff] %v10699_v8  ;;  %v10719_v8 = vld [vmem:[#allocation2 + $0x1f] sm:$0xff] }
 0x6f5   : > { %3373 = vrot.lane.b32.xlu1 %v10665_v16, %s7185_s9  ;;  %v10693_v16 = vpop.permute.xlu0 %3171  ;;  %13841 = vst [vmem:[#allocation34_spill] sm:$0xff] %v10719_v8 }
 0x6f6   : > { %13835 = vst [vmem:[#allocation108_spill] sm:$0xff] %v10693_v16 }
 0x6f7   : > { %3375 = vrot.lane.b32.xlu0 %v10671_v7, %s7185_s9  ;;  %v10691_v7 = vsel %vm418_vm0, %v3288_v39, 0.0  ;;  %v10715_v25 = vpop.permute.xlu1 %3177 }
 0x6f8   : > { %13834 = vst [vmem:[#allocation164_spill] sm:$0xff] %v10691_v7  ;;  %13840 = vst [vmem:[#allocation46_spill] sm:$0xff] %v10715_v25  ;;  %v10733_v25 = vld [vmem:[#allocation2 + $0x2f] sm:$0xff] }
 0x6f9   : > { %3377 = vrot.lane.b32.xlu1 %v10677_v38, %s7185_s9  ;;  %v3069_v38 = vld [vmem:[#allocation2 + $0x17] sm:$0xff]  ;;  %v10707_v39 = vpop.permute.xlu0 %3175  ;;  %13845 = vst [vmem:[#allocation53_spill] sm:$0xff] %v10733_v25 }
 0x6fa   : > { %13837 = vst [vmem:[#allocation39_spill] sm:$0xff] %v10707_v39  ;;  %v3073_v39 = vld [vmem:[#allocation2 + $0x37] sm:$0xff] }
 0x6fb   : > { %3379 = vrot.lane.b32.xlu0 %v10683_v60, %s7185_s9  ;;  %v3071_v60 = vld [vmem:[#allocation2 + $0x27] sm:$0xff] }
 0x6fc   : > { %v10727_v48 = vsel %vm415_vm1, %v3071_v60, 0.0 }
 0x6fd   : > { %3381 = vrot.lane.b32.xlu1 %v10691_v7, %s7185_s9  ;;  %v10713_v7 = vsel %vm415_vm1, %v3069_v38, 0.0  ;;  %v10721_v32 = vpop.permute.xlu0 %3179  ;;  %13843 = vst [vmem:[#allocation211_spill] sm:$0xff] %v10727_v48  ;;  %v10729_v38 = vpop.permute.xlu1 %3181 }
 0x6fe   : > { %13839 = vst [vmem:[#allocation203_spill] sm:$0xff] %v10713_v7  ;;  %13842 = vst [vmem:[#allocation103_spill] sm:$0xff] %v10721_v32  ;;  %v10741_v32 = vsel %vm415_vm1, %v3073_v39, 0.0 }
 0x6ff   : > { %3383 = vrot.lane.b32.xlu0 %v10697_v57, %s7185_s9  ;;  %13844 = vst [vmem:[#allocation41_spill] sm:$0xff] %v10729_v38  ;;  %13847 = vst [vmem:[#allocation219_spill] sm:$0xff] %v10741_v32  ;;  %v10747_v38 = vld [vmem:[#allocation2 + $0x3f] sm:$0xff] }
 0x700   : > { %13849 = vst [vmem:[#allocation95_spill] sm:$0xff] %v10747_v38 }
 0x701   : > { %3385 = vrot.lane.b32.xlu1 %v10705_v28, %s7185_s9  ;;  %v10743_v60 = vpop.permute.xlu1 %3185  ;;  %s7194_s9 = smov 3  }
 0x702   : > { %13848 = vst [vmem:[#allocation117_spill] sm:$0xff] %v10743_v60  ;;  %v10761_v60 = vld [vmem:[#allocation2 + $0x4f] sm:$0xff] }
 0x703   : > { %3423 = vrot.lane.b32.xlu0 %v10713_v7, %s7186_s13  ;;  %v10735_v7 = vpop.permute.xlu0 %3183  ;;  %13853 = vst [vmem:[#allocation123_spill] sm:$0xff] %v10761_v60 }
 0x704   : > { %13846 = vst [vmem:[#allocation119_spill] sm:$0xff] %v10735_v7 }
 0x705   : > { %3425 = vrot.lane.b32.xlu1 %v10719_v8, %s7186_s13  ;;  %v3075_v8 = vld [vmem:[#allocation2 + $0x47] sm:$0xff]  ;;  %v10757_v39 = vpop.permute.xlu1 %3189 }
 0x706   : > { %v10755_v7 = vsel %vm415_vm1, %v3075_v8, 0.0  ;;  %13852 = vst [vmem:[#allocation220_spill] sm:$0xff] %v10757_v39  ;;  %v10775_v39 = vld [vmem:[#allocation2 + $0x5f] sm:$0xff] }
 0x707   : > { %3427 = vrot.lane.b32.xlu0 %v10727_v48, %s7186_s13  ;;  %v10749_v48 = vpop.permute.xlu0 %3187  ;;  %13851 = vst [vmem:[#allocation179_spill] sm:$0xff] %v10755_v7  ;;  %13857 = vst [vmem:[#allocation132_spill] sm:$0xff] %v10775_v39 }
 0x708   : > { %13850 = vst [vmem:[#allocation131_spill] sm:$0xff] %v10749_v48 }
 0x709   : > { %3429 = vrot.lane.b32.xlu1 %v10733_v25, %s7186_s13  ;;  %v3077_v25 = vld [vmem:[#allocation2 + $0x57] sm:$0xff]  ;;  %v10771_v8 = vpop.permute.xlu1 %3193 }
 0x70a   : > { %v10769_v48 = vsel %vm415_vm1, %v3077_v25, 0.0  ;;  %13856 = vst [vmem:[#allocation105_spill] sm:$0xff] %v10771_v8  ;;  %v10789_v8 = vld [vmem:[#allocation2 + $0x6f] sm:$0xff] }
 0x70b   : > { %3431 = vrot.lane.b32.xlu0 %v10741_v32, %s7186_s13  ;;  %v10763_v32 = vpop.permute.xlu0 %3191  ;;  %13855 = vst [vmem:[#allocation187_spill] sm:$0xff] %v10769_v48  ;;  %13861 = vst [vmem:[#allocation26_spill] sm:$0xff] %v10789_v8 }
 0x70c   : > { %13854 = vst [vmem:[#allocation125_spill] sm:$0xff] %v10763_v32 }
 0x70d   : > { %3433 = vrot.lane.b32.xlu1 %v10747_v38, %s7186_s13  ;;  %v3079_v38 = vld [vmem:[#allocation2 + $0x67] sm:$0xff]  ;;  %v10785_v25 = vpop.permute.xlu1 %3197 }
 0x70e   : > { %v10783_v32 = vsel %vm415_vm1, %v3079_v38, 0.0  ;;  %13860 = vst [vmem:[#allocation212_spill] sm:$0xff] %v10785_v25  ;;  %v10803_v25 = vld [vmem:[#allocation2 + $0x7f] sm:$0xff] }
 0x70f   : > { %3435 = vrot.lane.b32.xlu0 %v10755_v7, %s7186_s13  ;;  %v10777_v7 = vpop.permute.xlu0 %3195  ;;  %13859 = vst [vmem:[#allocation50_spill] sm:$0xff] %v10783_v32  ;;  %13865 = vst [vmem:[#allocation111_spill] sm:$0xff] %v10803_v25 }
 0x710   : > { %13858 = vst [vmem:[#allocation75_spill] sm:$0xff] %v10777_v7 }
 0x711   : > { %3437 = vrot.lane.b32.xlu1 %v10761_v60, %s7186_s13  ;;  %v3081_v60 = vld [vmem:[#allocation2 + $0x77] sm:$0xff]  ;;  %v10799_v38 = vpop.permute.xlu1 %3201 }
 0x712   : > { %v10797_v7 = vsel %vm415_vm1, %v3081_v60, 0.0  ;;  %13864 = vst [vmem:[#allocation208_spill] sm:$0xff] %v10799_v38  ;;  %v10817_v38 = vld [vmem:[#allocation2 + $0x8f] sm:$0xff] }
 0x713   : > { %3439 = vrot.lane.b32.xlu0 %v10769_v48, %s7186_s13  ;;  %v10791_v48 = vpop.permute.xlu0 %3199  ;;  %13863 = vst [vmem:[#allocation56_spill] sm:$0xff] %v10797_v7  ;;  %13869 = vst [vmem:[#allocation27_spill] sm:$0xff] %v10817_v38 }
 0x714   : > { %13862 = vst [vmem:[#allocation64_spill] sm:$0xff] %v10791_v48 }
 0x715   : > { %3441 = vrot.lane.b32.xlu1 %v10775_v39, %s7186_s13  ;;  %v3083_v39 = vld [vmem:[#allocation2 + $0x87] sm:$0xff]  ;;  %v10813_v60 = vpop.permute.xlu1 %3205 }
 0x716   : > { %v10811_v48 = vsel %vm415_vm1, %v3083_v39, 0.0  ;;  %13868 = vst [vmem:[#allocation202_spill] sm:$0xff] %v10813_v60  ;;  %v10831_v60 = vld [vmem:[#allocation2 + $0x9f] sm:$0xff] }
 0x717   : > { %3443 = vrot.lane.b32.xlu0 %v10783_v32, %s7186_s13  ;;  %v10805_v32 = vpop.permute.xlu0 %3203  ;;  %13867 = vst [vmem:[#allocation200_spill] sm:$0xff] %v10811_v48  ;;  %13873 = vst [vmem:[#allocation79_spill] sm:$0xff] %v10831_v60 }
 0x718   : > { %13866 = vst [vmem:[#allocation92_spill] sm:$0xff] %v10805_v32 }
 0x719   : > { %3445 = vrot.lane.b32.xlu1 %v10789_v8, %s7186_s13  ;;  %v3085_v8 = vld [vmem:[#allocation2 + $0x97] sm:$0xff]  ;;  %v10827_v39 = vpop.permute.xlu1 %3209 }
 0x71a   : > { %v10825_v32 = vsel %vm415_vm1, %v3085_v8, 0.0  ;;  %13872 = vst [vmem:[#allocation124_spill] sm:$0xff] %v10827_v39  ;;  %v10845_v39 = vld [vmem:[#allocation2 + $0xaf] sm:$0xff] }
 0x71b   : > { %3447 = vrot.lane.b32.xlu0 %v10797_v7, %s7186_s13  ;;  %v10819_v7 = vpop.permute.xlu0 %3207  ;;  %13871 = vst [vmem:[#allocation82_spill] sm:$0xff] %v10825_v32  ;;  %13877 = vst [vmem:[#allocation65_spill] sm:$0xff] %v10845_v39 }
 0x71c   : > { %13870 = vst [vmem:[#allocation133_spill] sm:$0xff] %v10819_v7 }
 0x71d   : > { %3449 = vrot.lane.b32.xlu1 %v10803_v25, %s7186_s13  ;;  %v3087_v25 = vld [vmem:[#allocation2 + $0xa7] sm:$0xff]  ;;  %v10841_v8 = vpop.permute.xlu1 %3213 }
 0x71e   : > { %v10839_v7 = vsel %vm415_vm1, %v3087_v25, 0.0  ;;  %13876 = vst [vmem:[#allocation54_spill] sm:$0xff] %v10841_v8  ;;  %v10859_v8 = vld [vmem:[#allocation2 + $0xbf] sm:$0xff] }
 0x71f   : > { %3451 = vrot.lane.b32.xlu0 %v10811_v48, %s7186_s13  ;;  %v10833_v48 = vpop.permute.xlu0 %3211  ;;  %13875 = vst [vmem:[#allocation30_spill] sm:$0xff] %v10839_v7  ;;  %13881 = vst [vmem:[#allocation78_spill] sm:$0xff] %v10859_v8 }
 0x720   : > { %13874 = vst [vmem:[#allocation136_spill] sm:$0xff] %v10833_v48 }
 0x721   : > { %3453 = vrot.lane.b32.xlu1 %v10817_v38, %s7186_s13  ;;  %v3089_v38 = vld [vmem:[#allocation2 + $0xb7] sm:$0xff] }
 0x722   : > { %v10853_v48 = vsel %vm415_vm1, %v3089_v38, 0.0 }
 0x723   : > { %3455 = vrot.lane.b32.xlu0 %v10825_v32, %s7186_s13  ;;  %v10847_v32 = vpop.permute.xlu0 %3215  ;;  %13879 = vst [vmem:[#allocation32_spill] sm:$0xff] %v10853_v48  ;;  %v10855_v25 = vpop.permute.xlu1 %3217 }
 0x724   : > { %13878 = vst [vmem:[#allocation216_spill] sm:$0xff] %v10847_v32  ;;  %13880 = vst [vmem:[#allocation72_spill] sm:$0xff] %v10855_v25  ;;  %v10873_v25 = vld [vmem:[#allocation2 + $0xcf] sm:$0xff] }
 0x725   : > { %3457 = vrot.lane.b32.xlu1 %v10831_v60, %s7186_s13  ;;  %v3091_v60 = vld [vmem:[#allocation2 + $0xc7] sm:$0xff]  ;;  %13885 = vst [vmem:[#allocation57_spill] sm:$0xff] %v10873_v25 }
 0x726   : > { %v10867_v32 = vsel %vm415_vm1, %v3091_v60, 0.0 }
 0x727   : > { %3459 = vrot.lane.b32.xlu0 %v10839_v7, %s7186_s13  ;;  %13883 = vst [vmem:[#allocation210_spill] sm:$0xff] %v10867_v32 }
 0x729   : > { %3461 = vrot.lane.b32.xlu1 %v10845_v39, %s7186_s13  ;;  %v10861_v7 = vpop.permute.xlu0 %3219  ;;  %v3093_v39 = vld [vmem:[#allocation2 + $0xd7] sm:$0xff] }
 0x72a   : > { %13882 = vst [vmem:[#allocation35_spill] sm:$0xff] %v10861_v7  ;;  %v10881_v7 = vsel %vm415_vm1, %v3093_v39, 0.0 }
 0x72b   : > { %3463 = vrot.lane.b32.xlu0 %v10853_v48, %s7186_s13  ;;  %v10869_v38 = vpop.permute.xlu1 %3221  ;;  %13887 = vst [vmem:[#allocation29_spill] sm:$0xff] %v10881_v7 }
 0x72c   : > { %13884 = vst [vmem:[#allocation182_spill] sm:$0xff] %v10869_v38  ;;  %v10887_v38 = vld [vmem:[#allocation2 + $0xdf] sm:$0xff] }
 0x72d   : > { %3465 = vrot.lane.b32.xlu1 %v10859_v8, %s7186_s13  ;;  %v3095_v8 = vld [vmem:[#allocation2 + $0xe7] sm:$0xff]  ;;  %13889 = vst [vmem:[#allocation37_spill] sm:$0xff] %v10887_v38 }
 0x72f   : > { %3467 = vrot.lane.b32.xlu0 %v10867_v32, %s7186_s13 }
 0x731   : > { %v10875_v48 = vpop.permute.xlu0 %3223  ;;  %3469 = vrot.lane.b32.xlu1 %v10873_v25, %s7186_s13  ;;  %v3097_v25 = vld [vmem:[#allocation2 + $0xf7] sm:$0xff] }
 0x732   : > { %13886 = vst [vmem:[#allocation139_spill] sm:$0xff] %v10875_v48  ;;  %v10895_v48 = vsel %vm415_vm1, %v3095_v8, 0.0  ;;  %v3419_v8 = vld [vmem:[#allocation2 + $0x107] sm:$0xff] }
 0x733   : > { %v10883_v60 = vpop.permute.xlu1 %3225  ;;  %3471 = vrot.lane.b32.xlu0 %v10881_v7, %s7186_s13  ;;  %13891 = vst [vmem:[#allocation144_spill] sm:$0xff] %v10895_v48 }
 0x734   : > { %13888 = vst [vmem:[#allocation58_spill] sm:$0xff] %v10883_v60  ;;  %v10901_v60 = vld [vmem:[#allocation2 + $0xef] sm:$0xff] }
 0x735   : > { %v10889_v32 = vpop.permute.xlu0 %3323  ;;  %3473 = vrot.lane.b32.xlu1 %v10887_v38, %s7186_s13  ;;  %13893 = vst [vmem:[#allocation74_spill] sm:$0xff] %v10901_v60 }
 0x736   : > { %13890 = vst [vmem:[#allocation120_spill] sm:$0xff] %v10889_v32  ;;  %v10909_v32 = vsel %vm415_vm1, %v3097_v25, 0.0  ;;  %v10929_v25 = vld [vmem:[#allocation2 + $0x10f] sm:$0xff] }
 0x737   : > { %v10897_v39 = vpop.permute.xlu1 %3325  ;;  %3475 = vrot.lane.b32.xlu0 %v10895_v48, %s7186_s13  ;;  %13895 = vst [vmem:[#allocation94_spill] sm:$0xff] %v10909_v32 }
 0x738   : > { %13892 = vst [vmem:[#allocation31_spill] sm:$0xff] %v10897_v39  ;;  %v10915_v39 = vld [vmem:[#allocation2 + $0xff] sm:$0xff] }
 0x739   : > { %v10903_v7 = vpop.permute.xlu0 %3327  ;;  %3477 = vrot.lane.b32.xlu1 %v10901_v60, %s7186_s13 }
 0x73a   : > { %13894 = vst [vmem:[#allocation130_spill] sm:$0xff] %v10903_v7  ;;  %v10923_v7 = vsel %vm415_vm1, %v3419_v8, 0.0 }
 0x73b   : > { %v10911_v38 = vpop.permute.xlu1 %3329  ;;  %3479 = vrot.lane.b32.xlu0 %v10909_v32, %s7186_s13 }
 0x73c   : > { %13896 = vst [vmem:[#allocation122_spill] sm:$0xff] %v10911_v38 }
 0x73d   : > { %v10917_v48 = vpop.permute.xlu0 %3331  ;;  %3481 = vrot.lane.b32.xlu1 %v10915_v39, %s7186_s13 }
 0x73e   : > { %13897 = vst [vmem:[#allocation73_spill] sm:$0xff] %v10917_v48 }
 0x73f   : > { %v10925_v60 = vpop.permute.xlu1 %3333  ;;  %3483 = vrot.lane.b32.xlu0 %v10923_v7, %s7186_s13 }
 0x740   : > { %13898 = vst [vmem:[#allocation48_spill] sm:$0xff] %v10925_v60 }
 0x741   : > { %v10931_v38 = vpop.permute.xlu0 %3335  ;;  %3485 = vrot.lane.b32.xlu1 %v10929_v25, %s7186_s13  ;;  %s7195_s13 = smov 2  }
 0x742   : > { %13899 = vst [vmem:[#allocation80_spill] sm:$0xff] %v10931_v38 }
 0x743   : > { %v10935_v48 = vpop.permute.xlu1 %3337  ;;  %3521 = vrot.lane.b32.xlu0 %v10350_v9, %s7187_s15 }
 0x745   : > { %v10939_v16 = vpop.permute.xlu0 %3339  ;;  %3523 = vrot.lane.b32.xlu1 %v10355_v23, %s7187_s15 }
 0x746   : > { %13900 = vst [vmem:[#allocation89_spill] sm:$0xff] %v10939_v16 }
 0x747   : > { %v10943_v8 = vpop.permute.xlu1 %3341  ;;  %3525 = vrot.lane.b32.xlu0 %v10362_v46, %s7187_s15 }
 0x748   : > { %13901 = vst [vmem:[#allocation106_spill] sm:$0xff] %v10943_v8 }
 0x749   : > { %v10947_v60 = vpop.permute.xlu0 %3343  ;;  %3527 = vrot.lane.b32.xlu1 %v10367_v61, %s7187_s15 }
 0x74a   : > { %13902 = vst [vmem:[#allocation66_spill] sm:$0xff] %v10947_v60  ;;  %v14051_v60 = vld [vmem:[#allocation161_spill] sm:$0xff] }
 0x74b   : > { %v10951_v38 = vpop.permute.xlu1 %3345  ;;  %3529 = vrot.lane.b32.xlu0 %v10374_v3, %s7187_s15 }
 0x74c   : > { %13903 = vst [vmem:[#allocation51_spill] sm:$0xff] %v10951_v38 }
 0x74d   : > { %v10955_v9 = vpop.permute.xlu0 %3347  ;;  %3531 = vrot.lane.b32.xlu1 %v10379_v47, %s7187_s15 }
 0x74e   : > { %13904 = vst [vmem:[#allocation28_spill] sm:$0xff] %v10955_v9 }
 0x74f   : > { %v10959_v23 = vpop.permute.xlu1 %3349  ;;  %3533 = vrot.lane.b32.xlu0 %v10386_v50, %s7187_s15 }
 0x750   : > { %13905 = vst [vmem:[#allocation62_spill] sm:$0xff] %v10959_v23  ;;  %v14043_v23 = vld [vmem:[#allocation153_spill] sm:$0xff] }
 0x751   : > { %v10963_v46 = vpop.permute.xlu0 %3351  ;;  %3535 = vrot.lane.b32.xlu1 %v10397_v58, %s7187_s15 }
 0x752   : > { %13906 = vst [vmem:[#allocation128_spill] sm:$0xff] %v10963_v46 }
 0x753   : > { %v10967_v61 = vpop.permute.xlu1 %3353  ;;  %3537 = vrot.lane.b32.xlu0 %v10406_v52, %s7187_s15 }
 0x754   : > { %13907 = vst [vmem:[#allocation140_spill] sm:$0xff] %v10967_v61  ;;  %v6923_v61 = vld [vmem:[#allocation2 + $0x48] sm:$0xff] }
 0x755   : > { %v10971_v3 = vpop.permute.xlu0 %3355  ;;  %3539 = vrot.lane.b32.xlu1 %v10411_v36, %s7187_s15 }
 0x756   : > { %13908 = vst [vmem:[#allocation91_spill] sm:$0xff] %v10971_v3 }
 0x757   : > { %v10975_v47 = vpop.permute.xlu1 %3357  ;;  %3541 = vrot.lane.b32.xlu0 %v10418_v0, %s7187_s15 }
 0x758   : > { %13909 = vst [vmem:[#allocation55_spill] sm:$0xff] %v10975_v47  ;;  %v6722_v47 = vld [vmem:[#allocation9 + $0x60] sm:$0xff]  }
 0x759   : > { %v10979_v50 = vpop.permute.xlu0 %3359  ;;  %3543 = vrot.lane.b32.xlu1 %v10423_v56, %s7187_s15 }
 0x75a   : > { %13910 = vst [vmem:[#allocation175_spill] sm:$0xff] %v10979_v50 }
 0x75b   : > { %v10983_v58 = vpop.permute.xlu1 %3361  ;;  %3545 = vrot.lane.b32.xlu0 %v10430_v29, %s7187_s15 }
 0x75c   : > { %13911 = vst [vmem:[#allocation68_spill] sm:$0xff] %v10983_v58 }
 0x75d   : > { %v10987_v52 = vpop.permute.xlu0 %3363  ;;  %3547 = vrot.lane.b32.xlu1 %v10435_v17, %s7187_s15 }
 0x75e   : > { %13912 = vst [vmem:[#allocation114_spill] sm:$0xff] %v10987_v52 }
 0x75f   : > { %v10991_v36 = vpop.permute.xlu1 %3365  ;;  %3549 = vrot.lane.b32.xlu0 %v10442_v15, %s7187_s15 }
 0x760   : > { %13913 = vst [vmem:[#allocation190_spill] sm:$0xff] %v10991_v36  ;;  %v13970_v36 = vld [vmem:[#allocation132_spill] sm:$0xff] }
 0x761   : > { %v10995_v0 = vpop.permute.xlu0 %3367  ;;  %3551 = vrot.lane.b32.xlu1 %v10447_v33, %s7187_s15 }
 0x762   : > { %13914 = vst [vmem:[#allocation201_spill] sm:$0xff] %v10995_v0  ;;  %v6718_v0 = vld [vmem:[#allocation9 + $0x50] sm:$0xff]  }
 0x763   : > { %v10999_v56 = vpop.permute.xlu1 %3369  ;;  %3553 = vrot.lane.b32.xlu0 %v10454_v26, %s7187_s15 }
 0x764   : > { %13915 = vst [vmem:[#allocation151_spill] sm:$0xff] %v10999_v56 }
 0x765   : > { %v11003_v29 = vpop.permute.xlu0 %3371  ;;  %3555 = vrot.lane.b32.xlu1 %v10459_v5, %s7187_s15 }
 0x766   : > { %13916 = vst [vmem:[#allocation40_spill] sm:$0xff] %v11003_v29 }
 0x767   : > { %v11007_v17 = vpop.permute.xlu1 %3373  ;;  %3557 = vrot.lane.b32.xlu0 %v10466_v21, %s7187_s15 }
 0x768   : > { %13917 = vst [vmem:[#allocation142_spill] sm:$0xff] %v11007_v17 }
 0x769   : > { %v11011_v15 = vpop.permute.xlu0 %3375  ;;  %3559 = vrot.lane.b32.xlu1 %v10471_v20, %s7187_s15 }
 0x76a   : > { %13918 = vst [vmem:[#allocation104_spill] sm:$0xff] %v11011_v15 }
 0x76b   : > { %v11015_v33 = vpop.permute.xlu1 %3377  ;;  %3561 = vrot.lane.b32.xlu0 %v10478_v31, %s7187_s15 }
 0x76c   : > { %13919 = vst [vmem:[#allocation71_spill] sm:$0xff] %v11015_v33  ;;  %v13947_v33 = vld [vmem:[#allocation100_spill] sm:$0xff] }
 0x76d   : > { %v11019_v26 = vpop.permute.xlu0 %3379  ;;  %3563 = vrot.lane.b32.xlu1 %v10483_v44, %s7187_s15 }
 0x76e   : > { %13920 = vst [vmem:[#allocation138_spill] sm:$0xff] %v11019_v26 }
 0x76f   : > { %v11023_v5 = vpop.permute.xlu1 %3381  ;;  %3565 = vrot.lane.b32.xlu0 %v10490_v54, %s7187_s15 }
 0x770   : > { %13921 = vst [vmem:[#allocation45_spill] sm:$0xff] %v11023_v5 }
 0x771   : > { %v11027_v21 = vpop.permute.xlu0 %3383  ;;  %3567 = vrot.lane.b32.xlu1 %v10495_v51, %s7187_s15 }
 0x772   : > { %13922 = vst [vmem:[#allocation44_spill] sm:$0xff] %v11027_v21 }
 0x773   : > { %v11031_v20 = vpop.permute.xlu1 %3385  ;;  %3569 = vrot.lane.b32.xlu0 %v10502_v35, %s7187_s15 }
 0x774   : > { %13923 = vst [vmem:[#allocation109_spill] sm:$0xff] %v11031_v20 }
 0x775   : > { %v11035_v31 = vpop.permute.xlu0 %3423  ;;  %3571 = vrot.lane.b32.xlu1 %v10507_v59, %s7187_s15 }
 0x777   : > { %v11039_v44 = vpop.permute.xlu1 %3425  ;;  %3573 = vrot.lane.b32.xlu0 %v10514_v1, %s7187_s15 }
 0x779   : > { %v11043_v54 = vpop.permute.xlu0 %3427  ;;  %3575 = vrot.lane.b32.xlu1 %v10519_v2, %s7187_s15 }
 0x77b   : > { %v11047_v51 = vpop.permute.xlu1 %3429  ;;  %3577 = vrot.lane.b32.xlu0 %v10526_v42, %s7187_s15 }
 0x77d   : > { %3579 = vrot.lane.b32.xlu1 %v10531_v30, %s7187_s15  ;;  %v11053_v35 = vpop.permute.xlu0 %3431 }
 0x77f   : > { %v11055_v59 = vpop.permute.xlu1 %3433  ;;  %3581 = vrot.lane.b32.xlu0 %v10542_v62, %s7187_s15 }
 0x781   : > { %3583 = vrot.lane.b32.xlu1 %v10549_v12, %s7187_s15  ;;  %v11061_v1 = vpop.permute.xlu0 %3435 }
 0x783   : > { %v11063_v2 = vpop.permute.xlu1 %3437  ;;  %3621 = vrot.lane.b32.xlu0 %v10544_v24, %s7188_s10 }
 0x785   : > { %3623 = vrot.lane.b32.xlu1 %v10553_v14, %s7188_s10  ;;  %v11069_v21 = vpop.permute.xlu0 %3439 }
 0x786   : > { %13924 = vst [vmem:[#allocation146_spill] sm:$0xff] %v11069_v21 }
 0x787   : > { %v11071_v20 = vpop.permute.xlu1 %3441  ;;  %3625 = vrot.lane.b32.xlu0 %v10388_v13, %s7188_s10 }
 0x788   : > { %13925 = vst [vmem:[#allocation217_spill] sm:$0xff] %v11071_v20 }
 0x789   : > { %3627 = vrot.lane.b32.xlu1 %v10563_v27, %s7188_s10  ;;  %v11077_v26 = vpop.permute.xlu0 %3443 }
 0x78a   : > { %13926 = vst [vmem:[#allocation81_spill] sm:$0xff] %v11077_v26 }
 0x78b   : > { %v11079_v5 = vpop.permute.xlu1 %3445  ;;  %3629 = vrot.lane.b32.xlu0 %v10567_v45, %s7188_s10 }
 0x78c   : > { %13927 = vst [vmem:[#allocation129_spill] sm:$0xff] %v11079_v5  ;;  %v14050_v5 = vld [vmem:[#allocation154_spill] sm:$0xff] }
 0x78d   : > { %3631 = vrot.lane.b32.xlu1 %v10573_v43, %s7188_s10  ;;  %v11085_v24 = vpop.permute.xlu0 %3447 }
 0x78e   : > { %13928 = vst [vmem:[#allocation99_spill] sm:$0xff] %v11085_v24  ;;  %v6927_v24 = vld [vmem:[#allocation2 + $0x68] sm:$0xff] }
 0x78f   : > { %v11087_v14 = vpop.permute.xlu1 %3449  ;;  %3633 = vrot.lane.b32.xlu0 %v10577_v41, %s7188_s10 }
 0x790   : > { %13929 = vst [vmem:[#allocation159_spill] sm:$0xff] %v11087_v14  ;;  %v14038_v14 = vld [vmem:[#allocation145_spill] sm:$0xff] }
 0x791   : > { %3635 = vrot.lane.b32.xlu1 %v10583_v10, %s7188_s10  ;;  %v11093_v13 = vpop.permute.xlu0 %3451 }
 0x792   : > { %13930 = vst [vmem:[#allocation87_spill] sm:$0xff] %v11093_v13 }
 0x793   : > { %v11095_v27 = vpop.permute.xlu1 %3453  ;;  %3637 = vrot.lane.b32.xlu0 %v10587_v6, %s7188_s10 }
 0x794   : > { %13931 = vst [vmem:[#allocation49_spill] sm:$0xff] %v11095_v27  ;;  %v6921_v27 = vld [vmem:[#allocation2 + $0x38] sm:$0xff] }
 0x795   : > { %3639 = vrot.lane.b32.xlu1 %v10593_v11, %s7188_s10  ;;  %v11101_v45 = vpop.permute.xlu0 %3455 }
 0x796   : > { %13932 = vst [vmem:[#allocation60_spill] sm:$0xff] %v11101_v45 }
 0x797   : > { %v11103_v43 = vpop.permute.xlu1 %3457  ;;  %3641 = vrot.lane.b32.xlu0 %v10597_v19, %s7188_s10 }
 0x798   : > { %13933 = vst [vmem:[#allocation178_spill] sm:$0xff] %v11103_v43  ;;  %v13978_v43 = vld [vmem:[#allocation111_spill] sm:$0xff] }
 0x799   : > { %3643 = vrot.lane.b32.xlu1 %v10603_v18, %s7188_s10  ;;  %v11109_v41 = vpop.permute.xlu0 %3459 }
 0x79a   : > { %13934 = vst [vmem:[#allocation197_spill] sm:$0xff] %v11109_v41 }
 0x79b   : > { %v11111_v10 = vpop.permute.xlu1 %3461  ;;  %3645 = vrot.lane.b32.xlu0 %v10607_v40, %s7188_s10 }
 0x79c   : > { %13935 = vst [vmem:[#allocation163_spill] sm:$0xff] %v11111_v10  ;;  %v6720_v10 = vld [vmem:[#allocation9 + $0x58] sm:$0xff]  }
 0x79d   : > { %3647 = vrot.lane.b32.xlu1 %v10613_v49, %s7188_s10  ;;  %v11117_v6 = vpop.permute.xlu0 %3463 }
 0x79e   : > { %13936 = vst [vmem:[#allocation214_spill] sm:$0xff] %v11117_v6  ;;  %v6719_v6 = vld [vmem:[#allocation9 + $0x10] sm:$0xff]  }
 0x79f   : > { %v11119_v11 = vpop.permute.xlu1 %3465  ;;  %3649 = vrot.lane.b32.xlu0 %v10617_v4, %s7188_s10 }
 0x7a0   : > { %13937 = vst [vmem:[#allocation96_spill] sm:$0xff] %v11119_v11 }
 0x7a1   : > { %3651 = vrot.lane.b32.xlu1 %v10623_v55, %s7188_s10  ;;  %v11125_v19 = vpop.permute.xlu0 %3467 }
 0x7a2   : > { %13938 = vst [vmem:[#allocation23_spill] sm:$0xff] %v11125_v19  ;;  %v6717_v19 = vld [vmem:[#allocation9 + $0x8] sm:$0xff]  }
 0x7a3   : > { %v11127_v18 = vpop.permute.xlu1 %3469  ;;  %3653 = vrot.lane.b32.xlu0 %v10627_v34, %s7188_s10  ;;  %v13944_v34 = vld [vmem:[#allocation52_spill] sm:$0xff] }
 0x7a4   : > { %13939 = vst [vmem:[#allocation183_spill] sm:$0xff] %v11127_v18 }
 0x7a5   : > { %3655 = vrot.lane.b32.xlu1 %v10633_v63, %s7188_s10  ;;  %v11133_v40 = vpop.permute.xlu0 %3471 }
 0x7a6   : > { %13940 = vst [vmem:[#allocation70_spill] sm:$0xff] %v11133_v40  ;;  %v3618_v40 = vld [vmem:[#allocation2 + $0x111] sm:$0xff] }
 0x7a7   : > { %v11135_v49 = vpop.permute.xlu1 %3473  ;;  %3657 = vrot.lane.b32.xlu0 %v10637_v22, %s7188_s10  ;;  %v13948_v22 = vld [vmem:[#allocation43_spill] sm:$0xff]  ;;  %v3620_v29 = vsel %vm418_vm0, %v3618_v40, 0.0 }
 0x7a8   : > { %13941 = vst [vmem:[#allocation167_spill] sm:$0xff] %v11135_v49  ;;  %v13962_v40 = vld [vmem:[#allocation95_spill] sm:$0xff] }
 0x7a9   : > { %3659 = vrot.lane.b32.xlu1 %v10643_v53, %s7188_s10  ;;  %v11141_v4 = vpop.permute.xlu0 %3475 }
 0x7aa   : > { %13942 = vst [vmem:[#allocation98_spill] sm:$0xff] %v11141_v4 }
 0x7ab   : > { %v11143_v55 = vpop.permute.xlu1 %3477  ;;  %3661 = vrot.lane.b32.xlu0 %v10647_v37, %s7188_s10  ;;  %v13952_v37 = vld [vmem:[#allocation38_spill] sm:$0xff] }
 0x7ac   : > { %13943 = vst [vmem:[#allocation116_spill] sm:$0xff] %v11143_v55  ;;  %v13951_v55 = vld [vmem:[#allocation97_spill] sm:$0xff] }
 0x7ad   : > { %3663 = vrot.lane.b32.xlu1 %v13944_v34, %s7188_s10  ;;  %v11149_v63 = vpop.permute.xlu0 %3479 }
 0x7ae   : > { %13945 = vst [vmem:[#allocation127_spill] sm:$0xff] %v11149_v63 }
 0x7af   : > { %v11151_v15 = vpop.permute.xlu1 %3481  ;;  %3665 = vrot.lane.b32.xlu0 %v13947_v33, %s7188_s10  ;;  %v13954_v33 = vld [vmem:[#allocation164_spill] sm:$0xff] }
 0x7b0   : > { %13946 = vst [vmem:[#allocation174_spill] sm:$0xff] %v11151_v15  ;;  %v13953_v15 = vld [vmem:[#allocation93_spill] sm:$0xff] }
 0x7b1   : > { %3667 = vrot.lane.b32.xlu1 %v13948_v22, %s7188_s10  ;;  %v11157_v53 = vpop.permute.xlu0 %3483 }
 0x7b2   : > { %13949 = vst [vmem:[#allocation69_spill] sm:$0xff] %v11157_v53  ;;  %v6714_v53 = vld [vmem:[#allocation9 + $0x40] sm:$0xff]  }
 0x7b3   : > { %v11159_v4 = vpop.permute.xlu1 %3485  ;;  %3669 = vrot.lane.b32.xlu0 %v13951_v55, %s7188_s10  ;;  %6139 = vmatprep.subr.bf16.mxu0 %v6714_v53  ;;  %v6715_v55 = vld [vmem:[#allocation9] sm:$0xff]   ;;  %v6716_v53 = vld [vmem:[#allocation9 + $0x48] sm:$0xff]  }
 0x7b4   : > { %13950 = vst [vmem:[#allocation63_spill] sm:$0xff] %v11159_v4  ;;  %6140 = vmatpush3.bf16.msra.mxu0 %v6715_v55  ;;  %v13958_v55 = vld [vmem:[#allocation53_spill] sm:$0xff] }
 0x7b5   : > { %3671 = vrot.lane.b32.xlu1 %v13952_v37, %s7188_s10  ;;  %v11165_v34 = vpop.permute.xlu0 %3521  ;;  %6141 = vmatprep.subr.bf16.mxu0 %v6716_v53  ;;  %v13965_v53 = vld [vmem:[#allocation179_spill] sm:$0xff] }
 0x7b7   : > { %v11167_v63 = vpop.permute.xlu1 %3523  ;;  %3673 = vrot.lane.b32.xlu0 %v13953_v15, %s7188_s10  ;;  %v3617_v15 = vld [vmem:[#allocation2 + $0x109] sm:$0xff] }
 0x7b8   : > { %6142 = vmatpush3.bf16.msra.mxu0 %v6717_v19  ;;  %v13966_v19 = vld [vmem:[#allocation123_spill] sm:$0xff] }
 0x7b9   : > { %3675 = vrot.lane.b32.xlu1 %v13954_v33, %s7188_s10  ;;  %v11173_v22 = vpop.permute.xlu0 %3525  ;;  %6143 = vmatprep.subr.bf16.mxu0 %v6718_v0  ;;  %v13973_v0 = vld [vmem:[#allocation50_spill] sm:$0xff] }
 0x7bb   : > { %v11175_v4 = vpop.permute.xlu1 %3527  ;;  %3677 = vrot.lane.b32.xlu0 %v10697_v57, %s7188_s10 }
 0x7bc   : > { %6144 = vmatpush3.bf16.msra.mxu0 %v6719_v6  ;;  %v13974_v6 = vld [vmem:[#allocation26_spill] sm:$0xff] }
 0x7bd   : > { %3679 = vrot.lane.b32.xlu1 %v10705_v28, %s7188_s10  ;;  %v11181_v37 = vpop.permute.xlu0 %3529  ;;  %v13957_v28 = vld [vmem:[#allocation211_spill] sm:$0xff]  ;;  %6145 = vmatprep.subr.bf16.mxu0 %v6720_v10  ;;  %v13981_v10 = vld [vmem:[#allocation200_spill] sm:$0xff] }
 0x7bf   : > { %v11183_v49 = vpop.permute.xlu1 %3531  ;;  %3681 = vrot.lane.b32.xlu0 %v3617_v15, %s7188_s10 }
 0x7c1   : > { %3683 = vrot.lane.b32.xlu1 %v3620_v29, %s7188_s10  ;;  %v11189_v57 = vpop.permute.xlu0 %3533  ;;  %v13961_v29 = vld [vmem:[#allocation219_spill] sm:$0xff]  ;;  %s12527_s10 = scalar_lea.vmem [#allocation11], %s5470_s23  ;;  %s5740_s23 = sshll.u32 %s7259_s28, 11 }
 0x7c2   : > { %13956 = vst [vmem:[#allocation76_spill] sm:$0xff] %v11189_v57  ;;  %s12644_s21 = scalar_lea.hbm %s12701_s7, %s5740_s23  ;;  %s5345_s28 = scalar_lea.sflag [#allocation5], %s7443_s17 }
 0x7c3   : > { %v11191_v17 = vpop.permute.xlu1 %3535  ;;  %3721 = vrot.lane.b32.xlu0 %v13957_v28, %s7189_s14 }
 0x7c5   : > { %3723 = vrot.lane.b32.xlu1 %v13958_v55, %s7189_s14  ;;  %v11197_v18 = vpop.permute.xlu0 %3537 }
 0x7c6   : > { %13959 = vst [vmem:[#allocation83_spill] sm:$0xff] %v11197_v18 }
 0x7c7   : > { %v11199_v15 = vpop.permute.xlu1 %3539  ;;  %3725 = vrot.lane.b32.xlu0 %v13961_v29, %s7189_s14 }
 0x7c8   : > { %13960 = vst [vmem:[#allocation199_spill] sm:$0xff] %v11199_v15  ;;  %v14058_v15 = vld [vmem:[#allocation169_spill] sm:$0xff] }
 0x7c9   : > { %3727 = vrot.lane.b32.xlu1 %v13962_v40, %s7189_s14  ;;  %v11205_v33 = vpop.permute.xlu0 %3541  ;;  %v13969_v40 = vld [vmem:[#allocation187_spill] sm:$0xff] }
 0x7ca   : > { %13963 = vst [vmem:[#allocation134_spill] sm:$0xff] %v11205_v33  ;;  %v14047_v33 = vld [vmem:[#allocation157_spill] sm:$0xff] }
 0x7cb   : > { %v11207_v56 = vpop.permute.xlu1 %3543  ;;  %3729 = vrot.lane.b32.xlu0 %v13965_v53, %s7189_s14 }
 0x7cc   : > { %13964 = vst [vmem:[#allocation113_spill] sm:$0xff] %v11207_v56 }
 0x7cd   : > { %3731 = vrot.lane.b32.xlu1 %v13966_v19, %s7189_s14  ;;  %v11213_v11 = vpop.permute.xlu0 %3545  ;;  %v6721_v19 = vld [vmem:[#allocation9 + $0x18] sm:$0xff]  }
 0x7ce   : > { %13967 = vst [vmem:[#allocation67_spill] sm:$0xff] %v11213_v11  ;;  %6146 = vmatpush3.bf16.msra.mxu0 %v6721_v19  ;;  %v13982_v19 = vld [vmem:[#allocation27_spill] sm:$0xff]  ;;  %v6925_v11 = vld [vmem:[#allocation2 + $0x58] sm:$0xff] }
 0x7cf   : > { %v11215_v52 = vpop.permute.xlu1 %3547  ;;  %3733 = vrot.lane.b32.xlu0 %v13969_v40, %s7189_s14  ;;  %6147 = vmatprep.subr.bf16.mxu0 %v6722_v47  ;;  %v13989_v47 = vld [vmem:[#allocation30_spill] sm:$0xff]  ;;  %v14054_v40 = vld [vmem:[#allocation165_spill] sm:$0xff] }
 0x7d0   : > { %13968 = vst [vmem:[#allocation121_spill] sm:$0xff] %v11215_v52 }
 0x7d1   : > { %3735 = vrot.lane.b32.xlu1 %v13970_v36, %s7189_s14  ;;  %v11221_v41 = vpop.permute.xlu0 %3549  ;;  %v13977_v36 = vld [vmem:[#allocation56_spill] sm:$0xff] }
 0x7d2   : > { %13971 = vst [vmem:[#allocation110_spill] sm:$0xff] %v11221_v41 }
 0x7d3   : > { %v11223_v50 = vpop.permute.xlu1 %3551  ;;  %3737 = vrot.lane.b32.xlu0 %v13973_v0, %s7189_s14 }
 0x7d4   : > { %13972 = vst [vmem:[#allocation24_spill] sm:$0xff] %v11223_v50  ;;  %v6724_v50 = vld [vmem:[#allocation9 + $0x68] sm:$0xff]  }
 0x7d5   : > { %3739 = vrot.lane.b32.xlu1 %v13974_v6, %s7189_s14  ;;  %v11229_v58 = vpop.permute.xlu0 %3553  ;;  %v6723_v6 = vld [vmem:[#allocation9 + $0x20] sm:$0xff]  }
 0x7d6   : > { %13975 = vst [vmem:[#allocation61_spill] sm:$0xff] %v11229_v58  ;;  %6148 = vmatpush3.bf16.msra.mxu0 %v6723_v6  ;;  %v13990_v6 = vld [vmem:[#allocation65_spill] sm:$0xff] }
 0x7d7   : > { %v11231_v45 = vpop.permute.xlu1 %3555  ;;  %3741 = vrot.lane.b32.xlu0 %v13977_v36, %s7189_s14  ;;  %6149 = vmatprep.subr.bf16.mxu0 %v6724_v50  ;;  %v13997_v50 = vld [vmem:[#allocation210_spill] sm:$0xff] }
 0x7d8   : > { %13976 = vst [vmem:[#allocation102_spill] sm:$0xff] %v11231_v45 }
 0x7d9   : > { %3743 = vrot.lane.b32.xlu1 %v13978_v43, %s7189_s14  ;;  %v11237_v3 = vpop.permute.xlu0 %3557  ;;  %v13985_v43 = vld [vmem:[#allocation82_spill] sm:$0xff] }
 0x7da   : > { %13979 = vst [vmem:[#allocation156_spill] sm:$0xff] %v11237_v3  ;;  %v13986_v3 = vld [vmem:[#allocation79_spill] sm:$0xff] }
 0x7db   : > { %v11239_v41 = vpop.permute.xlu1 %3559  ;;  %3745 = vrot.lane.b32.xlu0 %v13981_v10, %s7189_s14 }
 0x7dc   : > { %13980 = vst [vmem:[#allocation59_spill] sm:$0xff] %v11239_v41 }
 0x7dd   : > { %3747 = vrot.lane.b32.xlu1 %v13982_v19, %s7189_s14  ;;  %v11245_v58 = vpop.permute.xlu0 %3561  ;;  %v6725_v19 = vld [vmem:[#allocation9 + $0x28] sm:$0xff]  }
 0x7de   : > { %13983 = vst [vmem:[#allocation112_spill] sm:$0xff] %v11245_v58  ;;  %6150 = vmatpush3.bf16.msra.mxu0 %v6725_v19  ;;  %v13998_v19 = vld [vmem:[#allocation57_spill] sm:$0xff] }
 0x7df   : > { %v11247_v45 = vpop.permute.xlu1 %3563  ;;  %3749 = vrot.lane.b32.xlu0 %v13985_v43, %s7189_s14  ;;  %v6726_v43 = vld [vmem:[#allocation9 + $0x70] sm:$0xff]  }
 0x7e0   : > { %13984 = vst [vmem:[#allocation141_spill] sm:$0xff] %v11247_v45  ;;  %6151 = vmatprep.subr.bf16.mxu0 %v6726_v43  ;;  %v14005_v43 = vld [vmem:[#allocation144_spill] sm:$0xff] }
 0x7e1   : > { %3751 = vrot.lane.b32.xlu1 %v13986_v3, %s7189_s14  ;;  %v11253_v41 = vpop.permute.xlu0 %3565  ;;  %v13993_v3 = vld [vmem:[#allocation32_spill] sm:$0xff] }
 0x7e2   : > { %13987 = vst [vmem:[#allocation118_spill] sm:$0xff] %v11253_v41  ;;  %v13994_v41 = vld [vmem:[#allocation78_spill] sm:$0xff] }
 0x7e3   : > { %v11255_v10 = vpop.permute.xlu1 %3567  ;;  %3753 = vrot.lane.b32.xlu0 %v13989_v47, %s7189_s14 }
 0x7e4   : > { %13988 = vst [vmem:[#allocation86_spill] sm:$0xff] %v11255_v10 }
 0x7e5   : > { %3755 = vrot.lane.b32.xlu1 %v13990_v6, %s7189_s14  ;;  %v11261_v58 = vpop.permute.xlu0 %3569  ;;  %v6727_v6 = vld [vmem:[#allocation9 + $0x30] sm:$0xff]  }
 0x7e6   : > { %13991 = vst [vmem:[#allocation218_spill] sm:$0xff] %v11261_v58  ;;  %6152 = vmatpush3.bf16.msra.mxu0 %v6727_v6  ;;  %v14006_v6 = vld [vmem:[#allocation74_spill] sm:$0xff] }
 0x7e7   : > { %v11263_v45 = vpop.permute.xlu1 %3571  ;;  %3757 = vrot.lane.b32.xlu0 %v13993_v3, %s7189_s14  ;;  %v6728_v3 = vld [vmem:[#allocation9 + $0x78] sm:$0xff]  }
 0x7e8   : > { %13992 = vst [vmem:[#allocation22_spill] sm:$0xff] %v11263_v45  ;;  %6153 = vmatprep.subr.bf16.mxu0 %v6728_v3  ;;  %v3717_v3 = vld [vmem:[#allocation2 + $0x117] sm:$0xff] }
 0x7e9   : > { %3759 = vrot.lane.b32.xlu1 %v13994_v41, %s7189_s14  ;;  %v11269_v10 = vpop.permute.xlu0 %3573  ;;  %v14001_v41 = vld [vmem:[#allocation29_spill] sm:$0xff] }
 0x7ea   : > { %13995 = vst [vmem:[#allocation209_spill] sm:$0xff] %v11269_v10  ;;  %v14002_v10 = vld [vmem:[#allocation37_spill] sm:$0xff] }
 0x7eb   : > { %v11271_v47 = vpop.permute.xlu1 %3575  ;;  %3761 = vrot.lane.b32.xlu0 %v13997_v50, %s7189_s14 }
 0x7ec   : > { %13996 = vst [vmem:[#allocation168_spill] sm:$0xff] %v11271_v47 }
 0x7ed   : > { %3763 = vrot.lane.b32.xlu1 %v13998_v19, %s7189_s14  ;;  %v11277_v58 = vpop.permute.xlu0 %3577  ;;  %v6729_v19 = vld [vmem:[#allocation9 + $0x38] sm:$0xff]  }
 0x7ee   : > { %13999 = vst [vmem:[#allocation25_spill] sm:$0xff] %v11277_v58  ;;  %6154 = vmatpush3.bf16.msra.mxu0 %v6729_v19 }
 0x7ef   : > { %v11279_v45 = vpop.permute.xlu1 %3579  ;;  %3765 = vrot.lane.b32.xlu0 %v14001_v41, %s7189_s14 }
 0x7f0   : > { %14000 = vst [vmem:[#allocation101_spill] sm:$0xff] %v11279_v45 }
 0x7f1   : > { %3767 = vrot.lane.b32.xlu1 %v14002_v10, %s7189_s14  ;;  %v11285_v47 = vpop.permute.xlu0 %3581 }
 0x7f2   : > { %14003 = vst [vmem:[#allocation152_spill] sm:$0xff] %v11285_v47 }
 0x7f3   : > { %v11287_v50 = vpop.permute.xlu1 %3583  ;;  %3769 = vrot.lane.b32.xlu0 %v14005_v43, %s7189_s14 }
 0x7f4   : > { %14004 = vst [vmem:[#allocation207_spill] sm:$0xff] %v11287_v50  ;;  %v3719_v50 = vsel %vm415_vm1, %v3717_v3, 0.0 }
 0x7f5   : > { %3771 = vrot.lane.b32.xlu1 %v14006_v6, %s7189_s14  ;;  %v11293_v58 = vpop.permute.xlu0 %3621 }
 0x7f7   : > { %v11295_v45 = vpop.permute.xlu1 %3623  ;;  %3773 = vrot.lane.b32.xlu0 %v10909_v32, %s7189_s14  ;;  %v3718_v32 = vld [vmem:[#allocation2 + $0x11f] sm:$0xff] }
 0x7f9   : > { %3775 = vrot.lane.b32.xlu1 %v10915_v39, %s7189_s14  ;;  %v11301_v10 = vpop.permute.xlu0 %3625 }
 0x7fb   : > { %v11303_v47 = vpop.permute.xlu1 %3627  ;;  %3777 = vrot.lane.b32.xlu0 %v10923_v7, %s7189_s14  ;;  %v6919_v7 = vld [vmem:[#allocation2 + $0x28] sm:$0xff] }
 0x7fd   : > { %3779 = vrot.lane.b32.xlu1 %v10929_v25, %s7189_s14  ;;  %v11309_v19 = vpop.permute.xlu0 %3629  ;;  %v6920_v25 = vld [vmem:[#allocation2 + $0x30] sm:$0xff] }
 0x7ff   : > { %v11313_v43 = vpop.permute.xlu1 %3631  ;;  %3781 = vrot.lane.b32.xlu0 %v3719_v50, %s7189_s14  ;;  %v6922_v50 = vld [vmem:[#allocation2 + $0x40] sm:$0xff] }
 0x801   : > { %3783 = vrot.lane.b32.xlu1 %v3718_v32, %s7189_s14  ;;  %v11317_v39 = vpop.permute.xlu0 %3633  ;;  %s5358_s14 = sshll.u32 %s12527_s10, 4  ;;  %s12647_s14 = int_to_ptr.vmem [resolvable:$true] %s5358_s14 }
 0x802   : > { %14008 = vst [vmem:[#allocation160_spill] sm:$0xff] %v11317_v39  ;;  %s7101_s16 = scalar_lea.vmem %s12647_s14, 2048 }
 0x803   : > { %v11319_v41 = vpop.permute.xlu1 %3635  ;;  %3819 = vrot.lane.b32.xlu0 %v6919_v7, %s7191_s12  ;;  %v6924_v7 = vld [vmem:[#allocation2 + $0x50] sm:$0xff]  ;;  %p7102_p10 = scmp.ne.s32.totalorder %s12647_s14, %s7101_s16 }
 0x804   : > { %14009 = vst [vmem:[#allocation171_spill] sm:$0xff] %v11319_v41 }
 0x805   : > { %3821 = vrot.lane.b32.xlu1 %v6920_v25, %s7191_s12  ;;  %v11323_v13 = vpop.permute.xlu0 %3637  ;;  %p7103_p3 = pnand %p7102_p10, %p7392_p5 }
 0x806   : > { %14010 = vst [vmem:[#allocation84_spill] sm:$0xff] %v11323_v13  ;;  %v11449_v13 = vpack.i.bf16 %v14051_v60, %v14050_v5  ;;  %v14062_v60 = vld [vmem:[#allocation172_spill] sm:$0xff] }
 0x807   : > { %v11325_v3 = vpop.permute.xlu1 %3639  ;;  %3823 = vrot.lane.b32.xlu0 %v6921_v27, %s7191_s12  ;;  %v6926_v27 = vld [vmem:[#allocation2 + $0x60] sm:$0xff]  ;;  %p7104_p7 = pneg %p7103_p3 }
 0x808   : > { %14011 = vst [vmem:[#allocation33_spill] sm:$0xff] %v11325_v3 }
 0x809   : > { %3825 = vrot.lane.b32.xlu1 %v6922_v50, %s7191_s12  ;;  %v11329_v32 = vpop.permute.xlu0 %3641 }
 0x80a   : > { %14012 = vst [vmem:[#allocation186_spill] sm:$0xff] %v11329_v32  ;;  %v14042_v32 = vld [vmem:[#allocation147_spill] sm:$0xff] }
 0x80b   : > { %v11331_v46 = vpop.permute.xlu1 %3643  ;;  %3827 = vrot.lane.b32.xlu0 %v6923_v61, %s7191_s12  ;;  %v7192_v61 = vmov 7   ;;  %v11433_v0 = vpack.i.bf16 %v14043_v23, %v14042_v32 }
 0x80c   : > { %14013 = vst [vmem:[#allocation90_spill] sm:$0xff] %v11331_v46  ;;  %6446 = vset.pattern.permute.xlu1 %v7192_v61  ;;  %6440 = vset.pattern.permute.xlu0 %v7192_v61  ;;  %v6932_v61 = vld [vmem:[#allocation2 + $0x90] sm:$0xff] }
 0x80d   : > { %3829 = vrot.lane.b32.xlu1 %v6924_v7, %s7191_s12  ;;  %v11335_v25 = vpop.permute.xlu0 %3645  ;;  %v6928_v7 = vld [vmem:[#allocation2 + $0x70] sm:$0xff]  ;;  %14044 = vst [vmem:[#allocation53_spill] sm:$0xff] %v11433_v0 }
 0x80e   : > { %14014 = vst [vmem:[#allocation135_spill] sm:$0xff] %v11335_v25 }
 0x80f   : > { %v11337_v36 = vpop.permute.xlu1 %3647  ;;  %3831 = vrot.lane.b32.xlu0 %v6925_v11, %s7191_s12  ;;  %v6929_v11 = vld [vmem:[#allocation2 + $0x78] sm:$0xff] }
 0x810   : > { %14015 = vst [vmem:[#allocation204_spill] sm:$0xff] %v11337_v36 }
 0x811   : > { %3833 = vrot.lane.b32.xlu1 %v6926_v27, %s7191_s12  ;;  %v11341_v50 = vpop.permute.xlu0 %3649  ;;  %v6930_v27 = vld [vmem:[#allocation2 + $0x80] sm:$0xff] }
 0x812   : > { %14016 = vst [vmem:[#allocation148_spill] sm:$0xff] %v11341_v50 }
 0x813   : > { %v11343_v52 = vpop.permute.xlu1 %3651  ;;  %3835 = vrot.lane.b32.xlu0 %v6927_v24, %s7191_s12  ;;  %v6931_v24 = vld [vmem:[#allocation2 + $0x88] sm:$0xff] }
 0x814   : > { %14017 = vst [vmem:[#allocation47_spill] sm:$0xff] %v11343_v52 }
 0x815   : > { %3837 = vrot.lane.b32.xlu1 %v6928_v7, %s7191_s12  ;;  %v11347_v25 = vpop.permute.xlu0 %3653 }
 0x816   : > { %14018 = vst [vmem:[#allocation213_spill] sm:$0xff] %v11347_v25 }
 0x817   : > { %v11349_v36 = vpop.permute.xlu1 %3655  ;;  %3839 = vrot.lane.b32.xlu0 %v6929_v11, %s7191_s12  ;;  %v6934_v11 = vld [vmem:[#allocation2 + $0xa0] sm:$0xff] }
 0x818   : > { %14019 = vst [vmem:[#allocation137_spill] sm:$0xff] %v11349_v36  ;;  %v6933_v36 = vld [vmem:[#allocation2 + $0x98] sm:$0xff] }
 0x819   : > { %3841 = vrot.lane.b32.xlu1 %v6930_v27, %s7191_s12  ;;  %v11353_v50 = vpop.permute.xlu0 %3657 }
 0x81a   : > { %14020 = vst [vmem:[#allocation205_spill] sm:$0xff] %v11353_v50 }
 0x81b   : > { %v11355_v52 = vpop.permute.xlu1 %3659  ;;  %3843 = vrot.lane.b32.xlu0 %v6931_v24, %s7191_s12  ;;  %v6936_v24 = vld [vmem:[#allocation2 + $0xb0] sm:$0xff] }
 0x81c   : > { %14021 = vst [vmem:[#allocation107_spill] sm:$0xff] %v11355_v52  ;;  %v6935_v52 = vld [vmem:[#allocation2 + $0xa8] sm:$0xff] }
 0x81d   : > { %3845 = vrot.lane.b32.xlu1 %v6932_v61, %s7191_s12  ;;  %v11359_v7 = vpop.permute.xlu0 %3661 }
 0x81e   : > { %14022 = vst [vmem:[#allocation215_spill] sm:$0xff] %v11359_v7 }
 0x81f   : > { %v11361_v25 = vpop.permute.xlu1 %3663  ;;  %3847 = vrot.lane.b32.xlu0 %v6933_v36, %s7191_s12  ;;  %v6938_v36 = vld [vmem:[#allocation2 + $0xc0] sm:$0xff] }
 0x820   : > { %14023 = vst [vmem:[#allocation115_spill] sm:$0xff] %v11361_v25  ;;  %v6937_v25 = vld [vmem:[#allocation2 + $0xb8] sm:$0xff] }
 0x821   : > { %3849 = vrot.lane.b32.xlu1 %v6934_v11, %s7191_s12  ;;  %v11365_v27 = vpop.permute.xlu0 %3665 }
 0x822   : > { %14024 = vst [vmem:[#allocation77_spill] sm:$0xff] %v11365_v27 }
 0x823   : > { %v11367_v50 = vpop.permute.xlu1 %3667  ;;  %3851 = vrot.lane.b32.xlu0 %v6935_v52, %s7191_s12  ;;  %v6940_v52 = vld [vmem:[#allocation2 + $0xd0] sm:$0xff] }
 0x824   : > { %14025 = vst [vmem:[#allocation193_spill] sm:$0xff] %v11367_v50  ;;  %v6939_v50 = vld [vmem:[#allocation2 + $0xc8] sm:$0xff] }
 0x825   : > { %3853 = vrot.lane.b32.xlu1 %v6936_v24, %s7191_s12  ;;  %v11371_v61 = vpop.permute.xlu0 %3669 }
 0x826   : > { %14026 = vst [vmem:[#allocation143_spill] sm:$0xff] %v11371_v61 }
 0x827   : > { %v11373_v7 = vpop.permute.xlu1 %3671  ;;  %3855 = vrot.lane.b32.xlu0 %v6937_v25, %s7191_s12  ;;  %v6942_v25 = vld [vmem:[#allocation2 + $0xe0] sm:$0xff] }
 0x828   : > { %14027 = vst [vmem:[#allocation126_spill] sm:$0xff] %v11373_v7  ;;  %v6941_v7 = vld [vmem:[#allocation2 + $0xd8] sm:$0xff] }
 0x829   : > { %3857 = vrot.lane.b32.xlu1 %v6938_v36, %s7191_s12  ;;  %v11377_v11 = vpop.permute.xlu0 %3673 }
 0x82a   : > { %14028 = vst [vmem:[#allocation206_spill] sm:$0xff] %v11377_v11 }
 0x82b   : > { %v11379_v27 = vpop.permute.xlu1 %3675  ;;  %3859 = vrot.lane.b32.xlu0 %v6939_v50, %s7191_s12  ;;  %v6944_v50 = vld [vmem:[#allocation2 + $0xf0] sm:$0xff] }
 0x82c   : > { %14029 = vst [vmem:[#allocation52_spill] sm:$0xff] %v11379_v27  ;;  %v6943_v27 = vld [vmem:[#allocation2 + $0xe8] sm:$0xff] }
 0x82d   : > { %3861 = vrot.lane.b32.xlu1 %v6940_v52, %s7191_s12  ;;  %v11383_v24 = vpop.permute.xlu0 %3677 }
 0x82e   : > { %14030 = vst [vmem:[#allocation100_spill] sm:$0xff] %v11383_v24 }
 0x82f   : > { %v11385_v61 = vpop.permute.xlu1 %3679  ;;  %3863 = vrot.lane.b32.xlu0 %v6941_v7, %s7191_s12 }
 0x830   : > { %14031 = vst [vmem:[#allocation43_spill] sm:$0xff] %v11385_v61 }
 0x831   : > { %3865 = vrot.lane.b32.xlu1 %v6942_v25, %s7191_s12  ;;  %v11389_v36 = vpop.permute.xlu0 %3681 }
 0x832   : > { %14032 = vst [vmem:[#allocation97_spill] sm:$0xff] %v11389_v36  ;;  %v6945_v36 = vld [vmem:[#allocation2 + $0x8] sm:$0xff] }
 0x833   : > { %v11391_v11 = vpop.permute.xlu1 %3683  ;;  %3867 = vrot.lane.b32.xlu0 %v6943_v27, %s7191_s12 }
 0x834   : > { %14033 = vst [vmem:[#allocation38_spill] sm:$0xff] %v11391_v11  ;;  %v14035_v11 = vld [vmem:[#allocation18_spill] sm:$0xff] }
 0x835   : > { %3869 = vrot.lane.b32.xlu1 %v6944_v50, %s7191_s12  ;;  %v11395_v52 = vpop.permute.xlu0 %3721 }
 0x837   : > { %v11397_v24 = vpop.permute.xlu1 %3723  ;;  %3871 = vrot.lane.b32.xlu0 %v10526_v42, %s7191_s12  ;;  %v14034_v42 = vld [vmem:[#allocation17_spill] sm:$0xff] }
 0x839   : > { %3873 = vrot.lane.b32.xlu1 %v10531_v30, %s7191_s12  ;;  %v11403_v7 = vpop.permute.xlu0 %3725  ;;  %v11418_v30 = vpack.i.bf16 %v14035_v11, %v14034_v42 }
 0x83b   : > { %v11405_v25 = vpop.permute.xlu1 %3727  ;;  %3875 = vrot.lane.b32.xlu0 %v10542_v62, %s7191_s12  ;;  %14036 = vst [vmem:[#allocation93_spill] sm:$0xff] %v11418_v30  ;;  %v14039_v62 = vld [vmem:[#allocation149_spill] sm:$0xff] }
 0x83c   : > { %v11425_v9 = vpack.i.bf16 %v14039_v62, %v14038_v14 }
 0x83d   : > { %3877 = vrot.lane.b32.xlu1 %v10549_v12, %s7191_s12  ;;  %v11411_v27 = vpop.permute.xlu0 %3729 }
 0x83e   : > { %14040 = vst [vmem:[#allocation20_spill] sm:$0xff] %v11425_v9 }
 0x83f   : > { %v11413_v50 = vpop.permute.xlu1 %3731  ;;  %3879 = vrot.lane.b32.xlu0 %v6945_v36, %s7191_s12 }
 0x841   : > { %3881 = vrot.lane.b32.xlu1 %v6945_v36, %s7191_s12  ;;  %v11421_v61 = vpop.permute.xlu0 %3733  ;;  %v14046_v36 = vld [vmem:[#allocation150_spill] sm:$0xff] }
 0x842   : > { %14037 = vst [vmem:[#allocation164_spill] sm:$0xff] %v11421_v61  ;;  %v11441_v56 = vpack.i.bf16 %v14047_v33, %v14046_v36 }
 0x843   : > { %v11427_v12 = vpop.permute.xlu1 %3735  ;;  %6361 = vrot.lane.b32.xlu0 %v11418_v30, %s7193_s11 }
 0x844   : > { %14041 = vst [vmem:[#allocation211_spill] sm:$0xff] %v11427_v12  ;;  %14048 = vst [vmem:[#allocation95_spill] sm:$0xff] %v11441_v56 }
 0x845   : > { %v11435_v46 = vpop.permute.xlu0 %3737  ;;  %6366 = vrot.lane.b32.xlu1 %v11425_v9, %s7193_s11 }
 0x846   : > { %14045 = vst [vmem:[#allocation219_spill] sm:$0xff] %v11435_v46  ;;  %v14053_v46 = vld [vmem:[#allocation158_spill] sm:$0xff] }
 0x847   : > { %v11443_v26 = vpop.permute.xlu1 %3739  ;;  %6371 = vrot.lane.b32.xlu0 %v11433_v0, %s7193_s11  ;;  %v11457_v3 = vpack.i.bf16 %v14054_v40, %v14053_v46  ;;  %v14066_v40 = vld [vmem:[#allocation176_spill] sm:$0xff] }
 0x848   : > { %14049 = vst [vmem:[#allocation123_spill] sm:$0xff] %v11443_v26  ;;  %v14057_v26 = vld [vmem:[#allocation162_spill] sm:$0xff] }
 0x849   : > { %v11451_v38 = vpop.permute.xlu0 %3741  ;;  %6376 = vrot.lane.b32.xlu1 %v11441_v56, %s7193_s11  ;;  %14055 = vst [vmem:[#allocation26_spill] sm:$0xff] %v11457_v3  ;;  %v11465_v21 = vpack.i.bf16 %v14058_v15, %v14057_v26  ;;  %v14069_v15 = vld [vmem:[#allocation180_spill] sm:$0xff] }
 0x84a   : > { %14052 = vst [vmem:[#allocation132_spill] sm:$0xff] %v11451_v38  ;;  %v14061_v38 = vld [vmem:[#allocation166_spill] sm:$0xff] }
 0x84b   : > { %v11459_v18 = vpop.permute.xlu1 %3743  ;;  %6381 = vrot.lane.b32.xlu0 %v11449_v13, %s7193_s11  ;;  %14059 = vst [vmem:[#allocation27_spill] sm:$0xff] %v11465_v21  ;;  %v11473_v61 = vpack.i.bf16 %v14062_v60, %v14061_v38  ;;  %v14072_v60 = vld [vmem:[#allocation184_spill] sm:$0xff] }
 0x84c   : > { %14056 = vst [vmem:[#allocation111_spill] sm:$0xff] %v11459_v18  ;;  %v14065_v18 = vld [vmem:[#allocation170_spill] sm:$0xff] }
 0x84d   : > { %v11467_v5 = vpop.permute.xlu0 %3745  ;;  %6386 = vrot.lane.b32.xlu1 %v11457_v3, %s7193_s11  ;;  %14063 = vst [vmem:[#allocation65_spill] sm:$0xff] %v11473_v61  ;;  %v11481_v20 = vpack.i.bf16 %v14066_v40, %v14065_v18  ;;  %v14075_v40 = vld [vmem:[#allocation188_spill] sm:$0xff] }
 0x84e   : > { %14060 = vst [vmem:[#allocation79_spill] sm:$0xff] %v11467_v5  ;;  %v14068_v5 = vld [vmem:[#allocation173_spill] sm:$0xff] }
 0x84f   : > { %v11475_v46 = vpop.permute.xlu1 %3747  ;;  %6391 = vrot.lane.b32.xlu0 %v11465_v21, %s7193_s11  ;;  %v11489_v16 = vpack.i.bf16 %v14069_v15, %v14068_v5  ;;  %v14078_v15 = vld [vmem:[#allocation191_spill] sm:$0xff] }
 0x850   : > { %14064 = vst [vmem:[#allocation78_spill] sm:$0xff] %v11475_v46  ;;  %v14071_v46 = vld [vmem:[#allocation177_spill] sm:$0xff] }
 0x851   : > { %v11483_v26 = vpop.permute.xlu0 %3749  ;;  %6396 = vrot.lane.b32.xlu1 %v11473_v61, %s7193_s11  ;;  %v11497_v36 = vpack.i.bf16 %v14072_v60, %v14071_v46  ;;  %v14081_v60 = vld [vmem:[#allocation194_spill] sm:$0xff] }
 0x852   : > { %14067 = vst [vmem:[#allocation57_spill] sm:$0xff] %v11483_v26  ;;  %v14074_v26 = vld [vmem:[#allocation181_spill] sm:$0xff] }
 0x853   : > { %v11491_v38 = vpop.permute.xlu1 %3751  ;;  %6401 = vrot.lane.b32.xlu0 %v11481_v20, %s7193_s11  ;;  %v11505_v12 = vpack.i.bf16 %v14075_v40, %v14074_v26  ;;  %v14084_v40 = vld [vmem:[#allocation196_spill] sm:$0xff] }
 0x854   : > { %14070 = vst [vmem:[#allocation37_spill] sm:$0xff] %v11491_v38  ;;  %v14077_v38 = vld [vmem:[#allocation185_spill] sm:$0xff] }
 0x855   : > { %v11499_v18 = vpop.permute.xlu0 %3753  ;;  %6406 = vrot.lane.b32.xlu1 %v11489_v16, %s7193_s11  ;;  %v11513_v39 = vpack.i.bf16 %v14078_v15, %v14077_v38  ;;  %v14087_v15 = vld [vmem:[#allocation198_spill] sm:$0xff] }
 0x856   : > { %14073 = vst [vmem:[#allocation74_spill] sm:$0xff] %v11499_v18  ;;  %v14080_v18 = vld [vmem:[#allocation189_spill] sm:$0xff] }
 0x857   : > { %v11507_v5 = vpop.permute.xlu1 %3755  ;;  %6411 = vrot.lane.b32.xlu0 %v11497_v36, %s7193_s11  ;;  %v11521_v8 = vpack.i.bf16 %v14081_v60, %v14080_v18 }
 0x858   : > { %14076 = vst [vmem:[#allocation19_spill] sm:$0xff] %v11507_v5  ;;  %v14083_v5 = vld [vmem:[#allocation192_spill] sm:$0xff] }
 0x859   : > { %v11515_v46 = vpop.permute.xlu0 %3757  ;;  %6416 = vrot.lane.b32.xlu1 %v11505_v12, %s7193_s11  ;;  %v11529_v53 = vpack.i.bf16 %v14084_v40, %v14083_v5 }
 0x85a   : > { %14079 = vst [vmem:[#allocation17_spill] sm:$0xff] %v11515_v46  ;;  %v14086_v46 = vld [vmem:[#allocation195_spill] sm:$0xff] }
 0x85b   : > { %v11523_v26 = vpop.permute.xlu1 %3759  ;;  %6421 = vrot.lane.b32.xlu0 %v11513_v39, %s7193_s11  ;;  %v11537_v33 = vpack.i.bf16 %v14087_v15, %v14086_v46  ;;  %v3067_v46 = vld [vmem:[#allocation2 + $0x7] sm:$0xff] }
 0x85c   : > { %14082 = vst [vmem:[#allocation18_spill] sm:$0xff] %v11523_v26 }
 0x85d   : > { %v11531_v38 = vpop.permute.xlu0 %3761  ;;  %6426 = vrot.lane.b32.xlu1 %v11521_v8, %s7193_s11 }
 0x85e   : > { %14085 = vst [vmem:[#allocation145_spill] sm:$0xff] %v11531_v38 }
 0x85f   : > { %v11539_v18 = vpop.permute.xlu1 %3763  ;;  %6431 = vrot.lane.b32.xlu0 %v11529_v53, %s7193_s11 }
 0x860   : > { %14088 = vst [vmem:[#allocation149_spill] sm:$0xff] %v11539_v18  ;;  %v3099_v18 = vsel %vm415_vm1, %v3067_v46, 0.0  ;;  %v14097_v46 = vld [vmem:[#allocation31_spill] sm:$0xff] }
 0x861   : > { %v11543_v26 = vpop.permute.xlu0 %3765  ;;  %6436 = vrot.lane.b32.xlu1 %v11537_v33, %s7193_s11  ;;  %s7105_s11 = sshll.u32 %s7196_s29, 4  ;;  %s7106_s11 = int_to_ptr.vmem [resolvable:$false] %s7105_s11 }
 0x862   : > { %14089 = vst [vmem:[#allocation147_spill] sm:$0xff] %v11543_v26  ;;  %v3068_v26 = vld [vmem:[#allocation2 + $0xf] sm:$0xff]  ;;  %s7107_s8 = scalar_lea.vmem %s7106_s11, 4096  ;;  %p7108_p12 = scmp.lt.s32.totalorder %s12647_s14, %s7106_s11 }
 0x863   : > { %v11547_v5 = vpop.permute.xlu1 %3767  ;;  %6442 = vperm.xlu0 %6440, %v11418_v30   ;;  %v14094_v30 = vld [vmem:[#allocation85_spill] sm:$0xff]  ;;  %p7109_p1 = scmp.lt.s32.totalorder %s7107_s8, %s7101_s16 }
 0x864   : > { %14090 = vst [vmem:[#allocation153_spill] sm:$0xff] %v11547_v5 }
 0x865   : > { %v11550_v38 = vpop.permute.xlu0 %3769  ;;  %6448 = vperm.xlu1 %6446, %v11425_v9   ;;  %v14095_v9 = vld [vmem:[#allocation155_spill] sm:$0xff]  ;;  %p7110_p2 = por %p7109_p1, %p7108_p12 }
 0x866   : > { %14091 = vst [vmem:[#allocation221_spill] sm:$0xff] %v11550_v38  ;;  %v3227_v38 = vadd.f32 %v14094_v30, %v3099_v18  ;;  %v3228_v60 = vadd.f32 %v14095_v9, %v3068_v26  ;;  %v14098_v9 = vld [vmem:[#allocation34_spill] sm:$0xff]  ;;  %v14099_v26 = vld [vmem:[#allocation36_spill] sm:$0xff] }
 0x867   : > { %v11553_v15 = vpop.permute.xlu1 %3771  ;;  %6458 = vperm.xlu0 %6440, %v11441_v56   ;;  %v14096_v56 = vld [vmem:[#allocation120_spill] sm:$0xff]  ;;  %v3230_v18 = vadd.f32 %v14099_v26, %v14098_v9  ;;  %v14103_v9 = vld [vmem:[#allocation130_spill] sm:$0xff]  ;;  %p7111_p4 = pnand %p7110_p2, %p7104_p7 }
 0x868   : > { %14092 = vst [vmem:[#allocation222_spill] sm:$0xff] %v11553_v15  ;;  %v3387_v6 = vadd.f32 %v14096_v56, %v3227_v38  ;;  %v3388_v15 = vadd.f32 %v14097_v46, %v3228_v60  ;;  %v14100_v56 = vld [vmem:[#allocation203_spill] sm:$0xff]  ;;  %v14101_v46 = vld [vmem:[#allocation88_spill] sm:$0xff] }
 0x869   : > { %v11558_v40 = vpop.permute.xlu0 %3773  ;;  %6453 = vperm.xlu1 %6446, %v11433_v0  }
 0x86a   : > { %14093 = vst [vmem:[#allocation223_spill] sm:$0xff] %v11558_v40  ;;  %v3487_v0 = vadd.f32 %v11035_v31, %v3387_v6  ;;  %v3229_v31 = vadd.f32 %v14101_v46, %v14100_v56  ;;  %v14102_v6 = vld [vmem:[#allocation122_spill] sm:$0xff] }
 0x86b   : > { %v11561_v5 = vpop.permute.xlu1 %3775  ;;  %6468 = vperm.xlu0 %6440, %v11457_v3   ;;  %v3488_v3 = vadd.f32 %v11039_v44, %v3388_v15  ;;  %v3390_v44 = vadd.f32 %v14102_v6, %v3230_v18 }
 0x86c   : > { %v3585_v30 = vadd.f32 %v11165_v34, %v3487_v0  ;;  %v3389_v34 = vadd.f32 %v14103_v9, %v3229_v31 }
 0x86d   : > { %v11566_v41 = vpop.permute.xlu0 %3777  ;;  %6463 = vperm.xlu1 %6446, %v11449_v13   ;;  %v3586_v38 = vadd.f32 %v11167_v63, %v3488_v3  ;;  %v3490_v63 = vadd.f32 %v11047_v51, %v3390_v44 }
 0x86e   : > { %v3685_v15 = vadd.f32 %v11293_v58, %v3585_v30  ;;  %v3489_v18 = vadd.f32 %v11043_v54, %v3389_v34  ;;  %v14105_v54 = vld [vmem:[#allocation108_spill] sm:$0xff] }
 0x86f   : > { %v11571_v57 = vpop.permute.xlu1 %3779  ;;  %6478 = vperm.xlu0 %6440, %v11473_v61   ;;  %v3686_v61 = vadd.f32 %v11295_v45, %v3586_v38  ;;  %v3588_v58 = vadd.f32 %v11175_v4, %v3490_v63  ;;  %v14104_v38 = vld [vmem:[#allocation42_spill] sm:$0xff]  ;;  %v14106_v4 = vld [vmem:[#allocation48_spill] sm:$0xff] }
 0x870   : > { %v3785_v0 = vadd.f32 %v11395_v52, %v3685_v15  ;;  %v3232_v56 = vadd.f32 %v14104_v38, %v13958_v55  ;;  %v3587_v51 = vadd.f32 %v11173_v22, %v3489_v18  ;;  %v4570_v18 = vsub.f32 1.0, %v14034_v42 }
 0x871   : > { %v11576_v40 = vpop.permute.xlu0 %3781  ;;  %6473 = vperm.xlu1 %6446, %v11465_v21   ;;  %v3786_v3 = vadd.f32 %v11397_v24, %v3686_v61  ;;  %v3688_v52 = vadd.f32 %v11303_v47, %v3588_v58  ;;  %v6946_v61 = vld [vmem:[#allocation2 + $0x41] sm:$0xff]  ;;  %v6947_v24 = vld [vmem:[#allocation2 + $0x39] sm:$0xff]  ;;  %v14108_v47 = vld [vmem:[#allocation73_spill] sm:$0xff] }
 0x872   : > { %v5626_v31 = vpack.c.bf16 %v6946_v61, %v6947_v24  ;;  %v3392_v44 = vadd.f32 %v14106_v4, %v3232_v56  ;;  %v3687_v15 = vadd.f32 %v11301_v10, %v3587_v51  ;;  %v4571_v10 = vsub.f32 1.0, %v14035_v11  ;;  %v6948_v58 = vld [vmem:[#allocation2 + $0x3f] sm:$0xff]  ;;  %v6949_v56 = vld [vmem:[#allocation2 + $0x51] sm:$0xff]  ;;  %v6950_v51 = vld [vmem:[#allocation2 + $0x49] sm:$0xff] }
 0x873   : > { %v11583_v60 = vpop.permute.xlu1 %3783  ;;  %6488 = vperm.xlu0 %6440, %v11489_v16   ;;  %v3788_v55 = vadd.f32 %v11405_v25, %v3688_v52  ;;  %v5629_v11 = vpack.c.bf16 %v6949_v56, %v6950_v51  ;;  %v4574_v4 = vsub.f32 1.0, %v14042_v32  ;;  %v14123_v51 = vld [vmem:[#allocation217_spill] sm:$0xff] }
 0x874   : > { %v3492_v63 = vadd.f32 %v11055_v59, %v3392_v44  ;;  %v6951_v44 = vld [vmem:[#allocation2 + $0x4f] sm:$0xff] }
 0x875   : > { %v3820_v21 = vpop.permute.xlu0 %3819  ;;  %6483 = vperm.xlu1 %6446, %v11481_v20  }
 0x876   : > { %v3883_v30 = vadd.f32 %v3820_v21, %v3785_v0  ;;  %v3231_v21 = vadd.f32 %v14105_v54, %v13957_v28  ;;  %v3787_v0 = vadd.f32 %v11403_v7, %v3687_v15 }
 0x877   : > { %v3822_v26 = vpop.permute.xlu1 %3821  ;;  %6498 = vperm.xlu0 %6440, %v11505_v12  }
 0x878   : > { %v3884_v45 = vadd.f32 %v3822_v26, %v3786_v3  ;;  %v3391_v34 = vadd.f32 %v14108_v47, %v3231_v21  ;;  %v3590_v3 = vadd.f32 %v11183_v49, %v3492_v63  ;;  %v14110_v49 = vld [vmem:[#allocation39_spill] sm:$0xff] }
 0x879   : > { %6493 = vperm.xlu1 %6446, %v11497_v36   ;;  %v3824_v22 = vpop.permute.xlu0 %3823  ;;  %v6953_v63 = vld [vmem:[#allocation2 + $0x59] sm:$0xff] }
 0x87a   : > { %v3919_v46 = vpack.c.bf16 %v3884_v45, %v3883_v30  ;;  %v3491_v25 = vadd.f32 %v11053_v35, %v3391_v34  ;;  %v3885_v26 = vadd.f32 %v3824_v22, %v3787_v0  ;;  %v14109_v30 = vld [vmem:[#allocation46_spill] sm:$0xff]  ;;  %v3690_v7 = vadd.f32 %v11313_v43, %v3590_v3  ;;  %v6952_v34 = vld [vmem:[#allocation2 + $0x61] sm:$0xff] }
 0x87b   : > { %v3826_v6 = vpop.permute.xlu1 %3825  ;;  %6508 = vperm.xlu0 %6440, %v11521_v8   ;;  %v3234_v45 = vadd.f32 %v6948_v58, %v14109_v30  ;;  %v4573_v35 = vsub.f32 1.0, %v14039_v62  ;;  %v4572_v43 = vsub.f32 1.0, %v14038_v14  ;;  %v14112_v14 = vld [vmem:[#allocation41_spill] sm:$0xff]  ;;  %v5632_v0 = vpack.c.bf16 %v6952_v34, %v6953_v63  ;;  %v14118_v3 = vld [vmem:[#allocation106_spill] sm:$0xff]  ;;  %v14120_v58 = vld [vmem:[#allocation211_spill] sm:$0xff] }
 0x87c   : > { %4119 = vmatmul.mubr.bf16.vlgmr.msra.gmra.mrb[32].mxu0 %v3919_v46  ;;  %v3886_v28 = vadd.f32 %v3826_v6, %v3788_v55  ;;  %v3589_v59 = vadd.f32 %v11181_v37, %v3491_v25  ;;  %v3233_v46 = vadd.f32 %v14110_v49, %v13961_v29  ;;  %v3790_v24 = vadd.f32 %v11413_v50, %v3690_v7  ;;  %v14113_v55 = vld [vmem:[#allocation76_spill] sm:$0xff]  ;;  %v14134_v34 = vld [vmem:[#allocation119_spill] sm:$0xff] }
 0x87d   : > { %5627 = vmatprep.mubr.msk.bf16.mxu0 %vm8432_vm3, %v5626_v31  ;;  %6503 = vperm.xlu1 %6446, %v11513_v39   ;;  %v3394_v42 = vadd.f32 %v10935_v48, %v3234_v45  ;;  %v3828_v37 = vpop.permute.xlu0 %3827  ;;  %v14111_v31 = vld [vmem:[#allocation80_spill] sm:$0xff]  ;;  %v4575_v48 = vsub.f32 1.0, %v14043_v23  ;;  %v3236_v15 = vadd.f32 %v6951_v44, %v14112_v14  ;;  %v6955_v14 = vld [vmem:[#allocation2 + $0x71] sm:$0xff] }
 0x87e   : > { %v3921_v38 = vpack.c.bf16 %v3886_v28, %v3885_v26  ;;  %v3689_v61 = vadd.f32 %v11309_v19, %v3589_v59  ;;  %v3393_v6 = vadd.f32 %v14111_v31, %v3233_v46  ;;  %v14119_v26 = vld [vmem:[#allocation160_spill] sm:$0xff]  ;;  %v14121_v59 = vld [vmem:[#allocation150_spill] sm:$0xff]  ;;  %v14125_v46 = vld [vmem:[#allocation161_spill] sm:$0xff] }
 0x87f   : > { %6518 = vperm.xlu0 %6440, %v11537_v33   ;;  %v3830_v52 = vpop.permute.xlu1 %3829  ;;  %v3494_v62 = vadd.f32 %v11063_v2, %v3394_v42  ;;  %v14114_v2 = vld [vmem:[#allocation171_spill] sm:$0xff]  ;;  %v3396_v32 = vadd.f32 %v14118_v3, %v3236_v15  ;;  %v4576_v7 = vsub.f32 1.0, %v14121_v59  ;;  %v4579_v42 = vsub.f32 1.0, %v14125_v46  ;;  %v6956_v15 = vld [vmem:[#allocation2 + $0x69] sm:$0xff]  ;;  %v14138_v3 = vld [vmem:[#allocation158_spill] sm:$0xff] }
 0x880   : > { %v3789_v29 = vadd.f32 %v11411_v27, %v3689_v61  ;;  %v3888_v54 = vadd.f32 %v3830_v52, %v3790_v24  ;;  %v3493_v19 = vadd.f32 %v11061_v1, %v3393_v6  ;;  %v14115_v1 = vld [vmem:[#allocation157_spill] sm:$0xff]  ;;  %v14124_v52 = vld [vmem:[#allocation164_spill] sm:$0xff]  ;;  %v14126_v61 = vld [vmem:[#allocation146_spill] sm:$0xff] }
 0x881   : > { %6513 = vperm.xlu1 %6446, %v11529_v53   ;;  %v3592_v50 = vadd.f32 %v11191_v17, %v3494_v62  ;;  %v4577_v28 = vsub.f32 1.0, %v14115_v1  ;;  %v14116_v17 = vld [vmem:[#allocation179_spill] sm:$0xff]  ;;  %v3832_v45 = vpop.permute.xlu0 %3831  ;;  %v14128_v6 = vld [vmem:[#allocation154_spill] sm:$0xff]  ;;  %v14136_v1 = vld [vmem:[#allocation84_spill] sm:$0xff] }
 0x882   : > { %v3887_v21 = vadd.f32 %v3828_v37, %v3789_v29  ;;  %v3591_v22 = vadd.f32 %v14113_v55, %v3493_v19  ;;  %v14127_v37 = vld [vmem:[#allocation199_spill] sm:$0xff]  ;;  %v4578_v62 = vsub.f32 1.0, %v14128_v6  ;;  %v5635_v55 = vpack.c.bf16 %v6955_v14, %v6956_v15  ;;  %v14145_v46 = vld [vmem:[#allocation162_spill] sm:$0xff] }
 0x883   : > { %4609 = vperm.xlu0 %6440, %v4571_v10   ;;  %v3692_v47 = vadd.f32 %v14114_v2, %v3592_v50  ;;  %v3834_v23 = vpop.permute.xlu1 %3833  ;;  %v14117_v10 = vld [vmem:[#allocation103_spill] sm:$0xff]  ;;  %v14132_v2 = vld [vmem:[#allocation165_spill] sm:$0xff]  ;;  %v14148_v6 = vld [vmem:[#allocation90_spill] sm:$0xff] }
 0x884   : > { %4127 = vmatmul.mubr.bf16.gmra.mrb[36].mxu0 %v3921_v38  ;;  %v3923_v27 = vpack.c.bf16 %v3888_v54, %v3887_v21  ;;  %v3235_v25 = vadd.f32 %v14117_v10, %v14116_v17  ;;  %v14122_v38 = vld [vmem:[#allocation89_spill] sm:$0xff]  ;;  %v6954_v29 = vld [vmem:[#allocation2 + $0x5f] sm:$0xff] }
 0x885   : > { %5630 = vmatprep.mubr.msk.bf16.mxu0 %vm8432_vm3, %v5629_v11  ;;  %4604 = vperm.xlu1 %6446, %v4570_v18   ;;  %v3691_v18 = vadd.f32 %v14119_v26, %v3591_v22  ;;  %v3792_v30 = vadd.f32 %v14120_v58, %v3692_v47  ;;  %v3496_v11 = vadd.f32 %v14123_v51, %v3396_v32  ;;  %v14129_v54 = vld [vmem:[#allocation117_spill] sm:$0xff]  ;;  %v14130_v19 = vld [vmem:[#allocation83_spill] sm:$0xff]  ;;  %v4581_v47 = vsub.f32 1.0, %v14132_v2  ;;  %v14139_v26 = vld [vmem:[#allocation66_spill] sm:$0xff] }
 0x886   : > { %v3395_v56 = vadd.f32 %v14122_v38, %v3235_v25  ;;  %v14131_v21 = vld [vmem:[#allocation33_spill] sm:$0xff]  ;;  %v14137_v17 = vld [vmem:[#allocation123_spill] sm:$0xff]  ;;  %v3836_v25 = vpop.permute.xlu0 %3835  ;;  %v4580_v32 = vsub.f32 1.0, %v14138_v3  ;;  %v14153_v2 = vld [vmem:[#allocation186_spill] sm:$0xff] }
 0x887   : > { %4619 = vperm.xlu0 %6440, %v4573_v35   ;;  %v3791_v35 = vadd.f32 %v14124_v52, %v3691_v18  ;;  %v3890_v49 = vadd.f32 %v3834_v23, %v3792_v30  ;;  %v3838_v22 = vpop.permute.xlu1 %3837  ;;  %v14140_v58 = vld [vmem:[#allocation129_spill] sm:$0xff]  ;;  %v14151_v14 = vld [vmem:[#allocation131_spill] sm:$0xff] }
 0x888   : > { %v3495_v24 = vadd.f32 %v14126_v61, %v3395_v56  ;;  %v14142_v38 = vld [vmem:[#allocation169_spill] sm:$0xff] }
 0x889   : > { %4614 = vperm.xlu1 %6446, %v4572_v43   ;;  %v3594_v43 = vadd.f32 %v14127_v37, %v3496_v11  ;;  %v3889_v31 = vadd.f32 %v3832_v45, %v3791_v35  ;;  %v14141_v45 = vld [vmem:[#allocation219_spill] sm:$0xff]  ;;  %v4583_v56 = vsub.f32 1.0, %v14142_v38  ;;  %v14143_v51 = vld [vmem:[#allocation81_spill] sm:$0xff]  ;;  %v14162_v38 = vld [vmem:[#allocation170_spill] sm:$0xff] }
 0x88a   : > { %v3593_v50 = vadd.f32 %v14130_v19, %v3495_v24  ;;  %v14144_v52 = vld [vmem:[#allocation113_spill] sm:$0xff]  ;;  %v14146_v24 = vld [vmem:[#allocation220_spill] sm:$0xff] }
 0x88b   : > { %4629 = vperm.xlu0 %6440, %v4575_v48   ;;  %v3238_v48 = vadd.f32 %v6954_v29, %v14129_v54  ;;  %v3925_v44 = vpack.c.bf16 %v3890_v49, %v3889_v31  ;;  %v6957_v61 = vld [vmem:[#allocation2 + $0x6f] sm:$0xff]  ;;  %v6958_v54 = vld [vmem:[#allocation2 + $0x81] sm:$0xff] }
 0x88c   : > { %4135 = vmatmul.mubr.bf16.gmra.mrb[40].mxu0 %v3923_v27  ;;  %v14133_v27 = vld [vmem:[#allocation187_spill] sm:$0xff]  ;;  %v3240_v37 = vadd.f32 %v6957_v61, %v14146_v24  ;;  %v6961_v24 = vld [vmem:[#allocation2 + $0x91] sm:$0xff] }
 0x88d   : > { %5633 = vmatprep.mubr.msk.bf16.mxu0 %vm8432_vm3, %v5632_v0  ;;  %4624 = vperm.xlu1 %6446, %v4574_v4   ;;  %v3694_v4 = vadd.f32 %v14131_v21, %v3594_v43  ;;  %v3237_v63 = vadd.f32 %v14134_v34, %v14133_v27  ;;  %v14135_v0 = vld [vmem:[#allocation51_spill] sm:$0xff]  ;;  %v14147_v43 = vld [vmem:[#allocation134_spill] sm:$0xff]  ;;  %v14149_v21 = vld [vmem:[#allocation172_spill] sm:$0xff] }
 0x88e   : > { %v3398_v23 = vadd.f32 %v14135_v0, %v3238_v48  ;;  %v6959_v48 = vld [vmem:[#allocation2 + $0x79] sm:$0xff] }
 0x88f   : > { %4639 = vperm.xlu0 %6440, %v4577_v28   ;;  %v3693_v28 = vadd.f32 %v14136_v1, %v3593_v50  ;;  %v3794_v10 = vadd.f32 %v14137_v17, %v3694_v4  ;;  %v3397_v18 = vadd.f32 %v14139_v26, %v3237_v63  ;;  %v5638_v19 = vpack.c.bf16 %v6958_v54, %v6959_v48  ;;  %v3842_v50 = vpop.permute.xlu1 %3841  ;;  %v14154_v27 = vld [vmem:[#allocation111_spill] sm:$0xff]  ;;  %v3840_v63 = vpop.permute.xlu0 %3839  ;;  %v14155_v0 = vld [vmem:[#allocation166_spill] sm:$0xff]  ;;  %v14156_v1 = vld [vmem:[#allocation28_spill] sm:$0xff] }
 0x890   : > { %v3498_v30 = vadd.f32 %v14140_v58, %v3398_v23  ;;  %v4585_v4 = vsub.f32 1.0, %v14149_v21  ;;  %v4584_v23 = vsub.f32 1.0, %v14155_v0  ;;  %v14157_v17 = vld [vmem:[#allocation159_spill] sm:$0xff]  ;;  %v14159_v26 = vld [vmem:[#allocation176_spill] sm:$0xff]  ;;  %v14168_v54 = vld [vmem:[#allocation125_spill] sm:$0xff] }
 0x891   : > { %4634 = vperm.xlu1 %6446, %v4576_v7   ;;  %v3793_v59 = vadd.f32 %v14141_v45, %v3693_v28  ;;  %v3892_v7 = vadd.f32 %v3838_v22, %v3794_v10  ;;  %v3497_v11 = vadd.f32 %v14143_v51, %v3397_v18  ;;  %v4587_v18 = vsub.f32 1.0, %v14159_v26  ;;  %v14160_v58 = vld [vmem:[#allocation99_spill] sm:$0xff]  ;;  %v14161_v45 = vld [vmem:[#allocation121_spill] sm:$0xff] }
 0x892   : > { %v3596_v35 = vadd.f32 %v14144_v52, %v3498_v30  ;;  %v6960_v51 = vld [vmem:[#allocation2 + $0x7f] sm:$0xff]  ;;  %v14179_v26 = vld [vmem:[#allocation177_spill] sm:$0xff] }
 0x893   : > { %4649 = vperm.xlu0 %6440, %v4579_v42   ;;  %v3891_v49 = vadd.f32 %v3836_v25, %v3793_v59  ;;  %v4582_v42 = vsub.f32 1.0, %v14145_v46  ;;  %v3595_v31 = vadd.f32 %v14147_v43, %v3497_v11  ;;  %v14158_v25 = vld [vmem:[#allocation132_spill] sm:$0xff]  ;;  %v14163_v11 = vld [vmem:[#allocation105_spill] sm:$0xff]  ;;  %v14170_v21 = vld [vmem:[#allocation135_spill] sm:$0xff] }
 0x894   : > { %4143 = vmatmul.mubr.bf16.gmra.mrb[44].mxu0 %v3925_v44  ;;  %v14150_v44 = vld [vmem:[#allocation50_spill] sm:$0xff]  ;;  %v3242_v52 = vadd.f32 %v6960_v51, %v14163_v11  ;;  %v14165_v46 = vld [vmem:[#allocation204_spill] sm:$0xff] }
 0x895   : > { %5636 = vmatprep.mubr.msk.bf16.mxu0 %vm8432_vm3, %v5635_v55  ;;  %4644 = vperm.xlu1 %6446, %v4578_v62   ;;  %v3696_v62 = vadd.f32 %v14148_v6, %v3596_v35  ;;  %v3927_v29 = vpack.c.bf16 %v3892_v7, %v3891_v49  ;;  %v3239_v15 = vadd.f32 %v14151_v14, %v14150_v44  ;;  %v14152_v55 = vld [vmem:[#allocation62_spill] sm:$0xff]  ;;  %v14164_v35 = vld [vmem:[#allocation67_spill] sm:$0xff]  ;;  %v14166_v6 = vld [vmem:[#allocation180_spill] sm:$0xff] }
 0x896   : > { %v3400_v22 = vadd.f32 %v14152_v55, %v3240_v37  ;;  %v6962_v37 = vld [vmem:[#allocation2 + $0x89] sm:$0xff]  ;;  %v14171_v44 = vld [vmem:[#allocation78_spill] sm:$0xff]  ;;  %v6964_v11 = vld [vmem:[#allocation2 + $0xa1] sm:$0xff] }
 0x897   : > { %4659 = vperm.xlu0 %6440, %v4581_v47   ;;  %v3695_v47 = vadd.f32 %v14153_v2, %v3595_v31  ;;  %v3796_v34 = vadd.f32 %v14154_v27, %v3696_v62  ;;  %v3399_v28 = vadd.f32 %v14156_v1, %v3239_v15  ;;  %v5641_v43 = vpack.c.bf16 %v6961_v24, %v6962_v37  ;;  %v3846_v31 = vpop.permute.xlu1 %3845  ;;  %v3844_v15 = vpop.permute.xlu0 %3843  ;;  %v14172_v55 = vld [vmem:[#allocation173_spill] sm:$0xff]  ;;  %v14173_v2 = vld [vmem:[#allocation128_spill] sm:$0xff]  ;;  %v14185_v24 = vld [vmem:[#allocation75_spill] sm:$0xff] }
 0x898   : > { %v3500_v10 = vadd.f32 %v14157_v17, %v3400_v22  ;;  %v4589_v62 = vsub.f32 1.0, %v14166_v6  ;;  %v4588_v22 = vsub.f32 1.0, %v14172_v55  ;;  %v14174_v27 = vld [vmem:[#allocation49_spill] sm:$0xff]  ;;  %v14176_v1 = vld [vmem:[#allocation184_spill] sm:$0xff]  ;;  %v14177_v17 = vld [vmem:[#allocation87_spill] sm:$0xff] }
 0x899   : > { %4654 = vperm.xlu1 %6446, %v4580_v32   ;;  %v3795_v3 = vadd.f32 %v14158_v25, %v3695_v47  ;;  %v3894_v32 = vadd.f32 %v3842_v50, %v3796_v34  ;;  %v3499_v30 = vadd.f32 %v14160_v58, %v3399_v28  ;;  %v4591_v28 = vsub.f32 1.0, %v14176_v1  ;;  %v14178_v25 = vld [vmem:[#allocation24_spill] sm:$0xff]  ;;  %v14196_v1 = vld [vmem:[#allocation185_spill] sm:$0xff] }
 0x89a   : > { %v3598_v59 = vadd.f32 %v14161_v45, %v3500_v10  ;;  %v6963_v58 = vld [vmem:[#allocation2 + $0x8f] sm:$0xff] }
 0x89b   : > { %4669 = vperm.xlu0 %6440, %v4583_v56   ;;  %v3893_v7 = vadd.f32 %v3840_v63, %v3795_v3  ;;  %v4586_v56 = vsub.f32 1.0, %v14162_v38  ;;  %v3597_v49 = vadd.f32 %v14164_v35, %v3499_v30  ;;  %v14175_v63 = vld [vmem:[#allocation79_spill] sm:$0xff]  ;;  %v14180_v30 = vld [vmem:[#allocation212_spill] sm:$0xff] }
 0x89c   : > { %4151 = vmatmul.mubr.bf16.gmra.mrb[48].mxu0 %v3927_v29  ;;  %v14167_v29 = vld [vmem:[#allocation56_spill] sm:$0xff]  ;;  %v3244_v45 = vadd.f32 %v6963_v58, %v14180_v30  ;;  %v14182_v38 = vld [vmem:[#allocation47_spill] sm:$0xff]  ;;  %v6967_v30 = vld [vmem:[#allocation2 + $0xb1] sm:$0xff] }
 0x89d   : > { %5639 = vmatprep.mubr.msk.bf16.mxu0 %vm8432_vm3, %v5638_v19  ;;  %4664 = vperm.xlu1 %6446, %v4582_v42   ;;  %v3698_v42 = vadd.f32 %v14165_v46, %v3598_v59  ;;  %v3929_v61 = vpack.c.bf16 %v3894_v32, %v3893_v7  ;;  %v3241_v48 = vadd.f32 %v14168_v54, %v14167_v29  ;;  %v14169_v19 = vld [vmem:[#allocation140_spill] sm:$0xff]  ;;  %v14181_v59 = vld [vmem:[#allocation110_spill] sm:$0xff]  ;;  %v14188_v29 = vld [vmem:[#allocation37_spill] sm:$0xff] }
 0x89e   : > { %v3402_v50 = vadd.f32 %v14169_v19, %v3242_v52  ;;  %v6965_v52 = vld [vmem:[#allocation2 + $0x99] sm:$0xff]  ;;  %v14183_v46 = vld [vmem:[#allocation188_spill] sm:$0xff]  ;;  %v14189_v19 = vld [vmem:[#allocation181_spill] sm:$0xff] }
 0x89f   : > { %4679 = vperm.xlu0 %6440, %v4585_v4   ;;  %v3697_v4 = vadd.f32 %v14170_v21, %v3597_v49  ;;  %v3798_v14 = vadd.f32 %v14171_v44, %v3698_v42  ;;  %v3401_v47 = vadd.f32 %v14173_v2, %v3241_v48  ;;  %v5644_v35 = vpack.c.bf16 %v6964_v11, %v6965_v52  ;;  %v3850_v49 = vpop.permute.xlu1 %3849  ;;  %v14187_v6 = vld [vmem:[#allocation148_spill] sm:$0xff]  ;;  %v3848_v48 = vpop.permute.xlu0 %3847  ;;  %v14190_v21 = vld [vmem:[#allocation91_spill] sm:$0xff]  ;;  %v14191_v44 = vld [vmem:[#allocation178_spill] sm:$0xff] }
 0x8a0   : > { %v3502_v34 = vadd.f32 %v14174_v27, %v3402_v50  ;;  %v4593_v42 = vsub.f32 1.0, %v14183_v46  ;;  %v4592_v50 = vsub.f32 1.0, %v14189_v19  ;;  %v14193_v2 = vld [vmem:[#allocation191_spill] sm:$0xff]  ;;  %v14194_v27 = vld [vmem:[#allocation60_spill] sm:$0xff]  ;;  %v14204_v46 = vld [vmem:[#allocation213_spill] sm:$0xff] }
 0x8a1   : > { %4674 = vperm.xlu1 %6446, %v4584_v23   ;;  %v3797_v0 = vadd.f32 %v14175_v63, %v3697_v4  ;;  %v3896_v23 = vadd.f32 %v3846_v31, %v3798_v14  ;;  %v3501_v10 = vadd.f32 %v14177_v17, %v3401_v47  ;;  %v4595_v47 = vsub.f32 1.0, %v14193_v2  ;;  %v14195_v63 = vld [vmem:[#allocation102_spill] sm:$0xff]  ;;  %v14202_v11 = vld [vmem:[#allocation64_spill] sm:$0xff] }
 0x8a2   : > { %v3600_v3 = vadd.f32 %v14178_v25, %v3502_v34  ;;  %v6966_v17 = vld [vmem:[#allocation2 + $0x9f] sm:$0xff]  ;;  %v14213_v2 = vld [vmem:[#allocation192_spill] sm:$0xff] }
 0x8a3   : > { %4689 = vperm.xlu0 %6440, %v4587_v18   ;;  %v3895_v32 = vadd.f32 %v3844_v15, %v3797_v0  ;;  %v4590_v18 = vsub.f32 1.0, %v14179_v26  ;;  %v3599_v7 = vadd.f32 %v14181_v59, %v3501_v10  ;;  %v14192_v15 = vld [vmem:[#allocation57_spill] sm:$0xff]  ;;  %v14197_v10 = vld [vmem:[#allocation208_spill] sm:$0xff] }
 0x8a4   : > { %4159 = vmatmul.mubr.bf16.gmra.mrb[52].mxu0 %v3929_v61  ;;  %v14184_v61 = vld [vmem:[#allocation200_spill] sm:$0xff]  ;;  %v3246_v25 = vadd.f32 %v6966_v17, %v14197_v10  ;;  %v14199_v26 = vld [vmem:[#allocation137_spill] sm:$0xff] }
 0x8a5   : > { %5642 = vmatprep.mubr.msk.bf16.mxu0 %vm8432_vm3, %v5641_v43  ;;  %4684 = vperm.xlu1 %6446, %v4586_v56   ;;  %v3700_v56 = vadd.f32 %v14182_v38, %v3600_v3  ;;  %v3931_v51 = vpack.c.bf16 %v3896_v23, %v3895_v32  ;;  %v3243_v37 = vadd.f32 %v14185_v24, %v14184_v61  ;;  %v14186_v43 = vld [vmem:[#allocation55_spill] sm:$0xff]  ;;  %v14198_v3 = vld [vmem:[#allocation61_spill] sm:$0xff]  ;;  %v14200_v38 = vld [vmem:[#allocation194_spill] sm:$0xff] }
 0x8a6   : > { %v3404_v31 = vadd.f32 %v14186_v43, %v3244_v45  ;;  %v6968_v45 = vld [vmem:[#allocation2 + $0xa9] sm:$0xff]  ;;  %v14205_v61 = vld [vmem:[#allocation19_spill] sm:$0xff] }
 0x8a7   : > { %4699 = vperm.xlu0 %6440, %v4589_v62   ;;  %v3699_v62 = vadd.f32 %v14187_v6, %v3599_v7  ;;  %v3800_v54 = vadd.f32 %v14188_v29, %v3700_v56  ;;  %v3403_v4 = vadd.f32 %v14190_v21, %v3243_v37  ;;  %v5647_v59 = vpack.c.bf16 %v6967_v30, %v6968_v45  ;;  %v3854_v7 = vpop.permute.xlu1 %3853  ;;  %v3852_v37 = vpop.permute.xlu0 %3851  ;;  %v14206_v43 = vld [vmem:[#allocation189_spill] sm:$0xff]  ;;  %v14207_v6 = vld [vmem:[#allocation175_spill] sm:$0xff]  ;;  %v14210_v21 = vld [vmem:[#allocation196_spill] sm:$0xff] }
 0x8a8   : > { %v3504_v14 = vadd.f32 %v14191_v44, %v3404_v31  ;;  %v4597_v56 = vsub.f32 1.0, %v14200_v38  ;;  %v4596_v31 = vsub.f32 1.0, %v14206_v43  ;;  %v14208_v29 = vld [vmem:[#allocation163_spill] sm:$0xff]  ;;  %v14211_v44 = vld [vmem:[#allocation197_spill] sm:$0xff]  ;;  %v14219_v30 = vld [vmem:[#allocation92_spill] sm:$0xff] }
 0x8a9   : > { %4694 = vperm.xlu1 %6446, %v4588_v22   ;;  %v3799_v55 = vadd.f32 %v14192_v15, %v3699_v62  ;;  %v3898_v22 = vadd.f32 %v3850_v49, %v3800_v54  ;;  %v3503_v34 = vadd.f32 %v14194_v27, %v3403_v4  ;;  %v4599_v4 = vsub.f32 1.0, %v14210_v21  ;;  %v14212_v15 = vld [vmem:[#allocation59_spill] sm:$0xff]  ;;  %v6969_v27 = vld [vmem:[#allocation2 + $0xaf] sm:$0xff] }
 0x8aa   : > { %v3602_v0 = vadd.f32 %v14195_v63, %v3504_v14  ;;  %v6970_v10 = vld [vmem:[#allocation2 + $0xc1] sm:$0xff]  ;;  %v14221_v38 = vld [vmem:[#allocation205_spill] sm:$0xff] }
 0x8ab   : > { %4709 = vperm.xlu0 %6440, %v4591_v28   ;;  %v3897_v23 = vadd.f32 %v3848_v48, %v3799_v55  ;;  %v4594_v28 = vsub.f32 1.0, %v14196_v1  ;;  %v3601_v32 = vadd.f32 %v14198_v3, %v3503_v34  ;;  %v14209_v48 = vld [vmem:[#allocation74_spill] sm:$0xff]  ;;  %v14216_v1 = vld [vmem:[#allocation107_spill] sm:$0xff] }
 0x8ac   : > { %4167 = vmatmul.mubr.bf16.gmra.mrb[56].mxu0 %v3931_v51  ;;  %v14201_v51 = vld [vmem:[#allocation82_spill] sm:$0xff] }
 0x8ad   : > { %5645 = vmatprep.mubr.msk.bf16.mxu0 %vm8432_vm3, %v5644_v35  ;;  %4704 = vperm.xlu1 %6446, %v4590_v18   ;;  %v3702_v18 = vadd.f32 %v14199_v26, %v3602_v0  ;;  %v3933_v58 = vpack.c.bf16 %v3898_v22, %v3897_v23  ;;  %v3245_v52 = vadd.f32 %v14202_v11, %v14201_v51  ;;  %v14203_v35 = vld [vmem:[#allocation68_spill] sm:$0xff]  ;;  %v14214_v34 = vld [vmem:[#allocation202_spill] sm:$0xff] }
 0x8ae   : > { %v3406_v49 = vadd.f32 %v14203_v35, %v3246_v25  ;;  %v3248_v63 = vadd.f32 %v6969_v27, %v14214_v34  ;;  %v14215_v0 = vld [vmem:[#allocation156_spill] sm:$0xff]  ;;  %v6971_v25 = vld [vmem:[#allocation2 + $0xb9] sm:$0xff] }
 0x8af   : > { %4719 = vperm.xlu0 %6440, %v4593_v42   ;;  %v3701_v42 = vadd.f32 %v14204_v46, %v3601_v32  ;;  %v3802_v24 = vadd.f32 %v14205_v61, %v3702_v18  ;;  %v3405_v62 = vadd.f32 %v14207_v6, %v3245_v52  ;;  %v5650_v3 = vpack.c.bf16 %v6970_v10, %v6971_v25  ;;  %v3858_v32 = vpop.permute.xlu1 %3857  ;;  %v14217_v26 = vld [vmem:[#allocation198_spill] sm:$0xff]  ;;  %v3856_v52 = vpop.permute.xlu0 %3855  ;;  %v14223_v35 = vld [vmem:[#allocation195_spill] sm:$0xff]  ;;  %v14225_v61 = vld [vmem:[#allocation96_spill] sm:$0xff] }
 0x8b0   : > { %v3506_v54 = vadd.f32 %v14208_v29, %v3406_v49  ;;  %v4601_v18 = vsub.f32 1.0, %v14217_v26  ;;  %v14222_v51 = vld [vmem:[#allocation18_spill] sm:$0xff]  ;;  %v4600_v49 = vsub.f32 1.0, %v14223_v35  ;;  %v14228_v29 = vld [vmem:[#allocation141_spill] sm:$0xff]  ;;  %v14232_v34 = vld [vmem:[#allocation32_spill] sm:$0xff] }
 0x8b1   : > { %4714 = vperm.xlu1 %6446, %v4592_v50   ;;  %v3801_v19 = vadd.f32 %v14209_v48, %v3701_v42  ;;  %v3900_v50 = vadd.f32 %v3854_v7, %v3802_v24  ;;  %v3505_v14 = vadd.f32 %v14211_v44, %v3405_v62  ;;  %v14224_v46 = vld [vmem:[#allocation114_spill] sm:$0xff]  ;;  %v14236_v10 = vld [vmem:[#allocation149_spill] sm:$0xff] }
 0x8b2   : > { %v3604_v55 = vadd.f32 %v14212_v15, %v3506_v54  ;;  %v14227_v6 = vld [vmem:[#allocation214_spill] sm:$0xff] }
 0x8b3   : > { %4729 = vperm.xlu0 %6440, %v4595_v47   ;;  %v3899_v22 = vadd.f32 %v3852_v37, %v3801_v19  ;;  %v4598_v47 = vsub.f32 1.0, %v14213_v2  ;;  %v3603_v23 = vadd.f32 %v14215_v0, %v3505_v14  ;;  %v14226_v37 = vld [vmem:[#allocation17_spill] sm:$0xff]  ;;  %v6972_v19 = vld [vmem:[#allocation2 + $0xbf] sm:$0xff]  ;;  %v3862_v27 = vpop.permute.xlu1 %3861 }
 0x8b4   : > { %4175 = vmatmul.mubr.bf16.gmra.mrb[60].mxu0 %v3933_v58  ;;  %v14218_v58 = vld [vmem:[#allocation30_spill] sm:$0xff]  ;;  %v14231_v14 = vld [vmem:[#allocation115_spill] sm:$0xff]  ;;  %v6974_v2 = vld [vmem:[#allocation2 + $0xc9] sm:$0xff] }
 0x8b5   : > { %5648 = vmatprep.mubr.msk.bf16.mxu0 %vm8432_vm3, %v5647_v59  ;;  %4724 = vperm.xlu1 %6446, %v4594_v28   ;;  %v3704_v28 = vadd.f32 %v14216_v1, %v3604_v55  ;;  %v3935_v17 = vpack.c.bf16 %v3900_v50, %v3899_v22  ;;  %v3247_v45 = vadd.f32 %v14219_v30, %v14218_v58  ;;  %v14220_v59 = vld [vmem:[#allocation190_spill] sm:$0xff]  ;;  %v14229_v50 = vld [vmem:[#allocation124_spill] sm:$0xff]  ;;  %v14239_v30 = vld [vmem:[#allocation145_spill] sm:$0xff] }
 0x8b6   : > { %v3408_v7 = vadd.f32 %v14220_v59, %v3248_v63  ;;  %v3250_v21 = vadd.f32 %v6972_v19, %v14229_v50  ;;  %v6973_v22 = vld [vmem:[#allocation2 + $0xd1] sm:$0xff] }
 0x8b7   : > { %4739 = vperm.xlu0 %6440, %v4597_v56   ;;  %v3703_v56 = vadd.f32 %v14221_v38, %v3603_v23  ;;  %v3804_v11 = vadd.f32 %v14222_v51, %v3704_v28  ;;  %v3407_v42 = vadd.f32 %v14224_v46, %v3247_v45  ;;  %v14233_v63 = vld [vmem:[#allocation133_spill] sm:$0xff]  ;;  %v14234_v23 = vld [vmem:[#allocation151_spill] sm:$0xff]  ;;  %v14242_v35 = vld [vmem:[#allocation54_spill] sm:$0xff] }
 0x8b8   : > { %v3508_v24 = vadd.f32 %v14225_v61, %v3408_v7  ;;  %v3249_v0 = vadd.f32 %v14233_v63, %v14232_v34  ;;  %v3410_v1 = vadd.f32 %v14234_v23, %v3250_v21  ;;  %v14235_v28 = vld [vmem:[#allocation215_spill] sm:$0xff]  ;;  %v14243_v46 = vld [vmem:[#allocation118_spill] sm:$0xff]  ;;  %v14244_v61 = vld [vmem:[#allocation193_spill] sm:$0xff] }
 0x8b9   : > { %4734 = vperm.xlu1 %6446, %v4596_v31   ;;  %v3803_v43 = vadd.f32 %v14226_v37, %v3703_v56  ;;  %v3902_v31 = vadd.f32 %v3858_v32, %v3804_v11  ;;  %v3507_v62 = vadd.f32 %v14227_v6, %v3407_v42  ;;  %v14237_v32 = vld [vmem:[#allocation201_spill] sm:$0xff]  ;;  %v14240_v7 = vld [vmem:[#allocation23_spill] sm:$0xff]  ;;  %v14241_v56 = vld [vmem:[#allocation86_spill] sm:$0xff] }
 0x8ba   : > { %v3606_v54 = vadd.f32 %v14228_v29, %v3508_v24  ;;  %v3409_v26 = vadd.f32 %v14237_v32, %v3249_v0  ;;  %v14245_v29 = vld [vmem:[#allocation210_spill] sm:$0xff]  ;;  %v14248_v21 = vld [vmem:[#allocation77_spill] sm:$0xff] }
 0x8bb   : > { %4749 = vperm.xlu0 %6440, %v4599_v4   ;;  %v3901_v48 = vadd.f32 %v3856_v52, %v3803_v43  ;;  %v14230_v4 = vld [vmem:[#allocation112_spill] sm:$0xff]  ;;  %v14247_v19 = vld [vmem:[#allocation142_spill] sm:$0xff] }
 0x8bc   : > { %4183 = vmatmul.mubr.bf16.gmra.mrb[64].mxu0 %v3935_v17  ;;  %v3605_v44 = vadd.f32 %v14230_v4, %v3507_v62  ;;  %v3706_v15 = vadd.f32 %v14231_v14, %v3606_v54  ;;  %v3509_v38 = vadd.f32 %v14240_v7, %v3409_v26  ;;  %v6975_v52 = vld [vmem:[#allocation2 + $0xcf] sm:$0xff]  ;;  %v6976_v43 = vld [vmem:[#allocation2 + $0xe1] sm:$0xff]  ;;  %v3866_v62 = vpop.permute.xlu1 %3865  ;;  %v14253_v0 = vld [vmem:[#allocation70_spill] sm:$0xff] }
 0x8bd   : > { %5651 = vmatprep.mubr.msk.bf16.mxu0 %vm8432_vm3, %v5650_v3  ;;  %4744 = vperm.xlu1 %6446, %v4598_v47   ;;  %v3937_v55 = vpack.c.bf16 %v3902_v31, %v3901_v48  ;;  %v5653_v47 = vpack.c.bf16 %v6973_v22, %v6974_v2  ;;  %v3860_v3 = vpop.permute.xlu0 %3859  ;;  %v6977_v31 = vld [vmem:[#allocation2 + $0xd9] sm:$0xff]  ;;  %v14246_v54 = vld [vmem:[#allocation136_spill] sm:$0xff] }
 0x8be   : > { %v3705_v17 = vadd.f32 %v14235_v28, %v3605_v44  ;;  %v3806_v25 = vadd.f32 %v14236_v10, %v3706_v15  ;;  %v3607_v42 = vadd.f32 %v14243_v46, %v3509_v38  ;;  %v5656_v6 = vpack.c.bf16 %v6976_v43, %v6977_v31  ;;  %v14249_v44 = vld [vmem:[#allocation153_spill] sm:$0xff]  ;;  %v14251_v2 = vld [vmem:[#allocation167_spill] sm:$0xff]  ;;  %v14256_v32 = vld [vmem:[#allocation218_spill] sm:$0xff] }
 0x8bf   : > { %4759 = vperm.xlu0 %6440, %v4601_v18   ;;  %v14238_v18 = vld [vmem:[#allocation183_spill] sm:$0xff]  ;;  %v3251_v48 = vadd.f32 %v14246_v54, %v14245_v29  ;;  %v14264_v31 = vld [vmem:[#allocation116_spill] sm:$0xff] }
 0x8c0   : > { %v3510_v58 = vadd.f32 %v14238_v18, %v3410_v1  ;;  %v3805_v45 = vadd.f32 %v14239_v30, %v3705_v17  ;;  %v3904_v59 = vadd.f32 %v3862_v27, %v3806_v25  ;;  %v3707_v4 = vadd.f32 %v14248_v21, %v3607_v42  ;;  %v14252_v27 = vld [vmem:[#allocation147_spill] sm:$0xff]  ;;  %v14254_v1 = vld [vmem:[#allocation22_spill] sm:$0xff]  ;;  %v14255_v25 = vld [vmem:[#allocation72_spill] sm:$0xff]  ;;  %v3870_v38 = vpop.permute.xlu1 %3869 }
 0x8c1   : > { %4754 = vperm.xlu1 %6446, %v4600_v49   ;;  %v3252_v49 = vadd.f32 %v6975_v52, %v14242_v35  ;;  %v3864_v15 = vpop.permute.xlu0 %3863  ;;  %v6978_v10 = vld [vmem:[#allocation2 + $0xdf] sm:$0xff] }
 0x8c2   : > { %v3608_v51 = vadd.f32 %v14241_v56, %v3510_v58  ;;  %v3903_v11 = vadd.f32 %v3860_v3, %v3805_v45  ;;  %v3807_v34 = vadd.f32 %v14252_v27, %v3707_v4  ;;  %v3254_v3 = vadd.f32 %v6978_v10, %v14255_v25  ;;  %v14257_v18 = vld [vmem:[#allocation126_spill] sm:$0xff]  ;;  %v14258_v56 = vld [vmem:[#allocation29_spill] sm:$0xff]  ;;  %v14260_v52 = vld [vmem:[#allocation71_spill] sm:$0xff] }
 0x8c3   : > { %v3412_v50 = vadd.f32 %v14247_v19, %v3252_v49  ;;  %v6979_v45 = vld [vmem:[#allocation2 + $0xf1] sm:$0xff]  ;;  %v14261_v49 = vld [vmem:[#allocation143_spill] sm:$0xff] }
 0x8c4   : > { %4191 = vmatmul.mubr.bf16.gmra.mrb[68].mxu0 %v3937_v55  ;;  %v3708_v24 = vadd.f32 %v14244_v61, %v3608_v51  ;;  %v3939_v37 = vpack.c.bf16 %v3904_v59, %v3903_v11  ;;  %v14250_v55 = vld [vmem:[#allocation40_spill] sm:$0xff]  ;;  %v3905_v17 = vadd.f32 %v3864_v15, %v3807_v34  ;;  %v3414_v35 = vadd.f32 %v14260_v52, %v3254_v3  ;;  %v14262_v42 = vld [vmem:[#allocation222_spill] sm:$0xff]  ;;  %v14273_v10 = vld [vmem:[#allocation45_spill] sm:$0xff] }
 0x8c5   : > { %5654 = vmatprep.mubr.msk.bf16.mxu0 %vm8432_vm3, %v5653_v47  ;;  %v3411_v22 = vadd.f32 %v14250_v55, %v3251_v48  ;;  %v3512_v47 = vadd.f32 %v14251_v2, %v3412_v50  ;;  %v6980_v59 = vld [vmem:[#allocation2 + $0xe9] sm:$0xff]  ;;  %v14266_v48 = vld [vmem:[#allocation98_spill] sm:$0xff]  ;;  %v6982_v34 = vld [vmem:[#allocation2 + $0x101] sm:$0xff] }
 0x8c6   : > { %v3808_v14 = vadd.f32 %v14249_v44, %v3708_v24  ;;  %v5659_v7 = vpack.c.bf16 %v6979_v45, %v6980_v59  ;;  %v14259_v51 = vld [vmem:[#allocation216_spill] sm:$0xff]  ;;  %v3868_v24 = vpop.permute.xlu0 %3867  ;;  %v14269_v55 = vld [vmem:[#allocation209_spill] sm:$0xff]  ;;  %v14274_v3 = vld [vmem:[#allocation206_spill] sm:$0xff] }
 0x8c7   : > { %v3511_v23 = vadd.f32 %v14253_v0, %v3411_v22  ;;  %v3610_v28 = vadd.f32 %v14254_v1, %v3512_v47  ;;  %v3253_v11 = vadd.f32 %v14259_v51, %v14258_v56  ;;  %v14267_v50 = vld [vmem:[#allocation168_spill] sm:$0xff]  ;;  %v14276_v45 = vld [vmem:[#allocation174_spill] sm:$0xff]  ;;  %v14278_v51 = vld [vmem:[#allocation127_spill] sm:$0xff] }
 0x8c8   : > { %v3906_v63 = vadd.f32 %v3866_v62, %v3808_v14  ;;  %v14265_v62 = vld [vmem:[#allocation221_spill] sm:$0xff]  ;;  %v14268_v14 = vld [vmem:[#allocation182_spill] sm:$0xff]  ;;  %v14270_v2 = vld [vmem:[#allocation52_spill] sm:$0xff] }
 0x8c9   : > { %v3609_v26 = vadd.f32 %v14256_v32, %v3511_v23  ;;  %v3710_v58 = vadd.f32 %v14257_v18, %v3610_v28  ;;  %v6981_v44 = vld [vmem:[#allocation2 + $0xef] sm:$0xff]  ;;  %v3874_v23 = vpop.permute.xlu1 %3873  ;;  %v14272_v28 = vld [vmem:[#allocation35_spill] sm:$0xff] }
 0x8ca   : > { %v3941_v30 = vpack.c.bf16 %v3906_v63, %v3905_v17  ;;  %v3256_v15 = vadd.f32 %v6981_v44, %v14268_v14  ;;  %v6983_v63 = vld [vmem:[#allocation2 + $0xf9] sm:$0xff]  ;;  %v14271_v1 = vld [vmem:[#allocation144_spill] sm:$0xff]  ;;  %v3872_v18 = vpop.permute.xlu0 %3871  ;;  %v14279_v52 = vld [vmem:[#allocation101_spill] sm:$0xff] }
 0x8cb   : > { %v3709_v46 = vadd.f32 %v14261_v49, %v3609_v26  ;;  %v3810_v61 = vadd.f32 %v14262_v42, %v3710_v58  ;;  %v5662_v0 = vpack.c.bf16 %v6982_v34, %v6983_v63  ;;  %v3255_v17 = vadd.f32 %v14272_v28, %v14271_v1  ;;  %v14275_v58 = vld [vmem:[#allocation138_spill] sm:$0xff]  ;;  %v14286_v44 = vld [vmem:[#allocation100_spill] sm:$0xff]  ;;  %v14289_v1 = vld [vmem:[#allocation69_spill] sm:$0xff] }
 0x8cc   : > { %4199 = vmatmul.mubr.bf16.gmra.mrb[72].mxu0 %v3939_v37  ;;  %v14263_v37 = vld [vmem:[#allocation104_spill] sm:$0xff]  ;;  %v3416_v25 = vadd.f32 %v14273_v10, %v3256_v15  ;;  %v14280_v42 = vld [vmem:[#allocation58_spill] sm:$0xff] }
 0x8cd   : > { %5657 = vmatprep.mubr.msk.bf16.mxu0 %vm8432_vm3, %v5656_v6  ;;  %v3413_v43 = vadd.f32 %v14263_v37, %v3253_v11  ;;  %v3514_v6 = vadd.f32 %v14264_v31, %v3414_v35  ;;  %v3809_v29 = vadd.f32 %v14265_v62, %v3709_v46  ;;  %v3908_v54 = vadd.f32 %v3870_v38, %v3810_v61  ;;  %v6984_v46 = vld [vmem:[#allocation2 + $0xff] sm:$0xff]  ;;  %v14281_v61 = vld [vmem:[#allocation25_spill] sm:$0xff] }
 0x8ce   : > { %v3516_v59 = vadd.f32 %v14276_v45, %v3416_v25  ;;  %v14282_v37 = vld [vmem:[#allocation43_spill] sm:$0xff]  ;;  %v6986_v62 = vld [vmem:[#allocation2 + $0x109] sm:$0xff] }
 0x8cf   : > { %v3513_v19 = vadd.f32 %v14266_v48, %v3413_v43  ;;  %v3612_v21 = vadd.f32 %v14267_v50, %v3514_v6  ;;  %v3907_v4 = vadd.f32 %v3868_v24, %v3809_v29  ;;  %v6985_v6 = vld [vmem:[#allocation2 + $0x111] sm:$0xff] }
 0x8d0   : > { %v3614_v35 = vadd.f32 %v14279_v52, %v3516_v59  ;;  %v5665_v29 = vpack.c.bf16 %v6985_v6, %v6986_v62  ;;  %v14283_v48 = vld [vmem:[#allocation94_spill] sm:$0xff]  ;;  %v14293_v45 = vld [vmem:[#allocation97_spill] sm:$0xff] }
 0x8d1   : > { %v3611_v22 = vadd.f32 %v14269_v55, %v3513_v19  ;;  %v3712_v47 = vadd.f32 %v14270_v2, %v3612_v21  ;;  %v3943_v27 = vpack.c.bf16 %v3908_v54, %v3907_v4  ;;  %v3878_v54 = vpop.permute.xlu1 %3877  ;;  %v14284_v19 = vld [vmem:[#allocation139_spill] sm:$0xff]  ;;  %v14285_v21 = vld [vmem:[#allocation109_spill] sm:$0xff]  ;;  %v3876_v55 = vpop.permute.xlu0 %3875 }
 0x8d2   : > { %v3714_v43 = vadd.f32 %v14282_v37, %v3614_v35  ;;  %v3257_v50 = vadd.f32 %v14284_v19, %v14283_v48 }
 0x8d3   : > { %v3711_v32 = vadd.f32 %v14274_v3, %v3611_v22  ;;  %v3812_v26 = vadd.f32 %v11561_v5, %v3712_v47  ;;  %v3258_v5 = vadd.f32 %v6984_v46, %v14280_v42  ;;  %v14287_v22 = vld [vmem:[#allocation44_spill] sm:$0xff]  ;;  %v14288_v47 = vld [vmem:[#allocation63_spill] sm:$0xff] }
 0x8d4   : > { %4207 = vmatmul.mubr.bf16.gmra.mrb[76].mxu0 %v3941_v30  ;;  %v3415_v30 = vadd.f32 %v14275_v58, %v3255_v17  ;;  %v3814_v15 = vadd.f32 %v11571_v57, %v3714_v43  ;;  %v3417_v2 = vadd.f32 %v14287_v22, %v3257_v50  ;;  %v14290_v17 = vld [vmem:[#allocation207_spill] sm:$0xff]  ;;  %v14291_v3 = vld [vmem:[#allocation152_spill] sm:$0xff] }
 0x8d5   : > { %5660 = vmatprep.mubr.msk.bf16.mxu0 %vm8432_vm3, %v5659_v7  ;;  %v14277_v7 = vld [vmem:[#allocation223_spill] sm:$0xff]  ;;  %v3910_v56 = vadd.f32 %v3874_v23, %v3812_v26  ;;  %v3418_v4 = vadd.f32 %v14285_v21, %v3258_v5  ;;  %v14292_v26 = vld [vmem:[#allocation38_spill] sm:$0xff] }
 0x8d6   : > { %v3811_v38 = vadd.f32 %v14277_v7, %v3711_v32  ;;  %v3515_v11 = vadd.f32 %v14278_v51, %v3415_v30  ;;  %v3912_v63 = vadd.f32 %v3878_v54, %v3814_v15  ;;  %v3916_v23 = vld [vmem:[#allocation2 + $0x121] sm:$0xff]  ;;  %v3517_v28 = vadd.f32 %v14289_v1, %v3417_v2  ;;  %v3882_v30 = vpop.permute.xlu1 %3881 }
 0x8d8   : > { %v3909_v49 = vadd.f32 %v3872_v18, %v3811_v38  ;;  %v3613_v24 = vadd.f32 %v14281_v61, %v3515_v11  ;;  %v3615_v32 = vadd.f32 %v14291_v3, %v3517_v28 }
 0x8da   : > { %v3945_v31 = vpack.c.bf16 %v3910_v56, %v3909_v49  ;;  %v3713_v14 = vadd.f32 %v14286_v44, %v3613_v24  ;;  %v3715_v59 = vadd.f32 %v14293_v45, %v3615_v32  ;;  %v11854_v52 = vpop.permute.xlu1 %6366 }
 0x8dc   : > { %4215 = vmatmul.mubr.bf16.gmra.mrb[80].mxu0 %v3943_v27  ;;  %v3518_v27 = vadd.f32 %v14288_v47, %v3418_v4  ;;  %v3813_v34 = vadd.f32 %v11566_v41, %v3713_v14  ;;  %v3880_v41 = vpop.permute.xlu0 %3879  ;;  %v3815_v38 = vadd.f32 %v11576_v40, %v3715_v59  ;;  %v11909_v47 = vld [vmem:[%s12700_s6] ss:$0 sm:$0xff] }
 0x8dd   : > { %5663 = vmatprep.mubr.msk.bf16.mxu0 %vm8432_vm3, %v5662_v0  ;;  %v3915_v0 = vld [vmem:[#allocation2 + $0x119] sm:$0xff] }
 0x8de   : > { %v3616_v10 = vadd.f32 %v14290_v17, %v3518_v27  ;;  %v3911_v25 = vadd.f32 %v3876_v55, %v3813_v34  ;;  %v5668_v57 = vpack.c.bf16 %v3916_v23, %v3915_v0  ;;  %v3913_v51 = vadd.f32 %v3880_v41, %v3815_v38  ;;  %v11856_v49 = vpop.permute.xlu1 %6376 }
 0x8e0   : > { %v3716_v18 = vadd.f32 %v14292_v26, %v3616_v10  ;;  %v3947_v58 = vpack.c.bf16 %v3912_v63, %v3911_v25  ;;  %v6362_v35 = vpop.permute.xlu0 %6361  ;;  %v14294_v25 = vlaneseq }
 0x8e2   : > { %v3816_v7 = vadd.f32 %v11583_v60, %v3716_v18  ;;  %v11860_v42 = vpop.permute.xlu1 %6386  ;;  %v6363_v18 = vunpack.i.l.bf16 %v6362_v35 }
 0x8e4   : > { %4223 = vmatmul.mubr.bf16.gmra.mrb[84].mxu0 %v3945_v31  ;;  %v3914_v56 = vadd.f32 %v3882_v30, %v3816_v7  ;;  %v11858_v46 = vpop.permute.xlu0 %6371  ;;  %v6364_v7 = vunpack.i.h.bf16 %v6362_v35 }
 0x8e5   : > { %5666 = vmatprep.mubr.msk.bf16.mxu0 %vm8432_vm3, %v5665_v29 }
 0x8e6   : > { %v3949_v11 = vpack.c.bf16 %v3914_v56, %v3913_v51  ;;  %v11864_v5 = vpop.permute.xlu1 %6396 }
 0x8e8   : > { %v11862_v60 = vpop.permute.xlu0 %6381 }
 0x8ea   : > { %v11868_v40 = vpop.permute.xlu1 %6406 }
 0x8ec   : > { %4231 = vmatmul.mubr.bf16.gmra.mrb[88].mxu0 %v3947_v58  ;;  %v11866_v9 = vpop.permute.xlu0 %6391 }
 0x8ed   : > { %5669 = vmatprep.mubr.msk.bf16.mxu0 %vm8432_vm3, %v5668_v57  ;;  %v11918_v57 = vand.u32 127, %v14294_v25 }
 0x8ee   : > { %v11872_v24 = vpop.permute.xlu1 %6416 }
 0x8ef   : > { %vm4281_vm0 = vcmp.lt.s32.totalorder %v11918_v57, 3  ;;  %vm4922_vm1 = vcmp.ge.s32.totalorder %v11918_v57, 6  ;;  %vm4923_vm3 = vcmp.lt.s32.totalorder %v11918_v57, 10  ;;  %vm5053_vm4 = vcmp.ge.s32.totalorder %v11918_v57, 10 }
 0x8f0   : > { %v11870_v61 = vpop.permute.xlu0 %6401  ;;  %v4346_v51 = vsel %vm4281_vm0, %v6363_v18, 0.0  ;;  %vm12305_vm2 = vmand %vm4922_vm1, %vm4923_vm3  ;;  %vm5054_vm5 = vcmp.lt.s32.totalorder %v11918_v57, 13 }
 0x8f1   : > { %vm12481_vm6 = vmand %vm5053_vm4, %vm5054_vm5 }
 0x8f2   : > { %v11876_v43 = vpop.permute.xlu1 %6426 }
 0x8f4   : > { %4239 = vmatmul.mubr.bf16.gmra.mrb[92].mxu0 %v3949_v11  ;;  %v11874_v37 = vpop.permute.xlu0 %6411 }
 0x8f6   : > { %v11880_v6 = vpop.permute.xlu1 %6436 }
 0x8f8   : > { %v11878_v31 = vpop.permute.xlu0 %6421 }
 0x8fa   : > { %v11884_v29 = vpop.permute.xlu1 %6448 }
 0x8fc   : > { %v11882_v62 = vpop.permute.xlu0 %6431 }
 0x8fe   : > { %v11886_v48 = vpop.permute.xlu1 %6453 }
 0x900   : > { %v6443_v54 = vpop.permute.xlu0 %6442 }
 0x901   : > { %v6444_v56 = vunpack.i.l.bf16 %v6443_v54 }
 0x902   : > { %v11890_v50 = vpop.permute.xlu1 %6463 }
 0x904   : > { %v11888_v19 = vpop.permute.xlu0 %6458 }
 0x906   : > { %v11894_v4 = vpop.permute.xlu1 %6473 }
 0x908   : > { %v11892_v21 = vpop.permute.xlu0 %6468 }
 0x90a   : > { %v11898_v14 = vpop.permute.xlu1 %6483 }
 0x90c   : > { %v11896_v44 = vpop.permute.xlu0 %6478 }
 0x90e   : > { %v11902_v55 = vpop.permute.xlu1 %6493 }
 0x910   : > { %v11900_v15 = vpop.permute.xlu0 %6488 }
 0x912   : > { %v11911_v23 = vpop.permute.xlu1 %6503 }
 0x914   : > { %v11904_v22 = vpop.permute.xlu0 %6498 }
 0x916   : > { %v11920_v26 = vpop.permute.xlu1 %6513 }
 0x918   : > { %v11914_v17 = vpop.permute.xlu0 %6508 }
 0x91c   : > { %v11923_v59 = vpop.permute.xlu0 %6518 }
 0x920   : > { %v4610_v25 = vpop.permute.xlu0 %4609 }
 0x94f   : > { %v6155_v2 = vpop.f32.mrb[32].mxu0 }
 0x950   : > { %v6156_v27 = vpop.f32.mrb[33].mxu0 }
 0x951   : > { %v6157_v34 = vadd.f32 %v6156_v27, %v6155_v2  ;;  %v6158_v63 = vpop.f32.mrb[34].mxu0  ;;  %v6445_v2 = vunpack.i.h.bf16 %v6443_v54 }
 0x952   : > { %v6159_v0 = vpop.f32.mrb[35].mxu0 }
 0x953   : > { %v4121_v1 = vadd.f32 %v6157_v34, %v11909_v47  ;;  %v6160_v28 = vadd.f32 %v6159_v0, %v6158_v63  ;;  %v4605_v34 = vpop.permute.xlu1 %4604  ;;  %v4347_v63 = vsel %vm4281_vm0, %v6364_v7, 0.0  ;;  %v6369_v7 = vunpack.i.h.bf16 %v11854_v52 }
 0x954   : > { %v4762_v35 = vmul.f32 %v4605_v34, %v4346_v51  ;;  %v4763_v54 = vmul.f32 %v4610_v25, %v4347_v63  ;;  %v6450_v51 = vunpack.i.l.bf16 %v11884_v29  ;;  %v6451_v63 = vunpack.i.h.bf16 %v11884_v29 }
 0x955   : > { %6730 = vtanh.f32 %v4121_v1  ;;  %v4124_v10 = vadd.f32 %v6160_v28, %v11909_v47 }
 0x957   : > { %6732 = vtanh.f32 %v4124_v10  ;;  %v6161_v3 = vpop.f32.mrb[36].mxu0 }
 0x958   : > { %v6162_v32 = vpop.f32.mrb[37].mxu0 }
 0x959   : > { %v6163_v58 = vadd.f32 %v6162_v32, %v6161_v3  ;;  %v6164_v30 = vpop.f32.mrb[38].mxu0  ;;  %v6368_v3 = vunpack.i.l.bf16 %v11854_v52 }
 0x95a   : > { %v6165_v45 = vpop.f32.mrb[39].mxu0 }
 0x95b   : > { %v4129_v41 = vadd.f32 %v6163_v58, %v11909_v47  ;;  %v6166_v38 = vadd.f32 %v6165_v45, %v6164_v30 }
 0x95d   : > { %6734 = vtanh.f32 %v4129_v41  ;;  %v4132_v11 = vadd.f32 %v6166_v38, %v11909_v47 }
 0x95f   : > { %v11929_v27 = vpop.eup %6730  ;;  %6736 = vtanh.f32 %v4132_v11  ;;  %v6167_v0 = vpop.f32.mrb[40].mxu0  ;;  %v4348_v11 = vsel %vm4281_vm0, %v6368_v3, 0.0 }
 0x960   : > { %v6168_v1 = vpop.f32.mrb[41].mxu0  ;;  %v4538_v28 = vmul.f32 %v11929_v27, %v6444_v56 }
 0x961   : > { %v11934_v10 = vpop.eup %6732  ;;  %v6169_v32 = vadd.f32 %v6168_v1, %v6167_v0  ;;  %v6170_v18 = vpop.f32.mrb[42].mxu0  ;;  %v4349_v0 = vsel %vm4281_vm0, %v6369_v7, 0.0  ;;  %v6374_v7 = vunpack.i.h.bf16 %v11858_v46 }
 0x962   : > { %v6171_v58 = vpop.f32.mrb[43].mxu0  ;;  %v4794_v30 = vadd.f32 %v4762_v35, %v4538_v28  ;;  %v4539_v45 = vmul.f32 %v11934_v10, %v6445_v2  ;;  %v4615_v2 = vpop.permute.xlu1 %4614 }
 0x963   : > { %v4137_v41 = vadd.f32 %v6169_v32, %v11909_v47  ;;  %v6172_v38 = vadd.f32 %v6171_v58, %v6170_v18  ;;  %v4764_v1 = vmul.f32 %v4615_v2, %v4348_v11  ;;  %v4620_v32 = vpop.permute.xlu0 %4619  ;;  %v6373_v18 = vunpack.i.l.bf16 %v11858_v46 }
 0x964   : > { %4826 = vrot.lane.b32.xlu1 %v4794_v30, %s7194_s9  ;;  %v4795_v56 = vadd.f32 %v4763_v54, %v4539_v45  ;;  %v4765_v58 = vmul.f32 %v4620_v32, %v4349_v0  ;;  %v6455_v11 = vunpack.i.l.bf16 %v11886_v48  ;;  %v6456_v0 = vunpack.i.h.bf16 %v11886_v48 }
 0x965   : > { %6738 = vtanh.f32 %v4137_v41  ;;  %v4140_v34 = vadd.f32 %v6172_v38, %v11909_v47 }
 0x966   : > { %4828 = vrot.lane.b32.xlu0 %v4795_v56, %s7194_s9  ;;  %v4625_v46 = vpop.permute.xlu1 %4624 }
 0x967   : > { %v11947_v52 = vpop.eup %6734  ;;  %6740 = vtanh.f32 %v4140_v34  ;;  %v6173_v35 = vpop.f32.mrb[44].mxu0  ;;  %v4350_v34 = vsel %vm4281_vm0, %v6373_v18, 0.0 }
 0x968   : > { %v6174_v28 = vpop.f32.mrb[45].mxu0  ;;  %v4540_v25 = vmul.f32 %v11947_v52, %v6450_v51 }
 0x969   : > { %v11952_v3 = vpop.eup %6736  ;;  %v6175_v29 = vadd.f32 %v6174_v28, %v6173_v35  ;;  %v6176_v54 = vpop.f32.mrb[46].mxu0  ;;  %v4351_v35 = vsel %vm4281_vm0, %v6374_v7, 0.0  ;;  %v4766_v28 = vmul.f32 %v4625_v46, %v4350_v34  ;;  %v6379_v7 = vunpack.i.h.bf16 %v11856_v49 }
 0x96a   : > { %v6177_v30 = vpop.f32.mrb[47].mxu0  ;;  %v4796_v45 = vadd.f32 %v4764_v1, %v4540_v25  ;;  %v4541_v41 = vmul.f32 %v11952_v3, %v6451_v63  ;;  %v6460_v34 = vunpack.i.l.bf16 %v11888_v19 }
 0x96b   : > { %v4145_v38 = vadd.f32 %v6175_v29, %v11909_v47  ;;  %v6178_v56 = vadd.f32 %v6177_v30, %v6176_v54  ;;  %v4630_v29 = vpop.permute.xlu0 %4629  ;;  %v6378_v54 = vunpack.i.l.bf16 %v11856_v49  ;;  %v4635_v49 = vpop.permute.xlu1 %4634 }
 0x96c   : > { %4830 = vrot.lane.b32.xlu1 %v4796_v45, %s7194_s9  ;;  %v4797_v51 = vadd.f32 %v4765_v58, %v4541_v41  ;;  %v4767_v30 = vmul.f32 %v4630_v29, %v4351_v35  ;;  %v6461_v35 = vunpack.i.h.bf16 %v11888_v19 }
 0x96d   : > { %6742 = vtanh.f32 %v4145_v38  ;;  %v4148_v2 = vadd.f32 %v6178_v56, %v11909_v47 }
 0x96e   : > { %4832 = vrot.lane.b32.xlu0 %v4797_v51, %s7194_s9 }
 0x96f   : > { %v11965_v63 = vpop.eup %6738  ;;  %6744 = vtanh.f32 %v4148_v2  ;;  %v6179_v1 = vpop.f32.mrb[48].mxu0  ;;  %v4352_v2 = vsel %vm4281_vm0, %v6378_v54, 0.0 }
 0x970   : > { %v6180_v25 = vpop.f32.mrb[49].mxu0  ;;  %v4542_v32 = vmul.f32 %v11965_v63, %v6455_v11 }
 0x971   : > { %v11970_v18 = vpop.eup %6740  ;;  %v6181_v48 = vadd.f32 %v6180_v25, %v6179_v1  ;;  %v6182_v58 = vpop.f32.mrb[50].mxu0  ;;  %v4353_v1 = vsel %vm4281_vm0, %v6379_v7, 0.0  ;;  %v4768_v25 = vmul.f32 %v4635_v49, %v4352_v2  ;;  %v6384_v7 = vunpack.i.h.bf16 %v11862_v60 }
 0x972   : > { %v6183_v45 = vpop.f32.mrb[51].mxu0  ;;  %v4798_v41 = vadd.f32 %v4766_v28, %v4542_v32  ;;  %v4543_v38 = vmul.f32 %v11970_v18, %v6456_v0  ;;  %v6465_v2 = vunpack.i.l.bf16 %v11890_v50 }
 0x973   : > { %v4153_v56 = vadd.f32 %v6181_v48, %v11909_v47  ;;  %v6184_v51 = vadd.f32 %v6183_v45, %v6182_v58  ;;  %v4640_v48 = vpop.permute.xlu0 %4639  ;;  %v6383_v58 = vunpack.i.l.bf16 %v11862_v60  ;;  %v4355_v60 = vsel %vm4281_vm0, %v6384_v7, 0.0 }
 0x974   : > { %4834 = vrot.lane.b32.xlu1 %v4798_v41, %s7194_s9  ;;  %v4799_v11 = vadd.f32 %v4767_v30, %v4543_v38  ;;  %v4769_v45 = vmul.f32 %v4640_v48, %v4353_v1 }
 0x975   : > { %6746 = vtanh.f32 %v4153_v56  ;;  %v4156_v46 = vadd.f32 %v6184_v51, %v11909_v47 }
 0x976   : > { %4836 = vrot.lane.b32.xlu0 %v4799_v11, %s7194_s9 }
 0x977   : > { %v11983_v0 = vpop.eup %6742  ;;  %6748 = vtanh.f32 %v4156_v46  ;;  %v6185_v28 = vpop.f32.mrb[52].mxu0  ;;  %v4354_v46 = vsel %vm4281_vm0, %v6383_v58, 0.0 }
 0x978   : > { %v6186_v32 = vpop.f32.mrb[53].mxu0  ;;  %v4544_v29 = vmul.f32 %v11983_v0, %v6460_v34 }
 0x979   : > { %v11988_v54 = vpop.eup %6744  ;;  %v6187_v19 = vadd.f32 %v6186_v32, %v6185_v28  ;;  %v6188_v30 = vpop.f32.mrb[54].mxu0 }
 0x97a   : > { %v6189_v41 = vpop.f32.mrb[55].mxu0  ;;  %v4800_v38 = vadd.f32 %v4768_v25, %v4544_v29  ;;  %v4545_v56 = vmul.f32 %v11988_v54, %v6461_v35  ;;  %v4645_v35 = vpop.permute.xlu1 %4644  ;;  %v6466_v25 = vunpack.i.h.bf16 %v11890_v50 }
 0x97b   : > { %v4161_v51 = vadd.f32 %v6187_v19, %v11909_v47  ;;  %v6190_v11 = vadd.f32 %v6189_v41, %v6188_v30  ;;  %v4770_v32 = vmul.f32 %v4645_v35, %v4354_v46  ;;  %v4650_v19 = vpop.permute.xlu0 %4649  ;;  %v6388_v30 = vunpack.i.l.bf16 %v11860_v42 }
 0x97c   : > { %4838 = vrot.lane.b32.xlu1 %v4800_v38, %s7194_s9  ;;  %v4801_v34 = vadd.f32 %v4769_v45, %v4545_v56  ;;  %v4771_v38 = vmul.f32 %v4650_v19, %v4355_v60  ;;  %v6470_v35 = vunpack.i.l.bf16 %v11892_v21 }
 0x97d   : > { %6750 = vtanh.f32 %v4161_v51  ;;  %v4164_v49 = vadd.f32 %v6190_v11, %v11909_v47  ;;  %v6389_v11 = vunpack.i.h.bf16 %v11860_v42  ;;  %v4356_v46 = vsel %vm4281_vm0, %v6388_v30, 0.0 }
 0x97e   : > { %4840 = vrot.lane.b32.xlu0 %v4801_v34, %s7194_s9 }
 0x97f   : > { %v12000_v1 = vpop.eup %6746  ;;  %6752 = vtanh.f32 %v4164_v49  ;;  %v6191_v28 = vpop.f32.mrb[56].mxu0  ;;  %v4357_v42 = vsel %vm4281_vm0, %v6389_v11, 0.0 }
 0x980   : > { %v6192_v29 = vpop.f32.mrb[57].mxu0  ;;  %v4546_v48 = vmul.f32 %v12000_v1, %v6465_v2 }
 0x981   : > { %v12006_v58 = vpop.eup %6748  ;;  %v6193_v45 = vadd.f32 %v6192_v29, %v6191_v28  ;;  %v6194_v41 = vpop.f32.mrb[58].mxu0 }
 0x982   : > { %v6195_v56 = vpop.f32.mrb[59].mxu0  ;;  %v4802_v51 = vadd.f32 %v4770_v32, %v4546_v48  ;;  %v4547_v7 = vmul.f32 %v12006_v58, %v6466_v25  ;;  %v4655_v28 = vpop.permute.xlu1 %4654  ;;  %v6471_v32 = vunpack.i.h.bf16 %v11892_v21 }
 0x983   : > { %v4169_v50 = vadd.f32 %v6193_v45, %v11909_v47  ;;  %v6196_v34 = vadd.f32 %v6195_v56, %v6194_v41  ;;  %v4772_v29 = vmul.f32 %v4655_v28, %v4356_v46  ;;  %v4660_v45 = vpop.permute.xlu0 %4659  ;;  %v6393_v41 = vunpack.i.l.bf16 %v11866_v9 }
 0x984   : > { %4842 = vrot.lane.b32.xlu1 %v4802_v51, %s7194_s9  ;;  %v4803_v2 = vadd.f32 %v4771_v38, %v4547_v7  ;;  %v4773_v51 = vmul.f32 %v4660_v45, %v4357_v42  ;;  %v6475_v28 = vunpack.i.l.bf16 %v11894_v4 }
 0x985   : > { %6754 = vtanh.f32 %v4169_v50  ;;  %v4172_v49 = vadd.f32 %v6196_v34, %v11909_v47  ;;  %v6394_v34 = vunpack.i.h.bf16 %v11866_v9 }
 0x986   : > { %4844 = vrot.lane.b32.xlu0 %v4803_v2, %s7194_s9 }
 0x987   : > { %v12018_v60 = vpop.eup %6750  ;;  %6756 = vtanh.f32 %v4172_v49  ;;  %v6197_v25 = vpop.f32.mrb[60].mxu0  ;;  %v4358_v49 = vsel %vm4281_vm0, %v6393_v41, 0.0  ;;  %v4359_v9 = vsel %vm4281_vm0, %v6394_v34, 0.0 }
 0x988   : > { %v6198_v48 = vpop.f32.mrb[61].mxu0  ;;  %v4548_v19 = vmul.f32 %v12018_v60, %v6470_v35 }
 0x989   : > { %v12024_v30 = vpop.eup %6752  ;;  %v6199_v38 = vadd.f32 %v6198_v48, %v6197_v25  ;;  %v6200_v56 = vpop.f32.mrb[62].mxu0 }
 0x98a   : > { %v6201_v7 = vpop.f32.mrb[63].mxu0  ;;  %v4804_v50 = vadd.f32 %v4772_v29, %v4548_v19  ;;  %v4549_v11 = vmul.f32 %v12024_v30, %v6471_v32  ;;  %v4665_v25 = vpop.permute.xlu1 %4664  ;;  %v6476_v29 = vunpack.i.h.bf16 %v11894_v4 }
 0x98b   : > { %v4177_v21 = vadd.f32 %v6199_v38, %v11909_v47  ;;  %v6202_v2 = vadd.f32 %v6201_v7, %v6200_v56  ;;  %v4774_v48 = vmul.f32 %v4665_v25, %v4358_v49  ;;  %v4670_v38 = vpop.permute.xlu0 %4669  ;;  %v6398_v56 = vunpack.i.l.bf16 %v11864_v5 }
 0x98c   : > { %4846 = vrot.lane.b32.xlu1 %v4804_v50, %s7194_s9  ;;  %v4805_v46 = vadd.f32 %v4773_v51, %v4549_v11  ;;  %v4775_v50 = vmul.f32 %v4670_v38, %v4359_v9  ;;  %v6480_v25 = vunpack.i.l.bf16 %v11896_v44 }
 0x98d   : > { %6758 = vtanh.f32 %v4177_v21  ;;  %v4180_v35 = vadd.f32 %v6202_v2, %v11909_v47  ;;  %v6399_v2 = vunpack.i.h.bf16 %v11864_v5 }
 0x98e   : > { %4848 = vrot.lane.b32.xlu0 %v4805_v46, %s7194_s9 }
 0x98f   : > { %v12036_v42 = vpop.eup %6754  ;;  %6760 = vtanh.f32 %v4180_v35  ;;  %v6203_v32 = vpop.f32.mrb[64].mxu0  ;;  %v4360_v35 = vsel %vm4281_vm0, %v6398_v56, 0.0  ;;  %v4361_v5 = vsel %vm4281_vm0, %v6399_v2, 0.0 }
 0x990   : > { %v6204_v19 = vpop.f32.mrb[65].mxu0  ;;  %v4550_v45 = vmul.f32 %v12036_v42, %v6475_v28 }
 0x991   : > { %v12042_v41 = vpop.eup %6756  ;;  %v6205_v51 = vadd.f32 %v6204_v19, %v6203_v32  ;;  %v6206_v7 = vpop.f32.mrb[66].mxu0 }
 0x992   : > { %v6207_v11 = vpop.f32.mrb[67].mxu0  ;;  %v4806_v21 = vadd.f32 %v4774_v48, %v4550_v45  ;;  %v4551_v34 = vmul.f32 %v12042_v41, %v6476_v29  ;;  %v4675_v32 = vpop.permute.xlu1 %4674  ;;  %v6481_v48 = vunpack.i.h.bf16 %v11896_v44 }
 0x993   : > { %v4185_v4 = vadd.f32 %v6205_v51, %v11909_v47  ;;  %v6208_v46 = vadd.f32 %v6207_v11, %v6206_v7  ;;  %v4776_v19 = vmul.f32 %v4675_v32, %v4360_v35  ;;  %v4680_v51 = vpop.permute.xlu0 %4679  ;;  %v6403_v7 = vunpack.i.l.bf16 %v11870_v61 }
 0x994   : > { %4850 = vrot.lane.b32.xlu1 %v4806_v21, %s7194_s9  ;;  %v4807_v49 = vadd.f32 %v4775_v50, %v4551_v34  ;;  %v4777_v21 = vmul.f32 %v4680_v51, %v4361_v5  ;;  %v6485_v32 = vunpack.i.l.bf16 %v11898_v14 }
 0x995   : > { %6762 = vtanh.f32 %v4185_v4  ;;  %v4188_v28 = vadd.f32 %v6208_v46, %v11909_v47  ;;  %v6404_v46 = vunpack.i.h.bf16 %v11870_v61 }
 0x996   : > { %4852 = vrot.lane.b32.xlu0 %v4807_v49, %s7194_s9 }
 0x997   : > { %v12054_v9 = vpop.eup %6758  ;;  %6764 = vtanh.f32 %v4188_v28  ;;  %v6209_v29 = vpop.f32.mrb[68].mxu0  ;;  %v4362_v28 = vsel %vm4281_vm0, %v6403_v7, 0.0  ;;  %v4363_v61 = vsel %vm4281_vm0, %v6404_v46, 0.0 }
 0x998   : > { %v6210_v45 = vpop.f32.mrb[69].mxu0  ;;  %v4552_v38 = vmul.f32 %v12054_v9, %v6480_v25 }
 0x999   : > { %v12060_v56 = vpop.eup %6760  ;;  %v6211_v50 = vadd.f32 %v6210_v45, %v6209_v29  ;;  %v6212_v11 = vpop.f32.mrb[70].mxu0 }
 0x99a   : > { %v6213_v34 = vpop.f32.mrb[71].mxu0  ;;  %v4808_v4 = vadd.f32 %v4776_v19, %v4552_v38  ;;  %v4553_v2 = vmul.f32 %v12060_v56, %v6481_v48  ;;  %v4685_v29 = vpop.permute.xlu1 %4684  ;;  %v6486_v19 = vunpack.i.h.bf16 %v11898_v14 }
 0x99b   : > { %v4193_v44 = vadd.f32 %v6211_v50, %v11909_v47  ;;  %v6214_v49 = vadd.f32 %v6213_v34, %v6212_v11  ;;  %v4778_v45 = vmul.f32 %v4685_v29, %v4362_v28  ;;  %v4690_v50 = vpop.permute.xlu0 %4689  ;;  %v6408_v11 = vunpack.i.l.bf16 %v11868_v40 }
 0x99c   : > { %4854 = vrot.lane.b32.xlu1 %v4808_v4, %s7194_s9  ;;  %v4809_v35 = vadd.f32 %v4777_v21, %v4553_v2  ;;  %v4779_v4 = vmul.f32 %v4690_v50, %v4363_v61  ;;  %v6490_v29 = vunpack.i.l.bf16 %v11900_v15 }
 0x99d   : > { %6766 = vtanh.f32 %v4193_v44  ;;  %v4196_v25 = vadd.f32 %v6214_v49, %v11909_v47  ;;  %v6409_v49 = vunpack.i.h.bf16 %v11868_v40 }
 0x99e   : > { %4856 = vrot.lane.b32.xlu0 %v4809_v35, %s7194_s9 }
 0x99f   : > { %v12072_v5 = vpop.eup %6762  ;;  %6768 = vtanh.f32 %v4196_v25  ;;  %v6215_v48 = vpop.f32.mrb[72].mxu0  ;;  %v4364_v25 = vsel %vm4281_vm0, %v6408_v11, 0.0  ;;  %v4365_v40 = vsel %vm4281_vm0, %v6409_v49, 0.0 }
 0x9a0   : > { %v6216_v38 = vpop.f32.mrb[73].mxu0  ;;  %v4554_v51 = vmul.f32 %v12072_v5, %v6485_v32 }
 0x9a1   : > { %v12078_v7 = vpop.eup %6764  ;;  %v6217_v21 = vadd.f32 %v6216_v38, %v6215_v48  ;;  %v6218_v34 = vpop.f32.mrb[74].mxu0 }
 0x9a2   : > { %v6219_v2 = vpop.f32.mrb[75].mxu0  ;;  %v4810_v44 = vadd.f32 %v4778_v45, %v4554_v51  ;;  %v4555_v46 = vmul.f32 %v12078_v7, %v6486_v19  ;;  %v4695_v48 = vpop.permute.xlu1 %4694  ;;  %v6491_v45 = vunpack.i.h.bf16 %v11900_v15 }
 0x9a3   : > { %v4201_v14 = vadd.f32 %v6217_v21, %v11909_v47  ;;  %v6220_v35 = vadd.f32 %v6219_v2, %v6218_v34  ;;  %v4780_v38 = vmul.f32 %v4695_v48, %v4364_v25  ;;  %v4700_v21 = vpop.permute.xlu0 %4699  ;;  %v6413_v34 = vunpack.i.l.bf16 %v11874_v37 }
 0x9a4   : > { %4858 = vrot.lane.b32.xlu1 %v4810_v44, %s7194_s9  ;;  %v4811_v28 = vadd.f32 %v4779_v4, %v4555_v46  ;;  %v4781_v44 = vmul.f32 %v4700_v21, %v4365_v40  ;;  %v6495_v48 = vunpack.i.l.bf16 %v11902_v55 }
 0x9a5   : > { %6770 = vtanh.f32 %v4201_v14  ;;  %v4204_v32 = vadd.f32 %v6220_v35, %v11909_v47  ;;  %v6414_v35 = vunpack.i.h.bf16 %v11874_v37 }
 0x9a6   : > { %4860 = vrot.lane.b32.xlu0 %v4811_v28, %s7194_s9 }
 0x9a7   : > { %v12090_v61 = vpop.eup %6766  ;;  %6772 = vtanh.f32 %v4204_v32  ;;  %v6221_v19 = vpop.f32.mrb[76].mxu0  ;;  %v4366_v32 = vsel %vm4281_vm0, %v6413_v34, 0.0  ;;  %v4367_v37 = vsel %vm4281_vm0, %v6414_v35, 0.0 }
 0x9a8   : > { %v6222_v51 = vpop.f32.mrb[77].mxu0  ;;  %v4556_v50 = vmul.f32 %v12090_v61, %v6490_v29 }
 0x9a9   : > { %v12096_v11 = vpop.eup %6768  ;;  %v6223_v4 = vadd.f32 %v6222_v51, %v6221_v19  ;;  %v6224_v2 = vpop.f32.mrb[78].mxu0 }
 0x9aa   : > { %v6225_v46 = vpop.f32.mrb[79].mxu0  ;;  %v4812_v14 = vadd.f32 %v4780_v38, %v4556_v50  ;;  %v4557_v49 = vmul.f32 %v12096_v11, %v6491_v45  ;;  %v4705_v19 = vpop.permute.xlu1 %4704  ;;  %v6496_v38 = vunpack.i.h.bf16 %v11902_v55 }
 0x9ab   : > { %v4209_v15 = vadd.f32 %v6223_v4, %v11909_v47  ;;  %v6226_v28 = vadd.f32 %v6225_v46, %v6224_v2  ;;  %v4782_v51 = vmul.f32 %v4705_v19, %v4366_v32  ;;  %v4710_v4 = vpop.permute.xlu0 %4709  ;;  %v6418_v2 = vunpack.i.l.bf16 %v11872_v24 }
 0x9ac   : > { %4862 = vrot.lane.b32.xlu1 %v4812_v14, %s7194_s9  ;;  %v4813_v25 = vadd.f32 %v4781_v44, %v4557_v49  ;;  %v4783_v14 = vmul.f32 %v4710_v4, %v4367_v37  ;;  %v6500_v19 = vunpack.i.l.bf16 %v11904_v22 }
 0x9ad   : > { %6774 = vtanh.f32 %v4209_v15  ;;  %v4212_v29 = vadd.f32 %v6226_v28, %v11909_v47  ;;  %v6419_v28 = vunpack.i.h.bf16 %v11872_v24 }
 0x9ae   : > { %4864 = vrot.lane.b32.xlu0 %v4813_v25, %s7194_s9 }
 0x9af   : > { %v12108_v40 = vpop.eup %6770  ;;  %6776 = vtanh.f32 %v4212_v29  ;;  %v6227_v45 = vpop.f32.mrb[80].mxu0  ;;  %v4368_v29 = vsel %vm4281_vm0, %v6418_v2, 0.0  ;;  %v4369_v24 = vsel %vm4281_vm0, %v6419_v28, 0.0 }
 0x9b0   : > { %14295 = vst [vmem:[#allocation85_spill] sm:$0xff] %v12108_v40  ;;  %v6228_v50 = vpop.f32.mrb[81].mxu0  ;;  %v4558_v21 = vmul.f32 %v12108_v40, %v6495_v48 }
 0x9b1   : > { %v12114_v34 = vpop.eup %6772  ;;  %v6229_v44 = vadd.f32 %v6228_v50, %v6227_v45  ;;  %v6230_v46 = vpop.f32.mrb[82].mxu0 }
 0x9b2   : > { %14296 = vst [vmem:[#allocation155_spill] sm:$0xff] %v12114_v34  ;;  %v6231_v49 = vpop.f32.mrb[83].mxu0  ;;  %v4814_v15 = vadd.f32 %v4782_v51, %v4558_v21  ;;  %v4559_v35 = vmul.f32 %v12114_v34, %v6496_v38  ;;  %v4715_v45 = vpop.permute.xlu1 %4714  ;;  %v6501_v51 = vunpack.i.h.bf16 %v11904_v22 }
 0x9b3   : > { %v4217_v55 = vadd.f32 %v6229_v44, %v11909_v47  ;;  %v6232_v25 = vadd.f32 %v6231_v49, %v6230_v46  ;;  %v4784_v50 = vmul.f32 %v4715_v45, %v4368_v29  ;;  %v4720_v44 = vpop.permute.xlu0 %4719  ;;  %v6423_v46 = vunpack.i.l.bf16 %v11878_v31 }
 0x9b4   : > { %4866 = vrot.lane.b32.xlu1 %v4814_v15, %s7194_s9  ;;  %v4815_v32 = vadd.f32 %v4783_v14, %v4559_v35  ;;  %v4785_v15 = vmul.f32 %v4720_v44, %v4369_v24  ;;  %v6505_v45 = vunpack.i.l.bf16 %v11911_v23 }
 0x9b5   : > { %6778 = vtanh.f32 %v4217_v55  ;;  %v4220_v48 = vadd.f32 %v6232_v25, %v11909_v47  ;;  %v6424_v25 = vunpack.i.h.bf16 %v11878_v31 }
 0x9b6   : > { %4868 = vrot.lane.b32.xlu0 %v4815_v32, %s7194_s9 }
 0x9b7   : > { %v12126_v37 = vpop.eup %6774  ;;  %6780 = vtanh.f32 %v4220_v48  ;;  %v6233_v38 = vpop.f32.mrb[84].mxu0  ;;  %v4370_v48 = vsel %vm4281_vm0, %v6423_v46, 0.0  ;;  %v4371_v31 = vsel %vm4281_vm0, %v6424_v25, 0.0 }
 0x9b8   : > { %14297 = vst [vmem:[#allocation120_spill] sm:$0xff] %v12126_v37  ;;  %v6234_v21 = vpop.f32.mrb[85].mxu0  ;;  %v4560_v4 = vmul.f32 %v12126_v37, %v6500_v19 }
 0x9b9   : > { %v12132_v2 = vpop.eup %6776  ;;  %v6235_v14 = vadd.f32 %v6234_v21, %v6233_v38  ;;  %v6236_v49 = vpop.f32.mrb[86].mxu0 }
 0x9ba   : > { %14298 = vst [vmem:[#allocation31_spill] sm:$0xff] %v12132_v2  ;;  %v6237_v35 = vpop.f32.mrb[87].mxu0  ;;  %v4816_v55 = vadd.f32 %v4784_v50, %v4560_v4  ;;  %v4561_v28 = vmul.f32 %v12132_v2, %v6501_v51  ;;  %v4725_v38 = vpop.permute.xlu1 %4724  ;;  %v6506_v50 = vunpack.i.h.bf16 %v11911_v23 }
 0x9bb   : > { %v4225_v22 = vadd.f32 %v6235_v14, %v11909_v47  ;;  %v6238_v32 = vadd.f32 %v6237_v35, %v6236_v49  ;;  %v4786_v21 = vmul.f32 %v4725_v38, %v4370_v48  ;;  %v4730_v14 = vpop.permute.xlu0 %4729  ;;  %v6428_v49 = vunpack.i.l.bf16 %v11876_v43 }
 0x9bc   : > { %4870 = vrot.lane.b32.xlu1 %v4816_v55, %s7194_s9  ;;  %v4817_v29 = vadd.f32 %v4785_v15, %v4561_v28  ;;  %v4787_v55 = vmul.f32 %v4730_v14, %v4371_v31  ;;  %v6510_v38 = vunpack.i.l.bf16 %v11914_v17 }
 0x9bd   : > { %6782 = vtanh.f32 %v4225_v22  ;;  %v4228_v19 = vadd.f32 %v6238_v32, %v11909_v47  ;;  %v6429_v32 = vunpack.i.h.bf16 %v11876_v43 }
 0x9be   : > { %4872 = vrot.lane.b32.xlu0 %v4817_v29, %s7194_s9 }
 0x9bf   : > { %v12144_v24 = vpop.eup %6778  ;;  %6784 = vtanh.f32 %v4228_v19  ;;  %v6239_v51 = vpop.f32.mrb[88].mxu0  ;;  %v4372_v19 = vsel %vm4281_vm0, %v6428_v49, 0.0  ;;  %v4373_v43 = vsel %vm4281_vm0, %v6429_v32, 0.0 }
 0x9c0   : > { %14299 = vst [vmem:[#allocation34_spill] sm:$0xff] %v12144_v24  ;;  %v6240_v4 = vpop.f32.mrb[89].mxu0  ;;  %v4562_v44 = vmul.f32 %v12144_v24, %v6505_v45 }
 0x9c1   : > { %v12150_v46 = vpop.eup %6780  ;;  %v6241_v15 = vadd.f32 %v6240_v4, %v6239_v51  ;;  %v6242_v35 = vpop.f32.mrb[90].mxu0 }
 0x9c2   : > { %14300 = vst [vmem:[#allocation36_spill] sm:$0xff] %v12150_v46  ;;  %v6243_v28 = vpop.f32.mrb[91].mxu0  ;;  %v4818_v22 = vadd.f32 %v4786_v21, %v4562_v44  ;;  %v4563_v25 = vmul.f32 %v12150_v46, %v6506_v50  ;;  %v4735_v51 = vpop.permute.xlu1 %4734  ;;  %v6511_v21 = vunpack.i.h.bf16 %v11914_v17 }
 0x9c3   : > { %v4233_v23 = vadd.f32 %v6241_v15, %v11909_v47  ;;  %v6244_v29 = vadd.f32 %v6243_v28, %v6242_v35  ;;  %v4788_v4 = vmul.f32 %v4735_v51, %v4372_v19  ;;  %v4740_v15 = vpop.permute.xlu0 %4739  ;;  %v6433_v35 = vunpack.i.l.bf16 %v11882_v62 }
 0x9c4   : > { %4874 = vrot.lane.b32.xlu1 %v4818_v22, %s7194_s9  ;;  %v4819_v48 = vadd.f32 %v4787_v55, %v4563_v25  ;;  %v4789_v22 = vmul.f32 %v4740_v15, %v4373_v43  ;;  %v6515_v51 = vunpack.i.l.bf16 %v11920_v26 }
 0x9c5   : > { %6786 = vtanh.f32 %v4233_v23  ;;  %v4236_v45 = vadd.f32 %v6244_v29, %v11909_v47  ;;  %v6434_v29 = vunpack.i.h.bf16 %v11882_v62 }
 0x9c6   : > { %4876 = vrot.lane.b32.xlu0 %v4819_v48, %s7194_s9 }
 0x9c7   : > { %v12162_v31 = vpop.eup %6782  ;;  %6788 = vtanh.f32 %v4236_v45  ;;  %v6245_v50 = vpop.f32.mrb[92].mxu0  ;;  %v4374_v45 = vsel %vm4281_vm0, %v6433_v35, 0.0  ;;  %v4375_v62 = vsel %vm4281_vm0, %v6434_v29, 0.0 }
 0x9c8   : > { %14301 = vst [vmem:[#allocation203_spill] sm:$0xff] %v12162_v31  ;;  %v6246_v44 = vpop.f32.mrb[93].mxu0  ;;  %v4564_v14 = vmul.f32 %v12162_v31, %v6510_v38  ;;  %v4750_v15 = vpop.permute.xlu0 %4749 }
 0x9c9   : > { %v12168_v49 = vpop.eup %6784  ;;  %v6247_v55 = vadd.f32 %v6246_v44, %v6245_v50  ;;  %v6248_v28 = vpop.f32.mrb[94].mxu0  ;;  %v4791_v35 = vmul.f32 %v4750_v15, %v4375_v62  ;;  %v14310_v15 = vld [vmem:[#allocation95_spill] sm:$0xff] }
 0x9ca   : > { %14302 = vst [vmem:[#allocation88_spill] sm:$0xff] %v12168_v49  ;;  %v6249_v25 = vpop.f32.mrb[95].mxu0  ;;  %v4820_v23 = vadd.f32 %v4788_v4, %v4564_v14  ;;  %v4565_v32 = vmul.f32 %v12168_v49, %v6511_v21  ;;  %v4745_v50 = vpop.permute.xlu1 %4744  ;;  %v6516_v21 = vunpack.i.h.bf16 %v11920_v26 }
 0x9cb   : > { %v4241_v17 = vadd.f32 %v6247_v55, %v11909_v47  ;;  %v6250_v48 = vadd.f32 %v6249_v25, %v6248_v28  ;;  %v4790_v4 = vmul.f32 %v4745_v50, %v4374_v45 }
 0x9cc   : > { %4878 = vrot.lane.b32.xlu1 %v4820_v23, %s7194_s9  ;;  %v4821_v19 = vadd.f32 %v4789_v22, %v4565_v32  ;;  %v6439_v22 = vunpack.i.h.bf16 %v11880_v6  ;;  %v6520_v32 = vunpack.i.l.bf16 %v11923_v59 }
 0x9cd   : > { %6790 = vtanh.f32 %v4241_v17  ;;  %v4244_v38 = vadd.f32 %v6250_v48, %v11909_v47  ;;  %v6438_v47 = vunpack.i.l.bf16 %v11880_v6  ;;  %v4760_v48 = vpop.permute.xlu0 %4759 }
 0x9ce   : > { %4880 = vrot.lane.b32.xlu0 %v4821_v19, %s7194_s9  ;;  %v4755_v23 = vpop.permute.xlu1 %4754  ;;  %v4377_v17 = vsel %vm4281_vm0, %v6439_v22, 0.0  ;;  %v6521_v19 = vunpack.i.h.bf16 %v11923_v59  ;;  %v14309_v59 = vld [vmem:[#allocation53_spill] sm:$0xff] }
 0x9cf   : > { %v12180_v43 = vpop.eup %6786  ;;  %6792 = vtanh.f32 %v4244_v38  ;;  %v4376_v26 = vsel %vm4281_vm0, %v6438_v47, 0.0  ;;  %v14311_v47 = vld [vmem:[#allocation26_spill] sm:$0xff] }
 0x9d0   : > { %14303 = vst [vmem:[#allocation122_spill] sm:$0xff] %v12180_v43  ;;  %v4566_v44 = vmul.f32 %v12180_v43, %v6515_v51  ;;  %v4792_v6 = vmul.f32 %v4755_v23, %v4376_v26  ;;  %v4793_v51 = vmul.f32 %v4760_v48, %v4377_v17 }
 0x9d1   : > { %v12186_v14 = vpop.eup %6788 }
 0x9d2   : > { %14304 = vst [vmem:[#allocation130_spill] sm:$0xff] %v12186_v14  ;;  %v4822_v55 = vadd.f32 %v4790_v4, %v4566_v44  ;;  %v4567_v28 = vmul.f32 %v12186_v14, %v6516_v21  ;;  %v14307_v4 = vld [vmem:[#allocation93_spill] sm:$0xff]  ;;  %v14308_v44 = vld [vmem:[#allocation20_spill] sm:$0xff] }
 0x9d4   : > { %4882 = vrot.lane.b32.xlu1 %v4822_v55, %s7194_s9  ;;  %v4823_v25 = vadd.f32 %v4791_v35, %v4567_v28  ;;  %v14312_v35 = vld [vmem:[#allocation27_spill] sm:$0xff]  ;;  %v14313_v55 = vld [vmem:[#allocation65_spill] sm:$0xff] }
 0x9d6   : > { %4884 = vrot.lane.b32.xlu0 %v4823_v25, %s7194_s9  ;;  %v4827_v28 = vpop.permute.xlu1 %4826 }
 0x9d7   : > { %v12196_v29 = vpop.eup %6790  ;;  %v4890_v49 = vadd.f32 %v11929_v27, %v4827_v28 }
 0x9d8   : > { %14305 = vst [vmem:[#allocation42_spill] sm:$0xff] %v12196_v29  ;;  %v4568_v45 = vmul.f32 %v12196_v29, %v6520_v32  ;;  %v4829_v22 = vpop.permute.xlu0 %4828 }
 0x9d9   : > { %v12202_v38 = vpop.eup %6792  ;;  %v4891_v31 = vadd.f32 %v11934_v10, %v4829_v22 }
 0x9da   : > { %14306 = vst [vmem:[#allocation108_spill] sm:$0xff] %v12202_v38  ;;  %v4824_v50 = vadd.f32 %v4792_v6, %v4568_v45  ;;  %v4569_v62 = vmul.f32 %v12202_v38, %v6521_v19 }
 0x9dc   : > { %4886 = vrot.lane.b32.xlu1 %v4824_v50, %s7194_s9  ;;  %v4825_v21 = vadd.f32 %v4793_v51, %v4569_v62 }
 0x9de   : > { %4888 = vrot.lane.b32.xlu0 %v4825_v21, %s7194_s9  ;;  %v4831_v25 = vpop.permute.xlu1 %4830 }
 0x9df   : > { %v12260_v24 = vadd.f32 %v11947_v52, %v4831_v25 }
 0x9e0   : > { %6523 = vrot.lane.b32.xlu1 %v14307_v4, %s7194_s9  ;;  %v4833_v23 = vpop.permute.xlu0 %4832 }
 0x9e1   : > { %v12263_v2 = vadd.f32 %v11952_v3, %v4833_v23  ;;  %v14317_v23 = vld [vmem:[#allocation155_spill] sm:$0xff] }
 0x9e2   : > { %6528 = vrot.lane.b32.xlu0 %v14308_v44, %s7194_s9 }
 0x9e4   : > { %6533 = vrot.lane.b32.xlu1 %v14309_v59, %s7194_s9 }
 0x9e6   : > { %6538 = vrot.lane.b32.xlu0 %v14310_v15, %s7194_s9 }
 0x9e8   : > { %6543 = vrot.lane.b32.xlu1 %v11449_v13, %s7194_s9  ;;  %v4837_v26 = vpop.permute.xlu0 %4836 }
 0x9e9   : > { %v12269_v34 = vadd.f32 %v11970_v18, %v4837_v26  ;;  %v14318_v26 = vld [vmem:[#allocation120_spill] sm:$0xff] }
 0x9ea   : > { %6548 = vrot.lane.b32.xlu0 %v14311_v47, %s7194_s9 }
 0x9ec   : > { %6553 = vrot.lane.b32.xlu1 %v14312_v35, %s7194_s9 }
 0x9ee   : > { %6558 = vrot.lane.b32.xlu0 %v14313_v55, %s7194_s9 }
 0x9f0   : > { %6563 = vrot.lane.b32.xlu1 %v11481_v20, %s7194_s9 }
 0x9f2   : > { %6568 = vrot.lane.b32.xlu0 %v11489_v16, %s7194_s9 }
 0x9f4   : > { %6573 = vrot.lane.b32.xlu1 %v11497_v36, %s7194_s9 }
 0x9f6   : > { %6578 = vrot.lane.b32.xlu0 %v11505_v12, %s7194_s9 }
 0x9f8   : > { %6583 = vrot.lane.b32.xlu1 %v11513_v39, %s7194_s9 }
 0x9fa   : > { %6588 = vrot.lane.b32.xlu0 %v11521_v8, %s7194_s9 }
 0x9fc   : > { %6593 = vrot.lane.b32.xlu1 %v11529_v53, %s7194_s9 }
 0x9fe   : > { %6598 = vrot.lane.b32.xlu0 %v11537_v33, %s7194_s9 }
 0xa00   : > { %6603 = vrot.lane.b32.xlu1 %v14307_v4, %s7195_s13 }
 0xa02   : > { %6608 = vrot.lane.b32.xlu0 %v14308_v44, %s7195_s13 }
 0xa04   : > { %6613 = vrot.lane.b32.xlu1 %v14309_v59, %s7195_s13 }
 0xa06   : > { %6618 = vrot.lane.b32.xlu0 %v14310_v15, %s7195_s13 }
 0xa08   : > { %6623 = vrot.lane.b32.xlu1 %v11449_v13, %s7195_s13  ;;  %v4835_v13 = vpop.permute.xlu1 %4834 }
 0xa09   : > { %v12266_v37 = vadd.f32 %v11965_v63, %v4835_v13 }
 0xa0a   : > { %6628 = vrot.lane.b32.xlu0 %v14311_v47, %s7195_s13 }
 0xa0c   : > { %6633 = vrot.lane.b32.xlu1 %v14312_v35, %s7195_s13  ;;  %v4839_v32 = vpop.permute.xlu1 %4838 }
 0xa0d   : > { %v12272_v40 = vadd.f32 %v11983_v0, %v4839_v32 }
 0xa0e   : > { %6638 = vrot.lane.b32.xlu0 %v14313_v55, %s7195_s13 }
 0xa10   : > { %6643 = vrot.lane.b32.xlu1 %v11481_v20, %s7195_s13  ;;  %v4841_v20 = vpop.permute.xlu0 %4840 }
 0xa11   : > { %v12275_v27 = vadd.f32 %v11988_v54, %v4841_v20 }
 0xa12   : > { %6648 = vrot.lane.b32.xlu0 %v11489_v16, %s7195_s13  ;;  %v4843_v16 = vpop.permute.xlu1 %4842 }
 0xa13   : > { %v12278_v10 = vadd.f32 %v12000_v1, %v4843_v16  ;;  %v14320_v16 = vld [vmem:[#allocation34_spill] sm:$0xff] }
 0xa14   : > { %6653 = vrot.lane.b32.xlu1 %v11497_v36, %s7195_s13  ;;  %v4845_v17 = vpop.permute.xlu0 %4844 }
 0xa15   : > { %v12281_v52 = vadd.f32 %v12006_v58, %v4845_v17 }
 0xa16   : > { %6658 = vrot.lane.b32.xlu0 %v11505_v12, %s7195_s13  ;;  %v4847_v48 = vpop.permute.xlu1 %4846 }
 0xa17   : > { %v12284_v28 = vadd.f32 %v12018_v60, %v4847_v48 }
 0xa18   : > { %6663 = vrot.lane.b32.xlu1 %v11513_v39, %s7195_s13  ;;  %v4849_v36 = vpop.permute.xlu0 %4848 }
 0xa19   : > { %v12287_v63 = vadd.f32 %v12024_v30, %v4849_v36 }
 0xa1a   : > { %6668 = vrot.lane.b32.xlu0 %v11521_v8, %s7195_s13  ;;  %v4851_v19 = vpop.permute.xlu1 %4850 }
 0xa1b   : > { %v12290_v0 = vadd.f32 %v12036_v42, %v4851_v19 }
 0xa1c   : > { %6673 = vrot.lane.b32.xlu1 %v11529_v53, %s7195_s13  ;;  %v4853_v6 = vpop.permute.xlu0 %4852 }
 0xa1d   : > { %v12293_v54 = vadd.f32 %v12042_v41, %v4853_v6 }
 0xa1e   : > { %6678 = vrot.lane.b32.xlu0 %v11537_v33, %s7195_s13  ;;  %v4855_v12 = vpop.permute.xlu1 %4854 }
 0xa1f   : > { %v12296_v1 = vadd.f32 %v12054_v9, %v4855_v12 }
 0xa20   : > { %v4857_v45 = vpop.permute.xlu0 %4856 }
 0xa21   : > { %v12299_v58 = vadd.f32 %v12060_v56, %v4857_v45 }
 0xa22   : > { %v4859_v51 = vpop.permute.xlu1 %4858 }
 0xa23   : > { %v12312_v42 = vadd.f32 %v12072_v5, %v4859_v51  ;;  %v14319_v5 = vld [vmem:[#allocation31_spill] sm:$0xff] }
 0xa24   : > { %v4861_v39 = vpop.permute.xlu0 %4860 }
 0xa25   : > { %v12315_v41 = vadd.f32 %v12078_v7, %v4861_v39 }
 0xa26   : > { %v4863_v50 = vpop.permute.xlu1 %4862 }
 0xa27   : > { %v12318_v9 = vadd.f32 %v12090_v61, %v4863_v50  ;;  %v14321_v61 = vld [vmem:[#allocation36_spill] sm:$0xff] }
 0xa28   : > { %v4865_v62 = vpop.permute.xlu0 %4864 }
 0xa29   : > { %v12321_v56 = vadd.f32 %v12096_v11, %v4865_v62 }
 0xa2a   : > { %v4867_v8 = vpop.permute.xlu1 %4866 }
 0xa2c   : > { %v4869_v21 = vpop.permute.xlu0 %4868 }
 0xa2d   : > { %v12327_v13 = vadd.f32 %v14317_v23, %v4869_v21  ;;  %v14322_v21 = vld [vmem:[#allocation203_spill] sm:$0xff]  ;;  %v14326_v23 = vld [vmem:[#allocation42_spill] sm:$0xff] }
 0xa2e   : > { %v4871_v4 = vpop.permute.xlu1 %4870 }
 0xa2f   : > { %v12330_v32 = vadd.f32 %v14318_v26, %v4871_v4  ;;  %v14327_v26 = vld [vmem:[#allocation108_spill] sm:$0xff] }
 0xa30   : > { %v4873_v53 = vpop.permute.xlu0 %4872 }
 0xa31   : > { %v12333_v20 = vadd.f32 %v14319_v5, %v4873_v53  ;;  %v14323_v53 = vld [vmem:[#allocation88_spill] sm:$0xff] }
 0xa36   : > { %v4875_v44 = vpop.permute.xlu1 %4874 }
 0xa37   : > { %v12336_v17 = vadd.f32 %v14320_v16, %v4875_v44 }
 0xa38   : > { %v4877_v59 = vpop.permute.xlu0 %4876 }
 0xa39   : > { %v12339_v48 = vadd.f32 %v14321_v61, %v4877_v59  ;;  %v14324_v59 = vld [vmem:[#allocation122_spill] sm:$0xff] }
 0xa3e   : > { %v4879_v33 = vpop.permute.xlu1 %4878 }
 0xa3f   : > { %v12346_v4 = vadd.f32 %v14322_v21, %v4879_v33 }
 0xa40   : > { %v4881_v15 = vpop.permute.xlu0 %4880 }
 0xa41   : > { %v12349_v44 = vadd.f32 %v14323_v53, %v4881_v15 }
 0xa46   : > { %v4883_v47 = vpop.permute.xlu1 %4882 }
 0xa48   : > { %v4885_v35 = vpop.permute.xlu0 %4884 }
 0xa4e   : > { %v4887_v55 = vpop.permute.xlu1 %4886 }
 0xa50   : > { %v4889_v38 = vpop.permute.xlu0 %4888 }
 0xa52   : > { %v6524_v29 = vpop.permute.xlu1 %6523 }
 0xa53   : > { %v6526_v18 = vunpack.i.h.bf16 %v6524_v29  ;;  %v6525_v22 = vunpack.i.l.bf16 %v6524_v29  ;;  %v14316_v29 = vld [vmem:[#allocation85_spill] sm:$0xff] }
 0xa54   : > { %v6529_v14 = vpop.permute.xlu0 %6528  ;;  %v12324_v25 = vadd.f32 %v14316_v29, %v4867_v8  ;;  %v14325_v29 = vld [vmem:[#allocation130_spill] sm:$0xff] }
 0xa55   : > { %v4990_v11 = vsel %vm12305_vm2, %v6526_v18, 0.0  ;;  %v4989_v36 = vsel %vm12305_vm2, %v6525_v22, 0.0  ;;  %v6531_v19 = vunpack.i.h.bf16 %v6529_v14  ;;  %v6530_v6 = vunpack.i.l.bf16 %v6529_v14 }
 0xa56   : > { %v6534_v43 = vpop.permute.xlu1 %6533  ;;  %v12352_v18 = vadd.f32 %v14324_v59, %v4883_v47  ;;  %v12355_v22 = vadd.f32 %v14325_v29, %v4885_v35  ;;  %v12365_v33 = vadd.f32 %v4989_v36, %v4890_v49 }
 0xa57   : > { %v6536_v12 = vunpack.i.h.bf16 %v6534_v43  ;;  %v6535_v45 = vunpack.i.l.bf16 %v6534_v43  ;;  %v12358_v43 = vadd.f32 %v14326_v23, %v4887_v55  ;;  %v4992_v15 = vsel %vm12305_vm2, %v6531_v19, 0.0 }
 0xa58   : > { %v6539_v46 = vpop.permute.xlu0 %6538  ;;  %v4991_v47 = vsel %vm12305_vm2, %v6530_v6, 0.0 }
 0xa59   : > { %v6541_v39 = vunpack.i.h.bf16 %v6539_v46  ;;  %v6540_v50 = vunpack.i.l.bf16 %v6539_v46  ;;  %v12361_v46 = vadd.f32 %v14327_v26, %v4889_v38  ;;  %v4994_v35 = vsel %vm12305_vm2, %v6536_v12, 0.0 }
 0xa5a   : > { %v6544_v3 = vpop.permute.xlu1 %6543  ;;  %v4993_v55 = vsel %vm12305_vm2, %v6535_v45, 0.0  ;;  %v12388_v12 = vadd.f32 %v4992_v15, %v12263_v2  ;;  %v12391_v45 = vadd.f32 %v4991_v47, %v12260_v24 }
 0xa5b   : > { %v6546_v62 = vunpack.i.h.bf16 %v6544_v3  ;;  %v6545_v8 = vunpack.i.l.bf16 %v6544_v3  ;;  %v12363_v3 = vadd.f32 %v4990_v11, %v4891_v31  ;;  %v4996_v38 = vsel %vm12305_vm2, %v6541_v39, 0.0 }
 0xa5c   : > { %v12309_v30 = vpop.permute.xlu0 %6548  ;;  %v4995_v31 = vsel %vm12305_vm2, %v6540_v50, 0.0  ;;  %v12400_v53 = vadd.f32 %v4996_v38, %v12275_v27 }
 0xa5d   : > { %v4998_v49 = vsel %vm12305_vm2, %v6546_v62, 0.0  ;;  %v4997_v16 = vsel %vm12305_vm2, %v6545_v8, 0.0  ;;  %v6551_v61 = vunpack.i.h.bf16 %v12309_v30  ;;  %v6550_v11 = vunpack.i.l.bf16 %v12309_v30 }
 0xa5e   : > { %v6554_v7 = vpop.permute.xlu1 %6553  ;;  %v12394_v62 = vadd.f32 %v4994_v35, %v12269_v34  ;;  %v12397_v30 = vadd.f32 %v4993_v55, %v12266_v37  ;;  %v12403_v2 = vadd.f32 %v4995_v31, %v12272_v40  ;;  %v12406_v24 = vadd.f32 %v4998_v49, %v12281_v52 }
 0xa5f   : > { %v6556_v36 = vunpack.i.h.bf16 %v6554_v7  ;;  %v6555_v19 = vunpack.i.l.bf16 %v6554_v7  ;;  %v5000_v34 = vsel %vm12305_vm2, %v6551_v61, 0.0  ;;  %v4999_v37 = vsel %vm12305_vm2, %v6550_v11, 0.0 }
 0xa60   : > { %v6559_v51 = vpop.permute.xlu0 %6558  ;;  %v12431_v61 = vadd.f32 %v4999_v37, %v12284_v28 }
 0xa61   : > { %v6561_v39 = vunpack.i.h.bf16 %v6559_v51  ;;  %v6560_v50 = vunpack.i.l.bf16 %v6559_v51  ;;  %v12409_v51 = vadd.f32 %v4997_v16, %v12278_v10  ;;  %v5002_v59 = vsel %vm12305_vm2, %v6556_v36, 0.0 }
 0xa62   : > { %v6564_v14 = vpop.permute.xlu1 %6563  ;;  %v5001_v27 = vsel %vm12305_vm2, %v6555_v19, 0.0  ;;  %v12428_v16 = vadd.f32 %v5000_v34, %v12287_v63 }
 0xa63   : > { %v6566_v7 = vunpack.i.h.bf16 %v6564_v14  ;;  %v6565_v8 = vunpack.i.l.bf16 %v6564_v14  ;;  %v5004_v52 = vsel %vm12305_vm2, %v6561_v39, 0.0  ;;  %v5003_v10 = vsel %vm12305_vm2, %v6560_v50, 0.0 }
 0xa64   : > { %v6569_v5 = vpop.permute.xlu0 %6568  ;;  %v12437_v11 = vadd.f32 %v5001_v27, %v12290_v0  ;;  %v12442_v19 = vadd.f32 %v5004_v52, %v12299_v58 }
 0xa65   : > { %v6571_v29 = vunpack.i.h.bf16 %v6569_v5  ;;  %v6570_v14 = vunpack.i.l.bf16 %v6569_v5  ;;  %v5006_v23 = vsel %vm12305_vm2, %v6566_v7, 0.0  ;;  %v5005_v26 = vsel %vm12305_vm2, %v6565_v8, 0.0 }
 0xa66   : > { %v6574_v6 = vpop.permute.xlu1 %6573  ;;  %v12434_v5 = vadd.f32 %v5002_v59, %v12293_v54  ;;  %v12452_v54 = vadd.f32 %v5006_v23, %v12315_v41  ;;  %v12455_v0 = vadd.f32 %v5005_v26, %v12312_v42 }
 0xa67   : > { %v6576_v15 = vunpack.i.h.bf16 %v6574_v6  ;;  %v6575_v47 = vunpack.i.l.bf16 %v6574_v6  ;;  %v12445_v6 = vadd.f32 %v5003_v10, %v12296_v1  ;;  %v5008_v63 = vsel %vm12305_vm2, %v6571_v29, 0.0 }
 0xa68   : > { %v6579_v21 = vpop.permute.xlu0 %6578  ;;  %v5007_v28 = vsel %vm12305_vm2, %v6570_v14, 0.0  ;;  %v12472_v8 = vadd.f32 %v5008_v63, %v12321_v56 }
 0xa69   : > { %v6581_v55 = vunpack.i.h.bf16 %v6579_v21  ;;  %v6580_v38 = vunpack.i.l.bf16 %v6579_v21  ;;  %v5010_v39 = vsel %vm12305_vm2, %v6576_v15, 0.0  ;;  %v5009_v58 = vsel %vm12305_vm2, %v6575_v47, 0.0 }
 0xa6a   : > { %v6584_v40 = vpop.permute.xlu1 %6583  ;;  %v12475_v21 = vadd.f32 %v5007_v28, %v12318_v9  ;;  %v12489_v56 = vadd.f32 %v5009_v58, %v12324_v25 }
 0xa6b   : > { %v6586_v31 = vunpack.i.h.bf16 %v6584_v40  ;;  %v6585_v49 = vunpack.i.l.bf16 %v6584_v40  ;;  %v5012_v50 = vsel %vm12305_vm2, %v6581_v55, 0.0  ;;  %v5011_v7 = vsel %vm12305_vm2, %v6580_v38, 0.0 }
 0xa6c   : > { %v6589_v35 = vpop.permute.xlu0 %6588  ;;  %v12486_v40 = vadd.f32 %v5010_v39, %v12327_v13  ;;  %v12492_v10 = vadd.f32 %v5012_v50, %v12333_v20  ;;  %v12495_v29 = vadd.f32 %v5011_v7, %v12330_v32 }
 0xa6d   : > { %v5014_v41 = vsel %vm12305_vm2, %v6586_v31, 0.0  ;;  %v5013_v42 = vsel %vm12305_vm2, %v6585_v49, 0.0  ;;  %v6591_v34 = vunpack.i.h.bf16 %v6589_v35  ;;  %v6590_v37 = vunpack.i.l.bf16 %v6589_v35 }
 0xa6e   : > { %v12439_v36 = vpop.permute.xlu1 %6593  ;;  %v12498_v57 = vadd.f32 %v5014_v41, %v12339_v48  ;;  %v12501_v14 = vadd.f32 %v5013_v42, %v12336_v17 }
 0xa6f   : > { %v5016_v20 = vsel %vm12305_vm2, %v6591_v34, 0.0  ;;  %v5015_v32 = vsel %vm12305_vm2, %v6590_v37, 0.0  ;;  %v6596_v49 = vunpack.i.h.bf16 %v12439_v36  ;;  %v6595_v41 = vunpack.i.l.bf16 %v12439_v36 }
 0xa70   : > { %v12461_v1 = vpop.permute.xlu0 %6598 }
 0xa72   : > { %v6604_v27 = vpop.permute.xlu1 %6603 }
 0xa73   : > { %v6606_v52 = vunpack.i.h.bf16 %v6604_v27  ;;  %v6605_v9 = vunpack.i.l.bf16 %v6604_v27 }
 0xa74   : > { %v6609_v23 = vpop.permute.xlu0 %6608 }
 0xa75   : > { %v5121_v13 = vsel %vm12481_vm6, %v6606_v52, 0.0  ;;  %v5120_v25 = vsel %vm12481_vm6, %v6605_v9, 0.0  ;;  %v6611_v26 = vunpack.i.h.bf16 %v6609_v23  ;;  %v6610_v15 = vunpack.i.l.bf16 %v6609_v23 }
 0xa76   : > { %v5152_v48 = vadd.f32 %v5120_v25, %v12365_v33  ;;  %v5153_v17 = vadd.f32 %v5121_v13, %v12363_v3  ;;  %v6614_v47 = vpop.permute.xlu1 %6613  ;;  %v12537_v9 = vadd.f32 %v5016_v20, %v12349_v44 }
 0xa77   : > { %v5123_v35 = vsel %vm12481_vm6, %v6611_v26, 0.0  ;;  %v5122_v55 = vsel %vm12481_vm6, %v6610_v15, 0.0  ;;  %v6616_v38 = vunpack.i.h.bf16 %v6614_v47  ;;  %v6615_v31 = vunpack.i.l.bf16 %v6614_v47 }
 0xa78   : > { %v5808_v63 = vpack.c.bf16 %v5153_v17, %v5152_v48  ;;  %v5154_v28 = vadd.f32 %v5122_v55, %v12391_v45  ;;  %v5155_v39 = vadd.f32 %v5123_v35, %v12388_v12  ;;  %v6619_v33 = vpop.permute.xlu0 %6618  ;;  %v12547_v17 = vadd.f32 %v5015_v32, %v12346_v4 }
 0xa79   : > { %v5125_v3 = vsel %vm12481_vm6, %v6616_v38, 0.0  ;;  %v5124_v58 = vsel %vm12481_vm6, %v6615_v31, 0.0  ;;  %v6621_v50 = vunpack.i.h.bf16 %v6619_v33  ;;  %v6620_v7 = vunpack.i.l.bf16 %v6619_v33 }
 0xa7a   : > { %5809 = vst [vmem:[%s12527_s10] sm:$0xff] %v5808_v63   ;;  %v5813_v45 = vpack.c.bf16 %v5155_v39, %v5154_v28  ;;  %v5156_v12 = vadd.f32 %v5124_v58, %v12397_v30  ;;  %v5157_v42 = vadd.f32 %v5125_v3, %v12394_v62  ;;  %v6624_v34 = vpop.permute.xlu1 %6623  ;;  %v5018_v4 = vsel %vm12305_vm2, %v6596_v49, 0.0 }
 0xa7b   : > { %v5127_v37 = vsel %vm12481_vm6, %v6621_v50, 0.0  ;;  %v5126_v27 = vsel %vm12481_vm6, %v6620_v7, 0.0  ;;  %v6626_v36 = vunpack.i.h.bf16 %v6624_v34  ;;  %v6625_v52 = vunpack.i.l.bf16 %v6624_v34 }
 0xa7c   : > { %5900 = vst [vmem:[%s12527_s10 + $0x8] sm:$0xff] %v5813_v45   ;;  %v5818_v23 = vpack.c.bf16 %v5157_v42, %v5156_v12  ;;  %v5158_v13 = vadd.f32 %v5126_v27, %v12403_v2  ;;  %v5159_v30 = vadd.f32 %v5127_v37, %v12400_v53  ;;  %v6629_v62 = vpop.permute.xlu0 %6628  ;;  %v5017_v3 = vsel %vm12305_vm2, %v6595_v41, 0.0 }
 0xa7d   : > { %v5129_v25 = vsel %vm12481_vm6, %v6626_v36, 0.0  ;;  %v5128_v26 = vsel %vm12481_vm6, %v6625_v52, 0.0  ;;  %v6631_v15 = vunpack.i.h.bf16 %v6629_v62  ;;  %v6630_v48 = vunpack.i.l.bf16 %v6629_v62 }
 0xa7e   : > { %5901 = vst [vmem:[%s12527_s10 + $0x10] sm:$0xff] %v5818_v23   ;;  %v5823_v44 = vpack.c.bf16 %v5159_v30, %v5158_v13  ;;  %v5160_v20 = vadd.f32 %v5128_v26, %v12409_v51  ;;  %v5161_v2 = vadd.f32 %v5129_v25, %v12406_v24  ;;  %v6634_v53 = vpop.permute.xlu1 %6633  ;;  %v6601_v42 = vunpack.i.h.bf16 %v12461_v1 }
 0xa7f   : > { %v5131_v47 = vsel %vm12481_vm6, %v6631_v15, 0.0  ;;  %v5130_v35 = vsel %vm12481_vm6, %v6630_v48, 0.0  ;;  %v6636_v55 = vunpack.i.h.bf16 %v6634_v53  ;;  %v6635_v38 = vunpack.i.l.bf16 %v6634_v53 }
 0xa80   : > { %5902 = vst [vmem:[%s12527_s10 + $0x18] sm:$0xff] %v5823_v44   ;;  %v5828_v32 = vpack.c.bf16 %v5161_v2, %v5160_v20  ;;  %v5162_v31 = vadd.f32 %v5130_v35, %v12431_v61  ;;  %v5163_v51 = vadd.f32 %v5131_v47, %v12428_v16  ;;  %v6639_v24 = vpop.permute.xlu0 %6638  ;;  %v6600_v23 = vunpack.i.l.bf16 %v12461_v1 }
 0xa81   : > { %v5133_v63 = vsel %vm12481_vm6, %v6636_v55, 0.0  ;;  %v5132_v28 = vsel %vm12481_vm6, %v6635_v38, 0.0  ;;  %v6641_v39 = vunpack.i.h.bf16 %v6639_v24  ;;  %v6640_v33 = vunpack.i.l.bf16 %v6639_v24 }
 0xa82   : > { %5903 = vst [vmem:[%s12527_s10 + $0x20] sm:$0xff] %v5828_v32   ;;  %v5833_v49 = vpack.c.bf16 %v5163_v51, %v5162_v31  ;;  %v5164_v58 = vadd.f32 %v5132_v28, %v12437_v11  ;;  %v5165_v61 = vadd.f32 %v5133_v63, %v12434_v5  ;;  %v6644_v16 = vpop.permute.xlu1 %6643  ;;  %v5050_v48 = vadd.f32 %v5018_v4, %v12355_v22 }
 0xa83   : > { %v5135_v50 = vsel %vm12481_vm6, %v6641_v39, 0.0  ;;  %v5134_v7 = vsel %vm12481_vm6, %v6640_v33, 0.0  ;;  %v6646_v45 = vunpack.i.h.bf16 %v6644_v16  ;;  %v6645_v12 = vunpack.i.l.bf16 %v6644_v16 }
 0xa84   : > { %5904 = vst [vmem:[%s12527_s10 + $0x28] sm:$0xff] %v5833_v49   ;;  %v5838_v41 = vpack.c.bf16 %v5165_v61, %v5164_v58  ;;  %v5166_v34 = vadd.f32 %v5134_v7, %v12445_v6  ;;  %v5167_v11 = vadd.f32 %v5135_v50, %v12442_v19  ;;  %v6649_v37 = vpop.permute.xlu0 %6648  ;;  %v5049_v35 = vadd.f32 %v5017_v3, %v12352_v18 }
 0xa85   : > { %v5137_v5 = vsel %vm12481_vm6, %v6646_v45, 0.0  ;;  %v5136_v27 = vsel %vm12481_vm6, %v6645_v12, 0.0  ;;  %v6651_v36 = vunpack.i.h.bf16 %v6649_v37  ;;  %v6650_v52 = vunpack.i.l.bf16 %v6649_v37 }
 0xa86   : > { %5905 = vst [vmem:[%s12527_s10 + $0x30] sm:$0xff] %v5838_v41   ;;  %v5843_v13 = vpack.c.bf16 %v5167_v11, %v5166_v34  ;;  %v5168_v30 = vadd.f32 %v5136_v27, %v12455_v0  ;;  %v5169_v6 = vadd.f32 %v5137_v5, %v12452_v54  ;;  %v6654_v62 = vpop.permute.xlu1 %6653  ;;  %v5020_v51 = vsel %vm12305_vm2, %v6601_v42, 0.0 }
 0xa87   : > { %v5139_v19 = vsel %vm12481_vm6, %v6651_v36, 0.0  ;;  %v5138_v25 = vsel %vm12481_vm6, %v6650_v52, 0.0  ;;  %v6656_v26 = vunpack.i.h.bf16 %v6654_v62  ;;  %v6655_v15 = vunpack.i.l.bf16 %v6654_v62 }
 0xa88   : > { %5906 = vst [vmem:[%s12527_s10 + $0x38] sm:$0xff] %v5843_v13   ;;  %v5848_v1 = vpack.c.bf16 %v5169_v6, %v5168_v30  ;;  %v5170_v44 = vadd.f32 %v5138_v25, %v12475_v21  ;;  %v5171_v0 = vadd.f32 %v5139_v19, %v12472_v8  ;;  %v6659_v20 = vpop.permute.xlu0 %6658  ;;  %v5019_v3 = vsel %vm12305_vm2, %v6600_v23, 0.0 }
 0xa89   : > { %v5141_v54 = vsel %vm12481_vm6, %v6656_v26, 0.0  ;;  %v5140_v2 = vsel %vm12481_vm6, %v6655_v15, 0.0  ;;  %v6661_v53 = vunpack.i.h.bf16 %v6659_v20  ;;  %v6660_v47 = vunpack.i.l.bf16 %v6659_v20 }
 0xa8a   : > { %5907 = vst [vmem:[%s12527_s10 + $0x40] sm:$0xff] %v5848_v1   ;;  %v5853_v22 = vpack.c.bf16 %v5171_v0, %v5170_v44  ;;  %v5172_v55 = vadd.f32 %v5140_v2, %v12489_v56  ;;  %v5173_v21 = vadd.f32 %v5141_v54, %v12486_v40  ;;  %v6664_v38 = vpop.permute.xlu1 %6663  ;;  %v5052_v60 = vadd.f32 %v5020_v51, %v12361_v46 }
 0xa8b   : > { %v5143_v8 = vsel %vm12481_vm6, %v6661_v53, 0.0  ;;  %v5142_v4 = vsel %vm12481_vm6, %v6660_v47, 0.0  ;;  %v6666_v32 = vunpack.i.h.bf16 %v6664_v38  ;;  %v6665_v31 = vunpack.i.l.bf16 %v6664_v38 }
 0xa8c   : > { %5908 = vst [vmem:[%s12527_s10 + $0x48] sm:$0xff] %v5853_v22   ;;  %v5858_v18 = vpack.c.bf16 %v5173_v21, %v5172_v55  ;;  %v5174_v24 = vadd.f32 %v5142_v4, %v12495_v29  ;;  %v5175_v56 = vadd.f32 %v5143_v8, %v12492_v10  ;;  %v6669_v40 = vpop.permute.xlu0 %6668  ;;  %v5051_v46 = vadd.f32 %v5019_v3, %v12358_v43 }
 0xa8d   : > { %v5145_v63 = vsel %vm12481_vm6, %v6666_v32, 0.0  ;;  %v5144_v28 = vsel %vm12481_vm6, %v6665_v31, 0.0  ;;  %v6671_v39 = vunpack.i.h.bf16 %v6669_v40  ;;  %v6670_v33 = vunpack.i.l.bf16 %v6669_v40 }
 0xa8e   : > { %5909 = vst [vmem:[%s12527_s10 + $0x50] sm:$0xff] %v5858_v18   ;;  %v5863_v49 = vpack.c.bf16 %v5175_v56, %v5174_v24  ;;  %v5176_v58 = vadd.f32 %v5144_v28, %v12501_v14  ;;  %v5177_v29 = vadd.f32 %v5145_v63, %v12498_v57  ;;  %v6674_v10 = vpop.permute.xlu1 %6673 }
 0xa8f   : > { %v5147_v61 = vsel %vm12481_vm6, %v6671_v39, 0.0  ;;  %v5146_v16 = vsel %vm12481_vm6, %v6670_v33, 0.0  ;;  %v6676_v50 = vunpack.i.h.bf16 %v6674_v10  ;;  %v6675_v7 = vunpack.i.l.bf16 %v6674_v10 }
 0xa90   : > { %5910 = vst [vmem:[%s12527_s10 + $0x58] sm:$0xff] %v5863_v49   ;;  %v5868_v45 = vpack.c.bf16 %v5177_v29, %v5176_v58  ;;  %v5178_v14 = vadd.f32 %v5146_v16, %v12547_v17  ;;  %v5179_v57 = vadd.f32 %v5147_v61, %v12537_v9  ;;  %v6679_v12 = vpop.permute.xlu0 %6678 }
 0xa91   : > { %v5149_v42 = vsel %vm12481_vm6, %v6676_v50, 0.0  ;;  %v5148_v41 = vsel %vm12481_vm6, %v6675_v7, 0.0  ;;  %v6681_v34 = vunpack.i.h.bf16 %v6679_v12  ;;  %v6680_v11 = vunpack.i.l.bf16 %v6679_v12 }
 0xa92   : > { %5911 = vst [vmem:[%s12527_s10 + $0x60] sm:$0xff] %v5868_v45   ;;  %v5873_v37 = vpack.c.bf16 %v5179_v57, %v5178_v14  ;;  %v5180_v17 = vadd.f32 %v5148_v41, %v5049_v35  ;;  %v5181_v5 = vadd.f32 %v5149_v42, %v5050_v48 }
 0xa93   : > { %v5151_v9 = vsel %vm12481_vm6, %v6681_v34, 0.0  ;;  %v5150_v27 = vsel %vm12481_vm6, %v6680_v11, 0.0 }
 0xa94   : > { %5912 = vst [vmem:[%s12527_s10 + $0x68] sm:$0xff] %v5873_v37   ;;  %v5878_v36 = vpack.c.bf16 %v5181_v5, %v5180_v17  ;;  %v5182_v52 = vadd.f32 %v5150_v27, %v5051_v46  ;;  %v5183_v23 = vadd.f32 %v5151_v9, %v5052_v60 }
 0xa96   : > { %5913 = vst [vmem:[%s12527_s10 + $0x70] sm:$0xff] %v5878_v36   ;;  %v5883_v43 = vpack.c.bf16 %v5183_v23, %v5182_v52 }
 0xa98   : > { %5914 = vst [vmem:[%s12527_s10 + $0x78] sm:$0xff] %v5883_v43  }
 0xa99   : > { %7114 = shalt.err (!%p7111_p4)
}
 0xa9a   : > { %s7115_s30 = scalar_lea.hbm %s12644_s21, 2048  ;;  %s7119_s10 = scalar_lea.hbm %s12701_s7, 4096 }
 0xa9b   : > { %p7116_p9 = scmp.ne.s32.totalorder %s12644_s21, %s7115_s30  ;;  %p7120_p8 = scmp.lt.u32.totalorder %s12644_s21, %s12701_s7 }
 0xa9c   : > { %p7121_p13 = scmp.lt.u32.totalorder %s7119_s10, %s7115_s30  ;;  %p7123_p10 = scmp.lt.u32.totalorder %s7115_s30, %s12644_s21 }
 0xa9d   : > { %p7117_p0 = pnand %p7116_p9, %p7392_p5 }
 0xa9e   : > { %p7122_p6 = por %p7121_p13, %p7120_p8 }
 0xa9f   : > { %p7118_p11 = pneg %p7117_p0 }
 0xaa0   : > { %p7124_p3 = por %p7123_p10, %p7122_p6 }
 0xaa2   : > { %p7125_p7 = pnand %p7124_p3, %p7118_p11 }
 0xaa4   : > { %7128 = shalt.err (!%p7125_p7)
}
 0xaa5   : > { %s7197_s20 = smov 4  }
 0xaa6   : > { %6281 = dma.vmem_to_hbm [thread:$0]  (%p7392_p5), %s12647_s14, 2048, %s12644_s21, %s5345_s28, %s7187_s15, %s7187_s15, %s7197_s20  }
 0xaa7 PF: > { %s14330_s16 = sld [smem:[#allocation16_spill]]  ;;  %s5373_s29 = sand.u32 1, %s7163_s24  }
 0xaa8   : > { %p14332_p1 = scmp.ge.s32.totalorder %s7175_s27, 2  ;;  %s5374_s11 = scalar_lea.sflag [#allocation5], %s5373_s29 }
 0xaad   : > { %p14331_p12 = scmp.ne.s32.totalorder %s14330_s16, 0 }
 0xaaf   : > { %p6298_p2 = pnand %p14332_p1, %p14331_p12 }
 0xab1   : > { %7158 = dma.done.wait (!%p6298_p2), %s5374_s11, 2048  }
 0xab2   : > { %7160 = vsyncadd (!%p6298_p2), %s5374_s11, 4294965248  ;;  %p22_p4 = scmp.ge.s32.totalorder %s7378_s22, 4   ;;  %s14333_s24 = smov %s7167_s25 }
 0xab3   : > { %s14334_s25 = smov %s7171_s26  ;;  %s14335_s26 = smov %s7388_s18 }
 0xab4   : > { %s14336_s27 = smov %s7378_s22  ;;  %24 = sbr.rel (!%p22_p4) target bundleno = 7 (0x7), region = 105 }
 0xabb   :  { %5379 = vsyncpa [#allocation4], 1 }
 0xabc   :  { %5381 = vsyncpa [#allocation4 + $0x1], 1 }
 0xabd   :  { %5382 = vsyncpa [#allocation7], 1 }
 0xabe   :  { %5383 = vsyncpa [#allocation10], 1 }
 0xabf   :  { %5384 = vsyncpa [#allocation5], 1 }
 0xac0   :  { %5386 = vsyncpa [#allocation5 + $0x1], 1 }

</bundles_post_ra>
